<compile_context>
chip_gen: v7x
topology: tpu7x:2x2x1
jax: 0.10.0
libtpu: 0.0.40
codegen_flags: <defaults>
</compile_context>

<pallas_src>
import functools
import math

import jax
import jax.numpy as jnp
from jax.experimental import pallas as pl
from jax.experimental.pallas import tpu as pltpu

TILE_M = 256   # rows per MXU tile (feeds the 256-wide MXU on v6e/v7x; sweep per chip)
TILE_N = 256   # output-channel tile


# ----------------------------- Pallas kernel ------------------------------- #
def _fused_conv_matmul_kernel(x_ref, w_ref, b_ref, o_ref, *, act):
    # [tm, K] @ [K, tn] on the MXU (bf16 in, f32 accumulate), fused bias + SiLU.
    acc = jnp.dot(x_ref[...], w_ref[...], preferred_element_type=jnp.float32)
    y = acc + b_ref[...]
    if act:
        y = y * jax.nn.sigmoid(y)          # SiLU (sigmoid on EUP, mul on VPU)
    o_ref[...] = y.astype(o_ref.dtype)


def fused_matmul(x, w, bias, act, out_dtype=jnp.bfloat16):
    """Y = act(x @ w + bias). x:[M,K] bf16, w:[K,N] bf16 (BN folded), bias:[1,N] f32."""
    M, K = x.shape
    N = w.shape[1]
    tm = min(TILE_M, M)        # full-dim blocks when the map is small (no padding)
    tn = min(TILE_N, N)
    grid = (pl.cdiv(M, tm), pl.cdiv(N, tn))

    # Explicit scoped-VMEM budget (double-buffered tiles + margin); the default
    # scoped limit is only 16 MiB on v5e.
    tile_bytes = 2 * (tm * K * x.dtype.itemsize
                      + K * tn * w.dtype.itemsize
                      + tn * 4
                      + tm * tn * jnp.dtype(out_dtype).itemsize)
    vmem_limit = min(64 << 20, max(16 << 20, int(1.5 * tile_bytes) + (4 << 20)))

    # TODO(synk): for very wide phi on v7x (64 MiB VMEM) add a K grid axis with
    # an f32 accumulator scratch; weights here are small enough at full K.
    return pl.pallas_call(
        functools.partial(_fused_conv_matmul_kernel, act=act),
        out_shape=jax.ShapeDtypeStruct((M, N), out_dtype),
        grid_spec=pltpu.PrefetchScalarGridSpec(
            num_scalar_prefetch=0,
            grid=grid,
            in_specs=[
                pl.BlockSpec((tm, K), lambda i, j: (i, 0)),   # patches (re-used over j)
                pl.BlockSpec((K, tn), lambda i, j: (0, j)),   # folded weights
                pl.BlockSpec((1, tn), lambda i, j: (0, j)),   # bias
            ],
            out_specs=pl.BlockSpec((tm, tn), lambda i, j: (i, j)),
        ),
        compiler_params=pltpu.CompilerParams(
            dimension_semantics=("parallel", "parallel"),
            vmem_limit_bytes=vmem_limit,
        ),
    )(x, w, bias)


# ------------------------------ conv glue ---------------------------------- #
def _im2col(x, k, stride, pad):
    # x: NHWC (bf16) -> patches [B*Ho*Wo, k*k*C] ((kh,kw) major, C fastest).
    B, H, W, C = x.shape
    if k == 1 and stride == 1 and pad == 0:
        return x.reshape(B * H * W, C), (B, H, W)
    xp = jnp.pad(x, ((0, 0), (pad, pad), (pad, pad), (0, 0)))
    Ho = (H + 2 * pad - k) // stride + 1
    Wo = (W + 2 * pad - k) // stride + 1
    cols = []
    for i in range(k):
        for j in range(k):
            cols.append(xp[:, i:i + stride * Ho:stride, j:j + stride * Wo:stride, :])
    patches = jnp.stack(cols, axis=3)                       # [B, Ho, Wo, k*k, C]
    # TODO(synk): 3x3 convs still materialize a k*k patch tensor (now in bf16);
    # a tap-accumulating kernel with shifted-window BlockSpecs would remove it.
    return patches.reshape(B * Ho * Wo, k * k * C), (B, Ho, Wo)


def conv_bn_silu(x, p, stride=1, act=True, out_dtype=jnp.bfloat16):
    # p["w"]: [k*k*Cin, Cout] bf16 with BN scale folded in; p["b"]: [1, Cout] f32.
    K, cout = p["w"].shape
    cin = x.shape[-1]
    k = math.isqrt(K // cin)
    assert k * k * cin == K
    pad = (k - 1) // 2
    cols, (B, Ho, Wo) = _im2col(x, k, stride, pad)
    y = fused_matmul(cols, p["w"], p["b"], act, out_dtype)
    return y.reshape(B, Ho, Wo, cout)


def upsample2x(x):  # nearest-neighbour, like nn.Upsample(scale_factor=2)
    return jnp.repeat(jnp.repeat(x, 2, axis=1), 2, axis=2)


# --------------------------- parameter init --------------------------------- #
def _conv_params(key, k, cin, cout, bn=True):
    kw, ks, kb = jax.random.split(key, 3)
    fan_in = k * k * cin
    w = jax.random.normal(kw, (k, k, cin, cout), jnp.float32) * (2.0 / fan_in) ** 0.5
    if bn:
        scale = 1.0 + 0.1 * jax.random.normal(ks, (cout,), jnp.float32)
    else:  # plain conv (pred heads have no BN)
        scale = jnp.ones((cout,), jnp.float32)
    bias = 0.1 * jax.random.normal(kb, (cout,), jnp.float32)
    # Fold BN scale into the weight, flatten to im2col layout, pre-cast to bf16.
    wf = (w * scale).reshape(k * k * cin, cout).astype(jnp.bfloat16)
    return {"w": wf, "b": bias.reshape(1, cout).astype(jnp.float32)}


def _fuse_preds_blockdiag(reg, obj, cls_):
    # One matmul over concat([reg_feat, cls_feat]) producing [reg(4), obj(1), cls(nc)].
    hc = reg["w"].shape[0]
    n_ro = reg["w"].shape[1] + obj["w"].shape[1]
    n_c = cls_["w"].shape[1]
    top = jnp.concatenate([reg["w"], obj["w"], jnp.zeros((hc, n_c), jnp.bfloat16)], 1)
    bot = jnp.concatenate([jnp.zeros((hc, n_ro), jnp.bfloat16), cls_["w"]], 1)
    w = jnp.concatenate([top, bot], axis=0)                  # [2*hc, 4+1+nc]
    b = jnp.concatenate([reg["b"], obj["b"], cls_["b"]], axis=1)
    return {"w": w, "b": b}


def init_yolox_params(key, num_classes, phi="nano"):
    width_dict = {"nano": 0.25, "tiny": 0.375, "s": 0.5, "m": 0.75, "l": 1.0, "x": 1.25}
    width = width_dict[phi]
    ch = lambda c: max(8, int(c * width))
    c1, c2, c3, c4, c5 = ch(64), ch(128), ch(256), ch(512), ch(1024)
    head_c = ch(256)

    keys = iter(jax.random.split(key, 64))
    nk = lambda: next(keys)

    p = {
        # backbone (CSPDarknet skeleton)
        "stem": _conv_params(nk(), 3, 3, c1),
        "dark2": _conv_params(nk(), 3, c1, c2),
        "dark3": _conv_params(nk(), 3, c2, c3),
        "dark4": _conv_params(nk(), 3, c3, c4),
        "dark5": _conv_params(nk(), 3, c4, c5),
        # PAFPN neck
        "lateral0": _conv_params(nk(), 1, c5, c4),
        "c3_p4": _conv_params(nk(), 3, 2 * c4, c4),
        "reduce1": _conv_params(nk(), 1, c4, c3),
        "c3_p3": _conv_params(nk(), 3, 2 * c3, c3),
        "bu_conv2": _conv_params(nk(), 3, c3, c3),
        "c3_n3": _conv_params(nk(), 3, 2 * c3, c4),
        "bu_conv1": _conv_params(nk(), 3, c4, c4),
        "c3_n4": _conv_params(nk(), 3, 2 * c4, c5),
        "head": [],
    }
    for cin in (c3, c4, c5):  # per-level decoupled head
        reg_pred = _conv_params(nk(), 1, head_c, 4, bn=False)
        obj_pred = _conv_params(nk(), 1, head_c, 1, bn=False)
        cls_pred = _conv_params(nk(), 1, head_c, num_classes, bn=False)
        p["head"].append({
            "stem": _conv_params(nk(), 1, cin, head_c),
            "cls_conv0": _conv_params(nk(), 3, head_c, head_c),
            "cls_conv1": _conv_params(nk(), 3, head_c, head_c),
            "reg_conv0": _conv_params(nk(), 3, head_c, head_c),
            "reg_conv1": _conv_params(nk(), 3, head_c, head_c),
            "pred": _fuse_preds_blockdiag(reg_pred, obj_pred, cls_pred),
        })
    return p


# ------------------------------ forward ------------------------------------- #
@jax.jit
def yolox_forward(params, x_nchw):
    """x_nchw: [B, 3, H, W] -> list of 3 NCHW maps [B, 4+1+nc, H/s, W/s], s=8,16,32."""
    x = jnp.transpose(x_nchw, (0, 2, 3, 1)).astype(jnp.bfloat16)   # -> NHWC bf16

    # backbone
    s = conv_bn_silu(x, params["stem"], stride=2)        # H/2
    d2 = conv_bn_silu(s, params["dark2"], stride=2)      # H/4
    f3 = conv_bn_silu(d2, params["dark3"], stride=2)     # H/8   (dark3)
    f4 = conv_bn_silu(f3, params["dark4"], stride=2)     # H/16  (dark4)
    f5 = conv_bn_silu(f4, params["dark5"], stride=2)     # H/32  (dark5)

    # PAFPN: top-down
    p5 = conv_bn_silu(f5, params["lateral0"], 1)
    p4 = conv_bn_silu(jnp.concatenate([upsample2x(p5), f4], -1), params["c3_p4"], 1)
    p4r = conv_bn_silu(p4, params["reduce1"], 1)
    pan_out2 = conv_bn_silu(jnp.concatenate([upsample2x(p4r), f3], -1), params["c3_p3"], 1)
    # bottom-up
    dn2 = conv_bn_silu(pan_out2, params["bu_conv2"], stride=2)
    pan_out1 = conv_bn_silu(jnp.concatenate([dn2, p4r], -1), params["c3_n3"], 1)
    dn1 = conv_bn_silu(pan_out1, params["bu_conv1"], stride=2)
    pan_out0 = conv_bn_silu(jnp.concatenate([dn1, p5], -1), params["c3_n4"], 1)

    # decoupled head
    # TODO(synk): stem + branch 3x3 convs at the H/16 and H/32 levels could be
    # chained inside one kernel (VMEM-resident features) to cut launch overhead.
    outputs = []
    for lvl, feat in enumerate((pan_out2, pan_out1, pan_out0)):
        hp = params["head"][lvl]
        t = conv_bn_silu(feat, hp["stem"], 1)
        cf = conv_bn_silu(conv_bn_silu(t, hp["cls_conv0"], 1), hp["cls_conv1"], 1)
        rf = conv_bn_silu(conv_bn_silu(t, hp["reg_conv0"], 1), hp["reg_conv1"], 1)
        # fused reg/obj/cls prediction: one matmul, output already [reg, obj, cls]
        pred_in = jnp.concatenate([rf, cf], axis=-1)
        out = conv_bn_silu(pred_in, hp["pred"], 1, act=False, out_dtype=jnp.float32)
        outputs.append(jnp.transpose(out, (0, 3, 1, 2)))     # -> NCHW like PyTorch
    return outputs


# ------------------------------- main ---------------------------------------- #
if __name__ == "__main__":
    # TODO(synk): Decode / NMS post-processing lives in .predict(), not forward();
    # only the forward pass (backbone + head) is implemented here.
    num_classes = 4
    phi = "nano"
    B, C, H, W = 2, 3, 64, 64  # small stand-in for 640x640 (must be /32)

    key = jax.random.PRNGKey(0)
    pkey, xkey = jax.random.split(key)
    params = init_yolox_params(pkey, num_classes, phi)
    x = jax.random.normal(xkey, (B, C, H, W), jnp.float32)

    outs = yolox_forward(params, x)
    outs = jax.block_until_ready(outs)

    expected = [(B, 5 + num_classes, H // 8, W // 8),
                (B, 5 + num_classes, H // 16, W // 16),
                (B, 5 + num_classes, H // 32, W // 32)]
    assert [o.shape for o in outs] == expected, [o.shape for o in outs]
    assert all(o.dtype == jnp.float32 for o in outs)
    assert all(bool(jnp.all(jnp.isfinite(o))) for o in outs)
    print("KERNEL_OK")
</pallas_src>

<mosaic_0001>
module attributes {stable_mosaic.version = 11 : i64} {
  func.func @_fused_conv_matmul_kernel(%arg0: i32, %arg1: i32, %arg2: memref<256x27xbf16, #tpu.memory_space<vmem>>, %arg3: memref<27x16xbf16, #tpu.memory_space<vmem>>, %arg4: memref<1x16xf32, #tpu.memory_space<vmem>>, %arg5: memref<256x16xbf16, #tpu.memory_space<vmem>>) attributes {dimension_semantics = [#tpu.dimension_semantics<parallel>, #tpu.dimension_semantics<parallel>], iteration_bounds = array<i64: 8, 1>, scalar_prefetch = 0 : i64, scratch_operands = 0 : i64, tpu.core_type = #tpu.core_type<tc>, window_params = [{transform_indices = @transform_0, window_bounds = array<i64: 256, 27>}, {transform_indices = @transform_1, window_bounds = array<i64: 27, 16>}, {transform_indices = @transform_2, window_bounds = array<i64: 1, 16>}, {transform_indices = @transform_3, window_bounds = array<i64: 256, 16>}]} {
    %c0 = arith.constant 0 : index
    %c0_0 = arith.constant 0 : index
    %0 = vector.load %arg2[%c0, %c0_0] : memref<256x27xbf16, #tpu.memory_space<vmem>>, vector<256x27xbf16>
    %c0_1 = arith.constant 0 : index
    %c0_2 = arith.constant 0 : index
    %1 = vector.load %arg3[%c0_1, %c0_2] : memref<27x16xbf16, #tpu.memory_space<vmem>>, vector<27x16xbf16>
    %cst = arith.constant dense<0.000000e+00> : vector<256x16xf32>
    %2 = tpu.matmul %0, %1, %cst {dimension_numbers = #tpu.dot_dimension_numbers<[1], [0], [0], [1], [0, 0, 1, 1], [], []>} : vector<256x27xbf16>, vector<27x16xbf16>, vector<256x16xf32> -> vector<256x16xf32>
    %c0_3 = arith.constant 0 : index
    %c0_4 = arith.constant 0 : index
    %3 = vector.load %arg4[%c0_3, %c0_4] : memref<1x16xf32, #tpu.memory_space<vmem>>, vector<1x16xf32>
    %4 = vector.broadcast %3 : vector<1x16xf32> to vector<256x16xf32>
    %5 = arith.addf %2, %4 : vector<256x16xf32>
    %6 = arith.negf %5 : vector<256x16xf32>
    %7 = math.exp %6 : vector<256x16xf32>
    %cst_5 = arith.constant 1.000000e+00 : f32
    %8 = vector.broadcast %cst_5 : f32 to vector<256x16xf32>
    %9 = arith.addf %8, %7 : vector<256x16xf32>
    %10 = arith.divf %8, %9 : vector<256x16xf32>
    %11 = arith.mulf %5, %10 : vector<256x16xf32>
    %12 = arith.truncf %11 : vector<256x16xf32> to vector<256x16xbf16>
    %c0_6 = arith.constant 0 : index
    %c0_7 = arith.constant 0 : index
    %13 = vector.load %arg5[%c0_6, %c0_7] : memref<256x16xbf16, #tpu.memory_space<vmem>>, vector<256x16xbf16>
    tpu.vector_store %arg5[%c0_6, %c0_7], %12 {strides = array<i32>} : memref<256x16xbf16, #tpu.memory_space<vmem>>, vector<256x16xbf16>,
    return
  }
  func.func @transform_0(%arg0: i32, %arg1: i32) -> (i32, i32) {
    %c0_i32 = arith.constant 0 : i32
    %c0_i32_0 = arith.constant 0 : i32
    return %arg0, %c0_i32 : i32, i32
  }
  func.func @transform_1(%arg0: i32, %arg1: i32) -> (i32, i32) {
    %c0_i32 = arith.constant 0 : i32
    %c0_i32_0 = arith.constant 0 : i32
    return %c0_i32, %arg1 : i32, i32
  }
  func.func @transform_2(%arg0: i32, %arg1: i32) -> (i32, i32) {
    %c0_i32 = arith.constant 0 : i32
    %c0_i32_0 = arith.constant 0 : i32
    return %c0_i32, %arg1 : i32, i32
  }
  func.func @transform_3(%arg0: i32, %arg1: i32) -> (i32, i32) {
    %c0_i32 = arith.constant 0 : i32
    return %arg0, %arg1 : i32, i32
  }
}

module attributes {stable_mosaic.version = 11 : i64} {
  func.func @_fused_conv_matmul_kernel(%arg0: i32, %arg1: i32, %arg2: memref<256x144xbf16, #tpu.memory_space<vmem>>, %arg3: memref<144x32xbf16, #tpu.memory_space<vmem>>, %arg4: memref<1x32xf32, #tpu.memory_space<vmem>>, %arg5: memref<256x32xbf16, #tpu.memory_space<vmem>>) attributes {dimension_semantics = [#tpu.dimension_semantics<parallel>, #tpu.dimension_semantics<parallel>], iteration_bounds = array<i64: 2, 1>, scalar_prefetch = 0 : i64, scratch_operands = 0 : i64, tpu.core_type = #tpu.core_type<tc>, window_params = [{transform_indices = @transform_0, window_bounds = array<i64: 256, 144>}, {transform_indices = @transform_1, window_bounds = array<i64: 144, 32>}, {transform_indices = @transform_2, window_bounds = array<i64: 1, 32>}, {transform_indices = @transform_3, window_bounds = array<i64: 256, 32>}]} {
    %c0 = arith.constant 0 : index
    %c0_0 = arith.constant 0 : index
    %0 = vector.load %arg2[%c0, %c0_0] : memref<256x144xbf16, #tpu.memory_space<vmem>>, vector<256x144xbf16>
    %c0_1 = arith.constant 0 : index
    %c0_2 = arith.constant 0 : index
    %1 = vector.load %arg3[%c0_1, %c0_2] : memref<144x32xbf16, #tpu.memory_space<vmem>>, vector<144x32xbf16>
    %cst = arith.constant dense<0.000000e+00> : vector<256x32xf32>
    %2 = tpu.matmul %0, %1, %cst {dimension_numbers = #tpu.dot_dimension_numbers<[1], [0], [0], [1], [0, 0, 1, 1], [], []>} : vector<256x144xbf16>, vector<144x32xbf16>, vector<256x32xf32> -> vector<256x32xf32>
    %c0_3 = arith.constant 0 : index
    %c0_4 = arith.constant 0 : index
    %3 = vector.load %arg4[%c0_3, %c0_4] : memref<1x32xf32, #tpu.memory_space<vmem>>, vector<1x32xf32>
    %4 = vector.broadcast %3 : vector<1x32xf32> to vector<256x32xf32>
    %5 = arith.addf %2, %4 : vector<256x32xf32>
    %6 = arith.negf %5 : vector<256x32xf32>
    %7 = math.exp %6 : vector<256x32xf32>
    %cst_5 = arith.constant 1.000000e+00 : f32
    %8 = vector.broadcast %cst_5 : f32 to vector<256x32xf32>
    %9 = arith.addf %8, %7 : vector<256x32xf32>
    %10 = arith.divf %8, %9 : vector<256x32xf32>
    %11 = arith.mulf %5, %10 : vector<256x32xf32>
    %12 = arith.truncf %11 : vector<256x32xf32> to vector<256x32xbf16>
    %c0_6 = arith.constant 0 : index
    %c0_7 = arith.constant 0 : index
    %13 = vector.load %arg5[%c0_6, %c0_7] : memref<256x32xbf16, #tpu.memory_space<vmem>>, vector<256x32xbf16>
    tpu.vector_store %arg5[%c0_6, %c0_7], %12 {strides = array<i32>} : memref<256x32xbf16, #tpu.memory_space<vmem>>, vector<256x32xbf16>,
    return
  }
  func.func @transform_0(%arg0: i32, %arg1: i32) -> (i32, i32) {
    %c0_i32 = arith.constant 0 : i32
    %c0_i32_0 = arith.constant 0 : i32
    return %arg0, %c0_i32 : i32, i32
  }
  func.func @transform_1(%arg0: i32, %arg1: i32) -> (i32, i32) {
    %c0_i32 = arith.constant 0 : i32
    %c0_i32_0 = arith.constant 0 : i32
    return %c0_i32, %arg1 : i32, i32
  }
  func.func @transform_2(%arg0: i32, %arg1: i32) -> (i32, i32) {
    %c0_i32 = arith.constant 0 : i32
    %c0_i32_0 = arith.constant 0 : i32
    return %c0_i32, %arg1 : i32, i32
  }
  func.func @transform_3(%arg0: i32, %arg1: i32) -> (i32, i32) {
    %c0_i32 = arith.constant 0 : i32
    return %arg0, %arg1 : i32, i32
  }
}

module attributes {stable_mosaic.version = 11 : i64} {
  func.func @_fused_conv_matmul_kernel(%arg0: i32, %arg1: i32, %arg2: memref<128x288xbf16, #tpu.memory_space<vmem>>, %arg3: memref<288x64xbf16, #tpu.memory_space<vmem>>, %arg4: memref<1x64xf32, #tpu.memory_space<vmem>>, %arg5: memref<128x64xbf16, #tpu.memory_space<vmem>>) attributes {dimension_semantics = [#tpu.dimension_semantics<parallel>, #tpu.dimension_semantics<parallel>], iteration_bounds = array<i64: 1, 1>, scalar_prefetch = 0 : i64, scratch_operands = 0 : i64, tpu.core_type = #tpu.core_type<tc>, window_params = [{transform_indices = @transform_0, window_bounds = array<i64: 128, 288>}, {transform_indices = @transform_1, window_bounds = array<i64: 288, 64>}, {transform_indices = @transform_2, window_bounds = array<i64: 1, 64>}, {transform_indices = @transform_3, window_bounds = array<i64: 128, 64>}]} {
    %c0 = arith.constant 0 : index
    %c0_0 = arith.constant 0 : index
    %0 = vector.load %arg2[%c0, %c0_0] : memref<128x288xbf16, #tpu.memory_space<vmem>>, vector<128x288xbf16>
    %c0_1 = arith.constant 0 : index
    %c0_2 = arith.constant 0 : index
    %1 = vector.load %arg3[%c0_1, %c0_2] : memref<288x64xbf16, #tpu.memory_space<vmem>>, vector<288x64xbf16>
    %cst = arith.constant dense<0.000000e+00> : vector<128x64xf32>
    %2 = tpu.matmul %0, %1, %cst {dimension_numbers = #tpu.dot_dimension_numbers<[1], [0], [0], [1], [0, 0, 1, 1], [], []>} : vector<128x288xbf16>, vector<288x64xbf16>, vector<128x64xf32> -> vector<128x64xf32>
    %c0_3 = arith.constant 0 : index
    %c0_4 = arith.constant 0 : index
    %3 = vector.load %arg4[%c0_3, %c0_4] : memref<1x64xf32, #tpu.memory_space<vmem>>, vector<1x64xf32>
    %4 = vector.broadcast %3 : vector<1x64xf32> to vector<128x64xf32>
    %5 = arith.addf %2, %4 : vector<128x64xf32>
    %6 = arith.negf %5 : vector<128x64xf32>
    %7 = math.exp %6 : vector<128x64xf32>
    %cst_5 = arith.constant 1.000000e+00 : f32
    %8 = vector.broadcast %cst_5 : f32 to vector<128x64xf32>
    %9 = arith.addf %8, %7 : vector<128x64xf32>
    %10 = arith.divf %8, %9 : vector<128x64xf32>
    %11 = arith.mulf %5, %10 : vector<128x64xf32>
    %12 = arith.truncf %11 : vector<128x64xf32> to vector<128x64xbf16>
    %c0_6 = arith.constant 0 : index
    %c0_7 = arith.constant 0 : index
    %13 = vector.load %arg5[%c0_6, %c0_7] : memref<128x64xbf16, #tpu.memory_space<vmem>>, vector<128x64xbf16>
    tpu.vector_store %arg5[%c0_6, %c0_7], %12 {strides = array<i32>} : memref<128x64xbf16, #tpu.memory_space<vmem>>, vector<128x64xbf16>,
    return
  }
  func.func @transform_0(%arg0: i32, %arg1: i32) -> (i32, i32) {
    %c0_i32 = arith.constant 0 : i32
    %c0_i32_0 = arith.constant 0 : i32
    return %arg0, %c0_i32 : i32, i32
  }
  func.func @transform_1(%arg0: i32, %arg1: i32) -> (i32, i32) {
    %c0_i32 = arith.constant 0 : i32
    %c0_i32_0 = arith.constant 0 : i32
    return %c0_i32, %arg1 : i32, i32
  }
  func.func @transform_2(%arg0: i32, %arg1: i32) -> (i32, i32) {
    %c0_i32 = arith.constant 0 : i32
    %c0_i32_0 = arith.constant 0 : i32
    return %c0_i32, %arg1 : i32, i32
  }
  func.func @transform_3(%arg0: i32, %arg1: i32) -> (i32, i32) {
    %c0_i32 = arith.constant 0 : i32
    return %arg0, %arg1 : i32, i32
  }
}

module attributes {stable_mosaic.version = 11 : i64} {
  func.func @_fused_conv_matmul_kernel(%arg0: i32, %arg1: i32, %arg2: memref<32x576xbf16, #tpu.memory_space<vmem>>, %arg3: memref<576x128xbf16, #tpu.memory_space<vmem>>, %arg4: memref<1x128xf32, #tpu.memory_space<vmem>>, %arg5: memref<32x128xbf16, #tpu.memory_space<vmem>>) attributes {dimension_semantics = [#tpu.dimension_semantics<parallel>, #tpu.dimension_semantics<parallel>], iteration_bounds = array<i64: 1, 1>, scalar_prefetch = 0 : i64, scratch_operands = 0 : i64, tpu.core_type = #tpu.core_type<tc>, window_params = [{transform_indices = @transform_0, window_bounds = array<i64: 32, 576>}, {transform_indices = @transform_1, window_bounds = array<i64: 576, 128>}, {transform_indices = @transform_2, window_bounds = array<i64: 1, 128>}, {transform_indices = @transform_3, window_bounds = array<i64: 32, 128>}]} {
    %c0 = arith.constant 0 : index
    %c0_0 = arith.constant 0 : index
    %0 = vector.load %arg2[%c0, %c0_0] : memref<32x576xbf16, #tpu.memory_space<vmem>>, vector<32x576xbf16>
    %c0_1 = arith.constant 0 : index
    %c0_2 = arith.constant 0 : index
    %1 = vector.load %arg3[%c0_1, %c0_2] : memref<576x128xbf16, #tpu.memory_space<vmem>>, vector<576x128xbf16>
    %cst = arith.constant dense<0.000000e+00> : vector<32x128xf32>
    %2 = tpu.matmul %0, %1, %cst {dimension_numbers = #tpu.dot_dimension_numbers<[1], [0], [0], [1], [0, 0, 1, 1], [], []>} : vector<32x576xbf16>, vector<576x128xbf16>, vector<32x128xf32> -> vector<32x128xf32>
    %c0_3 = arith.constant 0 : index
    %c0_4 = arith.constant 0 : index
    %3 = vector.load %arg4[%c0_3, %c0_4] : memref<1x128xf32, #tpu.memory_space<vmem>>, vector<1x128xf32>
    %4 = vector.broadcast %3 : vector<1x128xf32> to vector<32x128xf32>
    %5 = arith.addf %2, %4 : vector<32x128xf32>
    %6 = arith.negf %5 : vector<32x128xf32>
    %7 = math.exp %6 : vector<32x128xf32>
    %cst_5 = arith.constant 1.000000e+00 : f32
    %8 = vector.broadcast %cst_5 : f32 to vector<32x128xf32>
    %9 = arith.addf %8, %7 : vector<32x128xf32>
    %10 = arith.divf %8, %9 : vector<32x128xf32>
    %11 = arith.mulf %5, %10 : vector<32x128xf32>
    %12 = arith.truncf %11 : vector<32x128xf32> to vector<32x128xbf16>
    %c0_6 = arith.constant 0 : index
    %c0_7 = arith.constant 0 : index
    %13 = vector.load %arg5[%c0_6, %c0_7] : memref<32x128xbf16, #tpu.memory_space<vmem>>, vector<32x128xbf16>
    tpu.vector_store %arg5[%c0_6, %c0_7], %12 {strides = array<i32>} : memref<32x128xbf16, #tpu.memory_space<vmem>>, vector<32x128xbf16>,
    return
  }
  func.func @transform_0(%arg0: i32, %arg1: i32) -> (i32, i32) {
    %c0_i32 = arith.constant 0 : i32
    %c0_i32_0 = arith.constant 0 : i32
    return %arg0, %c0_i32 : i32, i32
  }
  func.func @transform_1(%arg0: i32, %arg1: i32) -> (i32, i32) {
    %c0_i32 = arith.constant 0 : i32
    %c0_i32_0 = arith.constant 0 : i32
    return %c0_i32, %arg1 : i32, i32
  }
  func.func @transform_2(%arg0: i32, %arg1: i32) -> (i32, i32) {
    %c0_i32 = arith.constant 0 : i32
    %c0_i32_0 = arith.constant 0 : i32
    return %c0_i32, %arg1 : i32, i32
  }
  func.func @transform_3(%arg0: i32, %arg1: i32) -> (i32, i32) {
    %c0_i32 = arith.constant 0 : i32
    return %arg0, %arg1 : i32, i32
  }
}

module attributes {stable_mosaic.version = 11 : i64} {
  func.func @_fused_conv_matmul_kernel(%arg0: i32, %arg1: i32, %arg2: memref<8x1152xbf16, #tpu.memory_space<vmem>>, %arg3: memref<1152x256xbf16, #tpu.memory_space<vmem>>, %arg4: memref<1x256xf32, #tpu.memory_space<vmem>>, %arg5: memref<8x256xbf16, #tpu.memory_space<vmem>>) attributes {dimension_semantics = [#tpu.dimension_semantics<parallel>, #tpu.dimension_semantics<parallel>], iteration_bounds = array<i64: 1, 1>, scalar_prefetch = 0 : i64, scratch_operands = 0 : i64, tpu.core_type = #tpu.core_type<tc>, window_params = [{transform_indices = @transform_0, window_bounds = array<i64: 8, 1152>}, {transform_indices = @transform_1, window_bounds = array<i64: 1152, 256>}, {transform_indices = @transform_2, window_bounds = array<i64: 1, 256>}, {transform_indices = @transform_3, window_bounds = array<i64: 8, 256>}]} {
    %c0 = arith.constant 0 : index
    %c0_0 = arith.constant 0 : index
    %0 = vector.load %arg2[%c0, %c0_0] : memref<8x1152xbf16, #tpu.memory_space<vmem>>, vector<8x1152xbf16>
    %c0_1 = arith.constant 0 : index
    %c0_2 = arith.constant 0 : index
    %1 = vector.load %arg3[%c0_1, %c0_2] : memref<1152x256xbf16, #tpu.memory_space<vmem>>, vector<1152x256xbf16>
    %cst = arith.constant dense<0.000000e+00> : vector<8x256xf32>
    %2 = tpu.matmul %0, %1, %cst {dimension_numbers = #tpu.dot_dimension_numbers<[1], [0], [0], [1], [0, 0, 1, 1], [], []>} : vector<8x1152xbf16>, vector<1152x256xbf16>, vector<8x256xf32> -> vector<8x256xf32>
    %c0_3 = arith.constant 0 : index
    %c0_4 = arith.constant 0 : index
    %3 = vector.load %arg4[%c0_3, %c0_4] : memref<1x256xf32, #tpu.memory_space<vmem>>, vector<1x256xf32>
    %4 = vector.broadcast %3 : vector<1x256xf32> to vector<8x256xf32>
    %5 = arith.addf %2, %4 : vector<8x256xf32>
    %6 = arith.negf %5 : vector<8x256xf32>
    %7 = math.exp %6 : vector<8x256xf32>
    %cst_5 = arith.constant 1.000000e+00 : f32
    %8 = vector.broadcast %cst_5 : f32 to vector<8x256xf32>
    %9 = arith.addf %8, %7 : vector<8x256xf32>
    %10 = arith.divf %8, %9 : vector<8x256xf32>
    %11 = arith.mulf %5, %10 : vector<8x256xf32>
    %12 = arith.truncf %11 : vector<8x256xf32> to vector<8x256xbf16>
    %c0_6 = arith.constant 0 : index
    %c0_7 = arith.constant 0 : index
    %13 = vector.load %arg5[%c0_6, %c0_7] : memref<8x256xbf16, #tpu.memory_space<vmem>>, vector<8x256xbf16>
    tpu.vector_store %arg5[%c0_6, %c0_7], %12 {strides = array<i32>} : memref<8x256xbf16, #tpu.memory_space<vmem>>, vector<8x256xbf16>,
    return
  }
  func.func @transform_0(%arg0: i32, %arg1: i32) -> (i32, i32) {
    %c0_i32 = arith.constant 0 : i32
    %c0_i32_0 = arith.constant 0 : i32
    return %arg0, %c0_i32 : i32, i32
  }
  func.func @transform_1(%arg0: i32, %arg1: i32) -> (i32, i32) {
    %c0_i32 = arith.constant 0 : i32
    %c0_i32_0 = arith.constant 0 : i32
    return %c0_i32, %arg1 : i32, i32
  }
  func.func @transform_2(%arg0: i32, %arg1: i32) -> (i32, i32) {
    %c0_i32 = arith.constant 0 : i32
    %c0_i32_0 = arith.constant 0 : i32
    return %c0_i32, %arg1 : i32, i32
  }
  func.func @transform_3(%arg0: i32, %arg1: i32) -> (i32, i32) {
    %c0_i32 = arith.constant 0 : i32
    return %arg0, %arg1 : i32, i32
  }
}

module attributes {stable_mosaic.version = 11 : i64} {
  func.func @_fused_conv_matmul_kernel(%arg0: i32, %arg1: i32, %arg2: memref<8x256xbf16, #tpu.memory_space<vmem>>, %arg3: memref<256x128xbf16, #tpu.memory_space<vmem>>, %arg4: memref<1x128xf32, #tpu.memory_space<vmem>>, %arg5: memref<8x128xbf16, #tpu.memory_space<vmem>>) attributes {dimension_semantics = [#tpu.dimension_semantics<parallel>, #tpu.dimension_semantics<parallel>], iteration_bounds = array<i64: 1, 1>, scalar_prefetch = 0 : i64, scratch_operands = 0 : i64, tpu.core_type = #tpu.core_type<tc>, window_params = [{transform_indices = @transform_0, window_bounds = array<i64: 8, 256>}, {transform_indices = @transform_1, window_bounds = array<i64: 256, 128>}, {transform_indices = @transform_2, window_bounds = array<i64: 1, 128>}, {transform_indices = @transform_3, window_bounds = array<i64: 8, 128>}]} {
    %c0 = arith.constant 0 : index
    %c0_0 = arith.constant 0 : index
    %0 = vector.load %arg2[%c0, %c0_0] : memref<8x256xbf16, #tpu.memory_space<vmem>>, vector<8x256xbf16>
    %c0_1 = arith.constant 0 : index
    %c0_2 = arith.constant 0 : index
    %1 = vector.load %arg3[%c0_1, %c0_2] : memref<256x128xbf16, #tpu.memory_space<vmem>>, vector<256x128xbf16>
    %cst = arith.constant dense<0.000000e+00> : vector<8x128xf32>
    %2 = tpu.matmul %0, %1, %cst {dimension_numbers = #tpu.dot_dimension_numbers<[1], [0], [0], [1], [0, 0, 1, 1], [], []>} : vector<8x256xbf16>, vector<256x128xbf16>, vector<8x128xf32> -> vector<8x128xf32>
    %c0_3 = arith.constant 0 : index
    %c0_4 = arith.constant 0 : index
    %3 = vector.load %arg4[%c0_3, %c0_4] : memref<1x128xf32, #tpu.memory_space<vmem>>, vector<1x128xf32>
    %4 = vector.broadcast %3 : vector<1x128xf32> to vector<8x128xf32>
    %5 = arith.addf %2, %4 : vector<8x128xf32>
    %6 = arith.negf %5 : vector<8x128xf32>
    %7 = math.exp %6 : vector<8x128xf32>
    %cst_5 = arith.constant 1.000000e+00 : f32
    %8 = vector.broadcast %cst_5 : f32 to vector<8x128xf32>
    %9 = arith.addf %8, %7 : vector<8x128xf32>
    %10 = arith.divf %8, %9 : vector<8x128xf32>
    %11 = arith.mulf %5, %10 : vector<8x128xf32>
    %12 = arith.truncf %11 : vector<8x128xf32> to vector<8x128xbf16>
    %c0_6 = arith.constant 0 : index
    %c0_7 = arith.constant 0 : index
    %13 = vector.load %arg5[%c0_6, %c0_7] : memref<8x128xbf16, #tpu.memory_space<vmem>>, vector<8x128xbf16>
    tpu.vector_store %arg5[%c0_6, %c0_7], %12 {strides = array<i32>} : memref<8x128xbf16, #tpu.memory_space<vmem>>, vector<8x128xbf16>,
    return
  }
  func.func @transform_0(%arg0: i32, %arg1: i32) -> (i32, i32) {
    %c0_i32 = arith.constant 0 : i32
    %c0_i32_0 = arith.constant 0 : i32
    return %arg0, %c0_i32 : i32, i32
  }
  func.func @transform_1(%arg0: i32, %arg1: i32) -> (i32, i32) {
    %c0_i32 = arith.constant 0 : i32
    %c0_i32_0 = arith.constant 0 : i32
    return %c0_i32, %arg1 : i32, i32
  }
  func.func @transform_2(%arg0: i32, %arg1: i32) -> (i32, i32) {
    %c0_i32 = arith.constant 0 : i32
    %c0_i32_0 = arith.constant 0 : i32
    return %c0_i32, %arg1 : i32, i32
  }
  func.func @transform_3(%arg0: i32, %arg1: i32) -> (i32, i32) {
    %c0_i32 = arith.constant 0 : i32
    return %arg0, %arg1 : i32, i32
  }
}

module attributes {stable_mosaic.version = 11 : i64} {
  func.func @_fused_conv_matmul_kernel(%arg0: i32, %arg1: i32, %arg2: memref<32x2304xbf16, #tpu.memory_space<vmem>>, %arg3: memref<2304x128xbf16, #tpu.memory_space<vmem>>, %arg4: memref<1x128xf32, #tpu.memory_space<vmem>>, %arg5: memref<32x128xbf16, #tpu.memory_space<vmem>>) attributes {dimension_semantics = [#tpu.dimension_semantics<parallel>, #tpu.dimension_semantics<parallel>], iteration_bounds = array<i64: 1, 1>, scalar_prefetch = 0 : i64, scratch_operands = 0 : i64, tpu.core_type = #tpu.core_type<tc>, window_params = [{transform_indices = @transform_0, window_bounds = array<i64: 32, 2304>}, {transform_indices = @transform_1, window_bounds = array<i64: 2304, 128>}, {transform_indices = @transform_2, window_bounds = array<i64: 1, 128>}, {transform_indices = @transform_3, window_bounds = array<i64: 32, 128>}]} {
    %c0 = arith.constant 0 : index
    %c0_0 = arith.constant 0 : index
    %0 = vector.load %arg2[%c0, %c0_0] : memref<32x2304xbf16, #tpu.memory_space<vmem>>, vector<32x2304xbf16>
    %c0_1 = arith.constant 0 : index
    %c0_2 = arith.constant 0 : index
    %1 = vector.load %arg3[%c0_1, %c0_2] : memref<2304x128xbf16, #tpu.memory_space<vmem>>, vector<2304x128xbf16>
    %cst = arith.constant dense<0.000000e+00> : vector<32x128xf32>
    %2 = tpu.matmul %0, %1, %cst {dimension_numbers = #tpu.dot_dimension_numbers<[1], [0], [0], [1], [0, 0, 1, 1], [], []>} : vector<32x2304xbf16>, vector<2304x128xbf16>, vector<32x128xf32> -> vector<32x128xf32>
    %c0_3 = arith.constant 0 : index
    %c0_4 = arith.constant 0 : index
    %3 = vector.load %arg4[%c0_3, %c0_4] : memref<1x128xf32, #tpu.memory_space<vmem>>, vector<1x128xf32>
    %4 = vector.broadcast %3 : vector<1x128xf32> to vector<32x128xf32>
    %5 = arith.addf %2, %4 : vector<32x128xf32>
    %6 = arith.negf %5 : vector<32x128xf32>
    %7 = math.exp %6 : vector<32x128xf32>
    %cst_5 = arith.constant 1.000000e+00 : f32
    %8 = vector.broadcast %cst_5 : f32 to vector<32x128xf32>
    %9 = arith.addf %8, %7 : vector<32x128xf32>
    %10 = arith.divf %8, %9 : vector<32x128xf32>
    %11 = arith.mulf %5, %10 : vector<32x128xf32>
    %12 = arith.truncf %11 : vector<32x128xf32> to vector<32x128xbf16>
    %c0_6 = arith.constant 0 : index
    %c0_7 = arith.constant 0 : index
    %13 = vector.load %arg5[%c0_6, %c0_7] : memref<32x128xbf16, #tpu.memory_space<vmem>>, vector<32x128xbf16>
    tpu.vector_store %arg5[%c0_6, %c0_7], %12 {strides = array<i32>} : memref<32x128xbf16, #tpu.memory_space<vmem>>, vector<32x128xbf16>,
    return
  }
  func.func @transform_0(%arg0: i32, %arg1: i32) -> (i32, i32) {
    %c0_i32 = arith.constant 0 : i32
    %c0_i32_0 = arith.constant 0 : i32
    return %arg0, %c0_i32 : i32, i32
  }
  func.func @transform_1(%arg0: i32, %arg1: i32) -> (i32, i32) {
    %c0_i32 = arith.constant 0 : i32
    %c0_i32_0 = arith.constant 0 : i32
    return %c0_i32, %arg1 : i32, i32
  }
  func.func @transform_2(%arg0: i32, %arg1: i32) -> (i32, i32) {
    %c0_i32 = arith.constant 0 : i32
    %c0_i32_0 = arith.constant 0 : i32
    return %c0_i32, %arg1 : i32, i32
  }
  func.func @transform_3(%arg0: i32, %arg1: i32) -> (i32, i32) {
    %c0_i32 = arith.constant 0 : i32
    return %arg0, %arg1 : i32, i32
  }
}

module attributes {stable_mosaic.version = 11 : i64} {
  func.func @_fused_conv_matmul_kernel(%arg0: i32, %arg1: i32, %arg2: memref<32x128xbf16, #tpu.memory_space<vmem>>, %arg3: memref<128x64xbf16, #tpu.memory_space<vmem>>, %arg4: memref<1x64xf32, #tpu.memory_space<vmem>>, %arg5: memref<32x64xbf16, #tpu.memory_space<vmem>>) attributes {dimension_semantics = [#tpu.dimension_semantics<parallel>, #tpu.dimension_semantics<parallel>], iteration_bounds = array<i64: 1, 1>, scalar_prefetch = 0 : i64, scratch_operands = 0 : i64, tpu.core_type = #tpu.core_type<tc>, window_params = [{transform_indices = @transform_0, window_bounds = array<i64: 32, 128>}, {transform_indices = @transform_1, window_bounds = array<i64: 128, 64>}, {transform_indices = @transform_2, window_bounds = array<i64: 1, 64>}, {transform_indices = @transform_3, window_bounds = array<i64: 32, 64>}]} {
    %c0 = arith.constant 0 : index
    %c0_0 = arith.constant 0 : index
    %0 = vector.load %arg2[%c0, %c0_0] : memref<32x128xbf16, #tpu.memory_space<vmem>>, vector<32x128xbf16>
    %c0_1 = arith.constant 0 : index
    %c0_2 = arith.constant 0 : index
    %1 = vector.load %arg3[%c0_1, %c0_2] : memref<128x64xbf16, #tpu.memory_space<vmem>>, vector<128x64xbf16>
    %cst = arith.constant dense<0.000000e+00> : vector<32x64xf32>
    %2 = tpu.matmul %0, %1, %cst {dimension_numbers = #tpu.dot_dimension_numbers<[1], [0], [0], [1], [0, 0, 1, 1], [], []>} : vector<32x128xbf16>, vector<128x64xbf16>, vector<32x64xf32> -> vector<32x64xf32>
    %c0_3 = arith.constant 0 : index
    %c0_4 = arith.constant 0 : index
    %3 = vector.load %arg4[%c0_3, %c0_4] : memref<1x64xf32, #tpu.memory_space<vmem>>, vector<1x64xf32>
    %4 = vector.broadcast %3 : vector<1x64xf32> to vector<32x64xf32>
    %5 = arith.addf %2, %4 : vector<32x64xf32>
    %6 = arith.negf %5 : vector<32x64xf32>
    %7 = math.exp %6 : vector<32x64xf32>
    %cst_5 = arith.constant 1.000000e+00 : f32
    %8 = vector.broadcast %cst_5 : f32 to vector<32x64xf32>
    %9 = arith.addf %8, %7 : vector<32x64xf32>
    %10 = arith.divf %8, %9 : vector<32x64xf32>
    %11 = arith.mulf %5, %10 : vector<32x64xf32>
    %12 = arith.truncf %11 : vector<32x64xf32> to vector<32x64xbf16>
    %c0_6 = arith.constant 0 : index
    %c0_7 = arith.constant 0 : index
    %13 = vector.load %arg5[%c0_6, %c0_7] : memref<32x64xbf16, #tpu.memory_space<vmem>>, vector<32x64xbf16>
    tpu.vector_store %arg5[%c0_6, %c0_7], %12 {strides = array<i32>} : memref<32x64xbf16, #tpu.memory_space<vmem>>, vector<32x64xbf16>,
    return
  }
  func.func @transform_0(%arg0: i32, %arg1: i32) -> (i32, i32) {
    %c0_i32 = arith.constant 0 : i32
    %c0_i32_0 = arith.constant 0 : i32
    return %arg0, %c0_i32 : i32, i32
  }
  func.func @transform_1(%arg0: i32, %arg1: i32) -> (i32, i32) {
    %c0_i32 = arith.constant 0 : i32
    %c0_i32_0 = arith.constant 0 : i32
    return %c0_i32, %arg1 : i32, i32
  }
  func.func @transform_2(%arg0: i32, %arg1: i32) -> (i32, i32) {
    %c0_i32 = arith.constant 0 : i32
    %c0_i32_0 = arith.constant 0 : i32
    return %c0_i32, %arg1 : i32, i32
  }
  func.func @transform_3(%arg0: i32, %arg1: i32) -> (i32, i32) {
    %c0_i32 = arith.constant 0 : i32
    return %arg0, %arg1 : i32, i32
  }
}

module attributes {stable_mosaic.version = 11 : i64} {
  func.func @_fused_conv_matmul_kernel(%arg0: i32, %arg1: i32, %arg2: memref<128x1152xbf16, #tpu.memory_space<vmem>>, %arg3: memref<1152x64xbf16, #tpu.memory_space<vmem>>, %arg4: memref<1x64xf32, #tpu.memory_space<vmem>>, %arg5: memref<128x64xbf16, #tpu.memory_space<vmem>>) attributes {dimension_semantics = [#tpu.dimension_semantics<parallel>, #tpu.dimension_semantics<parallel>], iteration_bounds = array<i64: 1, 1>, scalar_prefetch = 0 : i64, scratch_operands = 0 : i64, tpu.core_type = #tpu.core_type<tc>, window_params = [{transform_indices = @transform_0, window_bounds = array<i64: 128, 1152>}, {transform_indices = @transform_1, window_bounds = array<i64: 1152, 64>}, {transform_indices = @transform_2, window_bounds = array<i64: 1, 64>}, {transform_indices = @transform_3, window_bounds = array<i64: 128, 64>}]} {
    %c0 = arith.constant 0 : index
    %c0_0 = arith.constant 0 : index
    %0 = vector.load %arg2[%c0, %c0_0] : memref<128x1152xbf16, #tpu.memory_space<vmem>>, vector<128x1152xbf16>
    %c0_1 = arith.constant 0 : index
    %c0_2 = arith.constant 0 : index
    %1 = vector.load %arg3[%c0_1, %c0_2] : memref<1152x64xbf16, #tpu.memory_space<vmem>>, vector<1152x64xbf16>
    %cst = arith.constant dense<0.000000e+00> : vector<128x64xf32>
    %2 = tpu.matmul %0, %1, %cst {dimension_numbers = #tpu.dot_dimension_numbers<[1], [0], [0], [1], [0, 0, 1, 1], [], []>} : vector<128x1152xbf16>, vector<1152x64xbf16>, vector<128x64xf32> -> vector<128x64xf32>
    %c0_3 = arith.constant 0 : index
    %c0_4 = arith.constant 0 : index
    %3 = vector.load %arg4[%c0_3, %c0_4] : memref<1x64xf32, #tpu.memory_space<vmem>>, vector<1x64xf32>
    %4 = vector.broadcast %3 : vector<1x64xf32> to vector<128x64xf32>
    %5 = arith.addf %2, %4 : vector<128x64xf32>
    %6 = arith.negf %5 : vector<128x64xf32>
    %7 = math.exp %6 : vector<128x64xf32>
    %cst_5 = arith.constant 1.000000e+00 : f32
    %8 = vector.broadcast %cst_5 : f32 to vector<128x64xf32>
    %9 = arith.addf %8, %7 : vector<128x64xf32>
    %10 = arith.divf %8, %9 : vector<128x64xf32>
    %11 = arith.mulf %5, %10 : vector<128x64xf32>
    %12 = arith.truncf %11 : vector<128x64xf32> to vector<128x64xbf16>
    %c0_6 = arith.constant 0 : index
    %c0_7 = arith.constant 0 : index
    %13 = vector.load %arg5[%c0_6, %c0_7] : memref<128x64xbf16, #tpu.memory_space<vmem>>, vector<128x64xbf16>
    tpu.vector_store %arg5[%c0_6, %c0_7], %12 {strides = array<i32>} : memref<128x64xbf16, #tpu.memory_space<vmem>>, vector<128x64xbf16>,
    return
  }
  func.func @transform_0(%arg0: i32, %arg1: i32) -> (i32, i32) {
    %c0_i32 = arith.constant 0 : i32
    %c0_i32_0 = arith.constant 0 : i32
    return %arg0, %c0_i32 : i32, i32
  }
  func.func @transform_1(%arg0: i32, %arg1: i32) -> (i32, i32) {
    %c0_i32 = arith.constant 0 : i32
    %c0_i32_0 = arith.constant 0 : i32
    return %c0_i32, %arg1 : i32, i32
  }
  func.func @transform_2(%arg0: i32, %arg1: i32) -> (i32, i32) {
    %c0_i32 = arith.constant 0 : i32
    %c0_i32_0 = arith.constant 0 : i32
    return %c0_i32, %arg1 : i32, i32
  }
  func.func @transform_3(%arg0: i32, %arg1: i32) -> (i32, i32) {
    %c0_i32 = arith.constant 0 : i32
    return %arg0, %arg1 : i32, i32
  }
}

module attributes {stable_mosaic.version = 11 : i64} {
  func.func @_fused_conv_matmul_kernel(%arg0: i32, %arg1: i32, %arg2: memref<32x576xbf16, #tpu.memory_space<vmem>>, %arg3: memref<576x64xbf16, #tpu.memory_space<vmem>>, %arg4: memref<1x64xf32, #tpu.memory_space<vmem>>, %arg5: memref<32x64xbf16, #tpu.memory_space<vmem>>) attributes {dimension_semantics = [#tpu.dimension_semantics<parallel>, #tpu.dimension_semantics<parallel>], iteration_bounds = array<i64: 1, 1>, scalar_prefetch = 0 : i64, scratch_operands = 0 : i64, tpu.core_type = #tpu.core_type<tc>, window_params = [{transform_indices = @transform_0, window_bounds = array<i64: 32, 576>}, {transform_indices = @transform_1, window_bounds = array<i64: 576, 64>}, {transform_indices = @transform_2, window_bounds = array<i64: 1, 64>}, {transform_indices = @transform_3, window_bounds = array<i64: 32, 64>}]} {
    %c0 = arith.constant 0 : index
    %c0_0 = arith.constant 0 : index
    %0 = vector.load %arg2[%c0, %c0_0] : memref<32x576xbf16, #tpu.memory_space<vmem>>, vector<32x576xbf16>
    %c0_1 = arith.constant 0 : index
    %c0_2 = arith.constant 0 : index
    %1 = vector.load %arg3[%c0_1, %c0_2] : memref<576x64xbf16, #tpu.memory_space<vmem>>, vector<576x64xbf16>
    %cst = arith.constant dense<0.000000e+00> : vector<32x64xf32>
    %2 = tpu.matmul %0, %1, %cst {dimension_numbers = #tpu.dot_dimension_numbers<[1], [0], [0], [1], [0, 0, 1, 1], [], []>} : vector<32x576xbf16>, vector<576x64xbf16>, vector<32x64xf32> -> vector<32x64xf32>
    %c0_3 = arith.constant 0 : index
    %c0_4 = arith.constant 0 : index
    %3 = vector.load %arg4[%c0_3, %c0_4] : memref<1x64xf32, #tpu.memory_space<vmem>>, vector<1x64xf32>
    %4 = vector.broadcast %3 : vector<1x64xf32> to vector<32x64xf32>
    %5 = arith.addf %2, %4 : vector<32x64xf32>
    %6 = arith.negf %5 : vector<32x64xf32>
    %7 = math.exp %6 : vector<32x64xf32>
    %cst_5 = arith.constant 1.000000e+00 : f32
    %8 = vector.broadcast %cst_5 : f32 to vector<32x64xf32>
    %9 = arith.addf %8, %7 : vector<32x64xf32>
    %10 = arith.divf %8, %9 : vector<32x64xf32>
    %11 = arith.mulf %5, %10 : vector<32x64xf32>
    %12 = arith.truncf %11 : vector<32x64xf32> to vector<32x64xbf16>
    %c0_6 = arith.constant 0 : index
    %c0_7 = arith.constant 0 : index
    %13 = vector.load %arg5[%c0_6, %c0_7] : memref<32x64xbf16, #tpu.memory_space<vmem>>, vector<32x64xbf16>
    tpu.vector_store %arg5[%c0_6, %c0_7], %12 {strides = array<i32>} : memref<32x64xbf16, #tpu.memory_space<vmem>>, vector<32x64xbf16>,
    return
  }
  func.func @transform_0(%arg0: i32, %arg1: i32) -> (i32, i32) {
    %c0_i32 = arith.constant 0 : i32
    %c0_i32_0 = arith.constant 0 : i32
    return %arg0, %c0_i32 : i32, i32
  }
  func.func @transform_1(%arg0: i32, %arg1: i32) -> (i32, i32) {
    %c0_i32 = arith.constant 0 : i32
    %c0_i32_0 = arith.constant 0 : i32
    return %c0_i32, %arg1 : i32, i32
  }
  func.func @transform_2(%arg0: i32, %arg1: i32) -> (i32, i32) {
    %c0_i32 = arith.constant 0 : i32
    %c0_i32_0 = arith.constant 0 : i32
    return %c0_i32, %arg1 : i32, i32
  }
  func.func @transform_3(%arg0: i32, %arg1: i32) -> (i32, i32) {
    %c0_i32 = arith.constant 0 : i32
    return %arg0, %arg1 : i32, i32
  }
}

module attributes {stable_mosaic.version = 11 : i64} {
  func.func @_fused_conv_matmul_kernel(%arg0: i32, %arg1: i32, %arg2: memref<8x1152xbf16, #tpu.memory_space<vmem>>, %arg3: memref<1152x128xbf16, #tpu.memory_space<vmem>>, %arg4: memref<1x128xf32, #tpu.memory_space<vmem>>, %arg5: memref<8x128xbf16, #tpu.memory_space<vmem>>) attributes {dimension_semantics = [#tpu.dimension_semantics<parallel>, #tpu.dimension_semantics<parallel>], iteration_bounds = array<i64: 1, 1>, scalar_prefetch = 0 : i64, scratch_operands = 0 : i64, tpu.core_type = #tpu.core_type<tc>, window_params = [{transform_indices = @transform_0, window_bounds = array<i64: 8, 1152>}, {transform_indices = @transform_1, window_bounds = array<i64: 1152, 128>}, {transform_indices = @transform_2, window_bounds = array<i64: 1, 128>}, {transform_indices = @transform_3, window_bounds = array<i64: 8, 128>}]} {
    %c0 = arith.constant 0 : index
    %c0_0 = arith.constant 0 : index
    %0 = vector.load %arg2[%c0, %c0_0] : memref<8x1152xbf16, #tpu.memory_space<vmem>>, vector<8x1152xbf16>
    %c0_1 = arith.constant 0 : index
    %c0_2 = arith.constant 0 : index
    %1 = vector.load %arg3[%c0_1, %c0_2] : memref<1152x128xbf16, #tpu.memory_space<vmem>>, vector<1152x128xbf16>
    %cst = arith.constant dense<0.000000e+00> : vector<8x128xf32>
    %2 = tpu.matmul %0, %1, %cst {dimension_numbers = #tpu.dot_dimension_numbers<[1], [0], [0], [1], [0, 0, 1, 1], [], []>} : vector<8x1152xbf16>, vector<1152x128xbf16>, vector<8x128xf32> -> vector<8x128xf32>
    %c0_3 = arith.constant 0 : index
    %c0_4 = arith.constant 0 : index
    %3 = vector.load %arg4[%c0_3, %c0_4] : memref<1x128xf32, #tpu.memory_space<vmem>>, vector<1x128xf32>
    %4 = vector.broadcast %3 : vector<1x128xf32> to vector<8x128xf32>
    %5 = arith.addf %2, %4 : vector<8x128xf32>
    %6 = arith.negf %5 : vector<8x128xf32>
    %7 = math.exp %6 : vector<8x128xf32>
    %cst_5 = arith.constant 1.000000e+00 : f32
    %8 = vector.broadcast %cst_5 : f32 to vector<8x128xf32>
    %9 = arith.addf %8, %7 : vector<8x128xf32>
    %10 = arith.divf %8, %9 : vector<8x128xf32>
    %11 = arith.mulf %5, %10 : vector<8x128xf32>
    %12 = arith.truncf %11 : vector<8x128xf32> to vector<8x128xbf16>
    %c0_6 = arith.constant 0 : index
    %c0_7 = arith.constant 0 : index
    %13 = vector.load %arg5[%c0_6, %c0_7] : memref<8x128xbf16, #tpu.memory_space<vmem>>, vector<8x128xbf16>
    tpu.vector_store %arg5[%c0_6, %c0_7], %12 {strides = array<i32>} : memref<8x128xbf16, #tpu.memory_space<vmem>>, vector<8x128xbf16>,
    return
  }
  func.func @transform_0(%arg0: i32, %arg1: i32) -> (i32, i32) {
    %c0_i32 = arith.constant 0 : i32
    %c0_i32_0 = arith.constant 0 : i32
    return %arg0, %c0_i32 : i32, i32
  }
  func.func @transform_1(%arg0: i32, %arg1: i32) -> (i32, i32) {
    %c0_i32 = arith.constant 0 : i32
    %c0_i32_0 = arith.constant 0 : i32
    return %c0_i32, %arg1 : i32, i32
  }
  func.func @transform_2(%arg0: i32, %arg1: i32) -> (i32, i32) {
    %c0_i32 = arith.constant 0 : i32
    %c0_i32_0 = arith.constant 0 : i32
    return %c0_i32, %arg1 : i32, i32
  }
  func.func @transform_3(%arg0: i32, %arg1: i32) -> (i32, i32) {
    %c0_i32 = arith.constant 0 : i32
    return %arg0, %arg1 : i32, i32
  }
}

module attributes {stable_mosaic.version = 11 : i64} {
  func.func @_fused_conv_matmul_kernel(%arg0: i32, %arg1: i32, %arg2: memref<32x1152xbf16, #tpu.memory_space<vmem>>, %arg3: memref<1152x128xbf16, #tpu.memory_space<vmem>>, %arg4: memref<1x128xf32, #tpu.memory_space<vmem>>, %arg5: memref<32x128xbf16, #tpu.memory_space<vmem>>) attributes {dimension_semantics = [#tpu.dimension_semantics<parallel>, #tpu.dimension_semantics<parallel>], iteration_bounds = array<i64: 1, 1>, scalar_prefetch = 0 : i64, scratch_operands = 0 : i64, tpu.core_type = #tpu.core_type<tc>, window_params = [{transform_indices = @transform_0, window_bounds = array<i64: 32, 1152>}, {transform_indices = @transform_1, window_bounds = array<i64: 1152, 128>}, {transform_indices = @transform_2, window_bounds = array<i64: 1, 128>}, {transform_indices = @transform_3, window_bounds = array<i64: 32, 128>}]} {
    %c0 = arith.constant 0 : index
    %c0_0 = arith.constant 0 : index
    %0 = vector.load %arg2[%c0, %c0_0] : memref<32x1152xbf16, #tpu.memory_space<vmem>>, vector<32x1152xbf16>
    %c0_1 = arith.constant 0 : index
    %c0_2 = arith.constant 0 : index
    %1 = vector.load %arg3[%c0_1, %c0_2] : memref<1152x128xbf16, #tpu.memory_space<vmem>>, vector<1152x128xbf16>
    %cst = arith.constant dense<0.000000e+00> : vector<32x128xf32>
    %2 = tpu.matmul %0, %1, %cst {dimension_numbers = #tpu.dot_dimension_numbers<[1], [0], [0], [1], [0, 0, 1, 1], [], []>} : vector<32x1152xbf16>, vector<1152x128xbf16>, vector<32x128xf32> -> vector<32x128xf32>
    %c0_3 = arith.constant 0 : index
    %c0_4 = arith.constant 0 : index
    %3 = vector.load %arg4[%c0_3, %c0_4] : memref<1x128xf32, #tpu.memory_space<vmem>>, vector<1x128xf32>
    %4 = vector.broadcast %3 : vector<1x128xf32> to vector<32x128xf32>
    %5 = arith.addf %2, %4 : vector<32x128xf32>
    %6 = arith.negf %5 : vector<32x128xf32>
    %7 = math.exp %6 : vector<32x128xf32>
    %cst_5 = arith.constant 1.000000e+00 : f32
    %8 = vector.broadcast %cst_5 : f32 to vector<32x128xf32>
    %9 = arith.addf %8, %7 : vector<32x128xf32>
    %10 = arith.divf %8, %9 : vector<32x128xf32>
    %11 = arith.mulf %5, %10 : vector<32x128xf32>
    %12 = arith.truncf %11 : vector<32x128xf32> to vector<32x128xbf16>
    %c0_6 = arith.constant 0 : index
    %c0_7 = arith.constant 0 : index
    %13 = vector.load %arg5[%c0_6, %c0_7] : memref<32x128xbf16, #tpu.memory_space<vmem>>, vector<32x128xbf16>
    tpu.vector_store %arg5[%c0_6, %c0_7], %12 {strides = array<i32>} : memref<32x128xbf16, #tpu.memory_space<vmem>>, vector<32x128xbf16>,
    return
  }
  func.func @transform_0(%arg0: i32, %arg1: i32) -> (i32, i32) {
    %c0_i32 = arith.constant 0 : i32
    %c0_i32_0 = arith.constant 0 : i32
    return %arg0, %c0_i32 : i32, i32
  }
  func.func @transform_1(%arg0: i32, %arg1: i32) -> (i32, i32) {
    %c0_i32 = arith.constant 0 : i32
    %c0_i32_0 = arith.constant 0 : i32
    return %c0_i32, %arg1 : i32, i32
  }
  func.func @transform_2(%arg0: i32, %arg1: i32) -> (i32, i32) {
    %c0_i32 = arith.constant 0 : i32
    %c0_i32_0 = arith.constant 0 : i32
    return %c0_i32, %arg1 : i32, i32
  }
  func.func @transform_3(%arg0: i32, %arg1: i32) -> (i32, i32) {
    %c0_i32 = arith.constant 0 : i32
    return %arg0, %arg1 : i32, i32
  }
}

module attributes {stable_mosaic.version = 11 : i64} {
  func.func @_fused_conv_matmul_kernel(%arg0: i32, %arg1: i32, %arg2: memref<8x256xbf16, #tpu.memory_space<vmem>>, %arg3: memref<256x64xbf16, #tpu.memory_space<vmem>>, %arg4: memref<1x64xf32, #tpu.memory_space<vmem>>, %arg5: memref<8x64xbf16, #tpu.memory_space<vmem>>) attributes {dimension_semantics = [#tpu.dimension_semantics<parallel>, #tpu.dimension_semantics<parallel>], iteration_bounds = array<i64: 1, 1>, scalar_prefetch = 0 : i64, scratch_operands = 0 : i64, tpu.core_type = #tpu.core_type<tc>, window_params = [{transform_indices = @transform_0, window_bounds = array<i64: 8, 256>}, {transform_indices = @transform_1, window_bounds = array<i64: 256, 64>}, {transform_indices = @transform_2, window_bounds = array<i64: 1, 64>}, {transform_indices = @transform_3, window_bounds = array<i64: 8, 64>}]} {
    %c0 = arith.constant 0 : index
    %c0_0 = arith.constant 0 : index
    %0 = vector.load %arg2[%c0, %c0_0] : memref<8x256xbf16, #tpu.memory_space<vmem>>, vector<8x256xbf16>
    %c0_1 = arith.constant 0 : index
    %c0_2 = arith.constant 0 : index
    %1 = vector.load %arg3[%c0_1, %c0_2] : memref<256x64xbf16, #tpu.memory_space<vmem>>, vector<256x64xbf16>
    %cst = arith.constant dense<0.000000e+00> : vector<8x64xf32>
    %2 = tpu.matmul %0, %1, %cst {dimension_numbers = #tpu.dot_dimension_numbers<[1], [0], [0], [1], [0, 0, 1, 1], [], []>} : vector<8x256xbf16>, vector<256x64xbf16>, vector<8x64xf32> -> vector<8x64xf32>
    %c0_3 = arith.constant 0 : index
    %c0_4 = arith.constant 0 : index
    %3 = vector.load %arg4[%c0_3, %c0_4] : memref<1x64xf32, #tpu.memory_space<vmem>>, vector<1x64xf32>
    %4 = vector.broadcast %3 : vector<1x64xf32> to vector<8x64xf32>
    %5 = arith.addf %2, %4 : vector<8x64xf32>
    %6 = arith.negf %5 : vector<8x64xf32>
    %7 = math.exp %6 : vector<8x64xf32>
    %cst_5 = arith.constant 1.000000e+00 : f32
    %8 = vector.broadcast %cst_5 : f32 to vector<8x64xf32>
    %9 = arith.addf %8, %7 : vector<8x64xf32>
    %10 = arith.divf %8, %9 : vector<8x64xf32>
    %11 = arith.mulf %5, %10 : vector<8x64xf32>
    %12 = arith.truncf %11 : vector<8x64xf32> to vector<8x64xbf16>
    %c0_6 = arith.constant 0 : index
    %c0_7 = arith.constant 0 : index
    %13 = vector.load %arg5[%c0_6, %c0_7] : memref<8x64xbf16, #tpu.memory_space<vmem>>, vector<8x64xbf16>
    tpu.vector_store %arg5[%c0_6, %c0_7], %12 {strides = array<i32>} : memref<8x64xbf16, #tpu.memory_space<vmem>>, vector<8x64xbf16>,
    return
  }
  func.func @transform_0(%arg0: i32, %arg1: i32) -> (i32, i32) {
    %c0_i32 = arith.constant 0 : i32
    %c0_i32_0 = arith.constant 0 : i32
    return %arg0, %c0_i32 : i32, i32
  }
  func.func @transform_1(%arg0: i32, %arg1: i32) -> (i32, i32) {
    %c0_i32 = arith.constant 0 : i32
    %c0_i32_0 = arith.constant 0 : i32
    return %c0_i32, %arg1 : i32, i32
  }
  func.func @transform_2(%arg0: i32, %arg1: i32) -> (i32, i32) {
    %c0_i32 = arith.constant 0 : i32
    %c0_i32_0 = arith.constant 0 : i32
    return %c0_i32, %arg1 : i32, i32
  }
  func.func @transform_3(%arg0: i32, %arg1: i32) -> (i32, i32) {
    %c0_i32 = arith.constant 0 : i32
    return %arg0, %arg1 : i32, i32
  }
}

module attributes {stable_mosaic.version = 11 : i64} {
  func.func @_fused_conv_matmul_kernel(%arg0: i32, %arg1: i32, %arg2: memref<8x2304xbf16, #tpu.memory_space<vmem>>, %arg3: memref<2304x256xbf16, #tpu.memory_space<vmem>>, %arg4: memref<1x256xf32, #tpu.memory_space<vmem>>, %arg5: memref<8x256xbf16, #tpu.memory_space<vmem>>) attributes {dimension_semantics = [#tpu.dimension_semantics<parallel>, #tpu.dimension_semantics<parallel>], iteration_bounds = array<i64: 1, 1>, scalar_prefetch = 0 : i64, scratch_operands = 0 : i64, tpu.core_type = #tpu.core_type<tc>, window_params = [{transform_indices = @transform_0, window_bounds = array<i64: 8, 2304>}, {transform_indices = @transform_1, window_bounds = array<i64: 2304, 256>}, {transform_indices = @transform_2, window_bounds = array<i64: 1, 256>}, {transform_indices = @transform_3, window_bounds = array<i64: 8, 256>}]} {
    %c0 = arith.constant 0 : index
    %c0_0 = arith.constant 0 : index
    %0 = vector.load %arg2[%c0, %c0_0] : memref<8x2304xbf16, #tpu.memory_space<vmem>>, vector<8x2304xbf16>
    %c0_1 = arith.constant 0 : index
    %c0_2 = arith.constant 0 : index
    %1 = vector.load %arg3[%c0_1, %c0_2] : memref<2304x256xbf16, #tpu.memory_space<vmem>>, vector<2304x256xbf16>
    %cst = arith.constant dense<0.000000e+00> : vector<8x256xf32>
    %2 = tpu.matmul %0, %1, %cst {dimension_numbers = #tpu.dot_dimension_numbers<[1], [0], [0], [1], [0, 0, 1, 1], [], []>} : vector<8x2304xbf16>, vector<2304x256xbf16>, vector<8x256xf32> -> vector<8x256xf32>
    %c0_3 = arith.constant 0 : index
    %c0_4 = arith.constant 0 : index
    %3 = vector.load %arg4[%c0_3, %c0_4] : memref<1x256xf32, #tpu.memory_space<vmem>>, vector<1x256xf32>
    %4 = vector.broadcast %3 : vector<1x256xf32> to vector<8x256xf32>
    %5 = arith.addf %2, %4 : vector<8x256xf32>
    %6 = arith.negf %5 : vector<8x256xf32>
    %7 = math.exp %6 : vector<8x256xf32>
    %cst_5 = arith.constant 1.000000e+00 : f32
    %8 = vector.broadcast %cst_5 : f32 to vector<8x256xf32>
    %9 = arith.addf %8, %7 : vector<8x256xf32>
    %10 = arith.divf %8, %9 : vector<8x256xf32>
    %11 = arith.mulf %5, %10 : vector<8x256xf32>
    %12 = arith.truncf %11 : vector<8x256xf32> to vector<8x256xbf16>
    %c0_6 = arith.constant 0 : index
    %c0_7 = arith.constant 0 : index
    %13 = vector.load %arg5[%c0_6, %c0_7] : memref<8x256xbf16, #tpu.memory_space<vmem>>, vector<8x256xbf16>
    tpu.vector_store %arg5[%c0_6, %c0_7], %12 {strides = array<i32>} : memref<8x256xbf16, #tpu.memory_space<vmem>>, vector<8x256xbf16>,
    return
  }
  func.func @transform_0(%arg0: i32, %arg1: i32) -> (i32, i32) {
    %c0_i32 = arith.constant 0 : i32
    %c0_i32_0 = arith.constant 0 : i32
    return %arg0, %c0_i32 : i32, i32
  }
  func.func @transform_1(%arg0: i32, %arg1: i32) -> (i32, i32) {
    %c0_i32 = arith.constant 0 : i32
    %c0_i32_0 = arith.constant 0 : i32
    return %c0_i32, %arg1 : i32, i32
  }
  func.func @transform_2(%arg0: i32, %arg1: i32) -> (i32, i32) {
    %c0_i32 = arith.constant 0 : i32
    %c0_i32_0 = arith.constant 0 : i32
    return %c0_i32, %arg1 : i32, i32
  }
  func.func @transform_3(%arg0: i32, %arg1: i32) -> (i32, i32) {
    %c0_i32 = arith.constant 0 : i32
    return %arg0, %arg1 : i32, i32
  }
}

module attributes {stable_mosaic.version = 11 : i64} {
  func.func @_fused_conv_matmul_kernel(%arg0: i32, %arg1: i32, %arg2: memref<8x576xbf16, #tpu.memory_space<vmem>>, %arg3: memref<576x64xbf16, #tpu.memory_space<vmem>>, %arg4: memref<1x64xf32, #tpu.memory_space<vmem>>, %arg5: memref<8x64xbf16, #tpu.memory_space<vmem>>) attributes {dimension_semantics = [#tpu.dimension_semantics<parallel>, #tpu.dimension_semantics<parallel>], iteration_bounds = array<i64: 1, 1>, scalar_prefetch = 0 : i64, scratch_operands = 0 : i64, tpu.core_type = #tpu.core_type<tc>, window_params = [{transform_indices = @transform_0, window_bounds = array<i64: 8, 576>}, {transform_indices = @transform_1, window_bounds = array<i64: 576, 64>}, {transform_indices = @transform_2, window_bounds = array<i64: 1, 64>}, {transform_indices = @transform_3, window_bounds = array<i64: 8, 64>}]} {
    %c0 = arith.constant 0 : index
    %c0_0 = arith.constant 0 : index
    %0 = vector.load %arg2[%c0, %c0_0] : memref<8x576xbf16, #tpu.memory_space<vmem>>, vector<8x576xbf16>
    %c0_1 = arith.constant 0 : index
    %c0_2 = arith.constant 0 : index
    %1 = vector.load %arg3[%c0_1, %c0_2] : memref<576x64xbf16, #tpu.memory_space<vmem>>, vector<576x64xbf16>
    %cst = arith.constant dense<0.000000e+00> : vector<8x64xf32>
    %2 = tpu.matmul %0, %1, %cst {dimension_numbers = #tpu.dot_dimension_numbers<[1], [0], [0], [1], [0, 0, 1, 1], [], []>} : vector<8x576xbf16>, vector<576x64xbf16>, vector<8x64xf32> -> vector<8x64xf32>
    %c0_3 = arith.constant 0 : index
    %c0_4 = arith.constant 0 : index
    %3 = vector.load %arg4[%c0_3, %c0_4] : memref<1x64xf32, #tpu.memory_space<vmem>>, vector<1x64xf32>
    %4 = vector.broadcast %3 : vector<1x64xf32> to vector<8x64xf32>
    %5 = arith.addf %2, %4 : vector<8x64xf32>
    %6 = arith.negf %5 : vector<8x64xf32>
    %7 = math.exp %6 : vector<8x64xf32>
    %cst_5 = arith.constant 1.000000e+00 : f32
    %8 = vector.broadcast %cst_5 : f32 to vector<8x64xf32>
    %9 = arith.addf %8, %7 : vector<8x64xf32>
    %10 = arith.divf %8, %9 : vector<8x64xf32>
    %11 = arith.mulf %5, %10 : vector<8x64xf32>
    %12 = arith.truncf %11 : vector<8x64xf32> to vector<8x64xbf16>
    %c0_6 = arith.constant 0 : index
    %c0_7 = arith.constant 0 : index
    %13 = vector.load %arg5[%c0_6, %c0_7] : memref<8x64xbf16, #tpu.memory_space<vmem>>, vector<8x64xbf16>
    tpu.vector_store %arg5[%c0_6, %c0_7], %12 {strides = array<i32>} : memref<8x64xbf16, #tpu.memory_space<vmem>>, vector<8x64xbf16>,
    return
  }
  func.func @transform_0(%arg0: i32, %arg1: i32) -> (i32, i32) {
    %c0_i32 = arith.constant 0 : i32
    %c0_i32_0 = arith.constant 0 : i32
    return %arg0, %c0_i32 : i32, i32
  }
  func.func @transform_1(%arg0: i32, %arg1: i32) -> (i32, i32) {
    %c0_i32 = arith.constant 0 : i32
    %c0_i32_0 = arith.constant 0 : i32
    return %c0_i32, %arg1 : i32, i32
  }
  func.func @transform_2(%arg0: i32, %arg1: i32) -> (i32, i32) {
    %c0_i32 = arith.constant 0 : i32
    %c0_i32_0 = arith.constant 0 : i32
    return %c0_i32, %arg1 : i32, i32
  }
  func.func @transform_3(%arg0: i32, %arg1: i32) -> (i32, i32) {
    %c0_i32 = arith.constant 0 : i32
    return %arg0, %arg1 : i32, i32
  }
}

module attributes {stable_mosaic.version = 11 : i64} {
  func.func @_fused_conv_matmul_kernel(%arg0: i32, %arg1: i32, %arg2: memref<8x128xbf16, #tpu.memory_space<vmem>>, %arg3: memref<128x9xbf16, #tpu.memory_space<vmem>>, %arg4: memref<1x9xf32, #tpu.memory_space<vmem>>, %arg5: memref<8x9xf32, #tpu.memory_space<vmem>>) attributes {dimension_semantics = [#tpu.dimension_semantics<parallel>, #tpu.dimension_semantics<parallel>], iteration_bounds = array<i64: 1, 1>, scalar_prefetch = 0 : i64, scratch_operands = 0 : i64, tpu.core_type = #tpu.core_type<tc>, window_params = [{transform_indices = @transform_0, window_bounds = array<i64: 8, 128>}, {transform_indices = @transform_1, window_bounds = array<i64: 128, 9>}, {transform_indices = @transform_2, window_bounds = array<i64: 1, 9>}, {transform_indices = @transform_3, window_bounds = array<i64: 8, 9>}]} {
    %c0 = arith.constant 0 : index
    %c0_0 = arith.constant 0 : index
    %0 = vector.load %arg2[%c0, %c0_0] : memref<8x128xbf16, #tpu.memory_space<vmem>>, vector<8x128xbf16>
    %c0_1 = arith.constant 0 : index
    %c0_2 = arith.constant 0 : index
    %1 = vector.load %arg3[%c0_1, %c0_2] : memref<128x9xbf16, #tpu.memory_space<vmem>>, vector<128x9xbf16>
    %cst = arith.constant dense<0.000000e+00> : vector<8x9xf32>
    %2 = tpu.matmul %0, %1, %cst {dimension_numbers = #tpu.dot_dimension_numbers<[1], [0], [0], [1], [0, 0, 1, 1], [], []>} : vector<8x128xbf16>, vector<128x9xbf16>, vector<8x9xf32> -> vector<8x9xf32>
    %c0_3 = arith.constant 0 : index
    %c0_4 = arith.constant 0 : index
    %3 = vector.load %arg4[%c0_3, %c0_4] : memref<1x9xf32, #tpu.memory_space<vmem>>, vector<1x9xf32>
    %4 = vector.broadcast %3 : vector<1x9xf32> to vector<8x9xf32>
    %5 = arith.addf %2, %4 : vector<8x9xf32>
    %c0_5 = arith.constant 0 : index
    %c0_6 = arith.constant 0 : index
    %6 = vector.load %arg5[%c0_5, %c0_6] : memref<8x9xf32, #tpu.memory_space<vmem>>, vector<8x9xf32>
    tpu.vector_store %arg5[%c0_5, %c0_6], %5 {strides = array<i32>} : memref<8x9xf32, #tpu.memory_space<vmem>>, vector<8x9xf32>,
    return
  }
  func.func @transform_0(%arg0: i32, %arg1: i32) -> (i32, i32) {
    %c0_i32 = arith.constant 0 : i32
    %c0_i32_0 = arith.constant 0 : i32
    return %arg0, %c0_i32 : i32, i32
  }
  func.func @transform_1(%arg0: i32, %arg1: i32) -> (i32, i32) {
    %c0_i32 = arith.constant 0 : i32
    %c0_i32_0 = arith.constant 0 : i32
    return %c0_i32, %arg1 : i32, i32
  }
  func.func @transform_2(%arg0: i32, %arg1: i32) -> (i32, i32) {
    %c0_i32 = arith.constant 0 : i32
    %c0_i32_0 = arith.constant 0 : i32
    return %c0_i32, %arg1 : i32, i32
  }
  func.func @transform_3(%arg0: i32, %arg1: i32) -> (i32, i32) {
    %c0_i32 = arith.constant 0 : i32
    return %arg0, %arg1 : i32, i32
  }
}

module attributes {stable_mosaic.version = 11 : i64} {
  func.func @_fused_conv_matmul_kernel(%arg0: i32, %arg1: i32, %arg2: memref<128x64xbf16, #tpu.memory_space<vmem>>, %arg3: memref<64x64xbf16, #tpu.memory_space<vmem>>, %arg4: memref<1x64xf32, #tpu.memory_space<vmem>>, %arg5: memref<128x64xbf16, #tpu.memory_space<vmem>>) attributes {dimension_semantics = [#tpu.dimension_semantics<parallel>, #tpu.dimension_semantics<parallel>], iteration_bounds = array<i64: 1, 1>, scalar_prefetch = 0 : i64, scratch_operands = 0 : i64, tpu.core_type = #tpu.core_type<tc>, window_params = [{transform_indices = @transform_0, window_bounds = array<i64: 128, 64>}, {transform_indices = @transform_1, window_bounds = array<i64: 64, 64>}, {transform_indices = @transform_2, window_bounds = array<i64: 1, 64>}, {transform_indices = @transform_3, window_bounds = array<i64: 128, 64>}]} {
    %c0 = arith.constant 0 : index
    %c0_0 = arith.constant 0 : index
    %0 = vector.load %arg2[%c0, %c0_0] : memref<128x64xbf16, #tpu.memory_space<vmem>>, vector<128x64xbf16>
    %c0_1 = arith.constant 0 : index
    %c0_2 = arith.constant 0 : index
    %1 = vector.load %arg3[%c0_1, %c0_2] : memref<64x64xbf16, #tpu.memory_space<vmem>>, vector<64x64xbf16>
    %cst = arith.constant dense<0.000000e+00> : vector<128x64xf32>
    %2 = tpu.matmul %0, %1, %cst {dimension_numbers = #tpu.dot_dimension_numbers<[1], [0], [0], [1], [0, 0, 1, 1], [], []>} : vector<128x64xbf16>, vector<64x64xbf16>, vector<128x64xf32> -> vector<128x64xf32>
    %c0_3 = arith.constant 0 : index
    %c0_4 = arith.constant 0 : index
    %3 = vector.load %arg4[%c0_3, %c0_4] : memref<1x64xf32, #tpu.memory_space<vmem>>, vector<1x64xf32>
    %4 = vector.broadcast %3 : vector<1x64xf32> to vector<128x64xf32>
    %5 = arith.addf %2, %4 : vector<128x64xf32>
    %6 = arith.negf %5 : vector<128x64xf32>
    %7 = math.exp %6 : vector<128x64xf32>
    %cst_5 = arith.constant 1.000000e+00 : f32
    %8 = vector.broadcast %cst_5 : f32 to vector<128x64xf32>
    %9 = arith.addf %8, %7 : vector<128x64xf32>
    %10 = arith.divf %8, %9 : vector<128x64xf32>
    %11 = arith.mulf %5, %10 : vector<128x64xf32>
    %12 = arith.truncf %11 : vector<128x64xf32> to vector<128x64xbf16>
    %c0_6 = arith.constant 0 : index
    %c0_7 = arith.constant 0 : index
    %13 = vector.load %arg5[%c0_6, %c0_7] : memref<128x64xbf16, #tpu.memory_space<vmem>>, vector<128x64xbf16>
    tpu.vector_store %arg5[%c0_6, %c0_7], %12 {strides = array<i32>} : memref<128x64xbf16, #tpu.memory_space<vmem>>, vector<128x64xbf16>,
    return
  }
  func.func @transform_0(%arg0: i32, %arg1: i32) -> (i32, i32) {
    %c0_i32 = arith.constant 0 : i32
    %c0_i32_0 = arith.constant 0 : i32
    return %arg0, %c0_i32 : i32, i32
  }
  func.func @transform_1(%arg0: i32, %arg1: i32) -> (i32, i32) {
    %c0_i32 = arith.constant 0 : i32
    %c0_i32_0 = arith.constant 0 : i32
    return %c0_i32, %arg1 : i32, i32
  }
  func.func @transform_2(%arg0: i32, %arg1: i32) -> (i32, i32) {
    %c0_i32 = arith.constant 0 : i32
    %c0_i32_0 = arith.constant 0 : i32
    return %c0_i32, %arg1 : i32, i32
  }
  func.func @transform_3(%arg0: i32, %arg1: i32) -> (i32, i32) {
    %c0_i32 = arith.constant 0 : i32
    return %arg0, %arg1 : i32, i32
  }
}

module attributes {stable_mosaic.version = 11 : i64} {
  func.func @_fused_conv_matmul_kernel(%arg0: i32, %arg1: i32, %arg2: memref<32x128xbf16, #tpu.memory_space<vmem>>, %arg3: memref<128x9xbf16, #tpu.memory_space<vmem>>, %arg4: memref<1x9xf32, #tpu.memory_space<vmem>>, %arg5: memref<32x9xf32, #tpu.memory_space<vmem>>) attributes {dimension_semantics = [#tpu.dimension_semantics<parallel>, #tpu.dimension_semantics<parallel>], iteration_bounds = array<i64: 1, 1>, scalar_prefetch = 0 : i64, scratch_operands = 0 : i64, tpu.core_type = #tpu.core_type<tc>, window_params = [{transform_indices = @transform_0, window_bounds = array<i64: 32, 128>}, {transform_indices = @transform_1, window_bounds = array<i64: 128, 9>}, {transform_indices = @transform_2, window_bounds = array<i64: 1, 9>}, {transform_indices = @transform_3, window_bounds = array<i64: 32, 9>}]} {
    %c0 = arith.constant 0 : index
    %c0_0 = arith.constant 0 : index
    %0 = vector.load %arg2[%c0, %c0_0] : memref<32x128xbf16, #tpu.memory_space<vmem>>, vector<32x128xbf16>
    %c0_1 = arith.constant 0 : index
    %c0_2 = arith.constant 0 : index
    %1 = vector.load %arg3[%c0_1, %c0_2] : memref<128x9xbf16, #tpu.memory_space<vmem>>, vector<128x9xbf16>
    %cst = arith.constant dense<0.000000e+00> : vector<32x9xf32>
    %2 = tpu.matmul %0, %1, %cst {dimension_numbers = #tpu.dot_dimension_numbers<[1], [0], [0], [1], [0, 0, 1, 1], [], []>} : vector<32x128xbf16>, vector<128x9xbf16>, vector<32x9xf32> -> vector<32x9xf32>
    %c0_3 = arith.constant 0 : index
    %c0_4 = arith.constant 0 : index
    %3 = vector.load %arg4[%c0_3, %c0_4] : memref<1x9xf32, #tpu.memory_space<vmem>>, vector<1x9xf32>
    %4 = vector.broadcast %3 : vector<1x9xf32> to vector<32x9xf32>
    %5 = arith.addf %2, %4 : vector<32x9xf32>
    %c0_5 = arith.constant 0 : index
    %c0_6 = arith.constant 0 : index
    %6 = vector.load %arg5[%c0_5, %c0_6] : memref<32x9xf32, #tpu.memory_space<vmem>>, vector<32x9xf32>
    tpu.vector_store %arg5[%c0_5, %c0_6], %5 {strides = array<i32>} : memref<32x9xf32, #tpu.memory_space<vmem>>, vector<32x9xf32>,
    return
  }
  func.func @transform_0(%arg0: i32, %arg1: i32) -> (i32, i32) {
    %c0_i32 = arith.constant 0 : i32
    %c0_i32_0 = arith.constant 0 : i32
    return %arg0, %c0_i32 : i32, i32
  }
  func.func @transform_1(%arg0: i32, %arg1: i32) -> (i32, i32) {
    %c0_i32 = arith.constant 0 : i32
    %c0_i32_0 = arith.constant 0 : i32
    return %c0_i32, %arg1 : i32, i32
  }
  func.func @transform_2(%arg0: i32, %arg1: i32) -> (i32, i32) {
    %c0_i32 = arith.constant 0 : i32
    %c0_i32_0 = arith.constant 0 : i32
    return %c0_i32, %arg1 : i32, i32
  }
  func.func @transform_3(%arg0: i32, %arg1: i32) -> (i32, i32) {
    %c0_i32 = arith.constant 0 : i32
    return %arg0, %arg1 : i32, i32
  }
}

module attributes {stable_mosaic.version = 11 : i64} {
  func.func @_fused_conv_matmul_kernel(%arg0: i32, %arg1: i32, %arg2: memref<128x576xbf16, #tpu.memory_space<vmem>>, %arg3: memref<576x64xbf16, #tpu.memory_space<vmem>>, %arg4: memref<1x64xf32, #tpu.memory_space<vmem>>, %arg5: memref<128x64xbf16, #tpu.memory_space<vmem>>) attributes {dimension_semantics = [#tpu.dimension_semantics<parallel>, #tpu.dimension_semantics<parallel>], iteration_bounds = array<i64: 1, 1>, scalar_prefetch = 0 : i64, scratch_operands = 0 : i64, tpu.core_type = #tpu.core_type<tc>, window_params = [{transform_indices = @transform_0, window_bounds = array<i64: 128, 576>}, {transform_indices = @transform_1, window_bounds = array<i64: 576, 64>}, {transform_indices = @transform_2, window_bounds = array<i64: 1, 64>}, {transform_indices = @transform_3, window_bounds = array<i64: 128, 64>}]} {
    %c0 = arith.constant 0 : index
    %c0_0 = arith.constant 0 : index
    %0 = vector.load %arg2[%c0, %c0_0] : memref<128x576xbf16, #tpu.memory_space<vmem>>, vector<128x576xbf16>
    %c0_1 = arith.constant 0 : index
    %c0_2 = arith.constant 0 : index
    %1 = vector.load %arg3[%c0_1, %c0_2] : memref<576x64xbf16, #tpu.memory_space<vmem>>, vector<576x64xbf16>
    %cst = arith.constant dense<0.000000e+00> : vector<128x64xf32>
    %2 = tpu.matmul %0, %1, %cst {dimension_numbers = #tpu.dot_dimension_numbers<[1], [0], [0], [1], [0, 0, 1, 1], [], []>} : vector<128x576xbf16>, vector<576x64xbf16>, vector<128x64xf32> -> vector<128x64xf32>
    %c0_3 = arith.constant 0 : index
    %c0_4 = arith.constant 0 : index
    %3 = vector.load %arg4[%c0_3, %c0_4] : memref<1x64xf32, #tpu.memory_space<vmem>>, vector<1x64xf32>
    %4 = vector.broadcast %3 : vector<1x64xf32> to vector<128x64xf32>
    %5 = arith.addf %2, %4 : vector<128x64xf32>
    %6 = arith.negf %5 : vector<128x64xf32>
    %7 = math.exp %6 : vector<128x64xf32>
    %cst_5 = arith.constant 1.000000e+00 : f32
    %8 = vector.broadcast %cst_5 : f32 to vector<128x64xf32>
    %9 = arith.addf %8, %7 : vector<128x64xf32>
    %10 = arith.divf %8, %9 : vector<128x64xf32>
    %11 = arith.mulf %5, %10 : vector<128x64xf32>
    %12 = arith.truncf %11 : vector<128x64xf32> to vector<128x64xbf16>
    %c0_6 = arith.constant 0 : index
    %c0_7 = arith.constant 0 : index
    %13 = vector.load %arg5[%c0_6, %c0_7] : memref<128x64xbf16, #tpu.memory_space<vmem>>, vector<128x64xbf16>
    tpu.vector_store %arg5[%c0_6, %c0_7], %12 {strides = array<i32>} : memref<128x64xbf16, #tpu.memory_space<vmem>>, vector<128x64xbf16>,
    return
  }
  func.func @transform_0(%arg0: i32, %arg1: i32) -> (i32, i32) {
    %c0_i32 = arith.constant 0 : i32
    %c0_i32_0 = arith.constant 0 : i32
    return %arg0, %c0_i32 : i32, i32
  }
  func.func @transform_1(%arg0: i32, %arg1: i32) -> (i32, i32) {
    %c0_i32 = arith.constant 0 : i32
    %c0_i32_0 = arith.constant 0 : i32
    return %c0_i32, %arg1 : i32, i32
  }
  func.func @transform_2(%arg0: i32, %arg1: i32) -> (i32, i32) {
    %c0_i32 = arith.constant 0 : i32
    %c0_i32_0 = arith.constant 0 : i32
    return %c0_i32, %arg1 : i32, i32
  }
  func.func @transform_3(%arg0: i32, %arg1: i32) -> (i32, i32) {
    %c0_i32 = arith.constant 0 : i32
    return %arg0, %arg1 : i32, i32
  }
}

module attributes {stable_mosaic.version = 11 : i64} {
  func.func @_fused_conv_matmul_kernel(%arg0: i32, %arg1: i32, %arg2: memref<128x128xbf16, #tpu.memory_space<vmem>>, %arg3: memref<128x9xbf16, #tpu.memory_space<vmem>>, %arg4: memref<1x9xf32, #tpu.memory_space<vmem>>, %arg5: memref<128x9xf32, #tpu.memory_space<vmem>>) attributes {dimension_semantics = [#tpu.dimension_semantics<parallel>, #tpu.dimension_semantics<parallel>], iteration_bounds = array<i64: 1, 1>, scalar_prefetch = 0 : i64, scratch_operands = 0 : i64, tpu.core_type = #tpu.core_type<tc>, window_params = [{transform_indices = @transform_0, window_bounds = array<i64: 128, 128>}, {transform_indices = @transform_1, window_bounds = array<i64: 128, 9>}, {transform_indices = @transform_2, window_bounds = array<i64: 1, 9>}, {transform_indices = @transform_3, window_bounds = array<i64: 128, 9>}]} {
    %c0 = arith.constant 0 : index
    %c0_0 = arith.constant 0 : index
    %0 = vector.load %arg2[%c0, %c0_0] : memref<128x128xbf16, #tpu.memory_space<vmem>>, vector<128x128xbf16>
    %c0_1 = arith.constant 0 : index
    %c0_2 = arith.constant 0 : index
    %1 = vector.load %arg3[%c0_1, %c0_2] : memref<128x9xbf16, #tpu.memory_space<vmem>>, vector<128x9xbf16>
    %cst = arith.constant dense<0.000000e+00> : vector<128x9xf32>
    %2 = tpu.matmul %0, %1, %cst {dimension_numbers = #tpu.dot_dimension_numbers<[1], [0], [0], [1], [0, 0, 1, 1], [], []>} : vector<128x128xbf16>, vector<128x9xbf16>, vector<128x9xf32> -> vector<128x9xf32>
    %c0_3 = arith.constant 0 : index
    %c0_4 = arith.constant 0 : index
    %3 = vector.load %arg4[%c0_3, %c0_4] : memref<1x9xf32, #tpu.memory_space<vmem>>, vector<1x9xf32>
    %4 = vector.broadcast %3 : vector<1x9xf32> to vector<128x9xf32>
    %5 = arith.addf %2, %4 : vector<128x9xf32>
    %c0_5 = arith.constant 0 : index
    %c0_6 = arith.constant 0 : index
    %6 = vector.load %arg5[%c0_5, %c0_6] : memref<128x9xf32, #tpu.memory_space<vmem>>, vector<128x9xf32>
    tpu.vector_store %arg5[%c0_5, %c0_6], %5 {strides = array<i32>} : memref<128x9xf32, #tpu.memory_space<vmem>>, vector<128x9xf32>,
    return
  }
  func.func @transform_0(%arg0: i32, %arg1: i32) -> (i32, i32) {
    %c0_i32 = arith.constant 0 : i32
    %c0_i32_0 = arith.constant 0 : i32
    return %arg0, %c0_i32 : i32, i32
  }
  func.func @transform_1(%arg0: i32, %arg1: i32) -> (i32, i32) {
    %c0_i32 = arith.constant 0 : i32
    %c0_i32_0 = arith.constant 0 : i32
    return %c0_i32, %arg1 : i32, i32
  }
  func.func @transform_2(%arg0: i32, %arg1: i32) -> (i32, i32) {
    %c0_i32 = arith.constant 0 : i32
    %c0_i32_0 = arith.constant 0 : i32
    return %c0_i32, %arg1 : i32, i32
  }
  func.func @transform_3(%arg0: i32, %arg1: i32) -> (i32, i32) {
    %c0_i32 = arith.constant 0 : i32
    return %arg0, %arg1 : i32, i32
  }
}

</mosaic_0001>

<bundles_post_ra>
// kernel: yolox_forward.31
= control target key start
LH: loop header
LB: loop body
LE: loop exit
PB: predicated region body
PF: predicated region fallthrough
CT: control target
= control target key end

     0   :  { %s1482_s12 = smov 0   ;;  %s1484_s13 = smov 0   ;;  %s1814_s0 = inlined_call_operand.vmem [shape: bf16[2048,27], index: 0, kind: input, shape index: {}]   ;;  %s1815_s1 = inlined_call_operand.vmem [shape: bf16[27,16], index: 1, kind: input, shape index: {}]   ;;  %s1816_s2 = inlined_call_operand.vmem [shape: f32[1,16], index: 2, kind: input, shape index: {}]   ;;  %s1817_s3 = inlined_call_operand.vmem [shape: bf16[2048,16], index: 3, kind: output, shape index: {}]  }
   0x1   :  { %s1486_s14 = smov 0  }
   0x2 LB: > { %s25_s15 = sadd.s32 1, %s1455_s13  ;;  %p1070_p0 = scmp.ge.s32.totalorder %s1459_s14, 1  ;;  %s1459_s14 = sphi %s1486_s14, %s13_s14   ;;  %s1455_s13 = sphi %s1484_s13, %s1819_s13   ;;  %s1451_s12 = sphi %s1482_s12, %s1818_s12  }
   0x3   : > { %p27_p1 = scmp.ge.s32.totalorder %s25_s15, 8  ;;  %p169_p2 = scmp.lt.s32.totalorder %s1459_s14, 9 }
   0x5   : > { %s1821_s15 = smov (%p27_p1, %s25_s15), 0  ;;  %p170_p3 = pnand %p1070_p0, %p169_p2 }
   0x6   : > { %v1291_v0 = vld [vmem:[%s1815_s1] sm:$0xff] (!%p170_p3)   ;;  %vm409_vm0 = vcmask (!%p170_p3), 1044480   ;;  %v1292_v1 = vld [vmem:[%s1815_s1 + $0x8] sm:$0x3f] (!%p170_p3)   ;;  %vm410_vm1 = vcmask (!%p170_p3), 1045504   ;;  %s1071_s20 = sshll.u32 (!%p170_p3), %s1451_s12, 5 }
   0x7   : > { %173 = sbr.rel (%p170_p3) target bundleno = 323 (0x143), region = 32  ;;  %1226 = vmatprep.subr.bf16.mxu0 (!%p170_p3), %v1291_v0  ;;  %1262 = vmatprep.subr.bf16.mxu1 (!%p170_p3), %v1291_v0  ;;  %v1461_v2 = vmov (!%p170_p3), 65535   ;;  %p204_p4 = scmp.lt.s32.totalorder (!%p170_p3), %s1071_s20, 255  ;;  %vm360_vm2 = vcmask (!%p170_p3), 220160   ;;  %v1551_v22 = vld [vmem:[%s1816_s2] ss:$0 sm:$0xff] (!%p170_p3) }
   0x8   : > { %1227 = vmatpush3.bf16.msra.mxu0 (!%p170_p3), %v1291_v0  ;;  %1264 = vmatpush3.bf16.msra.mxu1 (!%p170_p3), %v1291_v0  ;;  %v411_v3 = vsel (!%p170_p3), %vm409_vm0, 4294967295, %v1461_v2  ;;  %vm929_vm3 = vcmask (!%p170_p3), 125952  }
   0x9   : > { %v412_v4 = vsel (!%p170_p3), %vm410_vm1, %v411_v3, 0 }
   0xa   : > { %v414_v5 = vand.u32 (!%p170_p3), %v1292_v1, %v412_v4 }
   0xc   : > { %1228 = vmatprep.subr.bf16.mxu0 (!%p170_p3), %v414_v5  ;;  %1263 = vmatprep.subr.bf16.mxu1 (!%p170_p3), %v414_v5 }
   0xd   : > { %1229 = vmatpush3.bf16.msra.mxu0 (!%p170_p3), %v414_v5  ;;  %1265 = vmatpush3.bf16.msra.mxu1 (!%p170_p3), %v414_v5 }
   0xe   : > { %s1823_s20 = smov (!%p204_p4, %s1071_s20), 255 }
   0xf   : > { %s1072_s21 = sshll.u32 %s1823_s20, 2 }
  0x10   : > { %s1514_s24 = scalar_lea.vmem %s1814_s0, %s1072_s21  ;;  %s1658_s29 = scalar_lea.vmem %s1817_s3, %s1072_s21 }
  0x11   : > { %v1293_v6 = vld [vmem:[%s1514_s24] sm:$0xff]   ;;  %v1295_v8 = vld [vmem:[%s1514_s24 + $0x8] sm:$0xff]   ;;  %v1297_v10 = vld [vmem:[%s1514_s24 + $0x10] sm:$0xff]  }
  0x12   : > { %v1294_v7 = vld [vmem:[%s1514_s24 + $0x40] sm:$0xff]   ;;  %1230 = vmatprep.mubr.msk.bf16.mxu0 %vm360_vm2, %v1293_v6  ;;  %v1296_v9 = vld [vmem:[%s1514_s24 + $0x48] sm:$0xff]   ;;  %v1298_v11 = vld [vmem:[%s1514_s24 + $0x50] sm:$0xff]  }
  0x13   : > { %1246 = vmatprep.mubr.msk.bf16.mxu1 %vm360_vm2, %v1294_v7  ;;  %1231 = vmatmul.mubr.msk.bf16.vlgmr.msra.gmra.mrb[0].mxu0 %vm360_vm2, %v1295_v8  ;;  %v1299_v12 = vld [vmem:[%s1514_s24 + $0x18] sm:$0xff]   ;;  %v1301_v14 = vld [vmem:[%s1514_s24 + $0x20] sm:$0xff]   ;;  %v1303_v16 = vld [vmem:[%s1514_s24 + $0x28] sm:$0xff]  }
  0x14   : > { %1247 = vmatmul.mubr.msk.bf16.vlgmr.msra.gmra.mrb[0].mxu1 %vm360_vm2, %v1296_v9  ;;  %1234 = vmatprep.mubr.msk.bf16.mxu0 %vm360_vm2, %v1297_v10  ;;  %v1300_v13 = vld [vmem:[%s1514_s24 + $0x58] sm:$0xff]   ;;  %v1302_v15 = vld [vmem:[%s1514_s24 + $0x60] sm:$0xff]   ;;  %v1304_v17 = vld [vmem:[%s1514_s24 + $0x68] sm:$0xff]  }
  0x15   : > { %1250 = vmatprep.mubr.msk.bf16.mxu1 %vm360_vm2, %v1298_v11  ;;  %v1305_v18 = vld [vmem:[%s1514_s24 + $0x30] sm:$0xff]   ;;  %v1307_v20 = vld [vmem:[%s1514_s24 + $0x38] sm:$0xff]  }
  0x16   : > { %v1306_v19 = vld [vmem:[%s1514_s24 + $0x70] sm:$0xff]   ;;  %v1308_v21 = vld [vmem:[%s1514_s24 + $0x78] sm:$0xff]  }
  0x1b   : > { %1235 = vmatmul.mubr.msk.bf16.gmra.mrb[4].mxu0 %vm360_vm2, %v1299_v12 }
  0x1c   : > { %1251 = vmatmul.mubr.msk.bf16.gmra.mrb[4].mxu1 %vm360_vm2, %v1300_v13  ;;  %1238 = vmatprep.mubr.msk.bf16.mxu0 %vm360_vm2, %v1301_v14 }
  0x1d   : > { %1254 = vmatprep.mubr.msk.bf16.mxu1 %vm360_vm2, %v1302_v15 }
  0x23   : > { %1239 = vmatmul.mubr.msk.bf16.gmra.mrb[8].mxu0 %vm360_vm2, %v1303_v16 }
  0x24   : > { %1255 = vmatmul.mubr.msk.bf16.gmra.mrb[8].mxu1 %vm360_vm2, %v1304_v17  ;;  %1242 = vmatprep.mubr.msk.bf16.mxu0 %vm360_vm2, %v1305_v18 }
  0x25   : > { %1258 = vmatprep.mubr.msk.bf16.mxu1 %vm360_vm2, %v1306_v19 }
  0x2b   : > { %1243 = vmatmul.mubr.msk.bf16.gmra.mrb[12].mxu0 %vm360_vm2, %v1307_v20 }
  0x2c   : > { %1259 = vmatmul.mubr.msk.bf16.gmra.mrb[12].mxu1 %vm360_vm2, %v1308_v21 }
  0xe6   : > { %v1232_v23 = vpop.f32.mrb[0].mxu0 }
  0xe7   : > { %v1554_v24 = vadd.f32 %v1232_v23, %v1551_v22  ;;  %v1248_v25 = vpop.f32.mrb[0].mxu1  ;;  %v450_v26 = vpop.f32.mrb[1].mxu0 }
  0xe8   : > { %v1557_v27 = vadd.f32 %v1248_v25, %v1551_v22  ;;  %v1560_v28 = vadd.f32 %v1551_v22, %v450_v26  ;;  %v514_v29 = vpop.f32.mrb[1].mxu1  ;;  %v1233_v30 = vpop.f32.mrb[2].mxu0 }
  0xe9   : > { %v1112_v31 = vmul.f32 -1.442695, %v1554_v24  ;;  %v1564_v32 = vadd.f32 %v1551_v22, %v514_v29  ;;  %v1567_v33 = vadd.f32 %v1233_v30, %v1551_v22  ;;  %v1249_v34 = vpop.f32.mrb[2].mxu1  ;;  %v453_v35 = vpop.f32.mrb[3].mxu0 }
  0xea   : > { %v1128_v36 = vmul.f32 -1.442695, %v1557_v27  ;;  %v1110_v37 = vmul.f32 -1.442695, %v1560_v28  ;;  %v1572_v38 = vadd.f32 %v1249_v34, %v1551_v22  ;;  %v1575_v39 = vadd.f32 %v1551_v22, %v453_v35  ;;  %v517_v40 = vpop.f32.mrb[3].mxu1 }
  0xeb   : > { %1309 = vpow2.f32 %v1112_v31  ;;  %v1126_v41 = vmul.f32 -1.442695, %v1564_v32  ;;  %v1113_v42 = vmul.f32 -1.442695, %v1567_v33  ;;  %v1580_v43 = vadd.f32 %v1551_v22, %v517_v40 }
  0xec   : > { %1311 = vpow2.f32 %v1128_v36  ;;  %v1129_v44 = vmul.f32 -1.442695, %v1572_v38  ;;  %v1111_v45 = vmul.f32 -1.442695, %v1575_v39 }
  0xed   : > { %1313 = vpow2.f32 %v1110_v37  ;;  %v1127_v46 = vmul.f32 -1.442695, %v1580_v43 }
  0xee   : > { %1315 = vpow2.f32 %v1126_v41  ;;  %v1236_v47 = vpop.f32.mrb[4].mxu0 }
  0xef   : > { %1317 = vpow2.f32 %v1113_v42  ;;  %v1586_v48 = vadd.f32 %v1236_v47, %v1551_v22  ;;  %v1252_v49 = vpop.f32.mrb[4].mxu1  ;;  %v466_v50 = vpop.f32.mrb[5].mxu0 }
  0xf0   : > { %1319 = vpow2.f32 %v1129_v44  ;;  %v1589_v51 = vadd.f32 %v1252_v49, %v1551_v22  ;;  %v1592_v52 = vadd.f32 %v1551_v22, %v466_v50  ;;  %v530_v53 = vpop.f32.mrb[5].mxu1  ;;  %v1237_v54 = vpop.f32.mrb[6].mxu0 }
  0xf1   : > { %1321 = vpow2.f32 %v1111_v45  ;;  %v1116_v55 = vmul.f32 -1.442695, %v1586_v48  ;;  %v1596_v56 = vadd.f32 %v1551_v22, %v530_v53  ;;  %v1599_v57 = vadd.f32 %v1237_v54, %v1551_v22  ;;  %v1253_v58 = vpop.f32.mrb[6].mxu1  ;;  %v469_v59 = vpop.f32.mrb[7].mxu0 }
  0xf2   : > { %1323 = vpow2.f32 %v1127_v46  ;;  %v1132_v60 = vmul.f32 -1.442695, %v1589_v51  ;;  %v1114_v61 = vmul.f32 -1.442695, %v1592_v52  ;;  %v533_v62 = vpop.f32.mrb[7].mxu1  ;;  %v1608_v23 = vadd.f32 %v1253_v58, %v1551_v22 }
  0xf3   : > { %1325 = vpow2.f32 %v1116_v55  ;;  %v1130_v63 = vmul.f32 -1.442695, %v1596_v56  ;;  %v1117_v0 = vmul.f32 -1.442695, %v1599_v57  ;;  %v1611_v29 = vadd.f32 %v1551_v22, %v469_v59 }
  0xf4   : > { %1327 = vpow2.f32 %v1132_v60  ;;  %v1614_v34 = vadd.f32 %v1551_v22, %v533_v62  ;;  %v1133_v45 = vmul.f32 -1.442695, %v1608_v23 }
  0xf5   : > { %v1310_v1 = vpop.eup %1309  ;;  %1329 = vpow2.f32 %v1114_v61  ;;  %v1115_v54 = vmul.f32 -1.442695, %v1611_v29 }
  0xf6   : > { %v1312_v2 = vpop.eup %1311  ;;  %v675_v3 = vadd.f32 1.0, %v1310_v1  ;;  %1331 = vpow2.f32 %v1130_v63  ;;  %v1240_v4 = vpop.f32.mrb[8].mxu0  ;;  %v1131_v62 = vmul.f32 -1.442695, %v1614_v34 }
  0xf7   : > { %v1314_v5 = vpop.eup %1313  ;;  %v691_v6 = vadd.f32 1.0, %v1312_v2  ;;  %1333 = vpow2.f32 %v1117_v0  ;;  %v1256_v7 = vpop.f32.mrb[8].mxu1  ;;  %v1617_v37 = vadd.f32 %v1240_v4, %v1551_v22 }
  0xf8   : > { %v482_v8 = vpop.f32.mrb[9].mxu0  ;;  %v1316_v9 = vpop.eup %1315  ;;  %1335 = vrcp.f32 %v675_v3  ;;  %v673_v10 = vadd.f32 1.0, %v1314_v5  ;;  %v1620_v40 = vadd.f32 %v1256_v7, %v1551_v22 }
  0xf9   : > { %v546_v11 = vpop.f32.mrb[9].mxu1  ;;  %v1241_v12 = vpop.f32.mrb[10].mxu0  ;;  %1337 = vrcp.f32 %v691_v6  ;;  %v689_v14 = vadd.f32 1.0, %v1316_v9  ;;  %v1624_v46 = vadd.f32 %v1551_v22, %v482_v8  ;;  %v1120_v4 = vmul.f32 -1.442695, %v1617_v37 }
  0xfa   : > { %v1318_v13 = vpop.eup %1317  ;;  %v1257_v15 = vpop.f32.mrb[10].mxu1  ;;  %1339 = vrcp.f32 %v673_v10  ;;  %v1630_v55 = vadd.f32 %v1551_v22, %v546_v11  ;;  %v1638_v63 = vadd.f32 %v1241_v12, %v1551_v22  ;;  %v1136_v5 = vmul.f32 -1.442695, %v1620_v40 }
  0xfb   : > { %v485_v16 = vpop.f32.mrb[11].mxu0  ;;  %v1320_v17 = vpop.eup %1319  ;;  %v676_v18 = vadd.f32 1.0, %v1318_v13  ;;  %1341 = vrcp.f32 %v689_v14  ;;  %v1118_v9 = vmul.f32 -1.442695, %v1624_v46  ;;  %v1651_v10 = vadd.f32 %v1257_v15, %v1551_v22 }
  0xfc   : > { %v1605_v19 = vpop.f32.mrb[11].mxu1  ;;  %v1322_v20 = vpop.eup %1321  ;;  %v692_v21 = vadd.f32 1.0, %v1320_v17  ;;  %v1134_v13 = vmul.f32 -1.442695, %v1630_v55 }
  0xfd   : > { %v1324_v25 = vpop.eup %1323  ;;  %1343 = vrcp.f32 %v676_v18  ;;  %v674_v26 = vadd.f32 1.0, %v1322_v20  ;;  %v1121_v18 = vmul.f32 -1.442695, %v1638_v63 }
  0xfe   : > { %v1326_v30 = vpop.eup %1325  ;;  %1345 = vrcp.f32 %v692_v21  ;;  %v690_v31 = vadd.f32 1.0, %v1324_v25  ;;  %v1244_v41 = vpop.f32.mrb[12].mxu0 }
  0xff   : > { %v1328_v35 = vpop.eup %1327  ;;  %1347 = vrcp.f32 %v674_v26  ;;  %v679_v36 = vadd.f32 1.0, %v1326_v30  ;;  %v1260_v47 = vpop.f32.mrb[12].mxu1 }
 0x100   : > { %v1330_v42 = vpop.eup %1329  ;;  %1349 = vrcp.f32 %v690_v31  ;;  %v695_v44 = vadd.f32 1.0, %v1328_v35  ;;  %v1626_v49 = vpop.f32.mrb[13].mxu0 }
 0x101   : > { %v1332_v50 = vpop.eup %1331  ;;  %1351 = vrcp.f32 %v679_v36  ;;  %v677_v53 = vadd.f32 1.0, %v1330_v42  ;;  %v1632_v58 = vpop.f32.mrb[13].mxu1 }
 0x102   : > { %v1634_v59 = vpop.f32.mrb[14].mxu0  ;;  %v1334_v60 = vpop.eup %1333  ;;  %1353 = vrcp.f32 %v695_v44  ;;  %v693_v61 = vadd.f32 1.0, %v1332_v50  ;;  %v1686_v44 = vadd.f32 %v1260_v47, %v1551_v22 }
 0x103   : > { %v1640_v0 = vpop.f32.mrb[14].mxu1  ;;  %v1642_v1 = vpop.f32.mrb[15].mxu0  ;;  %1355 = vrcp.f32 %v677_v53  ;;  %v680_v3 = vadd.f32 1.0, %v1334_v60 }
 0x104   : > { %v1336_v2 = vpop.eup %1335  ;;  %v1646_v6 = vpop.f32.mrb[15].mxu1  ;;  %1357 = vrcp.f32 %v693_v61 }
 0x105   : > { %v1338_v7 = vpop.eup %1337  ;;  %v771_v8 = vmul.f32 %v1336_v2, %v1554_v24  ;;  %1359 = vrcp.f32 %v680_v3  ;;  %v1663_v24 = vadd.f32 %v1551_v22, %v485_v16 }
 0x106   : > { %v1340_v11 = vpop.eup %1339  ;;  %v787_v12 = vmul.f32 %v1338_v7, %v1557_v27  ;;  %1361 = vpow2.f32 %v1133_v45  ;;  %v1670_v27 = vadd.f32 %v1551_v22, %v1605_v19  ;;  %v1680_v19 = vadd.f32 %v1244_v41, %v1551_v22 }
 0x107   : > { %v1342_v14 = vpop.eup %1341  ;;  %v1178_v17 = vpack.c.bf16 %v771_v8, %v771_v8  ;;  %v769_v15 = vmul.f32 %v1340_v11, %v1560_v28  ;;  %1363 = vpow2.f32 %v1115_v54  ;;  %v1137_v28 = vmul.f32 -1.442695, %v1651_v10 }
 0x108   : > { %v1344_v20 = vpop.eup %1343  ;;  %v1194_v21 = vpack.c.bf16 %v787_v12, %v787_v12  ;;  %v785_v25 = vmul.f32 %v1342_v14, %v1564_v32  ;;  %1365 = vpow2.f32 %v1131_v62  ;;  %v1119_v41 = vmul.f32 -1.442695, %v1663_v24 }
 0x109   : > { %v1346_v16 = vpop.eup %1345  ;;  %932 = vst.msk [vmem:[%s1658_s29 + $0x8] sm:$0xf] %vm929_vm3, %v1178_v17  ;;  %v1176_v26 = vpack.c.bf16 %v769_v15, %v769_v15  ;;  %v772_v30 = vmul.f32 %v1344_v20, %v1567_v33  ;;  %1367 = vpow2.f32 %v1120_v4  ;;  %v1135_v47 = vmul.f32 -1.442695, %v1670_v27 }
 0x10a   : > { %v1348_v31 = vpop.eup %1347  ;;  %948 = vst.msk [vmem:[%s1658_s29 + $0x48] sm:$0xf] %vm929_vm3, %v1194_v21  ;;  %v1192_v32 = vpack.c.bf16 %v785_v25, %v785_v25  ;;  %v788_v35 = vmul.f32 %v1346_v16, %v1572_v38  ;;  %1369 = vpow2.f32 %v1136_v5  ;;  %v1124_v62 = vmul.f32 -1.442695, %v1680_v19 }
 0x10b   : > { %v1350_v36 = vpop.eup %1349  ;;  %930 = vst.msk [vmem:[%s1658_s29] sm:$0xf] %vm929_vm3, %v1176_v26  ;;  %v1179_v42 = vpack.c.bf16 %v772_v30, %v772_v30  ;;  %v770_v33 = vmul.f32 %v1348_v31, %v1575_v39  ;;  %1371 = vpow2.f32 %v1118_v9  ;;  %v1140_v4 = vmul.f32 -1.442695, %v1686_v44 }
 0x10c   : > { %v1352_v45 = vpop.eup %1351  ;;  %946 = vst.msk [vmem:[%s1658_s29 + $0x40] sm:$0xf] %vm929_vm3, %v1192_v32  ;;  %v1195_v38 = vpack.c.bf16 %v788_v35, %v788_v35  ;;  %v786_v50 = vmul.f32 %v1350_v36, %v1580_v43  ;;  %1373 = vpow2.f32 %v1134_v13  ;;  %v1720_v35 = vadd.f32 %v1551_v22, %v1626_v49 }
 0x10d   : > { %v1354_v53 = vpop.eup %1353  ;;  %933 = vst.msk [vmem:[%s1658_s29 + $0xc] sm:$0xf] %vm929_vm3, %v1179_v42  ;;  %v1177_v54 = vpack.c.bf16 %v770_v33, %v770_v33  ;;  %v775_v39 = vmul.f32 %v1352_v45, %v1586_v48  ;;  %1375 = vpow2.f32 %v1121_v18  ;;  %v1724_v33 = vadd.f32 %v1551_v22, %v1632_v58 }
 0x10e   : > { %v1356_v60 = vpop.eup %1355  ;;  %949 = vst.msk [vmem:[%s1658_s29 + $0x4c] sm:$0xf] %vm929_vm3, %v1195_v38  ;;  %v1193_v61 = vpack.c.bf16 %v786_v50, %v786_v50  ;;  %v791_v43 = vmul.f32 %v1354_v53, %v1589_v51  ;;  %1377 = vpow2.f32 %v1137_v28  ;;  %v1728_v50 = vadd.f32 %v1634_v59, %v1551_v22 }
 0x10f   : > { %v1358_v2 = vpop.eup %1357  ;;  %931 = vst.msk [vmem:[%s1658_s29 + $0x4] sm:$0xf] %vm929_vm3, %v1177_v54  ;;  %v1182_v3 = vpack.c.bf16 %v775_v39, %v775_v39  ;;  %v773_v48 = vmul.f32 %v1356_v60, %v1592_v52  ;;  %1379 = vpow2.f32 %v1119_v41  ;;  %v1732_v49 = vadd.f32 %v1640_v0, %v1551_v22 }
 0x110   : > { %v1360_v5 = vpop.eup %1359  ;;  %947 = vst.msk [vmem:[%s1658_s29 + $0x44] sm:$0xf] %vm929_vm3, %v1193_v61  ;;  %v1198_v7 = vpack.c.bf16 %v791_v43, %v791_v43  ;;  %v789_v51 = vmul.f32 %v1358_v2, %v1596_v56  ;;  %1381 = vpow2.f32 %v1135_v47  ;;  %v1122_v58 = vmul.f32 -1.442695, %v1720_v35 }
 0x111   : > { %v1362_v8 = vpop.eup %1361  ;;  %936 = vst.msk [vmem:[%s1658_s29 + $0x18] sm:$0xf] %vm929_vm3, %v1182_v3  ;;  %v1180_v9 = vpack.c.bf16 %v773_v48, %v773_v48  ;;  %v776_v11 = vmul.f32 %v1360_v5, %v1599_v57  ;;  %1383 = vpow2.f32 %v1124_v62  ;;  %v1737_v47 = vadd.f32 %v1551_v22, %v1642_v1 }
 0x112   : > { %v1364_v52 = vpop.eup %1363  ;;  %952 = vst.msk [vmem:[%s1658_s29 + $0x58] sm:$0xf] %vm929_vm3, %v1198_v7  ;;  %v1196_v12 = vpack.c.bf16 %v789_v51, %v789_v51  ;;  %v696_v13 = vadd.f32 1.0, %v1362_v8  ;;  %1385 = vpow2.f32 %v1140_v4  ;;  %v1138_v61 = vmul.f32 -1.442695, %v1724_v33 }
 0x113   : > { %v1366_v14 = vpop.eup %1365  ;;  %934 = vst.msk [vmem:[%s1658_s29 + $0x10] sm:$0xf] %vm929_vm3, %v1180_v9  ;;  %v1183_v56 = vpack.c.bf16 %v776_v11, %v776_v11  ;;  %v678_v17 = vadd.f32 1.0, %v1364_v52  ;;  %v1742_v43 = vadd.f32 %v1551_v22, %v1646_v6  ;;  %v1125_v2 = vmul.f32 -1.442695, %v1728_v50 }
 0x114   : > { %v1368_v15 = vpop.eup %1367  ;;  %950 = vst.msk [vmem:[%s1658_s29 + $0x50] sm:$0xf] %vm929_vm3, %v1196_v12  ;;  %1387 = vrcp.f32 %v696_v13  ;;  %v694_v18 = vadd.f32 1.0, %v1366_v14  ;;  %v1141_v48 = vmul.f32 -1.442695, %v1732_v49 }
 0x115   : > { %v1370_v57 = vpop.eup %1369  ;;  %937 = vst.msk [vmem:[%s1658_s29 + $0x1c] sm:$0xf] %vm929_vm3, %v1183_v56  ;;  %1389 = vrcp.f32 %v678_v17  ;;  %v683_v20 = vadd.f32 1.0, %v1368_v15  ;;  %v1123_v22 = vmul.f32 -1.442695, %v1737_v47 }
 0x116   : > { %v1372_v21 = vpop.eup %1371  ;;  %1391 = vrcp.f32 %v694_v18  ;;  %v699_v25 = vadd.f32 1.0, %v1370_v57  ;;  %v1139_v8 = vmul.f32 -1.442695, %v1742_v43 }
 0x117   : > { %v1374_v16 = vpop.eup %1373  ;;  %1393 = vrcp.f32 %v683_v20  ;;  %v681_v26 = vadd.f32 1.0, %v1372_v21 }
 0x118   : > { %v1376_v30 = vpop.eup %1375  ;;  %1395 = vrcp.f32 %v699_v25  ;;  %v697_v28 = vadd.f32 1.0, %v1374_v16 }
 0x119   : > { %v1378_v31 = vpop.eup %1377  ;;  %1397 = vrcp.f32 %v681_v26  ;;  %v684_v32 = vadd.f32 1.0, %v1376_v30 }
 0x11a   : > { %v1380_v36 = vpop.eup %1379  ;;  %1399 = vrcp.f32 %v697_v28  ;;  %v700_v42 = vadd.f32 1.0, %v1378_v31 }
 0x11b   : > { %v1382_v45 = vpop.eup %1381  ;;  %1401 = vrcp.f32 %v684_v32  ;;  %v682_v38 = vadd.f32 1.0, %v1380_v36 }
 0x11c   : > { %v1384_v41 = vpop.eup %1383  ;;  %1403 = vrcp.f32 %v700_v42  ;;  %v698_v53 = vadd.f32 1.0, %v1382_v45 }
 0x11d   : > { %v1386_v54 = vpop.eup %1385  ;;  %1405 = vrcp.f32 %v682_v38  ;;  %v687_v39 = vadd.f32 1.0, %v1384_v41 }
 0x11e   : > { %v1388_v60 = vpop.eup %1387  ;;  %1407 = vrcp.f32 %v698_v53  ;;  %v703_v59 = vadd.f32 1.0, %v1386_v54 }
 0x11f   : > { %v1390_v0 = vpop.eup %1389  ;;  %v792_v62 = vmul.f32 %v1388_v60, %v1608_v23  ;;  %1409 = vrcp.f32 %v687_v39 }
 0x120   : > { %v1392_v3 = vpop.eup %1391  ;;  %v774_v1 = vmul.f32 %v1390_v0, %v1611_v29  ;;  %1411 = vrcp.f32 %v703_v59 }
 0x121   : > { %v1394_v4 = vpop.eup %1393  ;;  %v1199_v5 = vpack.c.bf16 %v792_v62, %v792_v62  ;;  %v790_v7 = vmul.f32 %v1392_v3, %v1614_v34  ;;  %1413 = vpow2.f32 %v1122_v58 }
 0x122   : > { %v1396_v6 = vpop.eup %1395  ;;  %v1181_v23 = vpack.c.bf16 %v774_v1, %v774_v1  ;;  %v779_v51 = vmul.f32 %v1394_v4, %v1617_v37  ;;  %1415 = vpow2.f32 %v1138_v61 }
 0x123   : > { %v1398_v29 = vpop.eup %1397  ;;  %953 = vst.msk [vmem:[%s1658_s29 + $0x5c] sm:$0xf] %vm929_vm3, %v1199_v5  ;;  %v1197_v9 = vpack.c.bf16 %v790_v7, %v790_v7  ;;  %v795_v11 = vmul.f32 %v1396_v6, %v1620_v40  ;;  %1417 = vpow2.f32 %v1125_v2 }
 0x124   : > { %v1400_v34 = vpop.eup %1399  ;;  %935 = vst.msk [vmem:[%s1658_s29 + $0x14] sm:$0xf] %vm929_vm3, %v1181_v23  ;;  %v1186_v52 = vpack.c.bf16 %v779_v51, %v779_v51  ;;  %v777_v12 = vmul.f32 %v1398_v29, %v1624_v46  ;;  %1419 = vpow2.f32 %v1141_v48 }
 0x125   : > { %v1402_v37 = vpop.eup %1401  ;;  %951 = vst.msk [vmem:[%s1658_s29 + $0x54] sm:$0xf] %vm929_vm3, %v1197_v9  ;;  %v1202_v13 = vpack.c.bf16 %v795_v11, %v795_v11  ;;  %v793_v14 = vmul.f32 %v1400_v34, %v1630_v55  ;;  %1421 = vpow2.f32 %v1123_v22 }
 0x126   : > { %v1404_v56 = vpop.eup %1403  ;;  %940 = vst.msk [vmem:[%s1658_s29 + $0x28] sm:$0xf] %vm929_vm3, %v1186_v52  ;;  %v1184_v40 = vpack.c.bf16 %v777_v12, %v777_v12  ;;  %v780_v17 = vmul.f32 %v1402_v37, %v1638_v63  ;;  %1423 = vpow2.f32 %v1139_v8 }
 0x127   : > { %v1406_v15 = vpop.eup %1405  ;;  %956 = vst.msk [vmem:[%s1658_s29 + $0x68] sm:$0xf] %vm929_vm3, %v1202_v13  ;;  %v1200_v46 = vpack.c.bf16 %v793_v14, %v793_v14  ;;  %v796_v18 = vmul.f32 %v1404_v56, %v1651_v10 }
 0x128   : > { %v1408_v57 = vpop.eup %1407  ;;  %938 = vst.msk [vmem:[%s1658_s29 + $0x20] sm:$0xf] %vm929_vm3, %v1184_v40  ;;  %v1187_v55 = vpack.c.bf16 %v780_v17, %v780_v17  ;;  %v778_v20 = vmul.f32 %v1406_v15, %v1663_v24 }
 0x129   : > { %v1410_v21 = vpop.eup %1409  ;;  %954 = vst.msk [vmem:[%s1658_s29 + $0x60] sm:$0xf] %vm929_vm3, %v1200_v46  ;;  %v1203_v63 = vpack.c.bf16 %v796_v18, %v796_v18  ;;  %v794_v25 = vmul.f32 %v1408_v57, %v1670_v27 }
 0x12a   : > { %v1412_v16 = vpop.eup %1411  ;;  %941 = vst.msk [vmem:[%s1658_s29 + $0x2c] sm:$0xf] %vm929_vm3, %v1187_v55  ;;  %v1185_v26 = vpack.c.bf16 %v778_v20, %v778_v20  ;;  %v783_v10 = vmul.f32 %v1410_v21, %v1680_v19 }
 0x12b   : > { %v1414_v30 = vpop.eup %1413  ;;  %957 = vst.msk [vmem:[%s1658_s29 + $0x6c] sm:$0xf] %vm929_vm3, %v1203_v63  ;;  %v1201_v28 = vpack.c.bf16 %v794_v25, %v794_v25  ;;  %v799_v24 = vmul.f32 %v1412_v16, %v1686_v44 }
 0x12c   : > { %v1416_v31 = vpop.eup %1415  ;;  %939 = vst.msk [vmem:[%s1658_s29 + $0x24] sm:$0xf] %vm929_vm3, %v1185_v26  ;;  %v1190_v32 = vpack.c.bf16 %v783_v10, %v783_v10  ;;  %v685_v36 = vadd.f32 1.0, %v1414_v30 }
 0x12d   : > { %v1418_v27 = vpop.eup %1417  ;;  %955 = vst.msk [vmem:[%s1658_s29 + $0x64] sm:$0xf] %vm929_vm3, %v1201_v28  ;;  %v1206_v42 = vpack.c.bf16 %v799_v24, %v799_v24  ;;  %v701_v45 = vadd.f32 1.0, %v1416_v31 }
 0x12e   : > { %v1420_v38 = vpop.eup %1419  ;;  %944 = vst.msk [vmem:[%s1658_s29 + $0x38] sm:$0xf] %vm929_vm3, %v1190_v32  ;;  %1425 = vrcp.f32 %v685_v36  ;;  %v688_v19 = vadd.f32 1.0, %v1418_v27 }
 0x12f   : > { %v1422_v41 = vpop.eup %1421  ;;  %960 = vst.msk [vmem:[%s1658_s29 + $0x78] sm:$0xf] %vm929_vm3, %v1206_v42  ;;  %1427 = vrcp.f32 %v701_v45  ;;  %v704_v44 = vadd.f32 1.0, %v1420_v38 }
 0x130   : > { %v1424_v53 = vpop.eup %1423  ;;  %1429 = vrcp.f32 %v688_v19  ;;  %v686_v54 = vadd.f32 1.0, %v1422_v41 }
 0x131   : > { %1431 = vrcp.f32 %v704_v44  ;;  %v702_v39 = vadd.f32 1.0, %v1424_v53 }
 0x132   : > { %1433 = vrcp.f32 %v686_v54 }
 0x133   : > { %1435 = vrcp.f32 %v702_v39 }
 0x138   : > { %v1426_v58 = vpop.eup %1425 }
 0x139   : > { %v1428_v60 = vpop.eup %1427  ;;  %v781_v59 = vmul.f32 %v1426_v58, %v1720_v35 }
 0x13a   : > { %v1430_v61 = vpop.eup %1429  ;;  %v797_v0 = vmul.f32 %v1428_v60, %v1724_v33 }
 0x13b   : > { %v1432_v62 = vpop.eup %1431  ;;  %v1188_v2 = vpack.c.bf16 %v781_v59, %v781_v59  ;;  %v784_v3 = vmul.f32 %v1430_v61, %v1728_v50 }
 0x13c   : > { %v1434_v1 = vpop.eup %1433  ;;  %v1204_v48 = vpack.c.bf16 %v797_v0, %v797_v0  ;;  %v800_v4 = vmul.f32 %v1432_v62, %v1732_v49 }
 0x13d   : > { %v1436_v5 = vpop.eup %1435  ;;  %942 = vst.msk [vmem:[%s1658_s29 + $0x30] sm:$0xf] %vm929_vm3, %v1188_v2  ;;  %v1191_v7 = vpack.c.bf16 %v784_v3, %v784_v3  ;;  %v782_v35 = vmul.f32 %v1434_v1, %v1737_v47 }
 0x13e   : > { %958 = vst.msk [vmem:[%s1658_s29 + $0x70] sm:$0xf] %vm929_vm3, %v1204_v48  ;;  %v1207_v33 = vpack.c.bf16 %v800_v4, %v800_v4  ;;  %v798_v22 = vmul.f32 %v1436_v5, %v1742_v43 }
 0x13f   : > { %945 = vst.msk [vmem:[%s1658_s29 + $0x3c] sm:$0xf] %vm929_vm3, %v1191_v7  ;;  %v1189_v6 = vpack.c.bf16 %v782_v35, %v782_v35 }
 0x140   : > { %961 = vst.msk [vmem:[%s1658_s29 + $0x7c] sm:$0xf] %vm929_vm3, %v1207_v33  ;;  %v1205_v50 = vpack.c.bf16 %v798_v22, %v798_v22 }
 0x141   : > { %943 = vst.msk [vmem:[%s1658_s29 + $0x34] sm:$0xf] %vm929_vm3, %v1189_v6 }
 0x142   : > { %959 = vst.msk [vmem:[%s1658_s29 + $0x74] sm:$0xf] %vm929_vm3, %v1205_v50 }
 0x143 PF: > { %s13_s14 = sadd.s32 1, %s1459_s14   ;;  %s1818_s12 = smov %s1455_s13 }
 0x144   : > { %p10_p5 = scmp.ge.s32.totalorder %s13_s14, 10   ;;  %s1819_s13 = smov %s1821_s15 }
 0x146   :  { %12 = sbr.rel (!%p10_p5) target bundleno = 2 (0x2), region = 68 }

// kernel: yolox_forward.32
= control target key start
LH: loop header
LB: loop body
LE: loop exit
PB: predicated region body
PF: predicated region fallthrough
CT: control target
= control target key end

     0   :  { %s1623_s12 = smov 0   ;;  %s1625_s13 = smov 0   ;;  %s1968_s0 = inlined_call_operand.vmem [shape: bf16[512,144], index: 0, kind: input, shape index: {}]   ;;  %s1969_s1 = inlined_call_operand.vmem [shape: bf16[144,32], index: 1, kind: input, shape index: {}]   ;;  %s1970_s2 = inlined_call_operand.vmem [shape: f32[1,32], index: 2, kind: input, shape index: {}]   ;;  %s1971_s3 = inlined_call_operand.vmem [shape: bf16[512,32], index: 3, kind: output, shape index: {}]  }
   0x1   :  { %s1627_s14 = smov 0  }
   0x2 LB: > { %s25_s15 = sadd.s32 1, %s1596_s13  ;;  %p1187_p0 = scmp.ge.s32.totalorder %s1600_s14, 1  ;;  %s1600_s14 = sphi %s1627_s14, %s13_s14   ;;  %s1596_s13 = sphi %s1625_s13, %s1973_s13   ;;  %s1592_s12 = sphi %s1623_s12, %s1972_s12  }
   0x3   : > { %p27_p1 = scmp.ge.s32.totalorder %s25_s15, 2  ;;  %p170_p2 = scmp.lt.s32.totalorder %s1600_s14, 3 }
   0x5   : > { %s1975_s15 = smov (%p27_p1, %s25_s15), 0  ;;  %p171_p3 = pnand %p1187_p0, %p170_p2 }
   0x6   : > { %v1393_v0 = vld [vmem:[%s1969_s1] sm:$0xff] (!%p171_p3)   ;;  %v1602_v1 = vmov (!%p171_p3), 0   ;;  %s1188_s18 = sshll.u32 (!%p171_p3), %s1592_s12, 5  ;;  %v1394_v2 = vld [vmem:[%s1969_s1 + $0x8] sm:$0xff] (!%p171_p3)   ;;  %v1395_v3 = vld [vmem:[%s1969_s1 + $0x10] sm:$0xff] (!%p171_p3)   ;;  %vm484_vm0 = vcmask (!%p171_p3), 130048  }
   0x7   : > { %174 = sbr.rel (%p171_p3) target bundleno = 353 (0x161), region = 32  ;;  %533 = vmatprep.subr.bf16.mxu0 (!%p171_p3), %v1602_v1  ;;  %1350 = vmatprep.subr.bf16.mxu1 (!%p171_p3), %v1602_v1  ;;  %p206_p4 = scmp.lt.s32.totalorder (!%p171_p3), %s1188_s18, 63  ;;  %v1396_v4 = vld [vmem:[%s1969_s1 + $0x18] sm:$0xff] (!%p171_p3)   ;;  %v1397_v7 = vld [vmem:[%s1969_s1 + $0x20] sm:$0xff] (!%p171_p3)   ;;  %v1398_v8 = vld [vmem:[%s1969_s1 + $0x28] sm:$0xff] (!%p171_p3)   ;;  %vm1046_vm1 = vcmask (!%p171_p3), 257024  }
   0x8   : > { %534 = vmatpush1.bf16.msra.mxu0 (!%p171_p3), %v1393_v0  ;;  %1359 = vmatpush1.bf16.msra.mxu1 (!%p171_p3), %v1393_v0  ;;  %v1399_v9 = vld [vmem:[%s1969_s1 + $0x30] sm:$0xff] (!%p171_p3)   ;;  %v1400_v10 = vld [vmem:[%s1969_s1 + $0x38] sm:$0xff] (!%p171_p3)   ;;  %v1401_v11 = vld [vmem:[%s1969_s1 + $0x40] sm:$0xff] (!%p171_p3)  }
   0x9   : > { %535 = vmatprep.subr.bf16.mxu0 (!%p171_p3), %v1602_v1  ;;  %1351 = vmatprep.subr.bf16.mxu1 (!%p171_p3), %v1602_v1  ;;  %v1727_v42 = vld [vmem:[%s1970_s2] ss:$0 sm:$0xff] (!%p171_p3) }
   0xc   : > { %536 = vmatpush1.bf16.msra.mxu0 (!%p171_p3), %v1394_v2  ;;  %1360 = vmatpush1.bf16.msra.mxu1 (!%p171_p3), %v1394_v2 }
   0xd   : > { %537 = vmatprep.subr.bf16.mxu0 (!%p171_p3), %v1602_v1  ;;  %1352 = vmatprep.subr.bf16.mxu1 (!%p171_p3), %v1602_v1 }
   0xe   : > { %s1977_s18 = smov (!%p206_p4, %s1188_s18), 63 }
   0xf   : > { %s1317_s23 = sshll.u32 %s1977_s18, 3  ;;  %s1192_s17 = sshll.u32 %s1977_s18, 2 }
  0x10   : > { %s1656_s26 = scalar_lea.vmem %s1968_s0, %s1317_s23  ;;  %538 = vmatpush1.bf16.msra.mxu0 %v1395_v3  ;;  %1361 = vmatpush1.bf16.msra.mxu1 %v1395_v3  ;;  %s1796_s20 = scalar_lea.vmem %s1971_s3, %s1192_s17 }
  0x11   : > { %v1404_v5 = vld [vmem:[%s1656_s26 + $0x4] ss:$8 sps:$4 sm:$0xff]   ;;  %539 = vmatprep.subr.bf16.mxu0 %v1602_v1  ;;  %1353 = vmatprep.subr.bf16.mxu1 %v1602_v1  ;;  %v1402_v12 = vld [vmem:[%s1656_s26] ss:$8 sps:$4 sm:$0xff]   ;;  %v1408_v14 = vld [vmem:[%s1656_s26 + $0x14] ss:$8 sps:$4 sm:$0xff]  }
  0x12   : > { %v1407_v6 = vld [vmem:[%s1656_s26 + $0x84] ss:$8 sps:$4 sm:$0xff]   ;;  %1235 = vmatprep.mubr.msk.bf16.mxu0 %vm484_vm0, %v1404_v5  ;;  %v1405_v13 = vld [vmem:[%s1656_s26 + $0x80] ss:$8 sps:$4 sm:$0xff]   ;;  %v1410_v15 = vld [vmem:[%s1656_s26 + $0x94] ss:$8 sps:$4 sm:$0xff]  }
  0x13   : > { %1243 = vmatprep.mubr.msk.bf16.mxu1 %vm484_vm0, %v1407_v6  ;;  %v1412_v16 = vld [vmem:[%s1656_s26 + $0x10] ss:$8 sps:$4 sm:$0xff]   ;;  %v1414_v18 = vld [vmem:[%s1656_s26 + $0x24] ss:$8 sps:$4 sm:$0xff]   ;;  %v1418_v20 = vld [vmem:[%s1656_s26 + $0x20] ss:$8 sps:$4 sm:$0xff]  }
  0x14   : > { %540 = vmatpush1.bf16.msra.mxu0 %v1396_v4  ;;  %1362 = vmatpush1.bf16.msra.mxu1 %v1396_v4  ;;  %v1413_v17 = vld [vmem:[%s1656_s26 + $0x90] ss:$8 sps:$4 sm:$0xff]   ;;  %v1416_v19 = vld [vmem:[%s1656_s26 + $0xa4] ss:$8 sps:$4 sm:$0xff]   ;;  %v1419_v21 = vld [vmem:[%s1656_s26 + $0xa0] ss:$8 sps:$4 sm:$0xff]  }
  0x15   : > { %541 = vmatprep.subr.bf16.mxu0 %v1602_v1  ;;  %1354 = vmatprep.subr.bf16.mxu1 %v1602_v1  ;;  %v1420_v22 = vld [vmem:[%s1656_s26 + $0x34] ss:$8 sps:$4 sm:$0xff]   ;;  %v1424_v24 = vld [vmem:[%s1656_s26 + $0x30] ss:$8 sps:$4 sm:$0xff]   ;;  %v1426_v26 = vld [vmem:[%s1656_s26 + $0x44] ss:$8 sps:$4 sm:$0xff]  }
  0x16   : > { %v1422_v23 = vld [vmem:[%s1656_s26 + $0xb4] ss:$8 sps:$4 sm:$0xff]   ;;  %v1425_v25 = vld [vmem:[%s1656_s26 + $0xb0] ss:$8 sps:$4 sm:$0xff]   ;;  %v1428_v27 = vld [vmem:[%s1656_s26 + $0xc4] ss:$8 sps:$4 sm:$0xff]  }
  0x17   : > { %v1430_v28 = vld [vmem:[%s1656_s26 + $0x40] ss:$8 sps:$4 sm:$0xff]   ;;  %v1432_v30 = vld [vmem:[%s1656_s26 + $0x54] ss:$8 sps:$4 sm:$0xff]   ;;  %v1436_v32 = vld [vmem:[%s1656_s26 + $0x50] ss:$8 sps:$4 sm:$0xff]  }
  0x18   : > { %542 = vmatpush1.bf16.msra.mxu0 %v1397_v7  ;;  %1363 = vmatpush1.bf16.msra.mxu1 %v1397_v7  ;;  %v1431_v29 = vld [vmem:[%s1656_s26 + $0xc0] ss:$8 sps:$4 sm:$0xff]   ;;  %v1434_v31 = vld [vmem:[%s1656_s26 + $0xd4] ss:$8 sps:$4 sm:$0xff]   ;;  %v1437_v33 = vld [vmem:[%s1656_s26 + $0xd0] ss:$8 sps:$4 sm:$0xff]  }
  0x19   : > { %543 = vmatprep.subr.bf16.mxu0 %v1602_v1  ;;  %1355 = vmatprep.subr.bf16.mxu1 %v1602_v1  ;;  %v1438_v34 = vld [vmem:[%s1656_s26 + $0x64] ss:$8 sps:$4 sm:$0xff]   ;;  %v1442_v36 = vld [vmem:[%s1656_s26 + $0x60] ss:$8 sps:$4 sm:$0xff]   ;;  %v1444_v38 = vld [vmem:[%s1656_s26 + $0x74] ss:$8 sps:$4 sm:$0xff]  }
  0x1a   : > { %v1440_v35 = vld [vmem:[%s1656_s26 + $0xe4] ss:$8 sps:$4 sm:$0xff]   ;;  %v1443_v37 = vld [vmem:[%s1656_s26 + $0xe0] ss:$8 sps:$4 sm:$0xff]   ;;  %v1446_v39 = vld [vmem:[%s1656_s26 + $0xf4] ss:$8 sps:$4 sm:$0xff]  }
  0x1b   : > { %v1448_v40 = vld [vmem:[%s1656_s26 + $0x70] ss:$8 sps:$4 sm:$0xff]  }
  0x1c   : > { %544 = vmatpush1.bf16.msra.mxu0 %v1398_v8  ;;  %1364 = vmatpush1.bf16.msra.mxu1 %v1398_v8  ;;  %v1449_v41 = vld [vmem:[%s1656_s26 + $0xf0] ss:$8 sps:$4 sm:$0xff]  }
  0x1d   : > { %545 = vmatprep.subr.bf16.mxu0 %v1602_v1  ;;  %1356 = vmatprep.subr.bf16.mxu1 %v1602_v1 }
  0x20   : > { %546 = vmatpush1.bf16.msra.mxu0 %v1399_v9  ;;  %1365 = vmatpush1.bf16.msra.mxu1 %v1399_v9 }
  0x21   : > { %547 = vmatprep.subr.bf16.mxu0 %v1602_v1  ;;  %1357 = vmatprep.subr.bf16.mxu1 %v1602_v1 }
  0x24   : > { %548 = vmatpush1.bf16.msra.mxu0 %v1400_v10  ;;  %1366 = vmatpush1.bf16.msra.mxu1 %v1400_v10 }
  0x25   : > { %549 = vmatprep.subr.bf16.mxu0 %v1602_v1  ;;  %1358 = vmatprep.subr.bf16.mxu1 %v1602_v1 }
  0x28   : > { %550 = vmatpush1.bf16.msra.mxu0 %v1401_v11  ;;  %1367 = vmatpush1.bf16.msra.mxu1 %v1401_v11 }
  0x2b   : > { %566 = vmatmul.mubr.bf16.vlgmr.msra.gmra.mrb[0].mxu0 %v1402_v12  ;;  %630 = vmatmul.mubr.bf16.vlgmr.msra.gmra.mrb[0].mxu1 %v1405_v13 }
  0x2c   : > { %1236 = vmatprep.mubr.msk.bf16.mxu0 %vm484_vm0, %v1408_v14  ;;  %1244 = vmatprep.mubr.msk.bf16.mxu1 %vm484_vm0, %v1410_v15 }
  0x33   : > { %574 = vmatmul.mubr.bf16.gmra.mrb[4].mxu0 %v1412_v16  ;;  %638 = vmatmul.mubr.bf16.gmra.mrb[4].mxu1 %v1413_v17 }
  0x34   : > { %1237 = vmatprep.mubr.msk.bf16.mxu0 %vm484_vm0, %v1414_v18  ;;  %1245 = vmatprep.mubr.msk.bf16.mxu1 %vm484_vm0, %v1416_v19 }
  0x3b   : > { %582 = vmatmul.mubr.bf16.gmra.mrb[8].mxu0 %v1418_v20  ;;  %646 = vmatmul.mubr.bf16.gmra.mrb[8].mxu1 %v1419_v21 }
  0x3c   : > { %1238 = vmatprep.mubr.msk.bf16.mxu0 %vm484_vm0, %v1420_v22  ;;  %1246 = vmatprep.mubr.msk.bf16.mxu1 %vm484_vm0, %v1422_v23 }
  0x43   : > { %590 = vmatmul.mubr.bf16.gmra.mrb[12].mxu0 %v1424_v24  ;;  %654 = vmatmul.mubr.bf16.gmra.mrb[12].mxu1 %v1425_v25 }
  0x44   : > { %1239 = vmatprep.mubr.msk.bf16.mxu0 %vm484_vm0, %v1426_v26  ;;  %1247 = vmatprep.mubr.msk.bf16.mxu1 %vm484_vm0, %v1428_v27 }
  0x4b   : > { %598 = vmatmul.mubr.bf16.gmra.mrb[16].mxu0 %v1430_v28  ;;  %662 = vmatmul.mubr.bf16.gmra.mrb[16].mxu1 %v1431_v29 }
  0x4c   : > { %1240 = vmatprep.mubr.msk.bf16.mxu0 %vm484_vm0, %v1432_v30  ;;  %1248 = vmatprep.mubr.msk.bf16.mxu1 %vm484_vm0, %v1434_v31 }
  0x53   : > { %606 = vmatmul.mubr.bf16.gmra.mrb[20].mxu0 %v1436_v32  ;;  %670 = vmatmul.mubr.bf16.gmra.mrb[20].mxu1 %v1437_v33 }
  0x54   : > { %1241 = vmatprep.mubr.msk.bf16.mxu0 %vm484_vm0, %v1438_v34  ;;  %1249 = vmatprep.mubr.msk.bf16.mxu1 %vm484_vm0, %v1440_v35 }
  0x5b   : > { %614 = vmatmul.mubr.bf16.gmra.mrb[24].mxu0 %v1442_v36  ;;  %678 = vmatmul.mubr.bf16.gmra.mrb[24].mxu1 %v1443_v37 }
  0x5c   : > { %1242 = vmatprep.mubr.msk.bf16.mxu0 %vm484_vm0, %v1444_v38  ;;  %1250 = vmatprep.mubr.msk.bf16.mxu1 %vm484_vm0, %v1446_v39 }
  0x63   : > { %622 = vmatmul.mubr.bf16.gmra.mrb[28].mxu0 %v1448_v40  ;;  %686 = vmatmul.mubr.bf16.gmra.mrb[28].mxu1 %v1449_v41 }
  0xfe   : > { %v567_v43 = vpop.f32.mrb[0].mxu0  ;;  %v631_v44 = vpop.f32.mrb[0].mxu1 }
  0xff   : > { %v1730_v45 = vadd.f32 %v1727_v42, %v567_v43  ;;  %v1733_v46 = vadd.f32 %v1727_v42, %v631_v44  ;;  %v569_v47 = vpop.f32.mrb[1].mxu0  ;;  %v633_v48 = vpop.f32.mrb[1].mxu1 }
 0x100   : > { %v570_v49 = vpop.f32.mrb[2].mxu0  ;;  %v634_v50 = vpop.f32.mrb[2].mxu1 }
 0x101   : > { %v1251_v51 = vmul.f32 -1.442695, %v1730_v45  ;;  %v1267_v52 = vmul.f32 -1.442695, %v1733_v46  ;;  %v1738_v53 = vadd.f32 %v1727_v42, %v570_v49  ;;  %v1741_v54 = vadd.f32 %v1727_v42, %v634_v50  ;;  %v572_v55 = vpop.f32.mrb[3].mxu0  ;;  %v636_v56 = vpop.f32.mrb[3].mxu1 }
 0x103   : > { %1450 = vpow2.f32 %v1251_v51  ;;  %v1252_v57 = vmul.f32 -1.442695, %v1738_v53  ;;  %v1268_v58 = vmul.f32 -1.442695, %v1741_v54 }
 0x104   : > { %1452 = vpow2.f32 %v1267_v52 }
 0x105   : > { %1454 = vpow2.f32 %v1252_v57 }
 0x106   : > { %1456 = vpow2.f32 %v1268_v58  ;;  %v575_v59 = vpop.f32.mrb[4].mxu0  ;;  %v639_v60 = vpop.f32.mrb[4].mxu1 }
 0x107   : > { %v1746_v61 = vadd.f32 %v1727_v42, %v575_v59  ;;  %v1749_v62 = vadd.f32 %v1727_v42, %v639_v60  ;;  %v577_v63 = vpop.f32.mrb[5].mxu0  ;;  %v641_v0 = vpop.f32.mrb[5].mxu1 }
 0x108   : > { %v578_v1 = vpop.f32.mrb[6].mxu0  ;;  %v642_v2 = vpop.f32.mrb[6].mxu1 }
 0x109   : > { %v1253_v3 = vmul.f32 -1.442695, %v1746_v61  ;;  %v1269_v4 = vmul.f32 -1.442695, %v1749_v62  ;;  %v1754_v5 = vadd.f32 %v1727_v42, %v578_v1  ;;  %v1757_v6 = vadd.f32 %v1727_v42, %v642_v2  ;;  %v580_v7 = vpop.f32.mrb[7].mxu0  ;;  %v644_v8 = vpop.f32.mrb[7].mxu1 }
 0x10b   : > { %1458 = vpow2.f32 %v1253_v3  ;;  %v1254_v9 = vmul.f32 -1.442695, %v1754_v5  ;;  %v1270_v10 = vmul.f32 -1.442695, %v1757_v6 }
 0x10c   : > { %1460 = vpow2.f32 %v1269_v4 }
 0x10d   : > { %v1451_v11 = vpop.eup %1450  ;;  %1462 = vpow2.f32 %v1254_v9 }
 0x10e   : > { %v1453_v12 = vpop.eup %1452  ;;  %v790_v13 = vadd.f32 1.0, %v1451_v11  ;;  %1464 = vpow2.f32 %v1270_v10  ;;  %v583_v14 = vpop.f32.mrb[8].mxu0 }
 0x10f   : > { %v647_v15 = vpop.f32.mrb[8].mxu1  ;;  %v1455_v16 = vpop.eup %1454  ;;  %v806_v17 = vadd.f32 1.0, %v1453_v12  ;;  %v1762_v18 = vadd.f32 %v1727_v42, %v583_v14 }
 0x110   : > { %v1765_v19 = vadd.f32 %v1727_v42, %v647_v15  ;;  %v585_v20 = vpop.f32.mrb[9].mxu0  ;;  %v649_v21 = vpop.f32.mrb[9].mxu1  ;;  %1466 = vrcp.f32 %v790_v13  ;;  %v791_v23 = vadd.f32 1.0, %v1455_v16 }
 0x111   : > { %v1457_v22 = vpop.eup %1456  ;;  %v586_v24 = vpop.f32.mrb[10].mxu0  ;;  %1468 = vrcp.f32 %v806_v17  ;;  %v1255_v27 = vmul.f32 -1.442695, %v1762_v18 }
 0x112   : > { %v650_v25 = vpop.f32.mrb[10].mxu1  ;;  %v807_v26 = vadd.f32 1.0, %v1457_v22  ;;  %v1271_v28 = vmul.f32 -1.442695, %v1765_v19  ;;  %v588_v29 = vpop.f32.mrb[11].mxu0  ;;  %1470 = vrcp.f32 %v791_v23  ;;  %v1770_v30 = vadd.f32 %v1727_v42, %v586_v24 }
 0x113   : > { %v1773_v31 = vadd.f32 %v1727_v42, %v650_v25  ;;  %v652_v32 = vpop.f32.mrb[11].mxu1 }
 0x114   : > { %1472 = vrcp.f32 %v807_v26  ;;  %v1256_v33 = vmul.f32 -1.442695, %v1770_v30 }
 0x115   : > { %1474 = vpow2.f32 %v1255_v27  ;;  %v1272_v34 = vmul.f32 -1.442695, %v1773_v31  ;;  %v1459_v35 = vpop.eup %1458 }
 0x116   : > { %1476 = vpow2.f32 %v1271_v28  ;;  %v1461_v36 = vpop.eup %1460  ;;  %v792_v37 = vadd.f32 1.0, %v1459_v35  ;;  %v591_v38 = vpop.f32.mrb[12].mxu0 }
 0x117   : > { %1478 = vpow2.f32 %v1256_v33  ;;  %v655_v39 = vpop.f32.mrb[12].mxu1  ;;  %v1463_v40 = vpop.eup %1462  ;;  %v808_v41 = vadd.f32 1.0, %v1461_v36  ;;  %v1778_v43 = vadd.f32 %v1727_v42, %v591_v38 }
 0x118   : > { %1480 = vpow2.f32 %v1272_v34  ;;  %v1781_v44 = vadd.f32 %v1727_v42, %v655_v39  ;;  %v593_v47 = vpop.f32.mrb[13].mxu0  ;;  %v657_v48 = vpop.f32.mrb[13].mxu1  ;;  %v793_v50 = vadd.f32 1.0, %v1463_v40 }
 0x119   : > { %v1465_v49 = vpop.eup %1464  ;;  %1482 = vrcp.f32 %v792_v37  ;;  %v594_v51 = vpop.f32.mrb[14].mxu0  ;;  %v1257_v56 = vmul.f32 -1.442695, %v1778_v43 }
 0x11a   : > { %v658_v52 = vpop.f32.mrb[14].mxu1  ;;  %1484 = vrcp.f32 %v808_v41  ;;  %v809_v55 = vadd.f32 1.0, %v1465_v49  ;;  %v1273_v57 = vmul.f32 -1.442695, %v1781_v44  ;;  %v596_v58 = vpop.f32.mrb[15].mxu0  ;;  %v1787_v60 = vadd.f32 %v1727_v42, %v594_v51 }
 0x11b   : > { %v1467_v59 = vpop.eup %1466  ;;  %1486 = vrcp.f32 %v793_v50  ;;  %v1790_v63 = vadd.f32 %v1727_v42, %v658_v52  ;;  %v660_v0 = vpop.f32.mrb[15].mxu1 }
 0x11c   : > { %v1469_v1 = vpop.eup %1468  ;;  %v886_v2 = vmul.f32 %v1467_v59, %v1730_v45  ;;  %1488 = vrcp.f32 %v809_v55  ;;  %v1258_v7 = vmul.f32 -1.442695, %v1787_v60 }
 0x11d   : > { %v1471_v3 = vpop.eup %1470  ;;  %v902_v4 = vmul.f32 %v1469_v1, %v1733_v46  ;;  %1490 = vpow2.f32 %v1257_v56  ;;  %v1274_v8 = vmul.f32 -1.442695, %v1790_v63 }
 0x11e   : > { %v1473_v9 = vpop.eup %1472  ;;  %v1318_v10 = vpack.c.bf16 %v886_v2, %v886_v2  ;;  %v887_v45 = vmul.f32 %v1471_v3, %v1738_v53  ;;  %1492 = vpow2.f32 %v1273_v57  ;;  %v599_v14 = vpop.f32.mrb[16].mxu0 }
 0x11f   : > { %v1475_v11 = vpop.eup %1474  ;;  %v1334_v12 = vpack.c.bf16 %v902_v4, %v902_v4  ;;  %v903_v13 = vmul.f32 %v1473_v9, %v1741_v54  ;;  %1494 = vpow2.f32 %v1258_v7  ;;  %v663_v15 = vpop.f32.mrb[16].mxu1  ;;  %v1806_v20 = vadd.f32 %v1727_v42, %v599_v14 }
 0x120   : > { %v1477_v16 = vpop.eup %1476  ;;  %1047 = vst.msk [vmem:[%s1796_s20] sm:$0xf] %vm1046_vm1, %v1318_v10  ;;  %v1319_v46 = vpack.c.bf16 %v887_v45, %v887_v45  ;;  %v794_v17 = vadd.f32 1.0, %v1475_v11  ;;  %1496 = vpow2.f32 %v1274_v8  ;;  %v601_v53 = vpop.f32.mrb[17].mxu0  ;;  %v1811_v24 = vadd.f32 %v1727_v42, %v663_v15 }
 0x121   : > { %v665_v21 = vpop.f32.mrb[17].mxu1  ;;  %v1479_v22 = vpop.eup %1478  ;;  %1063 = vst.msk [vmem:[%s1796_s20 + $0x40] sm:$0xf] %vm1046_vm1, %v1334_v12  ;;  %v1335_v54 = vpack.c.bf16 %v903_v13, %v903_v13  ;;  %v810_v23 = vadd.f32 1.0, %v1477_v16  ;;  %v1259_v29 = vmul.f32 -1.442695, %v1806_v20 }
 0x122   : > { %v602_v25 = vpop.f32.mrb[18].mxu0  ;;  %v666_v26 = vpop.f32.mrb[18].mxu1  ;;  %1048 = vst.msk [vmem:[%s1796_s20 + $0x4] sm:$0xf] %vm1046_vm1, %v1319_v46  ;;  %1498 = vrcp.f32 %v794_v17  ;;  %v795_v28 = vadd.f32 1.0, %v1479_v22 }
 0x123   : > { %v1481_v27 = vpop.eup %1480  ;;  %v1817_v32 = vadd.f32 %v1727_v42, %v602_v25  ;;  %v604_v33 = vpop.f32.mrb[19].mxu0  ;;  %1064 = vst.msk [vmem:[%s1796_s20 + $0x44] sm:$0xf] %vm1046_vm1, %v1335_v54  ;;  %1500 = vrcp.f32 %v810_v23  ;;  %v1275_v37 = vmul.f32 -1.442695, %v1811_v24  ;;  %v1823_v38 = vadd.f32 %v1727_v42, %v666_v26 }
 0x124   : > { %v668_v34 = vpop.f32.mrb[19].mxu1  ;;  %v1483_v35 = vpop.eup %1482  ;;  %v811_v36 = vadd.f32 1.0, %v1481_v27  ;;  %1502 = vrcp.f32 %v795_v28 }
 0x125   : > { %v1485_v39 = vpop.eup %1484  ;;  %v888_v40 = vmul.f32 %v1483_v35, %v1746_v61  ;;  %v1260_v41 = vmul.f32 -1.442695, %v1817_v32  ;;  %v1276_v49 = vmul.f32 -1.442695, %v1823_v38 }
 0x126   : > { %v1487_v47 = vpop.eup %1486  ;;  %v904_v48 = vmul.f32 %v1485_v39, %v1749_v62  ;;  %1504 = vrcp.f32 %v811_v36  ;;  %v607_v57 = vpop.f32.mrb[20].mxu0 }
 0x127   : > { %v1489_v50 = vpop.eup %1488  ;;  %v1320_v51 = vpack.c.bf16 %v888_v40, %v888_v40  ;;  %v889_v52 = vmul.f32 %v1487_v47, %v1754_v5  ;;  %1506 = vpow2.f32 %v1259_v29  ;;  %v671_v58 = vpop.f32.mrb[20].mxu1  ;;  %v1834_v1 = vadd.f32 %v1727_v42, %v607_v57 }
 0x128   : > { %v1491_v55 = vpop.eup %1490  ;;  %v1336_v56 = vpack.c.bf16 %v904_v48, %v904_v48  ;;  %v905_v61 = vmul.f32 %v1489_v50, %v1757_v6  ;;  %1508 = vpow2.f32 %v1275_v37  ;;  %v609_v5 = vpop.f32.mrb[21].mxu0  ;;  %v1839_v7 = vadd.f32 %v1727_v42, %v671_v58 }
 0x129   : > { %v1493_v59 = vpop.eup %1492  ;;  %1049 = vst.msk [vmem:[%s1796_s20 + $0x8] sm:$0xf] %vm1046_vm1, %v1320_v51  ;;  %v1321_v62 = vpack.c.bf16 %v889_v52, %v889_v52  ;;  %v796_v0 = vadd.f32 1.0, %v1491_v55  ;;  %1510 = vpow2.f32 %v1260_v41  ;;  %v673_v2 = vpop.f32.mrb[21].mxu1  ;;  %v1261_v11 = vmul.f32 -1.442695, %v1834_v1 }
 0x12a   : > { %v1495_v3 = vpop.eup %1494  ;;  %1065 = vst.msk [vmem:[%s1796_s20 + $0x48] sm:$0xf] %vm1046_vm1, %v1336_v56  ;;  %v1337_v6 = vpack.c.bf16 %v905_v61, %v905_v61  ;;  %v812_v4 = vadd.f32 1.0, %v1493_v59  ;;  %1512 = vpow2.f32 %v1276_v49  ;;  %v610_v8 = vpop.f32.mrb[22].mxu0  ;;  %v1277_v16 = vmul.f32 -1.442695, %v1839_v7 }
 0x12b   : > { %v674_v9 = vpop.f32.mrb[22].mxu1  ;;  %v1497_v10 = vpop.eup %1496  ;;  %1050 = vst.msk [vmem:[%s1796_s20 + $0xc] sm:$0xf] %vm1046_vm1, %v1321_v62  ;;  %1514 = vrcp.f32 %v796_v0  ;;  %v797_v45 = vadd.f32 1.0, %v1495_v3  ;;  %v1845_v12 = vadd.f32 %v1727_v42, %v610_v8 }
 0x12c   : > { %v612_v13 = vpop.f32.mrb[23].mxu0  ;;  %v676_v14 = vpop.f32.mrb[23].mxu1  ;;  %1066 = vst.msk [vmem:[%s1796_s20 + $0x4c] sm:$0xf] %vm1046_vm1, %v1337_v6  ;;  %1516 = vrcp.f32 %v812_v4  ;;  %v813_v15 = vadd.f32 1.0, %v1497_v10  ;;  %v1851_v46 = vadd.f32 %v1727_v42, %v674_v9 }
 0x12d   : > { %v1499_v17 = vpop.eup %1498  ;;  %1518 = vrcp.f32 %v797_v45  ;;  %v1262_v53 = vmul.f32 -1.442695, %v1845_v12 }
 0x12e   : > { %v1501_v21 = vpop.eup %1500  ;;  %v890_v22 = vmul.f32 %v1499_v17, %v1762_v18  ;;  %1520 = vrcp.f32 %v813_v15  ;;  %v1278_v54 = vmul.f32 -1.442695, %v1851_v46  ;;  %v615_v29 = vpop.f32.mrb[24].mxu0 }
 0x12f   : > { %v1503_v23 = vpop.eup %1502  ;;  %v906_v25 = vmul.f32 %v1501_v21, %v1765_v19  ;;  %1522 = vpow2.f32 %v1261_v11  ;;  %v679_v33 = vpop.f32.mrb[24].mxu1  ;;  %v1860_v36 = vadd.f32 %v1727_v42, %v615_v29 }
 0x130   : > { %v1505_v26 = vpop.eup %1504  ;;  %v1322_v27 = vpack.c.bf16 %v890_v22, %v890_v22  ;;  %v891_v28 = vmul.f32 %v1503_v23, %v1770_v30  ;;  %1524 = vpow2.f32 %v1277_v16  ;;  %v617_v37 = vpop.f32.mrb[25].mxu0  ;;  %v1865_v41 = vadd.f32 %v1727_v42, %v679_v33 }
 0x131   : > { %v1507_v34 = vpop.eup %1506  ;;  %v1338_v35 = vpack.c.bf16 %v906_v25, %v906_v25  ;;  %v907_v18 = vmul.f32 %v1505_v26, %v1773_v31  ;;  %1526 = vpow2.f32 %v1262_v53  ;;  %v681_v19 = vpop.f32.mrb[25].mxu1  ;;  %v1263_v57 = vmul.f32 -1.442695, %v1860_v36 }
 0x132   : > { %v1509_v39 = vpop.eup %1508  ;;  %1051 = vst.msk [vmem:[%s1796_s20 + $0x10] sm:$0xf] %vm1046_vm1, %v1322_v27  ;;  %v1323_v40 = vpack.c.bf16 %v891_v28, %v891_v28  ;;  %v798_v30 = vadd.f32 1.0, %v1507_v34  ;;  %1528 = vpow2.f32 %v1278_v54  ;;  %v618_v47 = vpop.f32.mrb[26].mxu0  ;;  %v1279_v0 = vmul.f32 -1.442695, %v1865_v41 }
 0x133   : > { %v682_v48 = vpop.f32.mrb[26].mxu1  ;;  %v1511_v31 = vpop.eup %1510  ;;  %1067 = vst.msk [vmem:[%s1796_s20 + $0x50] sm:$0xf] %vm1046_vm1, %v1338_v35  ;;  %v1339_v49 = vpack.c.bf16 %v907_v18, %v907_v18  ;;  %v814_v50 = vadd.f32 1.0, %v1509_v39  ;;  %v1870_v51 = vadd.f32 %v1727_v42, %v618_v47 }
 0x134   : > { %v620_v52 = vpop.f32.mrb[27].mxu0  ;;  %v684_v55 = vpop.f32.mrb[27].mxu1  ;;  %1052 = vst.msk [vmem:[%s1796_s20 + $0x14] sm:$0xf] %vm1046_vm1, %v1323_v40  ;;  %1530 = vrcp.f32 %v798_v30  ;;  %v799_v61 = vadd.f32 1.0, %v1511_v31  ;;  %v1876_v58 = vadd.f32 %v1727_v42, %v682_v48 }
 0x135   : > { %v1513_v56 = vpop.eup %1512  ;;  %1068 = vst.msk [vmem:[%s1796_s20 + $0x54] sm:$0xf] %vm1046_vm1, %v1339_v49  ;;  %1532 = vrcp.f32 %v814_v50  ;;  %v1264_v3 = vmul.f32 -1.442695, %v1870_v51 }
 0x136   : > { %v1515_v59 = vpop.eup %1514  ;;  %v815_v62 = vadd.f32 1.0, %v1513_v56  ;;  %1534 = vrcp.f32 %v799_v61  ;;  %v1280_v8 = vmul.f32 -1.442695, %v1876_v58  ;;  %v623_v11 = vpop.f32.mrb[28].mxu0 }
 0x137   : > { %v1517_v5 = vpop.eup %1516  ;;  %v892_v2 = vmul.f32 %v1515_v59, %v1778_v43  ;;  %v687_v13 = vpop.f32.mrb[28].mxu1  ;;  %v1888_v16 = vadd.f32 %v1727_v42, %v623_v11 }
 0x138   : > { %v1519_v6 = vpop.eup %1518  ;;  %v908_v4 = vmul.f32 %v1517_v5, %v1781_v44  ;;  %1536 = vrcp.f32 %v815_v62  ;;  %v625_v44 = vpop.f32.mrb[29].mxu0  ;;  %v1893_v22 = vadd.f32 %v1727_v42, %v687_v13 }
 0x139   : > { %v1521_v9 = vpop.eup %1520  ;;  %v1324_v10 = vpack.c.bf16 %v892_v2, %v892_v2  ;;  %v893_v45 = vmul.f32 %v1519_v6, %v1787_v60  ;;  %1538 = vpow2.f32 %v1263_v57  ;;  %v689_v17 = vpop.f32.mrb[29].mxu1  ;;  %v1265_v34 = vmul.f32 -1.442695, %v1888_v16 }
 0x13a   : > { %v1523_v14 = vpop.eup %1522  ;;  %v1340_v43 = vpack.c.bf16 %v908_v4, %v908_v4  ;;  %v909_v15 = vmul.f32 %v1521_v9, %v1790_v63  ;;  %1540 = vpow2.f32 %v1279_v0  ;;  %v626_v54 = vpop.f32.mrb[30].mxu0  ;;  %v1281_v37 = vmul.f32 -1.442695, %v1893_v22 }
 0x13b   : > { %v1525_v53 = vpop.eup %1524  ;;  %1053 = vst.msk [vmem:[%s1796_s20 + $0x18] sm:$0xf] %vm1046_vm1, %v1324_v10  ;;  %v1325_v21 = vpack.c.bf16 %v893_v45, %v893_v45  ;;  %v800_v60 = vadd.f32 1.0, %v1523_v14  ;;  %1542 = vpow2.f32 %v1264_v3  ;;  %v690_v23 = vpop.f32.mrb[30].mxu1  ;;  %v1901_v35 = vadd.f32 %v1727_v42, %v626_v54 }
 0x13c   : > { %v1527_v63 = vpop.eup %1526  ;;  %1069 = vst.msk [vmem:[%s1796_s20 + $0x58] sm:$0xf] %vm1046_vm1, %v1340_v43  ;;  %v1341_v25 = vpack.c.bf16 %v909_v15, %v909_v15  ;;  %v816_v26 = vadd.f32 1.0, %v1525_v53  ;;  %1544 = vpow2.f32 %v1280_v8  ;;  %v628_v27 = vpop.f32.mrb[31].mxu0  ;;  %v1907_v19 = vadd.f32 %v1727_v42, %v690_v23 }
 0x13d   : > { %v692_v28 = vpop.f32.mrb[31].mxu1  ;;  %v1529_v29 = vpop.eup %1528  ;;  %1054 = vst.msk [vmem:[%s1796_s20 + $0x1c] sm:$0xf] %vm1046_vm1, %v1325_v21  ;;  %1546 = vrcp.f32 %v800_v60  ;;  %v801_v33 = vadd.f32 1.0, %v1527_v63  ;;  %v1266_v40 = vmul.f32 -1.442695, %v1901_v35 }
 0x13e   : > { %1070 = vst.msk [vmem:[%s1796_s20 + $0x5c] sm:$0xf] %vm1046_vm1, %v1341_v25  ;;  %1548 = vrcp.f32 %v816_v26  ;;  %v817_v18 = vadd.f32 1.0, %v1529_v29  ;;  %v1531_v39 = vpop.eup %1530  ;;  %v1282_v48 = vmul.f32 -1.442695, %v1907_v19 }
 0x13f   : > { %1550 = vrcp.f32 %v801_v33  ;;  %v1533_v30 = vpop.eup %1532  ;;  %v894_v47 = vmul.f32 %v1531_v39, %v1806_v20 }
 0x140   : > { %1552 = vrcp.f32 %v817_v18  ;;  %v1535_v31 = vpop.eup %1534  ;;  %v910_v49 = vmul.f32 %v1533_v30, %v1811_v24 }
 0x141   : > { %1554 = vpow2.f32 %v1265_v34  ;;  %v1326_v52 = vpack.c.bf16 %v894_v47, %v894_v47  ;;  %v895_v42 = vmul.f32 %v1535_v31, %v1817_v32 }
 0x142   : > { %v1537_v50 = vpop.eup %1536  ;;  %1556 = vpow2.f32 %v1281_v37  ;;  %v1342_v56 = vpack.c.bf16 %v910_v49, %v910_v49 }
 0x143   : > { %v1539_v55 = vpop.eup %1538  ;;  %v911_v61 = vmul.f32 %v1537_v50, %v1823_v38  ;;  %1558 = vpow2.f32 %v1266_v40  ;;  %1055 = vst.msk [vmem:[%s1796_s20 + $0x20] sm:$0xf] %vm1046_vm1, %v1326_v52  ;;  %v1327_v57 = vpack.c.bf16 %v895_v42, %v895_v42 }
 0x144   : > { %v1541_v20 = vpop.eup %1540  ;;  %v802_v59 = vadd.f32 1.0, %v1539_v55  ;;  %1560 = vpow2.f32 %v1282_v48  ;;  %1071 = vst.msk [vmem:[%s1796_s20 + $0x60] sm:$0xf] %vm1046_vm1, %v1342_v56 }
 0x145   : > { %v1543_v24 = vpop.eup %1542  ;;  %v1343_v62 = vpack.c.bf16 %v911_v61, %v911_v61  ;;  %v818_v0 = vadd.f32 1.0, %v1541_v20  ;;  %1056 = vst.msk [vmem:[%s1796_s20 + $0x24] sm:$0xf] %vm1046_vm1, %v1327_v57 }
 0x146   : > { %v1545_v32 = vpop.eup %1544  ;;  %1562 = vrcp.f32 %v802_v59  ;;  %v803_v5 = vadd.f32 1.0, %v1543_v24 }
 0x147   : > { %v1547_v2 = vpop.eup %1546  ;;  %1072 = vst.msk [vmem:[%s1796_s20 + $0x64] sm:$0xf] %vm1046_vm1, %v1343_v62  ;;  %1564 = vrcp.f32 %v818_v0  ;;  %v819_v38 = vadd.f32 1.0, %v1545_v32 }
 0x148   : > { %v1549_v3 = vpop.eup %1548  ;;  %v896_v6 = vmul.f32 %v1547_v2, %v1834_v1  ;;  %1566 = vrcp.f32 %v803_v5 }
 0x149   : > { %v1551_v4 = vpop.eup %1550  ;;  %v912_v8 = vmul.f32 %v1549_v3, %v1839_v7  ;;  %1568 = vrcp.f32 %v819_v38 }
 0x14a   : > { %v1553_v9 = vpop.eup %1552  ;;  %v1328_v10 = vpack.c.bf16 %v896_v6, %v896_v6  ;;  %v897_v45 = vmul.f32 %v1551_v4, %v1845_v12 }
 0x14b   : > { %v1555_v11 = vpop.eup %1554  ;;  %v1344_v13 = vpack.c.bf16 %v912_v8, %v912_v8  ;;  %v913_v14 = vmul.f32 %v1553_v9, %v1851_v46 }
 0x14c   : > { %v1557_v43 = vpop.eup %1556  ;;  %1057 = vst.msk [vmem:[%s1796_s20 + $0x28] sm:$0xf] %vm1046_vm1, %v1328_v10  ;;  %v1329_v1 = vpack.c.bf16 %v897_v45, %v897_v45  ;;  %v804_v15 = vadd.f32 1.0, %v1555_v11 }
 0x14d   : > { %v1559_v44 = vpop.eup %1558  ;;  %1073 = vst.msk [vmem:[%s1796_s20 + $0x68] sm:$0xf] %vm1046_vm1, %v1344_v13  ;;  %v1345_v7 = vpack.c.bf16 %v913_v14, %v913_v14  ;;  %v820_v17 = vadd.f32 1.0, %v1557_v43 }
 0x14e   : > { %v1561_v53 = vpop.eup %1560  ;;  %1058 = vst.msk [vmem:[%s1796_s20 + $0x2c] sm:$0xf] %vm1046_vm1, %v1329_v1  ;;  %1570 = vrcp.f32 %v804_v15  ;;  %v805_v12 = vadd.f32 1.0, %v1559_v44 }
 0x14f   : > { %1074 = vst.msk [vmem:[%s1796_s20 + $0x6c] sm:$0xf] %vm1046_vm1, %v1345_v7  ;;  %1572 = vrcp.f32 %v820_v17  ;;  %v821_v46 = vadd.f32 1.0, %v1561_v53 }
 0x150   : > { %v1563_v21 = vpop.eup %1562  ;;  %1574 = vrcp.f32 %v805_v12 }
 0x151   : > { %v1565_v60 = vpop.eup %1564  ;;  %v898_v54 = vmul.f32 %v1563_v21, %v1860_v36  ;;  %1576 = vrcp.f32 %v821_v46 }
 0x152   : > { %v1567_v23 = vpop.eup %1566  ;;  %v914_v63 = vmul.f32 %v1565_v60, %v1865_v41 }
 0x153   : > { %v1569_v25 = vpop.eup %1568  ;;  %v1330_v26 = vpack.c.bf16 %v898_v54, %v898_v54  ;;  %v899_v27 = vmul.f32 %v1567_v23, %v1870_v51 }
 0x154   : > { %v1346_v28 = vpack.c.bf16 %v914_v63, %v914_v63  ;;  %v915_v29 = vmul.f32 %v1569_v25, %v1876_v58 }
 0x155   : > { %1059 = vst.msk [vmem:[%s1796_s20 + $0x30] sm:$0xf] %vm1046_vm1, %v1330_v26  ;;  %v1331_v33 = vpack.c.bf16 %v899_v27, %v899_v27 }
 0x156   : > { %1075 = vst.msk [vmem:[%s1796_s20 + $0x70] sm:$0xf] %vm1046_vm1, %v1346_v28  ;;  %v1347_v34 = vpack.c.bf16 %v915_v29, %v915_v29 }
 0x157   : > { %1060 = vst.msk [vmem:[%s1796_s20 + $0x34] sm:$0xf] %vm1046_vm1, %v1331_v33 }
 0x158   : > { %v1571_v36 = vpop.eup %1570  ;;  %1076 = vst.msk [vmem:[%s1796_s20 + $0x74] sm:$0xf] %vm1046_vm1, %v1347_v34 }
 0x159   : > { %v1573_v41 = vpop.eup %1572  ;;  %v900_v51 = vmul.f32 %v1571_v36, %v1888_v16 }
 0x15a   : > { %v1575_v18 = vpop.eup %1574  ;;  %v916_v58 = vmul.f32 %v1573_v41, %v1893_v22 }
 0x15b   : > { %v1577_v37 = vpop.eup %1576  ;;  %v1332_v39 = vpack.c.bf16 %v900_v51, %v900_v51  ;;  %v901_v40 = vmul.f32 %v1575_v18, %v1901_v35 }
 0x15c   : > { %v1348_v30 = vpack.c.bf16 %v916_v58, %v916_v58  ;;  %v917_v47 = vmul.f32 %v1577_v37, %v1907_v19 }
 0x15d   : > { %1061 = vst.msk [vmem:[%s1796_s20 + $0x38] sm:$0xf] %vm1046_vm1, %v1332_v39  ;;  %v1333_v48 = vpack.c.bf16 %v901_v40, %v901_v40 }
 0x15e   : > { %1077 = vst.msk [vmem:[%s1796_s20 + $0x78] sm:$0xf] %vm1046_vm1, %v1348_v30  ;;  %v1349_v31 = vpack.c.bf16 %v917_v47, %v917_v47 }
 0x15f   : > { %1062 = vst.msk [vmem:[%s1796_s20 + $0x3c] sm:$0xf] %vm1046_vm1, %v1333_v48 }
 0x160   : > { %1078 = vst.msk [vmem:[%s1796_s20 + $0x7c] sm:$0xf] %vm1046_vm1, %v1349_v31 }
 0x161 PF: > { %s13_s14 = sadd.s32 1, %s1600_s14   ;;  %s1972_s12 = smov %s1596_s13 }
 0x162   : > { %p10_p5 = scmp.ge.s32.totalorder %s13_s14, 4   ;;  %s1973_s13 = smov %s1975_s15 }
 0x164   :  { %12 = sbr.rel (!%p10_p5) target bundleno = 2 (0x2), region = 68 }

// kernel: yolox_forward.33
= control target key start
LH: loop header
LB: loop body
LE: loop exit
PB: predicated region body
PF: predicated region fallthrough
CT: control target
= control target key end

     0   :  { %vm318_vm0 = vcmask 261120   ;;  %vm713_vm1 = vcmask 519168   ;;  %s1378_s1 = inlined_call_operand.vmem [shape: bf16[288,64], index: 1, kind: input, shape index: {}]   ;;  %s1379_s0 = inlined_call_operand.vmem [shape: bf16[128,288], index: 0, kind: input, shape index: {}]   ;;  %s1380_s2 = inlined_call_operand.vmem [shape: f32[1,64], index: 2, kind: input, shape index: {}]   ;;  %s1381_s3 = inlined_call_operand.vmem [shape: bf16[128,64], index: 3, kind: output, shape index: {}]  }
   0x1   :  { %v943_v0 = vld [vmem:[%s1378_s1 + $0x40] sm:$0xff]   ;;  %v945_v2 = vld [vmem:[%s1378_s1 + $0x48] sm:$0xff]   ;;  %v947_v4 = vld [vmem:[%s1378_s1 + $0x50] sm:$0xff]  }
   0x2   :  { %v944_v1 = vld [vmem:[%s1378_s1] sm:$0xff]   ;;  %833 = vmatprep.subr.bf16.mxu0 %v943_v0  ;;  %927 = vmatprep.subr.bf16.mxu1 %v943_v0  ;;  %v946_v3 = vld [vmem:[%s1378_s1 + $0x8] sm:$0xff]   ;;  %v948_v5 = vld [vmem:[%s1378_s1 + $0x10] sm:$0xff]  }
   0x3   :  { %834 = vmatpush3.bf16.msra.mxu0 %v944_v1  ;;  %935 = vmatpush3.bf16.msra.mxu1 %v944_v1  ;;  %v949_v6 = vld [vmem:[%s1378_s1 + $0x58] sm:$0xff]   ;;  %v951_v8 = vld [vmem:[%s1378_s1 + $0x60] sm:$0xff]   ;;  %v953_v10 = vld [vmem:[%s1378_s1 + $0x68] sm:$0xff]  }
   0x4   :  { %835 = vmatprep.subr.bf16.mxu0 %v945_v2  ;;  %928 = vmatprep.subr.bf16.mxu1 %v945_v2  ;;  %v950_v7 = vld [vmem:[%s1378_s1 + $0x18] sm:$0xff]   ;;  %v952_v9 = vld [vmem:[%s1378_s1 + $0x20] sm:$0xff]   ;;  %v954_v13 = vld [vmem:[%s1378_s1 + $0x28] sm:$0xff]  }
   0x5   :  { %v961_v11 = vld [vmem:[%s1379_s0 + $0x4] ss:$12 sps:$4 sm:$0xff]   ;;  %v964_v12 = vld [vmem:[%s1379_s0 + $0x94] ss:$12 sps:$4 sm:$0xff]   ;;  %v957_v16 = vld [vmem:[%s1378_s1 + $0x78] sm:$0xff]  }
   0x6   :  { %v955_v14 = vld [vmem:[%s1378_s1 + $0x70] sm:$0xff]   ;;  %375 = vmatprep.mubr.bf16.mxu0 %v961_v11  ;;  %423 = vmatprep.mubr.bf16.mxu1 %v964_v12  ;;  %v958_v17 = vld [vmem:[%s1378_s1 + $0x38] sm:$0xff]   ;;  %v959_v18 = vld [vmem:[%s1379_s0] ss:$12 sps:$4 sm:$0xff]  }
   0x7   :  { %836 = vmatpush3.bf16.msra.mxu0 %v946_v3  ;;  %936 = vmatpush3.bf16.msra.mxu1 %v946_v3  ;;  %v956_v15 = vld [vmem:[%s1378_s1 + $0x30] sm:$0xff]   ;;  %v965_v19 = vld [vmem:[%s1378_s1 + $0x80] sm:$0xff]   ;;  %v966_v21 = vld [vmem:[%s1379_s0 + $0x1c] ss:$12 sps:$4 sm:$0xff]  }
   0x8   :  { %837 = vmatprep.subr.bf16.mxu0 %v947_v4  ;;  %929 = vmatprep.subr.bf16.mxu1 %v947_v4  ;;  %v962_v20 = vld [vmem:[%s1379_s0 + $0x90] ss:$12 sps:$4 sm:$0xff]   ;;  %v968_v22 = vld [vmem:[%s1379_s0 + $0xac] ss:$12 sps:$4 sm:$0xff]   ;;  %v971_v25 = vld [vmem:[%s1379_s0 + $0xa8] ss:$12 sps:$4 sm:$0xff]  }
   0x9   :  { %v972_v23 = vld [vmem:[%s1378_s1 + $0x88] sm:$0xff]   ;;  %v970_v24 = vld [vmem:[%s1379_s0 + $0x18] ss:$12 sps:$4 sm:$0xff]   ;;  %v973_v26 = vld [vmem:[%s1379_s0 + $0x34] ss:$12 sps:$4 sm:$0xff]  }
   0xa   :  { %v975_v27 = vld [vmem:[%s1379_s0 + $0x8] ss:$12 sps:$4 sm:$0xff]   ;;  %v976_v28 = vld [vmem:[%s1379_s0 + $0x30] ss:$12 sps:$4 sm:$0xff]   ;;  %v977_v29 = vld [vmem:[%s1379_s0 + $0x20] ss:$12 sps:$4 sm:$0xff]  }
   0xb   :  { %838 = vmatpush3.bf16.msra.mxu0 %v948_v5  ;;  %937 = vmatpush3.bf16.msra.mxu1 %v948_v5  ;;  %v978_v30 = vld [vmem:[%s1379_s0 + $0x4c] ss:$12 sps:$4 sm:$0xff]   ;;  %v981_v32 = vld [vmem:[%s1379_s0 + $0x48] ss:$12 sps:$4 sm:$0xff]   ;;  %v982_v33 = vld [vmem:[%s1379_s0 + $0x50] ss:$12 sps:$4 sm:$0xff]  }
   0xc   :  { %839 = vmatprep.subr.bf16.mxu0 %v949_v6  ;;  %930 = vmatprep.subr.bf16.mxu1 %v949_v6  ;;  %v980_v31 = vld [vmem:[%s1379_s0 + $0x38] ss:$12 sps:$4 sm:$0xff]   ;;  %v985_v35 = vld [vmem:[%s1379_s0 + $0x68] ss:$12 sps:$4 sm:$0xff]   ;;  %v986_v36 = vld [vmem:[%s1379_s0 + $0x60] ss:$12 sps:$4 sm:$0xff]  }
   0xd   :  { %v983_v34 = vld [vmem:[%s1379_s0 + $0x64] ss:$12 sps:$4 sm:$0xff]   ;;  %v987_v37 = vld [vmem:[%s1379_s0 + $0x80] ss:$12 sps:$4 sm:$0xff]   ;;  %v988_v38 = vld [vmem:[%s1379_s0 + $0x7c] ss:$12 sps:$4 sm:$0xff]  }
   0xe   :  { %v990_v39 = vld [vmem:[%s1379_s0 + $0x98] ss:$12 sps:$4 sm:$0xff]   ;;  %v992_v41 = vld [vmem:[%s1379_s0 + $0xb0] ss:$12 sps:$4 sm:$0xff]   ;;  %v1222_v2 = vld [vmem:[%s1380_s2] ss:$0 sm:$0xff] }
   0xf   :  { %840 = vmatpush3.bf16.msra.mxu0 %v950_v7  ;;  %938 = vmatpush3.bf16.msra.mxu1 %v950_v7  ;;  %v991_v40 = vld [vmem:[%s1379_s0 + $0x78] ss:$12 sps:$4 sm:$0xff]  }
  0x10   :  { %841 = vmatprep.subr.bf16.mxu0 %v951_v8  ;;  %931 = vmatprep.subr.bf16.mxu1 %v951_v8 }
  0x13   :  { %842 = vmatpush3.bf16.msra.mxu0 %v952_v9  ;;  %939 = vmatpush3.bf16.msra.mxu1 %v952_v9 }
  0x14   :  { %843 = vmatprep.subr.bf16.mxu0 %v953_v10  ;;  %932 = vmatprep.subr.bf16.mxu1 %v953_v10 }
  0x17   :  { %844 = vmatpush3.bf16.msra.mxu0 %v954_v13  ;;  %940 = vmatpush3.bf16.msra.mxu1 %v954_v13 }
  0x18   :  { %845 = vmatprep.subr.bf16.mxu0 %v955_v14  ;;  %933 = vmatprep.subr.bf16.mxu1 %v955_v14 }
  0x1b   :  { %846 = vmatpush3.bf16.msra.mxu0 %v956_v15  ;;  %941 = vmatpush3.bf16.msra.mxu1 %v956_v15 }
  0x1c   :  { %847 = vmatprep.subr.bf16.mxu0 %v957_v16  ;;  %934 = vmatprep.subr.bf16.mxu1 %v957_v16 }
  0x1f   :  { %848 = vmatpush3.bf16.msra.mxu0 %v958_v17  ;;  %942 = vmatpush3.bf16.msra.mxu1 %v958_v17 }
  0x20   :  { %907 = vmatprep.subr.bf16.mxu1 %v965_v19 }
  0x22   :  { %376 = vmatmul.mubr.bf16.vlgmr.msra.gmra.mrb[0].mxu0 %v959_v18  ;;  %424 = vmatmul.mubr.bf16.vlgmr.msra.gmra.mrb[0].mxu1 %v962_v20 }
  0x23   :  { %908 = vmatpush3.bf16.msra.mxu1 %v965_v19  ;;  %383 = vmatprep.mubr.bf16.mxu0 %v966_v21 }
  0x24   :  { %431 = vmatprep.mubr.bf16.mxu1 %v968_v22  ;;  %909 = vmatprep.subr.bf16.mxu1 %v972_v23 }
  0x27   :  { %910 = vmatpush3.bf16.msra.mxu1 %v972_v23 }
  0x2a   :  { %384 = vmatmul.mubr.bf16.gmra.mrb[4].mxu0 %v970_v24  ;;  %432 = vmatmul.mubr.bf16.gmra.mrb[4].mxu1 %v971_v25 }
  0x2b   :  { %391 = vmatprep.mubr.bf16.mxu0 %v973_v26  ;;  %911 = vmatprep.mubr.msk.bf16.mxu1 %vm318_vm0, %v975_v27 }
  0x32   :  { %392 = vmatmul.mubr.bf16.gmra.mrb[8].mxu0 %v976_v28  ;;  %912 = vmatmul.mubr.msk.bf16.vlgmr.msra.gmra.mrb[8].mxu1 %vm318_vm0, %v977_v29 }
  0x33   :  { %399 = vmatprep.mubr.bf16.mxu0 %v978_v30  ;;  %915 = vmatprep.mubr.msk.bf16.mxu1 %vm318_vm0, %v980_v31 }
  0x3a   :  { %400 = vmatmul.mubr.bf16.gmra.mrb[12].mxu0 %v981_v32  ;;  %916 = vmatmul.mubr.msk.bf16.gmra.mrb[12].mxu1 %vm318_vm0, %v982_v33 }
  0x3b   :  { %407 = vmatprep.mubr.bf16.mxu0 %v983_v34  ;;  %919 = vmatprep.mubr.msk.bf16.mxu1 %vm318_vm0, %v985_v35 }
  0x42   :  { %408 = vmatmul.mubr.bf16.gmra.mrb[16].mxu0 %v986_v36  ;;  %920 = vmatmul.mubr.msk.bf16.gmra.mrb[16].mxu1 %vm318_vm0, %v987_v37 }
  0x43   :  { %415 = vmatprep.mubr.bf16.mxu0 %v988_v38  ;;  %923 = vmatprep.mubr.msk.bf16.mxu1 %vm318_vm0, %v990_v39 }
  0x4a   :  { %416 = vmatmul.mubr.bf16.gmra.mrb[20].mxu0 %v991_v40  ;;  %924 = vmatmul.mubr.msk.bf16.gmra.mrb[20].mxu1 %vm318_vm0, %v992_v41 }
  0xf5   :  { %v849_v42 = vpop.f32.mrb[0].mxu0  ;;  %v885_v43 = vpop.f32.mrb[0].mxu1 }
  0xf6   :  { %v850_v44 = vpop.f32.mrb[1].mxu0  ;;  %v886_v45 = vpop.f32.mrb[1].mxu1 }
  0xf7   :  { %v851_v46 = vadd.f32 %v850_v44, %v849_v42  ;;  %v852_v47 = vpop.f32.mrb[2].mxu0  ;;  %v1211_v48 = vadd.f32 %v886_v45, %v885_v43  ;;  %v888_v49 = vpop.f32.mrb[2].mxu1 }
  0xf8   :  { %v853_v50 = vpop.f32.mrb[3].mxu0  ;;  %v889_v51 = vpop.f32.mrb[3].mxu1 }
  0xf9   :  { %v854_v52 = vadd.f32 %v853_v50, %v852_v47  ;;  %v1213_v53 = vadd.f32 %v889_v51, %v888_v49  ;;  %v378_v6 = vadd.f32 %v851_v46, %v1222_v2 }
  0xfb   :  { %v381_v15 = vadd.f32 %v854_v52, %v1222_v2 }
  0xfd   :  { %v855_v54 = vpop.f32.mrb[4].mxu0  ;;  %v891_v55 = vpop.f32.mrb[4].mxu1 }
  0xfe   :  { %v856_v56 = vpop.f32.mrb[5].mxu0  ;;  %v892_v57 = vpop.f32.mrb[5].mxu1 }
  0xff   :  { %v857_v58 = vadd.f32 %v856_v56, %v855_v54  ;;  %v858_v59 = vpop.f32.mrb[6].mxu0  ;;  %v1215_v60 = vadd.f32 %v892_v57, %v891_v55  ;;  %v894_v61 = vpop.f32.mrb[6].mxu1 }
 0x100   :  { %v859_v62 = vpop.f32.mrb[7].mxu0  ;;  %v895_v63 = vpop.f32.mrb[7].mxu1 }
 0x101   :  { %v860_v0 = vadd.f32 %v859_v62, %v858_v59  ;;  %v1217_v1 = vadd.f32 %v895_v63, %v894_v61  ;;  %v386_v3 = vadd.f32 %v857_v58, %v1222_v2 }
 0x103   :  { %v389_v10 = vadd.f32 %v860_v0, %v1222_v2 }
 0x105   :  { %v861_v4 = vpop.f32.mrb[8].mxu0  ;;  %v913_v5 = vpop.f32.mrb[8].mxu1 }
 0x106   :  { %v1226_v7 = vadd.f32 %v913_v5, %v386_v3  ;;  %v862_v8 = vpop.f32.mrb[9].mxu0  ;;  %v474_v9 = vpop.f32.mrb[9].mxu1 }
 0x107   :  { %v863_v11 = vadd.f32 %v862_v8, %v861_v4  ;;  %v1229_v12 = vadd.f32 %v474_v9, %v378_v6  ;;  %v864_v13 = vpop.f32.mrb[10].mxu0  ;;  %v914_v14 = vpop.f32.mrb[10].mxu1 }
 0x108   :  { %v787_v16 = vmul.f32 -1.442695, %v1226_v7  ;;  %v1233_v17 = vadd.f32 %v914_v14, %v389_v10  ;;  %v865_v18 = vpop.f32.mrb[11].mxu0  ;;  %v477_v19 = vpop.f32.mrb[11].mxu1  ;;  %v434_v10 = vadd.f32 %v1215_v60, %v1222_v2  ;;  %v429_v60 = vadd.f32 %v1213_v53, %v1222_v2 }
 0x109   :  { %v785_v20 = vmul.f32 -1.442695, %v1229_v12  ;;  %v866_v21 = vadd.f32 %v865_v18, %v864_v13  ;;  %v1236_v22 = vadd.f32 %v477_v19, %v381_v15  ;;  %v394_v27 = vadd.f32 %v863_v11, %v1222_v2 }
 0x10a   :  { %993 = vpow2.f32 %v787_v16  ;;  %v788_v23 = vmul.f32 -1.442695, %v1233_v17  ;;  %v426_v18 = vadd.f32 %v1211_v48, %v1222_v2 }
 0x10b   :  { %995 = vpow2.f32 %v785_v20  ;;  %v786_v24 = vmul.f32 -1.442695, %v1236_v22  ;;  %v397_v34 = vadd.f32 %v866_v21, %v1222_v2 }
 0x10c   :  { %997 = vpow2.f32 %v788_v23 }
 0x10d   :  { %999 = vpow2.f32 %v786_v24  ;;  %v867_v25 = vpop.f32.mrb[12].mxu0  ;;  %v917_v26 = vpop.f32.mrb[12].mxu1  ;;  %v437_v24 = vadd.f32 %v1217_v1, %v1222_v2 }
 0x10e   :  { %v868_v28 = vpop.f32.mrb[13].mxu0  ;;  %v490_v29 = vpop.f32.mrb[13].mxu1 }
 0x10f   :  { %v869_v30 = vadd.f32 %v868_v28, %v867_v25  ;;  %v1241_v31 = vadd.f32 %v490_v29, %v394_v27  ;;  %v870_v32 = vpop.f32.mrb[14].mxu0  ;;  %v918_v33 = vpop.f32.mrb[14].mxu1 }
 0x110   :  { %v871_v35 = vpop.f32.mrb[15].mxu0  ;;  %v493_v36 = vpop.f32.mrb[15].mxu1 }
 0x111   :  { %v402_v37 = vadd.f32 %v869_v30, %v1222_v2  ;;  %v789_v38 = vmul.f32 -1.442695, %v1241_v31  ;;  %v872_v39 = vadd.f32 %v871_v35, %v870_v32  ;;  %v1246_v40 = vadd.f32 %v493_v36, %v397_v34 }
 0x113   :  { %v1248_v41 = vadd.f32 %v917_v26, %v402_v37  ;;  %1001 = vpow2.f32 %v789_v38  ;;  %v405_v42 = vadd.f32 %v872_v39, %v1222_v2  ;;  %v790_v43 = vmul.f32 -1.442695, %v1246_v40 }
 0x114   :  { %v994_v44 = vpop.eup %993 }
 0x115   :  { %v996_v45 = vpop.eup %995  ;;  %v587_v46 = vadd.f32 1.0, %v994_v44  ;;  %v1252_v47 = vadd.f32 %v918_v33, %v405_v42  ;;  %1003 = vpow2.f32 %v790_v43  ;;  %v873_v49 = vpop.f32.mrb[16].mxu0  ;;  %v791_v58 = vmul.f32 -1.442695, %v1248_v41 }
 0x116   :  { %v1254_v50 = vpop.f32.mrb[16].mxu1  ;;  %v998_v51 = vpop.eup %997  ;;  %v585_v52 = vadd.f32 1.0, %v996_v45 }
 0x117   :  { %v874_v54 = vpop.f32.mrb[17].mxu0  ;;  %v506_v55 = vpop.f32.mrb[17].mxu1  ;;  %1005 = vrcp.f32 %v587_v46  ;;  %v588_v57 = vadd.f32 1.0, %v998_v51  ;;  %v792_v0 = vmul.f32 -1.442695, %v1252_v47 }
 0x118   :  { %v1000_v56 = vpop.eup %999  ;;  %v875_v59 = vadd.f32 %v874_v54, %v873_v49  ;;  %v876_v61 = vpop.f32.mrb[18].mxu0  ;;  %1007 = vrcp.f32 %v585_v52 }
 0x119   :  { %v1257_v62 = vpop.f32.mrb[18].mxu1  ;;  %v586_v63 = vadd.f32 1.0, %v1000_v56  ;;  %v877_v3 = vpop.f32.mrb[19].mxu0  ;;  %1009 = vrcp.f32 %v588_v57 }
 0x11a   :  { %v509_v4 = vpop.f32.mrb[19].mxu1  ;;  %v410_v5 = vadd.f32 %v875_v59, %v1222_v2  ;;  %v878_v6 = vadd.f32 %v877_v3, %v876_v61 }
 0x11b   :  { %1011 = vrcp.f32 %v586_v63 }
 0x11c   :  { %1013 = vpow2.f32 %v791_v58  ;;  %v1261_v8 = vadd.f32 %v506_v55, %v410_v5  ;;  %v413_v9 = vadd.f32 %v878_v6, %v1222_v2 }
 0x11d   :  { %1015 = vpow2.f32 %v792_v0  ;;  %v1002_v11 = vpop.eup %1001  ;;  %v879_v15 = vpop.f32.mrb[20].mxu0 }
 0x11e   :  { %v793_v13 = vmul.f32 -1.442695, %v1261_v8  ;;  %v1267_v14 = vadd.f32 %v509_v4, %v413_v9  ;;  %v925_v16 = vpop.f32.mrb[20].mxu1  ;;  %v589_v19 = vadd.f32 1.0, %v1002_v11  ;;  %v880_v21 = vpop.f32.mrb[21].mxu0 }
 0x11f   :  { %v1271_v20 = vadd.f32 %v925_v16, %v434_v10  ;;  %v522_v23 = vpop.f32.mrb[21].mxu1  ;;  %v1004_v25 = vpop.eup %1003  ;;  %v881_v27 = vadd.f32 %v880_v21, %v879_v15 }
 0x120   :  { %1017 = vpow2.f32 %v793_v13  ;;  %v794_v26 = vmul.f32 -1.442695, %v1267_v14  ;;  %v1278_v28 = vadd.f32 %v522_v23, %v426_v18  ;;  %v882_v29 = vpop.f32.mrb[22].mxu0  ;;  %v926_v48 = vpop.f32.mrb[22].mxu1  ;;  %v590_v30 = vadd.f32 1.0, %v1004_v25 }
 0x121   :  { %1019 = vrcp.f32 %v589_v19  ;;  %v799_v32 = vmul.f32 -1.442695, %v1271_v20  ;;  %v1281_v33 = vadd.f32 %v926_v48, %v437_v24  ;;  %v883_v34 = vpop.f32.mrb[23].mxu0  ;;  %v525_v1 = vpop.f32.mrb[23].mxu1  ;;  %v418_v53 = vadd.f32 %v881_v27, %v1222_v2 }
 0x122   :  { %v1006_v35 = vpop.eup %1005  ;;  %1021 = vpow2.f32 %v794_v26  ;;  %v797_v36 = vmul.f32 -1.442695, %v1278_v28  ;;  %v884_v37 = vadd.f32 %v883_v34, %v882_v29  ;;  %v1287_v43 = vadd.f32 %v525_v1, %v429_v60 }
 0x123   :  { %v1008_v38 = vpop.eup %1007  ;;  %v635_v39 = vmul.f32 %v1006_v35, %v1226_v7  ;;  %1023 = vrcp.f32 %v590_v30  ;;  %v800_v42 = vmul.f32 -1.442695, %v1281_v33  ;;  %v1291_v46 = vadd.f32 %v1254_v50, %v418_v53 }
 0x124   :  { %v1010_v44 = vpop.eup %1009  ;;  %v633_v45 = vmul.f32 %v1008_v38, %v1229_v12  ;;  %1025 = vpow2.f32 %v799_v32  ;;  %v421_v49 = vadd.f32 %v884_v37, %v1222_v2  ;;  %v798_v7 = vmul.f32 -1.442695, %v1287_v43 }
 0x125   :  { %v1012_v51 = vpop.eup %1011  ;;  %v819_v52 = vpack.c.bf16 %v635_v39, %v635_v39  ;;  %v636_v54 = vmul.f32 %v1010_v44, %v1233_v17  ;;  %1027 = vpow2.f32 %v797_v36  ;;  %v795_v58 = vmul.f32 -1.442695, %v1291_v46 }
 0x126   :  { %v1014_v55 = vpop.eup %1013  ;;  %v817_v56 = vpack.c.bf16 %v633_v45, %v633_v45  ;;  %v634_v57 = vmul.f32 %v1012_v51, %v1236_v22  ;;  %1029 = vpow2.f32 %v800_v42  ;;  %v1303_v17 = vadd.f32 %v1257_v62, %v421_v49 }
 0x127   :  { %v1016_v12 = vpop.eup %1015  ;;  %716 = vst.msk [vmem:[%s1381_s3 + $0x8] sm:$0xf] %vm713_vm1, %v819_v52  ;;  %v820_v2 = vpack.c.bf16 %v636_v54, %v636_v54  ;;  %v591_v50 = vadd.f32 1.0, %v1014_v55  ;;  %1031 = vpow2.f32 %v798_v7 }
 0x128   :  { %714 = vst.msk [vmem:[%s1381_s3] sm:$0xf] %vm713_vm1, %v817_v56  ;;  %v818_v22 = vpack.c.bf16 %v634_v57, %v634_v57  ;;  %v592_v59 = vadd.f32 1.0, %v1016_v12  ;;  %1033 = vpow2.f32 %v795_v58  ;;  %v796_v61 = vmul.f32 -1.442695, %v1303_v17 }
 0x129   :  { %717 = vst.msk [vmem:[%s1381_s3 + $0xc] sm:$0xf] %vm713_vm1, %v820_v2  ;;  %1035 = vrcp.f32 %v591_v50 }
 0x12a   :  { %v1018_v63 = vpop.eup %1017  ;;  %715 = vst.msk [vmem:[%s1381_s3 + $0x4] sm:$0xf] %vm713_vm1, %v818_v22  ;;  %1037 = vrcp.f32 %v592_v59 }
 0x12b   :  { %v1020_v62 = vpop.eup %1019  ;;  %v593_v0 = vadd.f32 1.0, %v1018_v63  ;;  %1039 = vpow2.f32 %v796_v61 }
 0x12c   :  { %v1022_v3 = vpop.eup %1021  ;;  %v637_v4 = vmul.f32 %v1020_v62, %v1241_v31 }
 0x12d   :  { %v1024_v5 = vpop.eup %1023  ;;  %1041 = vrcp.f32 %v593_v0  ;;  %v594_v6 = vadd.f32 1.0, %v1022_v3 }
 0x12e   :  { %v1026_v9 = vpop.eup %1025  ;;  %v821_v10 = vpack.c.bf16 %v637_v4, %v637_v4  ;;  %v638_v11 = vmul.f32 %v1024_v5, %v1246_v40 }
 0x12f   :  { %v1028_v13 = vpop.eup %1027  ;;  %1043 = vrcp.f32 %v594_v6  ;;  %v599_v15 = vadd.f32 1.0, %v1026_v9 }
 0x130   :  { %v1030_v16 = vpop.eup %1029  ;;  %718 = vst.msk [vmem:[%s1381_s3 + $0x10] sm:$0xf] %vm713_vm1, %v821_v10  ;;  %v822_v18 = vpack.c.bf16 %v638_v11, %v638_v11  ;;  %v597_v19 = vadd.f32 1.0, %v1028_v13 }
 0x131   :  { %v1032_v21 = vpop.eup %1031  ;;  %1045 = vrcp.f32 %v599_v15  ;;  %v600_v31 = vadd.f32 1.0, %v1030_v16 }
 0x132   :  { %v1034_v23 = vpop.eup %1033  ;;  %719 = vst.msk [vmem:[%s1381_s3 + $0x14] sm:$0xf] %vm713_vm1, %v822_v18  ;;  %1047 = vrcp.f32 %v597_v19  ;;  %v598_v40 = vadd.f32 1.0, %v1032_v21 }
 0x133   :  { %v1036_v24 = vpop.eup %1035  ;;  %v595_v60 = vadd.f32 1.0, %v1034_v23  ;;  %1049 = vrcp.f32 %v600_v31 }
 0x134   :  { %v1038_v25 = vpop.eup %1037  ;;  %v639_v26 = vmul.f32 %v1036_v24, %v1248_v41  ;;  %1051 = vrcp.f32 %v598_v40 }
 0x135   :  { %v1040_v27 = vpop.eup %1039  ;;  %v640_v29 = vmul.f32 %v1038_v25, %v1252_v47  ;;  %1053 = vrcp.f32 %v595_v60 }
 0x136   :  { %v823_v48 = vpack.c.bf16 %v639_v26, %v639_v26  ;;  %v596_v30 = vadd.f32 1.0, %v1040_v27 }
 0x137   :  { %v1042_v32 = vpop.eup %1041  ;;  %v824_v34 = vpack.c.bf16 %v640_v29, %v640_v29 }
 0x138   :  { %720 = vst.msk [vmem:[%s1381_s3 + $0x18] sm:$0xf] %vm713_vm1, %v823_v48  ;;  %v641_v1 = vmul.f32 %v1042_v32, %v1261_v8  ;;  %1055 = vrcp.f32 %v596_v30 }
 0x139   :  { %v1044_v35 = vpop.eup %1043  ;;  %721 = vst.msk [vmem:[%s1381_s3 + $0x1c] sm:$0xf] %vm713_vm1, %v824_v34 }
 0x13a   :  { %v825_v41 = vpack.c.bf16 %v641_v1, %v641_v1  ;;  %v642_v47 = vmul.f32 %v1044_v35, %v1267_v14 }
 0x13b   :  { %v1046_v53 = vpop.eup %1045 }
 0x13c   :  { %v1048_v36 = vpop.eup %1047  ;;  %722 = vst.msk [vmem:[%s1381_s3 + $0x20] sm:$0xf] %vm713_vm1, %v825_v41  ;;  %v826_v37 = vpack.c.bf16 %v642_v47, %v642_v47  ;;  %v647_v8 = vmul.f32 %v1046_v53, %v1271_v20 }
 0x13d   :  { %v1050_v38 = vpop.eup %1049  ;;  %v645_v39 = vmul.f32 %v1048_v36, %v1278_v28 }
 0x13e   :  { %v1052_v42 = vpop.eup %1051  ;;  %723 = vst.msk [vmem:[%s1381_s3 + $0x24] sm:$0xf] %vm713_vm1, %v826_v37  ;;  %v831_v14 = vpack.c.bf16 %v647_v8, %v647_v8  ;;  %v648_v44 = vmul.f32 %v1050_v38, %v1281_v33 }
 0x13f   :  { %v1054_v45 = vpop.eup %1053  ;;  %v829_v49 = vpack.c.bf16 %v645_v39, %v645_v39  ;;  %v646_v51 = vmul.f32 %v1052_v42, %v1287_v43 }
 0x140   :  { %728 = vst.msk [vmem:[%s1381_s3 + $0x38] sm:$0xf] %vm713_vm1, %v831_v14  ;;  %v643_v20 = vmul.f32 %v1054_v45, %v1291_v46  ;;  %v832_v28 = vpack.c.bf16 %v648_v44, %v648_v44 }
 0x141   :  { %726 = vst.msk [vmem:[%s1381_s3 + $0x30] sm:$0xf] %vm713_vm1, %v829_v49  ;;  %v830_v52 = vpack.c.bf16 %v646_v51, %v646_v51 }
 0x142   :  { %v1056_v54 = vpop.eup %1055  ;;  %v827_v33 = vpack.c.bf16 %v643_v20, %v643_v20  ;;  %729 = vst.msk [vmem:[%s1381_s3 + $0x3c] sm:$0xf] %vm713_vm1, %v832_v28 }
 0x143   :  { %v644_v43 = vmul.f32 %v1056_v54, %v1303_v17  ;;  %727 = vst.msk [vmem:[%s1381_s3 + $0x34] sm:$0xf] %vm713_vm1, %v830_v52 }
 0x144   :  { %724 = vst.msk [vmem:[%s1381_s3 + $0x28] sm:$0xf] %vm713_vm1, %v827_v33 }
 0x145   :  { %v828_v46 = vpack.c.bf16 %v644_v43, %v644_v43 }
 0x147   :  { %725 = vst.msk [vmem:[%s1381_s3 + $0x2c] sm:$0xf] %vm713_vm1, %v828_v46 }

// kernel: yolox_forward.34
= control target key start
LH: loop header
LB: loop body
LE: loop exit
PB: predicated region body
PF: predicated region fallthrough
CT: control target
= control target key end

     0   :  { %vm372_vm0 = vcmask 523264   ;;  %s957_s1 = inlined_call_operand.vmem [shape: bf16[576,128], index: 1, kind: input, shape index: {}]   ;;  %s958_s0 = inlined_call_operand.vmem [shape: bf16[32,576], index: 0, kind: input, shape index: {}]   ;;  %s959_s2 = inlined_call_operand.vmem [shape: f32[1,128], index: 2, kind: input, shape index: {}]   ;;  %s960_s3 = inlined_call_operand.vmem [shape: bf16[32,128], index: 3, kind: output, shape index: {}]  }
   0x1   :  { %v724_v0 = vld [vmem:[%s957_s1 + $0x40] sm:$0xff]   ;;  %v728_v4 = vld [vmem:[%s957_s1 + $0x48] sm:$0xff]   ;;  %v732_v8 = vld [vmem:[%s957_s1 + $0x50] sm:$0xff]  }
   0x2   :  { %v725_v1 = vld [vmem:[%s957_s1] sm:$0xff]   ;;  %650 = vmatprep.subr.bf16.mxu0 %v724_v0  ;;  %v729_v5 = vld [vmem:[%s957_s1 + $0x8] sm:$0xff]   ;;  %v733_v9 = vld [vmem:[%s957_s1 + $0x10] sm:$0xff]  }
   0x3   :  { %v726_v2 = vld [vmem:[%s957_s1 + $0xc0] sm:$0xff]   ;;  %651 = vmatpush3.bf16.msra.mxu0 %v725_v1  ;;  %v730_v6 = vld [vmem:[%s957_s1 + $0xc8] sm:$0xff]   ;;  %v734_v10 = vld [vmem:[%s957_s1 + $0xd0] sm:$0xff]  }
   0x4   :  { %v727_v3 = vld [vmem:[%s957_s1 + $0x80] sm:$0xff]   ;;  %678 = vmatprep.subr.bf16.mxu1 %v726_v2  ;;  %652 = vmatprep.subr.bf16.mxu0 %v728_v4  ;;  %v731_v7 = vld [vmem:[%s957_s1 + $0x88] sm:$0xff]   ;;  %v735_v11 = vld [vmem:[%s957_s1 + $0x90] sm:$0xff]  }
   0x5   :  { %679 = vmatpush3.bf16.msra.mxu1 %v727_v3  ;;  %v736_v12 = vld [vmem:[%s957_s1 + $0x58] sm:$0xff]   ;;  %v740_v16 = vld [vmem:[%s957_s1 + $0x60] sm:$0xff]   ;;  %v744_v20 = vld [vmem:[%s957_s1 + $0x68] sm:$0xff]  }
   0x6   :  { %680 = vmatprep.subr.bf16.mxu1 %v730_v6  ;;  %v737_v13 = vld [vmem:[%s957_s1 + $0x18] sm:$0xff]   ;;  %v741_v17 = vld [vmem:[%s957_s1 + $0x20] sm:$0xff]   ;;  %v745_v21 = vld [vmem:[%s957_s1 + $0x28] sm:$0xff]  }
   0x7   :  { %653 = vmatpush3.bf16.msra.mxu0 %v729_v5  ;;  %v738_v14 = vld [vmem:[%s957_s1 + $0xd8] sm:$0xff]   ;;  %v742_v18 = vld [vmem:[%s957_s1 + $0xe0] sm:$0xff]   ;;  %v746_v22 = vld [vmem:[%s957_s1 + $0xe8] sm:$0xff]  }
   0x8   :  { %654 = vmatprep.subr.bf16.mxu0 %v732_v8  ;;  %v739_v15 = vld [vmem:[%s957_s1 + $0x98] sm:$0xff]   ;;  %v743_v19 = vld [vmem:[%s957_s1 + $0xa0] sm:$0xff]   ;;  %v747_v23 = vld [vmem:[%s957_s1 + $0xa8] sm:$0xff]  }
   0x9   :  { %681 = vmatpush3.bf16.msra.mxu1 %v731_v7  ;;  %v748_v24 = vld [vmem:[%s957_s1 + $0x70] sm:$0xff]   ;;  %v752_v28 = vld [vmem:[%s957_s1 + $0x78] sm:$0xff]   ;;  %v759_v34 = vld [vmem:[%s957_s1 + $0x100] sm:$0xff]  }
   0xa   :  { %682 = vmatprep.subr.bf16.mxu1 %v734_v10  ;;  %v749_v25 = vld [vmem:[%s957_s1 + $0x30] sm:$0xff]   ;;  %v753_v29 = vld [vmem:[%s957_s1 + $0x38] sm:$0xff]   ;;  %v762_v36 = vld [vmem:[%s958_s0 + $0xc] ss:$20 sps:$4 sm:$0xff]  }
   0xb   :  { %655 = vmatpush3.bf16.msra.mxu0 %v733_v9  ;;  %v750_v26 = vld [vmem:[%s957_s1 + $0xf0] sm:$0xff]   ;;  %v754_v30 = vld [vmem:[%s957_s1 + $0xf8] sm:$0xff]   ;;  %v763_v37 = vld [vmem:[%s957_s1 + $0x108] sm:$0xff]   ;;  %460 = vmatprep.mubr.bf16.mxu1 %v762_v36 }
   0xc   :  { %656 = vmatprep.subr.bf16.mxu0 %v736_v12  ;;  %v751_v27 = vld [vmem:[%s957_s1 + $0xb0] sm:$0xff]   ;;  %v757_v32 = vld [vmem:[%s958_s0 + $0x4] ss:$20 sps:$4 sm:$0xff]   ;;  %v760_v35 = vld [vmem:[%s958_s0 + $0x8] ss:$20 sps:$4 sm:$0xff]  }
   0xd   :  { %683 = vmatpush3.bf16.msra.mxu1 %v735_v11  ;;  %v755_v31 = vld [vmem:[%s958_s0] ss:$20 sps:$4 sm:$0xff]   ;;  %v758_v33 = vld [vmem:[%s957_s1 + $0xb8] sm:$0xff]   ;;  %411 = vmatprep.mubr.bf16.mxu0 %v757_v32  ;;  %v770_v42 = vld [vmem:[%s958_s0 + $0x30] ss:$20 sps:$4 sm:$0xff]  }
   0xe   :  { %684 = vmatprep.subr.bf16.mxu1 %v738_v14  ;;  %v764_v38 = vld [vmem:[%s958_s0 + $0x2c] ss:$20 sps:$4 sm:$0xff]   ;;  %v766_v39 = vld [vmem:[%s958_s0 + $0x28] ss:$20 sps:$4 sm:$0xff]   ;;  %v767_v40 = vld [vmem:[%s957_s1 + $0x110] sm:$0xff]  }
   0xf   :  { %657 = vmatpush3.bf16.msra.mxu0 %v737_v13  ;;  %v768_v41 = vld [vmem:[%s958_s0 + $0x34] ss:$20 sps:$4 sm:$0xff]   ;;  %v771_v43 = vld [vmem:[%s957_s1 + $0x118] sm:$0xff]   ;;  %v772_v44 = vld [vmem:[%s958_s0 + $0x10] ss:$20 sps:$4 sm:$0xff]  }
  0x10   :  { %658 = vmatprep.subr.bf16.mxu0 %v740_v16  ;;  %v773_v45 = vld [vmem:[%s958_s0 + $0x38] ss:$20 sps:$4 sm:$0xff]   ;;  %v578_v47 = vld [vmem:[%s959_s2] ss:$0 sm:$0xff] }
  0x11   :  { %685 = vmatpush3.bf16.msra.mxu1 %v739_v15 }
  0x12   :  { %686 = vmatprep.subr.bf16.mxu1 %v742_v18 }
  0x13   :  { %659 = vmatpush3.bf16.msra.mxu0 %v741_v17 }
  0x14   :  { %660 = vmatprep.subr.bf16.mxu0 %v744_v20 }
  0x15   :  { %687 = vmatpush3.bf16.msra.mxu1 %v743_v19 }
  0x16   :  { %688 = vmatprep.subr.bf16.mxu1 %v746_v22 }
  0x17   :  { %661 = vmatpush3.bf16.msra.mxu0 %v745_v21 }
  0x18   :  { %662 = vmatprep.subr.bf16.mxu0 %v748_v24 }
  0x19   :  { %689 = vmatpush3.bf16.msra.mxu1 %v747_v23 }
  0x1a   :  { %690 = vmatprep.subr.bf16.mxu1 %v750_v26 }
  0x1b   :  { %663 = vmatpush3.bf16.msra.mxu0 %v749_v25 }
  0x1c   :  { %664 = vmatprep.subr.bf16.mxu0 %v752_v28 }
  0x1d   :  { %691 = vmatpush3.bf16.msra.mxu1 %v751_v27 }
  0x1e   :  { %692 = vmatprep.subr.bf16.mxu1 %v754_v30 }
  0x1f   :  { %665 = vmatpush3.bf16.msra.mxu0 %v753_v29 }
  0x20   :  { %712 = vmatprep.subr.bf16.mxu0 %v759_v34 }
  0x21   :  { %693 = vmatpush3.bf16.msra.mxu1 %v758_v33 }
  0x22   :  { %412 = vmatmul.mubr.bf16.vlgmr.msra.gmra.mrb[0].mxu0 %v755_v31 }
  0x23   :  { %713 = vmatpush3.bf16.msra.mxu0 %v759_v34  ;;  %419 = vmatprep.mubr.bf16.mxu0 %v764_v38 }
  0x24   :  { %461 = vmatmul.mubr.bf16.vlgmr.msra.gmra.mrb[0].mxu1 %v760_v35  ;;  %714 = vmatprep.subr.bf16.mxu0 %v763_v37 }
  0x25   :  { %468 = vmatprep.mubr.bf16.mxu1 %v768_v41 }
  0x27   :  { %715 = vmatpush3.bf16.msra.mxu0 %v763_v37 }
  0x28   :  { %716 = vmatprep.subr.bf16.mxu0 %v767_v40 }
  0x2a   :  { %420 = vmatmul.mubr.bf16.gmra.mrb[4].mxu0 %v766_v39 }
  0x2b   :  { %720 = vmatprep.mubr.msk.bf16.mxu0 %vm372_vm0, %v772_v44  ;;  %717 = vmatpush3.bf16.msra.mxu0 %v767_v40 }
  0x2c   :  { %469 = vmatmul.mubr.bf16.gmra.mrb[4].mxu1 %v770_v42  ;;  %718 = vmatprep.subr.bf16.mxu0 %v771_v43 }
  0x2f   :  { %719 = vmatpush3.bf16.msra.mxu0 %v771_v43 }
  0x32   :  { %721 = vmatmul.mubr.msk.bf16.vlgmr.msra.gmra.mrb[8].mxu0 %vm372_vm0, %v773_v45 }
  0xf5   :  { %v666_v46 = vpop.f32.mrb[0].mxu0 }
  0xf6   :  { %v667_v48 = vpop.f32.mrb[1].mxu0 }
  0xf7   :  { %v668_v49 = vadd.f32 %v667_v48, %v666_v46  ;;  %v669_v50 = vpop.f32.mrb[2].mxu0  ;;  %v694_v51 = vpop.f32.mrb[0].mxu1 }
  0xf8   :  { %v670_v52 = vpop.f32.mrb[3].mxu0  ;;  %v695_v55 = vpop.f32.mrb[1].mxu1 }
  0xf9   :  { %v414_v53 = vadd.f32 %v668_v49, %v578_v47  ;;  %v671_v54 = vadd.f32 %v670_v52, %v669_v50  ;;  %v696_v56 = vadd.f32 %v695_v55, %v694_v51  ;;  %v697_v57 = vpop.f32.mrb[2].mxu1 }
  0xfa   :  { %v698_v59 = vpop.f32.mrb[3].mxu1 }
  0xfb   :  { %v417_v58 = vadd.f32 %v671_v54, %v578_v47  ;;  %v699_v60 = vadd.f32 %v698_v59, %v697_v57  ;;  %v463_v61 = vadd.f32 %v696_v56, %v414_v53 }
  0xfd   :  { %v672_v62 = vpop.f32.mrb[4].mxu0  ;;  %v466_v0 = vadd.f32 %v699_v60, %v417_v58 }
  0xfe   :  { %v673_v63 = vpop.f32.mrb[5].mxu0 }
  0xff   :  { %v674_v1 = vadd.f32 %v673_v63, %v672_v62  ;;  %v675_v2 = vpop.f32.mrb[6].mxu0  ;;  %v700_v3 = vpop.f32.mrb[4].mxu1 }
 0x100   :  { %v676_v4 = vpop.f32.mrb[7].mxu0  ;;  %v701_v7 = vpop.f32.mrb[5].mxu1 }
 0x101   :  { %v422_v5 = vadd.f32 %v674_v1, %v578_v47  ;;  %v677_v6 = vadd.f32 %v676_v4, %v675_v2  ;;  %v702_v8 = vadd.f32 %v701_v7, %v700_v3  ;;  %v703_v9 = vpop.f32.mrb[6].mxu1 }
 0x102   :  { %v704_v11 = vpop.f32.mrb[7].mxu1 }
 0x103   :  { %v425_v10 = vadd.f32 %v677_v6, %v578_v47  ;;  %v705_v12 = vadd.f32 %v704_v11, %v703_v9  ;;  %v471_v13 = vadd.f32 %v702_v8, %v422_v5 }
 0x105   :  { %v722_v14 = vpop.f32.mrb[8].mxu0  ;;  %v474_v15 = vadd.f32 %v705_v12, %v425_v10 }
 0x106   :  { %v520_v16 = vadd.f32 %v722_v14, %v471_v13  ;;  %v511_v17 = vpop.f32.mrb[9].mxu0 }
 0x107   :  { %v512_v18 = vadd.f32 %v511_v17, %v463_v61  ;;  %v723_v19 = vpop.f32.mrb[10].mxu0 }
 0x108   :  { %v629_v20 = vmul.f32 -1.442695, %v520_v16  ;;  %v523_v21 = vadd.f32 %v723_v19, %v474_v15  ;;  %v514_v22 = vpop.f32.mrb[11].mxu0 }
 0x109   :  { %v627_v23 = vmul.f32 -1.442695, %v512_v18  ;;  %v515_v24 = vadd.f32 %v514_v22, %v466_v0 }
 0x10a   :  { %774 = vpow2.f32 %v629_v20  ;;  %v630_v25 = vmul.f32 -1.442695, %v523_v21 }
 0x10b   :  { %776 = vpow2.f32 %v627_v23  ;;  %v628_v26 = vmul.f32 -1.442695, %v515_v24 }
 0x10c   :  { %778 = vpow2.f32 %v630_v25 }
 0x10d   :  { %780 = vpow2.f32 %v628_v26 }
 0x114   :  { %v775_v27 = vpop.eup %774 }
 0x115   :  { %v777_v28 = vpop.eup %776  ;;  %v540_v29 = vadd.f32 1.0, %v775_v27 }
 0x116   :  { %v779_v30 = vpop.eup %778  ;;  %v538_v31 = vadd.f32 1.0, %v777_v28 }
 0x117   :  { %v781_v32 = vpop.eup %780  ;;  %782 = vrcp.f32 %v540_v29  ;;  %v541_v33 = vadd.f32 1.0, %v779_v30 }
 0x118   :  { %784 = vrcp.f32 %v538_v31  ;;  %v539_v34 = vadd.f32 1.0, %v781_v32 }
 0x119   :  { %786 = vrcp.f32 %v541_v33 }
 0x11a   :  { %788 = vrcp.f32 %v539_v34 }
 0x121   :  { %v783_v35 = vpop.eup %782 }
 0x122   :  { %v785_v36 = vpop.eup %784  ;;  %v552_v39 = vmul.f32 %v783_v35, %v520_v16 }
 0x123   :  { %v787_v37 = vpop.eup %786  ;;  %v550_v41 = vmul.f32 %v785_v36, %v512_v18 }
 0x124   :  { %v789_v38 = vpop.eup %788  ;;  %v553_v40 = vmul.f32 %v787_v37, %v523_v21 }
 0x125   :  { %v551_v42 = vmul.f32 %v789_v38, %v515_v24 }
 0x126   :  { %v647_v43 = vpack.c.bf16 %v553_v40, %v552_v39 }
 0x127   :  { %v642_v44 = vpack.c.bf16 %v551_v42, %v550_v41 }
 0x128   :  { %649 = vst [vmem:[%s960_s3 + $0x8] sm:$0xff] %v647_v43  }
 0x129   :  { %643 = vst [vmem:[%s960_s3] sm:$0xff] %v642_v44  }

// kernel: yolox_forward.36
= control target key start
LH: loop header
LB: loop body
LE: loop exit
PB: predicated region body
PF: predicated region fallthrough
CT: control target
= control target key end

     0   :  { %s352_s1 = inlined_call_operand.vmem [shape: bf16[256,128], index: 1, kind: input, shape index: {}]   ;;  %s353_s0 = inlined_call_operand.vmem [shape: bf16[8,256], index: 0, kind: input, shape index: {}]   ;;  %s354_s2 = inlined_call_operand.vmem [shape: f32[1,128], index: 2, kind: input, shape index: {}]   ;;  %s355_s3 = inlined_call_operand.vmem [shape: bf16[8,128], index: 3, kind: output, shape index: {}]  }
   0x1   :  { %v253_v0 = vld [vmem:[%s352_s1 + $0x40] sm:$0xff]   ;;  %v255_v2 = vld [vmem:[%s352_s1 + $0x48] sm:$0xff]   ;;  %v257_v4 = vld [vmem:[%s352_s1 + $0x50] sm:$0xff]  }
   0x2   :  { %v254_v1 = vld [vmem:[%s352_s1] sm:$0xff]   ;;  %231 = vmatprep.subr.bf16.mxu0 %v253_v0  ;;  %v256_v3 = vld [vmem:[%s352_s1 + $0x8] sm:$0xff]   ;;  %v258_v5 = vld [vmem:[%s352_s1 + $0x10] sm:$0xff]  }
   0x3   :  { %232 = vmatpush3.bf16.msra.mxu0 %v254_v1  ;;  %v259_v6 = vld [vmem:[%s352_s1 + $0x58] sm:$0xff]   ;;  %v261_v8 = vld [vmem:[%s352_s1 + $0x60] sm:$0xff]   ;;  %v263_v10 = vld [vmem:[%s352_s1 + $0x68] sm:$0xff]  }
   0x4   :  { %233 = vmatprep.subr.bf16.mxu0 %v255_v2  ;;  %v260_v7 = vld [vmem:[%s352_s1 + $0x18] sm:$0xff]   ;;  %v262_v9 = vld [vmem:[%s352_s1 + $0x20] sm:$0xff]   ;;  %v264_v13 = vld [vmem:[%s352_s1 + $0x28] sm:$0xff]  }
   0x5   :  { %v15_v11 = vld [vmem:[%s353_s0] sm:$0xff]  ;;  %v265_v14 = vld [vmem:[%s352_s1 + $0x70] sm:$0xff]   ;;  %v267_v16 = vld [vmem:[%s352_s1 + $0x78] sm:$0xff]  }
   0x6   :  { %v213_v12 = vcombine.high %v15_v11, %v15_v11  ;;  %v266_v15 = vld [vmem:[%s352_s1 + $0x30] sm:$0xff]   ;;  %v268_v17 = vld [vmem:[%s352_s1 + $0x38] sm:$0xff]   ;;  %v212_v18 = vcombine.low %v15_v11, %v15_v11  ;;  %v211_v20 = vld [vmem:[%s354_s2] ss:$0 sm:$0xff] }
   0x7   :  { %234 = vmatpush3.bf16.msra.mxu0 %v256_v3 }
   0x8   :  { %235 = vmatprep.subr.bf16.mxu0 %v257_v4  ;;  %190 = vmatprep.mubr.bf16.mxu0 %v213_v12 }
   0xb   :  { %236 = vmatpush3.bf16.msra.mxu0 %v258_v5 }
   0xc   :  { %237 = vmatprep.subr.bf16.mxu0 %v259_v6 }
   0xf   :  { %238 = vmatpush3.bf16.msra.mxu0 %v260_v7 }
  0x10   :  { %239 = vmatprep.subr.bf16.mxu0 %v261_v8 }
  0x13   :  { %240 = vmatpush3.bf16.msra.mxu0 %v262_v9 }
  0x14   :  { %241 = vmatprep.subr.bf16.mxu0 %v263_v10 }
  0x17   :  { %242 = vmatpush3.bf16.msra.mxu0 %v264_v13 }
  0x18   :  { %243 = vmatprep.subr.bf16.mxu0 %v265_v14 }
  0x1b   :  { %244 = vmatpush3.bf16.msra.mxu0 %v266_v15 }
  0x1c   :  { %245 = vmatprep.subr.bf16.mxu0 %v267_v16 }
  0x1f   :  { %246 = vmatpush3.bf16.msra.mxu0 %v268_v17 }
  0x22   :  { %191 = vmatmul.mubr.bf16.vlgmr.msra.gmra.mrb[0].mxu0 %v212_v18 }
  0xf5   :  { %v247_v19 = vpop.f32.mrb[0].mxu0 }
  0xf6   :  { %v248_v21 = vpop.f32.mrb[1].mxu0 }
  0xf7   :  { %v249_v22 = vadd.f32 %v248_v21, %v247_v19  ;;  %v250_v23 = vpop.f32.mrb[2].mxu0 }
  0xf8   :  { %v251_v24 = vpop.f32.mrb[3].mxu0 }
  0xf9   :  { %v193_v25 = vadd.f32 %v249_v22, %v211_v20 }
  0xfb   :  { %v230_v26 = vmul.f32 -1.442695, %v193_v25 }
  0xfd   :  { %271 = vpow2.f32 %v230_v26 }
 0x107   :  { %v272_v27 = vpop.eup %271 }
 0x108   :  { %v201_v28 = vadd.f32 1.0, %v272_v27 }
 0x10a   :  { %273 = vrcp.f32 %v201_v28 }
 0x114   :  { %v274_v29 = vpop.eup %273 }
 0x115   :  { %v204_v30 = vmul.f32 %v274_v29, %v193_v25 }
 0x117   :  { %v205_v31 = vpack.c.bf16 %v204_v30, %v204_v30 }
 0x119   :  { %206 = vst [vmem:[%s355_s3] sm:$0xf] %v205_v31 }

// kernel: yolox_forward.35
= control target key start
LH: loop header
LB: loop body
LE: loop exit
PB: predicated region body
PF: predicated region fallthrough
CT: control target
= control target key end

     0   :  { %s2053_s1 = inlined_call_operand.vmem [shape: bf16[1152,256], index: 1, kind: input, shape index: {}]   ;;  %s2054_s0 = inlined_call_operand.vmem [shape: bf16[8,1152], index: 0, kind: input, shape index: {}]   ;;  %s2055_s2 = inlined_call_operand.vmem [shape: f32[1,256], index: 2, kind: input, shape index: {}]   ;;  %s2056_s3 = inlined_call_operand.vmem [shape: bf16[8,256], index: 3, kind: output, shape index: {}]  }
   0x1   :  { %v1334_v0 = vld [vmem:[%s2053_s1 + $0x4] ss:$8 sps:$4 sm:$0xff]   ;;  %v1338_v2 = vld [vmem:[%s2053_s1] ss:$8 sps:$4 sm:$0xff]   ;;  %v1340_v4 = vld [vmem:[%s2053_s1 + $0x14] ss:$8 sps:$4 sm:$0xff]  }
   0x2   :  { %v1336_v1 = vld [vmem:[%s2053_s1 + $0x204] ss:$8 sps:$4 sm:$0xff]   ;;  %928 = vmatprep.subr.bf16.mxu1 %v1334_v0  ;;  %v1339_v3 = vld [vmem:[%s2053_s1 + $0x200] ss:$8 sps:$4 sm:$0xff]   ;;  %v1342_v5 = vld [vmem:[%s2053_s1 + $0x214] ss:$8 sps:$4 sm:$0xff]  }
   0x3   :  { %1010 = vmatprep.subr.bf16.mxu0 %v1336_v1  ;;  %929 = vmatpush1.bf16.msra.mxu1 %v1338_v2  ;;  %v1344_v6 = vld [vmem:[%s2053_s1 + $0x10] ss:$8 sps:$4 sm:$0xff]   ;;  %v1346_v8 = vld [vmem:[%s2053_s1 + $0x24] ss:$8 sps:$4 sm:$0xff]   ;;  %v1350_v10 = vld [vmem:[%s2053_s1 + $0x20] ss:$8 sps:$4 sm:$0xff]  }
   0x4   :  { %1011 = vmatpush1.bf16.msra.mxu0 %v1339_v3  ;;  %930 = vmatprep.subr.bf16.mxu1 %v1340_v4  ;;  %v1345_v7 = vld [vmem:[%s2053_s1 + $0x210] ss:$8 sps:$4 sm:$0xff]   ;;  %v1348_v9 = vld [vmem:[%s2053_s1 + $0x224] ss:$8 sps:$4 sm:$0xff]   ;;  %v1351_v11 = vld [vmem:[%s2053_s1 + $0x220] ss:$8 sps:$4 sm:$0xff]  }
   0x5   :  { %1012 = vmatprep.subr.bf16.mxu0 %v1342_v5  ;;  %v1352_v12 = vld [vmem:[%s2053_s1 + $0x34] ss:$8 sps:$4 sm:$0xff]   ;;  %v1356_v14 = vld [vmem:[%s2053_s1 + $0x30] ss:$8 sps:$4 sm:$0xff]   ;;  %v1358_v16 = vld [vmem:[%s2053_s1 + $0x44] ss:$8 sps:$4 sm:$0xff]  }
   0x6   :  { %v1354_v13 = vld [vmem:[%s2053_s1 + $0x234] ss:$8 sps:$4 sm:$0xff]   ;;  %v1357_v15 = vld [vmem:[%s2053_s1 + $0x230] ss:$8 sps:$4 sm:$0xff]   ;;  %v1360_v17 = vld [vmem:[%s2053_s1 + $0x244] ss:$8 sps:$4 sm:$0xff]  }
   0x7   :  { %931 = vmatpush1.bf16.msra.mxu1 %v1344_v6  ;;  %v1362_v18 = vld [vmem:[%s2053_s1 + $0x40] ss:$8 sps:$4 sm:$0xff]   ;;  %v1364_v20 = vld [vmem:[%s2053_s1 + $0x54] ss:$8 sps:$4 sm:$0xff]   ;;  %v1368_v22 = vld [vmem:[%s2053_s1 + $0x50] ss:$8 sps:$4 sm:$0xff]  }
   0x8   :  { %1013 = vmatpush1.bf16.msra.mxu0 %v1345_v7  ;;  %932 = vmatprep.subr.bf16.mxu1 %v1346_v8  ;;  %v1363_v19 = vld [vmem:[%s2053_s1 + $0x240] ss:$8 sps:$4 sm:$0xff]   ;;  %v1366_v21 = vld [vmem:[%s2053_s1 + $0x254] ss:$8 sps:$4 sm:$0xff]   ;;  %v1369_v23 = vld [vmem:[%s2053_s1 + $0x250] ss:$8 sps:$4 sm:$0xff]  }
   0x9   :  { %1014 = vmatprep.subr.bf16.mxu0 %v1348_v9  ;;  %v1370_v24 = vld [vmem:[%s2053_s1 + $0x64] ss:$8 sps:$4 sm:$0xff]   ;;  %v1374_v26 = vld [vmem:[%s2053_s1 + $0x60] ss:$8 sps:$4 sm:$0xff]   ;;  %v1376_v28 = vld [vmem:[%s2053_s1 + $0x74] ss:$8 sps:$4 sm:$0xff]  }
   0xa   :  { %v1372_v25 = vld [vmem:[%s2053_s1 + $0x264] ss:$8 sps:$4 sm:$0xff]   ;;  %v1375_v27 = vld [vmem:[%s2053_s1 + $0x260] ss:$8 sps:$4 sm:$0xff]   ;;  %v1378_v29 = vld [vmem:[%s2053_s1 + $0x274] ss:$8 sps:$4 sm:$0xff]  }
   0xb   :  { %933 = vmatpush1.bf16.msra.mxu1 %v1350_v10  ;;  %v1380_v30 = vld [vmem:[%s2053_s1 + $0x70] ss:$8 sps:$4 sm:$0xff]   ;;  %v1382_v32 = vld [vmem:[%s2053_s1 + $0x84] ss:$8 sps:$4 sm:$0xff]   ;;  %v1386_v34 = vld [vmem:[%s2053_s1 + $0x80] ss:$8 sps:$4 sm:$0xff]  }
   0xc   :  { %1015 = vmatpush1.bf16.msra.mxu0 %v1351_v11  ;;  %934 = vmatprep.subr.bf16.mxu1 %v1352_v12  ;;  %v1381_v31 = vld [vmem:[%s2053_s1 + $0x270] ss:$8 sps:$4 sm:$0xff]   ;;  %v1384_v33 = vld [vmem:[%s2053_s1 + $0x284] ss:$8 sps:$4 sm:$0xff]   ;;  %v1387_v35 = vld [vmem:[%s2053_s1 + $0x280] ss:$8 sps:$4 sm:$0xff]  }
   0xd   :  { %1016 = vmatprep.subr.bf16.mxu0 %v1354_v13  ;;  %v1388_v36 = vld [vmem:[%s2053_s1 + $0x94] ss:$8 sps:$4 sm:$0xff]   ;;  %v1392_v38 = vld [vmem:[%s2053_s1 + $0x90] ss:$8 sps:$4 sm:$0xff]   ;;  %v1394_v40 = vld [vmem:[%s2053_s1 + $0xa4] ss:$8 sps:$4 sm:$0xff]  }
   0xe   :  { %v1390_v37 = vld [vmem:[%s2053_s1 + $0x294] ss:$8 sps:$4 sm:$0xff]   ;;  %v1393_v39 = vld [vmem:[%s2053_s1 + $0x290] ss:$8 sps:$4 sm:$0xff]   ;;  %v1396_v41 = vld [vmem:[%s2053_s1 + $0x2a4] ss:$8 sps:$4 sm:$0xff]  }
   0xf   :  { %935 = vmatpush1.bf16.msra.mxu1 %v1356_v14  ;;  %v1398_v42 = vld [vmem:[%s2053_s1 + $0xa0] ss:$8 sps:$4 sm:$0xff]   ;;  %v1400_v44 = vld [vmem:[%s2053_s1 + $0xb4] ss:$8 sps:$4 sm:$0xff]   ;;  %v1404_v47 = vld [vmem:[%s2053_s1 + $0xb0] ss:$8 sps:$4 sm:$0xff]  }
  0x10   :  { %1017 = vmatpush1.bf16.msra.mxu0 %v1357_v15  ;;  %936 = vmatprep.subr.bf16.mxu1 %v1358_v16  ;;  %v1399_v43 = vld [vmem:[%s2053_s1 + $0x2a0] ss:$8 sps:$4 sm:$0xff]   ;;  %v1402_v45 = vld [vmem:[%s2053_s1 + $0x2b4] ss:$8 sps:$4 sm:$0xff]   ;;  %v1405_v49 = vld [vmem:[%s2053_s1 + $0x2b0] ss:$8 sps:$4 sm:$0xff]  }
  0x11   :  { %1018 = vmatprep.subr.bf16.mxu0 %v1360_v17  ;;  %v15_v46 = vld [vmem:[%s2054_s0] sm:$0xff]  ;;  %v17_v50 = vld [vmem:[%s2054_s0 + $0x10] sm:$0xff] }
  0x12   :  { %v1161_v48 = vcombine.high %v15_v46, %v15_v46  ;;  %v1406_v51 = vld [vmem:[%s2053_s1 + $0xc4] ss:$8 sps:$4 sm:$0xff]   ;;  %v1165_v53 = vcombine.high %v17_v50, %v17_v50  ;;  %v1410_v54 = vld [vmem:[%s2053_s1 + $0xc0] ss:$8 sps:$4 sm:$0xff]   ;;  %v1412_v56 = vld [vmem:[%s2053_s1 + $0xd4] ss:$8 sps:$4 sm:$0xff]   ;;  %v1160_v6 = vcombine.low %v15_v46, %v15_v46  ;;  %v1164_v7 = vcombine.low %v17_v50, %v17_v50 }
  0x13   :  { %937 = vmatpush1.bf16.msra.mxu1 %v1362_v18  ;;  %v1408_v52 = vld [vmem:[%s2053_s1 + $0x2c4] ss:$8 sps:$4 sm:$0xff]   ;;  %v1411_v55 = vld [vmem:[%s2053_s1 + $0x2c0] ss:$8 sps:$4 sm:$0xff]   ;;  %v1414_v57 = vld [vmem:[%s2053_s1 + $0x2d4] ss:$8 sps:$4 sm:$0xff]  }
  0x14   :  { %1019 = vmatpush1.bf16.msra.mxu0 %v1363_v19  ;;  %938 = vmatprep.subr.bf16.mxu1 %v1364_v20  ;;  %v1416_v58 = vld [vmem:[%s2053_s1 + $0xd0] ss:$8 sps:$4 sm:$0xff]   ;;  %v1418_v60 = vld [vmem:[%s2053_s1 + $0xe4] ss:$8 sps:$4 sm:$0xff]   ;;  %v1422_v62 = vld [vmem:[%s2053_s1 + $0xe0] ss:$8 sps:$4 sm:$0xff]  }
  0x15   :  { %1020 = vmatprep.subr.bf16.mxu0 %v1366_v21  ;;  %960 = vmatprep.mubr.bf16.mxu1 %v1161_v48  ;;  %v1417_v59 = vld [vmem:[%s2053_s1 + $0x2d0] ss:$8 sps:$4 sm:$0xff]   ;;  %v1420_v61 = vld [vmem:[%s2053_s1 + $0x2e4] ss:$8 sps:$4 sm:$0xff]   ;;  %v1423_v63 = vld [vmem:[%s2053_s1 + $0x2e0] ss:$8 sps:$4 sm:$0xff]  }
  0x16   :  { %1042 = vmatprep.mubr.bf16.mxu0 %v1165_v53  ;;  %v1424_v0 = vld [vmem:[%s2053_s1 + $0xf4] ss:$8 sps:$4 sm:$0xff]   ;;  %v1428_v2 = vld [vmem:[%s2053_s1 + $0xf0] ss:$8 sps:$4 sm:$0xff]   ;;  %v1434_v4 = vld [vmem:[%s2053_s1 + $0x104] ss:$8 sps:$4 sm:$0xff]  }
  0x17   :  { %939 = vmatpush1.bf16.msra.mxu1 %v1368_v22  ;;  %v1426_v1 = vld [vmem:[%s2053_s1 + $0x2f4] ss:$8 sps:$4 sm:$0xff]   ;;  %v1429_v3 = vld [vmem:[%s2053_s1 + $0x2f0] ss:$8 sps:$4 sm:$0xff]   ;;  %v1439_v5 = vld [vmem:[%s2053_s1 + $0x304] ss:$8 sps:$4 sm:$0xff]  }
  0x18   :  { %1021 = vmatpush1.bf16.msra.mxu0 %v1369_v23  ;;  %940 = vmatprep.subr.bf16.mxu1 %v1370_v24  ;;  %v1432_v8 = vld [vmem:[%s2053_s1 + $0x100] ss:$8 sps:$4 sm:$0xff]   ;;  %v1442_v10 = vld [vmem:[%s2053_s1 + $0x114] ss:$8 sps:$4 sm:$0xff]   ;;  %v1440_v12 = vld [vmem:[%s2053_s1 + $0x110] ss:$8 sps:$4 sm:$0xff]  }
  0x19   :  { %1022 = vmatprep.subr.bf16.mxu0 %v1372_v25  ;;  %v1437_v9 = vld [vmem:[%s2053_s1 + $0x300] ss:$8 sps:$4 sm:$0xff]   ;;  %v1445_v11 = vld [vmem:[%s2053_s1 + $0x314] ss:$8 sps:$4 sm:$0xff]   ;;  %v1443_v13 = vld [vmem:[%s2053_s1 + $0x310] ss:$8 sps:$4 sm:$0xff]  }
  0x1a   :  { %v1448_v14 = vld [vmem:[%s2053_s1 + $0x124] ss:$8 sps:$4 sm:$0xff]   ;;  %v1446_v16 = vld [vmem:[%s2053_s1 + $0x120] ss:$8 sps:$4 sm:$0xff]   ;;  %v1454_v18 = vld [vmem:[%s2053_s1 + $0x134] ss:$8 sps:$4 sm:$0xff]  }
  0x1b   :  { %941 = vmatpush1.bf16.msra.mxu1 %v1374_v26  ;;  %v1451_v15 = vld [vmem:[%s2053_s1 + $0x324] ss:$8 sps:$4 sm:$0xff]   ;;  %v1449_v17 = vld [vmem:[%s2053_s1 + $0x320] ss:$8 sps:$4 sm:$0xff]   ;;  %v1457_v19 = vld [vmem:[%s2053_s1 + $0x334] ss:$8 sps:$4 sm:$0xff]  }
  0x1c   :  { %1023 = vmatpush1.bf16.msra.mxu0 %v1375_v27  ;;  %942 = vmatprep.subr.bf16.mxu1 %v1376_v28  ;;  %v1452_v20 = vld [vmem:[%s2053_s1 + $0x130] ss:$8 sps:$4 sm:$0xff]   ;;  %v1460_v22 = vld [vmem:[%s2053_s1 + $0x144] ss:$8 sps:$4 sm:$0xff]   ;;  %v1458_v24 = vld [vmem:[%s2053_s1 + $0x140] ss:$8 sps:$4 sm:$0xff]  }
  0x1d   :  { %1024 = vmatprep.subr.bf16.mxu0 %v1378_v29  ;;  %v1455_v21 = vld [vmem:[%s2053_s1 + $0x330] ss:$8 sps:$4 sm:$0xff]   ;;  %v1463_v23 = vld [vmem:[%s2053_s1 + $0x344] ss:$8 sps:$4 sm:$0xff]   ;;  %v1461_v25 = vld [vmem:[%s2053_s1 + $0x340] ss:$8 sps:$4 sm:$0xff]  }
  0x1e   :  { %v1466_v26 = vld [vmem:[%s2053_s1 + $0x154] ss:$8 sps:$4 sm:$0xff]   ;;  %v1464_v28 = vld [vmem:[%s2053_s1 + $0x150] ss:$8 sps:$4 sm:$0xff]   ;;  %v1496_v50 = vld [vmem:[%s2053_s1 + $0x1a4] ss:$8 sps:$4 sm:$0xff]  }
  0x1f   :  { %943 = vmatpush1.bf16.msra.mxu1 %v1380_v30  ;;  %v1469_v27 = vld [vmem:[%s2053_s1 + $0x354] ss:$8 sps:$4 sm:$0xff]   ;;  %v1467_v29 = vld [vmem:[%s2053_s1 + $0x350] ss:$8 sps:$4 sm:$0xff]   ;;  %v1472_v30 = vld [vmem:[%s2053_s1 + $0x164] ss:$8 sps:$4 sm:$0xff]  }
  0x20   :  { %1025 = vmatpush1.bf16.msra.mxu0 %v1381_v31  ;;  %944 = vmatprep.subr.bf16.mxu1 %v1382_v32  ;;  %v1475_v31 = vld [vmem:[%s2053_s1 + $0x364] ss:$8 sps:$4 sm:$0xff]   ;;  %v1490_v46 = vld [vmem:[%s2053_s1 + $0x194] ss:$8 sps:$4 sm:$0xff]   ;;  %v1488_v48 = vld [vmem:[%s2053_s1 + $0x190] ss:$8 sps:$4 sm:$0xff]  }
  0x21   :  { %1026 = vmatprep.subr.bf16.mxu0 %v1384_v33  ;;  %v1867_v32 = vld [vmem:[%s2054_s0 + $0x8] sm:$0xff]  ;;  %v1872_v33 = vld [vmem:[%s2054_s0 + $0x18] sm:$0xff] }
  0x22   :  { %v1497_v53 = vld [vmem:[%s2053_s1 + $0x3a0] ss:$8 sps:$4 sm:$0xff]  }
  0x23   :  { %945 = vmatpush1.bf16.msra.mxu1 %v1386_v34  ;;  %v1470_v34 = vld [vmem:[%s2053_s1 + $0x160] ss:$8 sps:$4 sm:$0xff]  }
  0x24   :  { %1027 = vmatpush1.bf16.msra.mxu0 %v1387_v35  ;;  %946 = vmatprep.subr.bf16.mxu1 %v1388_v36  ;;  %v1473_v35 = vld [vmem:[%s2053_s1 + $0x360] ss:$8 sps:$4 sm:$0xff]   ;;  %v1163_v36 = vcombine.high %v1867_v32, %v1867_v32 }
  0x25   :  { %1028 = vmatprep.subr.bf16.mxu0 %v1390_v37  ;;  %v1167_v37 = vcombine.high %v1872_v33, %v1872_v33 }
  0x27   :  { %947 = vmatpush1.bf16.msra.mxu1 %v1392_v38  ;;  %v1478_v38 = vld [vmem:[%s2053_s1 + $0x174] ss:$8 sps:$4 sm:$0xff]  }
  0x28   :  { %1029 = vmatpush1.bf16.msra.mxu0 %v1393_v39  ;;  %948 = vmatprep.subr.bf16.mxu1 %v1394_v40  ;;  %v1481_v39 = vld [vmem:[%s2053_s1 + $0x374] ss:$8 sps:$4 sm:$0xff]   ;;  %v1476_v40 = vld [vmem:[%s2053_s1 + $0x170] ss:$8 sps:$4 sm:$0xff]  }
  0x29   :  { %1030 = vmatprep.subr.bf16.mxu0 %v1396_v41  ;;  %v1479_v41 = vld [vmem:[%s2053_s1 + $0x370] ss:$8 sps:$4 sm:$0xff]  }
  0x2b   :  { %949 = vmatpush1.bf16.msra.mxu1 %v1398_v42  ;;  %v1484_v42 = vld [vmem:[%s2053_s1 + $0x184] ss:$8 sps:$4 sm:$0xff]  }
  0x2c   :  { %1031 = vmatpush1.bf16.msra.mxu0 %v1399_v43  ;;  %950 = vmatprep.subr.bf16.mxu1 %v1400_v44  ;;  %v1487_v43 = vld [vmem:[%s2053_s1 + $0x384] ss:$8 sps:$4 sm:$0xff]   ;;  %v1482_v44 = vld [vmem:[%s2053_s1 + $0x180] ss:$8 sps:$4 sm:$0xff]  }
  0x2d   :  { %1032 = vmatprep.subr.bf16.mxu0 %v1402_v45  ;;  %v1485_v45 = vld [vmem:[%s2053_s1 + $0x380] ss:$8 sps:$4 sm:$0xff]  }
  0x2f   :  { %951 = vmatpush1.bf16.msra.mxu1 %v1404_v47  ;;  %v1493_v47 = vld [vmem:[%s2053_s1 + $0x394] ss:$8 sps:$4 sm:$0xff]  }
  0x30   :  { %1033 = vmatpush1.bf16.msra.mxu0 %v1405_v49  ;;  %952 = vmatprep.subr.bf16.mxu1 %v1406_v51  ;;  %v1491_v49 = vld [vmem:[%s2053_s1 + $0x390] ss:$8 sps:$4 sm:$0xff]   ;;  %v1499_v51 = vld [vmem:[%s2053_s1 + $0x3a4] ss:$8 sps:$4 sm:$0xff]  }
  0x31   :  { %1034 = vmatprep.subr.bf16.mxu0 %v1408_v52  ;;  %v1494_v52 = vld [vmem:[%s2053_s1 + $0x1a0] ss:$8 sps:$4 sm:$0xff]  }
  0x33   :  { %953 = vmatpush1.bf16.msra.mxu1 %v1410_v54  ;;  %v1502_v54 = vld [vmem:[%s2053_s1 + $0x1b4] ss:$8 sps:$4 sm:$0xff]  }
  0x34   :  { %1035 = vmatpush1.bf16.msra.mxu0 %v1411_v55  ;;  %954 = vmatprep.subr.bf16.mxu1 %v1412_v56  ;;  %v1505_v55 = vld [vmem:[%s2053_s1 + $0x3b4] ss:$8 sps:$4 sm:$0xff]   ;;  %v1500_v56 = vld [vmem:[%s2053_s1 + $0x1b0] ss:$8 sps:$4 sm:$0xff]  }
  0x35   :  { %1036 = vmatprep.subr.bf16.mxu0 %v1414_v57  ;;  %v1503_v57 = vld [vmem:[%s2053_s1 + $0x3b0] ss:$8 sps:$4 sm:$0xff]  }
  0x37   :  { %955 = vmatpush1.bf16.msra.mxu1 %v1416_v58  ;;  %v1508_v58 = vld [vmem:[%s2053_s1 + $0x1c4] ss:$8 sps:$4 sm:$0xff]  }
  0x38   :  { %1037 = vmatpush1.bf16.msra.mxu0 %v1417_v59  ;;  %956 = vmatprep.subr.bf16.mxu1 %v1418_v60  ;;  %v1511_v59 = vld [vmem:[%s2053_s1 + $0x3c4] ss:$8 sps:$4 sm:$0xff]   ;;  %v1506_v60 = vld [vmem:[%s2053_s1 + $0x1c0] ss:$8 sps:$4 sm:$0xff]  }
  0x39   :  { %1038 = vmatprep.subr.bf16.mxu0 %v1420_v61  ;;  %v1509_v61 = vld [vmem:[%s2053_s1 + $0x3c0] ss:$8 sps:$4 sm:$0xff]  }
  0x3b   :  { %957 = vmatpush1.bf16.msra.mxu1 %v1422_v62  ;;  %v1514_v62 = vld [vmem:[%s2053_s1 + $0x1d4] ss:$8 sps:$4 sm:$0xff]  }
  0x3c   :  { %1039 = vmatpush1.bf16.msra.mxu0 %v1423_v63  ;;  %958 = vmatprep.subr.bf16.mxu1 %v1424_v0  ;;  %v1517_v63 = vld [vmem:[%s2053_s1 + $0x3d4] ss:$8 sps:$4 sm:$0xff]   ;;  %v1512_v0 = vld [vmem:[%s2053_s1 + $0x1d0] ss:$8 sps:$4 sm:$0xff]  }
  0x3d   :  { %1040 = vmatprep.subr.bf16.mxu0 %v1426_v1  ;;  %v1515_v1 = vld [vmem:[%s2053_s1 + $0x3d0] ss:$8 sps:$4 sm:$0xff]  }
  0x3f   :  { %959 = vmatpush1.bf16.msra.mxu1 %v1428_v2  ;;  %v1520_v2 = vld [vmem:[%s2053_s1 + $0x1e4] ss:$8 sps:$4 sm:$0xff]  }
  0x40   :  { %1041 = vmatpush1.bf16.msra.mxu0 %v1429_v3  ;;  %969 = vmatprep.subr.bf16.mxu1 %v1434_v4  ;;  %v1523_v3 = vld [vmem:[%s2053_s1 + $0x3e4] ss:$8 sps:$4 sm:$0xff]   ;;  %v1518_v4 = vld [vmem:[%s2053_s1 + $0x1e0] ss:$8 sps:$4 sm:$0xff]  }
  0x41   :  { %1051 = vmatprep.subr.bf16.mxu0 %v1439_v5  ;;  %v1521_v5 = vld [vmem:[%s2053_s1 + $0x3e0] ss:$8 sps:$4 sm:$0xff]  }
  0x42   :  { %961 = vmatmul.mubr.bf16.vlgmr.msra.gmra.mrb[0].mxu1 %v1160_v6  ;;  %v1526_v6 = vld [vmem:[%s2053_s1 + $0x1f4] ss:$8 sps:$4 sm:$0xff]  }
  0x43   :  { %1043 = vmatmul.mubr.bf16.vlgmr.msra.gmra.mrb[0].mxu0 %v1164_v7  ;;  %970 = vmatpush1.bf16.msra.mxu1 %v1432_v8  ;;  %v1529_v7 = vld [vmem:[%s2053_s1 + $0x3f4] ss:$8 sps:$4 sm:$0xff]   ;;  %v1524_v8 = vld [vmem:[%s2053_s1 + $0x1f0] ss:$8 sps:$4 sm:$0xff]  }
  0x44   :  { %1052 = vmatpush1.bf16.msra.mxu0 %v1437_v9  ;;  %971 = vmatprep.subr.bf16.mxu1 %v1442_v10  ;;  %v1527_v9 = vld [vmem:[%s2053_s1 + $0x3f0] ss:$8 sps:$4 sm:$0xff]   ;;  %v1536_v10 = vld [vmem:[%s2053_s1 + $0x404] ss:$8 sps:$4 sm:$0xff]  }
  0x45   :  { %1053 = vmatprep.subr.bf16.mxu0 %v1445_v11  ;;  %1001 = vmatprep.mubr.bf16.mxu1 %v1163_v36  ;;  %v1162_v11 = vcombine.low %v1867_v32, %v1867_v32 }
  0x46   :  { %1083 = vmatprep.mubr.bf16.mxu0 %v1167_v37  ;;  %v164_v37 = vld [vmem:[%s2055_s2] sm:$0x3] }
  0x47   :  { %972 = vmatpush1.bf16.msra.mxu1 %v1440_v12  ;;  %v1166_v12 = vcombine.low %v1872_v33, %v1872_v33 }
  0x48   :  { %1054 = vmatpush1.bf16.msra.mxu0 %v1443_v13  ;;  %973 = vmatprep.subr.bf16.mxu1 %v1448_v14  ;;  %v1534_v13 = vld [vmem:[%s2053_s1 + $0x400] ss:$8 sps:$4 sm:$0xff]   ;;  %v1539_v14 = vld [vmem:[%s2053_s1 + $0x414] ss:$8 sps:$4 sm:$0xff]  }
  0x49   :  { %1055 = vmatprep.subr.bf16.mxu0 %v1451_v15  ;;  %v1537_v15 = vld [vmem:[%s2053_s1 + $0x410] ss:$8 sps:$4 sm:$0xff]  }
  0x4b   :  { %974 = vmatpush1.bf16.msra.mxu1 %v1446_v16  ;;  %v1567_v16 = vmov 0  }
  0x4c   :  { %1056 = vmatpush1.bf16.msra.mxu0 %v1449_v17  ;;  %975 = vmatprep.subr.bf16.mxu1 %v1454_v18  ;;  %v1542_v17 = vld [vmem:[%s2053_s1 + $0x424] ss:$8 sps:$4 sm:$0xff]   ;;  %v1540_v18 = vld [vmem:[%s2053_s1 + $0x420] ss:$8 sps:$4 sm:$0xff]  }
  0x4d   :  { %1057 = vmatprep.subr.bf16.mxu0 %v1457_v19  ;;  %v1545_v19 = vld [vmem:[%s2053_s1 + $0x434] ss:$8 sps:$4 sm:$0xff]  }
  0x4f   :  { %976 = vmatpush1.bf16.msra.mxu1 %v1452_v20  ;;  %v1543_v20 = vld [vmem:[%s2053_s1 + $0x430] ss:$8 sps:$4 sm:$0xff]  }
  0x50   :  { %1058 = vmatpush1.bf16.msra.mxu0 %v1455_v21  ;;  %977 = vmatprep.subr.bf16.mxu1 %v1460_v22  ;;  %v1548_v21 = vld [vmem:[%s2053_s1 + $0x444] ss:$8 sps:$4 sm:$0xff]   ;;  %v1546_v22 = vld [vmem:[%s2053_s1 + $0x440] ss:$8 sps:$4 sm:$0xff]  }
  0x51   :  { %1059 = vmatprep.subr.bf16.mxu0 %v1463_v23  ;;  %v1551_v23 = vld [vmem:[%s2053_s1 + $0x454] ss:$8 sps:$4 sm:$0xff]  }
  0x53   :  { %978 = vmatpush1.bf16.msra.mxu1 %v1458_v24  ;;  %v1549_v24 = vld [vmem:[%s2053_s1 + $0x450] ss:$8 sps:$4 sm:$0xff]  }
  0x54   :  { %1060 = vmatpush1.bf16.msra.mxu0 %v1461_v25  ;;  %979 = vmatprep.subr.bf16.mxu1 %v1466_v26  ;;  %v1554_v25 = vld [vmem:[%s2053_s1 + $0x464] ss:$8 sps:$4 sm:$0xff]   ;;  %v1552_v26 = vld [vmem:[%s2053_s1 + $0x460] ss:$8 sps:$4 sm:$0xff]  }
  0x55   :  { %1061 = vmatprep.subr.bf16.mxu0 %v1469_v27  ;;  %v1557_v27 = vld [vmem:[%s2053_s1 + $0x474] ss:$8 sps:$4 sm:$0xff]  }
  0x57   :  { %980 = vmatpush1.bf16.msra.mxu1 %v1464_v28  ;;  %v1555_v28 = vld [vmem:[%s2053_s1 + $0x470] ss:$8 sps:$4 sm:$0xff]  }
  0x58   :  { %1062 = vmatpush1.bf16.msra.mxu0 %v1467_v29  ;;  %981 = vmatprep.subr.bf16.mxu1 %v1472_v30  ;;  %v1558_v29 = vld [vmem:[%s2054_s0 + $0x20] ss:$0 sps:$4 sm:$0xff]  }
  0x59   :  { %1063 = vmatprep.subr.bf16.mxu0 %v1475_v31 }
  0x5b   :  { %982 = vmatpush1.bf16.msra.mxu1 %v1470_v34  ;;  %v166_v34 = vlaneseq }
  0x5c   :  { %1064 = vmatpush1.bf16.msra.mxu0 %v1473_v35  ;;  %983 = vmatprep.subr.bf16.mxu1 %v1478_v38 }
  0x5d   :  { %1065 = vmatprep.subr.bf16.mxu0 %v1481_v39  ;;  %v167_v35 = vshrl.u32 %v166_v34, 7 }
  0x5f   :  { %984 = vmatpush1.bf16.msra.mxu1 %v1476_v40  ;;  %v168_v36 = vsub.s32 0, %v167_v35  ;;  %v172_v38 = vsub.s32 1, %v167_v35 }
  0x60   :  { %1066 = vmatpush1.bf16.msra.mxu0 %v1479_v41  ;;  %985 = vmatprep.subr.bf16.mxu1 %v1484_v42 }
  0x61   :  { %1067 = vmatprep.subr.bf16.mxu0 %v1487_v43  ;;  %v169_v39 = vrot.slane %v164_v37, %v168_v36  ;;  %v173_v40 = vrot.slane %v164_v37, %v172_v38 }
  0x63   :  { %986 = vmatpush1.bf16.msra.mxu1 %v1482_v44 }
  0x64   :  { %1068 = vmatpush1.bf16.msra.mxu0 %v1485_v45  ;;  %987 = vmatprep.subr.bf16.mxu1 %v1490_v46 }
  0x65   :  { %1069 = vmatprep.subr.bf16.mxu0 %v1493_v47 }
  0x67   :  { %988 = vmatpush1.bf16.msra.mxu1 %v1488_v48 }
  0x68   :  { %1070 = vmatpush1.bf16.msra.mxu0 %v1491_v49  ;;  %989 = vmatprep.subr.bf16.mxu1 %v1496_v50 }
  0x69   :  { %1071 = vmatprep.subr.bf16.mxu0 %v1499_v51 }
  0x6b   :  { %990 = vmatpush1.bf16.msra.mxu1 %v1494_v52 }
  0x6c   :  { %1072 = vmatpush1.bf16.msra.mxu0 %v1497_v53  ;;  %991 = vmatprep.subr.bf16.mxu1 %v1502_v54 }
  0x6d   :  { %1073 = vmatprep.subr.bf16.mxu0 %v1505_v55 }
  0x6f   :  { %992 = vmatpush1.bf16.msra.mxu1 %v1500_v56 }
  0x70   :  { %1074 = vmatpush1.bf16.msra.mxu0 %v1503_v57  ;;  %993 = vmatprep.subr.bf16.mxu1 %v1508_v58 }
  0x71   :  { %1075 = vmatprep.subr.bf16.mxu0 %v1511_v59 }
  0x73   :  { %994 = vmatpush1.bf16.msra.mxu1 %v1506_v60 }
  0x74   :  { %1076 = vmatpush1.bf16.msra.mxu0 %v1509_v61  ;;  %995 = vmatprep.subr.bf16.mxu1 %v1514_v62 }
  0x75   :  { %1077 = vmatprep.subr.bf16.mxu0 %v1517_v63 }
  0x77   :  { %996 = vmatpush1.bf16.msra.mxu1 %v1512_v0 }
  0x78   :  { %1078 = vmatpush1.bf16.msra.mxu0 %v1515_v1  ;;  %997 = vmatprep.subr.bf16.mxu1 %v1520_v2 }
  0x79   :  { %1079 = vmatprep.subr.bf16.mxu0 %v1523_v3 }
  0x7b   :  { %998 = vmatpush1.bf16.msra.mxu1 %v1518_v4 }
  0x7c   :  { %1080 = vmatpush1.bf16.msra.mxu0 %v1521_v5  ;;  %999 = vmatprep.subr.bf16.mxu1 %v1526_v6 }
  0x7d   :  { %1081 = vmatprep.subr.bf16.mxu0 %v1529_v7 }
  0x7f   :  { %1000 = vmatpush1.bf16.msra.mxu1 %v1524_v8 }
  0x80   :  { %1082 = vmatpush1.bf16.msra.mxu0 %v1527_v9 }
  0x81   :  { %1092 = vmatprep.subr.bf16.mxu0 %v1536_v10 }
  0x82   :  { %1002 = vmatmul.mubr.bf16.vlgmr.msra.gmra.mrb[0].mxu1 %v1162_v11 }
  0x83   :  { %1084 = vmatmul.mubr.bf16.vlgmr.msra.gmra.mrb[0].mxu0 %v1166_v12 }
  0x84   :  { %1093 = vmatpush1.bf16.msra.mxu0 %v1534_v13  ;;  %1124 = vmatprep.mubr.bf16.mxu0 %v1567_v16 }
  0x85   :  { %1094 = vmatprep.subr.bf16.mxu0 %v1539_v14 }
  0x88   :  { %1095 = vmatpush1.bf16.msra.mxu0 %v1537_v15 }
  0x89   :  { %1096 = vmatprep.subr.bf16.mxu0 %v1542_v17 }
  0x8c   :  { %1097 = vmatpush1.bf16.msra.mxu0 %v1540_v18 }
  0x8d   :  { %1098 = vmatprep.subr.bf16.mxu0 %v1545_v19 }
  0x90   :  { %1099 = vmatpush1.bf16.msra.mxu0 %v1543_v20 }
  0x91   :  { %1100 = vmatprep.subr.bf16.mxu0 %v1548_v21 }
  0x94   :  { %1101 = vmatpush1.bf16.msra.mxu0 %v1546_v22 }
  0x95   :  { %1102 = vmatprep.subr.bf16.mxu0 %v1551_v23 }
  0x98   :  { %1103 = vmatpush1.bf16.msra.mxu0 %v1549_v24 }
  0x99   :  { %1104 = vmatprep.subr.bf16.mxu0 %v1554_v25 }
  0x9c   :  { %1105 = vmatpush1.bf16.msra.mxu0 %v1552_v26 }
  0x9d   :  { %1106 = vmatprep.subr.bf16.mxu0 %v1557_v27 }
  0xa0   :  { %1107 = vmatpush1.bf16.msra.mxu0 %v1555_v28 }
  0xa3   :  { %1125 = vmatmul.mubr.bf16.vlgmr.msra.gmra.mrb[0].mxu0 %v1558_v29 }
 0x155   :  { %v1003_v30 = vpop.f32.mrb[0].mxu1 }
 0x156   :  { %v1005_v31 = vpop.f32.mrb[1].mxu1  ;;  %v1317_v41 = vadd.f32 %v1003_v30, %v169_v39 }
 0x157   :  { %v1007_v32 = vpop.f32.mrb[2].mxu1  ;;  %v1319_v42 = vadd.f32 %v1005_v31, %v173_v40 }
 0x158   :  { %v1008_v33 = vpop.f32.mrb[3].mxu1 }
 0x176   :  { %v1126_v43 = vpop.f32.mrb[0].mxu0 }
 0x177   :  { %v1318_v44 = vadd.f32 %v1317_v41, %v1126_v43  ;;  %v1128_v45 = vpop.f32.mrb[1].mxu0 }
 0x178   :  { %v1320_v46 = vadd.f32 %v1319_v42, %v1128_v45  ;;  %v1130_v47 = vpop.f32.mrb[2].mxu0 }
 0x179   :  { %v1313_v48 = vmul.f32 -1.442695, %v1318_v44  ;;  %v1131_v49 = vpop.f32.mrb[3].mxu0 }
 0x17a   :  { %v1314_v50 = vmul.f32 -1.442695, %v1320_v46 }
 0x17b   :  { %1559 = vpow2.f32 %v1313_v48 }
 0x17c   :  { %1561 = vpow2.f32 %v1314_v50 }
 0x185   :  { %v1560_v51 = vpop.eup %1559 }
 0x186   :  { %v1562_v52 = vpop.eup %1561  ;;  %v1139_v53 = vadd.f32 1.0, %v1560_v51 }
 0x187   :  { %v1140_v54 = vadd.f32 1.0, %v1562_v52 }
 0x188   :  { %1563 = vrcp.f32 %v1139_v53 }
 0x189   :  { %1565 = vrcp.f32 %v1140_v54 }
 0x192   :  { %v1564_v55 = vpop.eup %1563 }
 0x193   :  { %v1566_v56 = vpop.eup %1565  ;;  %v1145_v57 = vmul.f32 %v1564_v55, %v1318_v44 }
 0x194   :  { %v1146_v58 = vmul.f32 %v1566_v56, %v1320_v46 }
 0x196   :  { %v1316_v59 = vpack.c.bf16 %v1146_v58, %v1145_v57 }
 0x198   :  { %1155 = vst [vmem:[%s2056_s3] sm:$0xff] %v1316_v59 }

// kernel: yolox_forward.38
= control target key start
LH: loop header
LB: loop body
LE: loop exit
PB: predicated region body
PF: predicated region fallthrough
CT: control target
= control target key end

     0   :  { %vm195_vm0 = vcmask 519168   ;;  %s348_s1 = inlined_call_operand.vmem [shape: bf16[128,64], index: 1, kind: input, shape index: {}]   ;;  %s349_s0 = inlined_call_operand.vmem [shape: bf16[32,128], index: 0, kind: input, shape index: {}]   ;;  %s350_s2 = inlined_call_operand.vmem [shape: f32[1,64], index: 2, kind: input, shape index: {}]   ;;  %s351_s3 = inlined_call_operand.vmem [shape: bf16[32,64], index: 3, kind: output, shape index: {}]  }
   0x1   :  { %v257_v0 = vld [vmem:[%s348_s1] sm:$0xff]   ;;  %v258_v1 = vld [vmem:[%s348_s1 + $0x8] sm:$0xff]   ;;  %v259_v2 = vld [vmem:[%s348_s1 + $0x10] sm:$0xff]  }
   0x2   :  { %237 = vmatprep.subr.bf16.mxu0 %v257_v0  ;;  %v260_v3 = vld [vmem:[%s348_s1 + $0x18] sm:$0xff]   ;;  %v265_v4 = vld [vmem:[%s349_s0] sm:$0xff]   ;;  %v262_v6 = vld [vmem:[%s348_s1 + $0x28] sm:$0xff]  }
   0x3   :  { %238 = vmatpush3.bf16.msra.mxu0 %v257_v0  ;;  %253 = vmatprep.mubr.bf16.mxu0 %v265_v4  ;;  %v261_v5 = vld [vmem:[%s348_s1 + $0x20] sm:$0xff]   ;;  %v263_v7 = vld [vmem:[%s348_s1 + $0x30] sm:$0xff]   ;;  %v264_v8 = vld [vmem:[%s348_s1 + $0x38] sm:$0xff]  }
   0x4   :  { %239 = vmatprep.subr.bf16.mxu0 %v258_v1  ;;  %v266_v9 = vld [vmem:[%s349_s0 + $0x8] sm:$0xff]   ;;  %v204_v10 = vld [vmem:[%s350_s2] ss:$0 sm:$0xff] }
   0x7   :  { %240 = vmatpush3.bf16.msra.mxu0 %v258_v1 }
   0x8   :  { %241 = vmatprep.subr.bf16.mxu0 %v259_v2 }
   0xb   :  { %242 = vmatpush3.bf16.msra.mxu0 %v259_v2 }
   0xc   :  { %243 = vmatprep.subr.bf16.mxu0 %v260_v3 }
   0xf   :  { %244 = vmatpush3.bf16.msra.mxu0 %v260_v3 }
  0x10   :  { %245 = vmatprep.subr.bf16.mxu0 %v261_v5 }
  0x13   :  { %246 = vmatpush3.bf16.msra.mxu0 %v261_v5 }
  0x14   :  { %247 = vmatprep.subr.bf16.mxu0 %v262_v6 }
  0x17   :  { %248 = vmatpush3.bf16.msra.mxu0 %v262_v6 }
  0x18   :  { %249 = vmatprep.subr.bf16.mxu0 %v263_v7 }
  0x1b   :  { %250 = vmatpush3.bf16.msra.mxu0 %v263_v7 }
  0x1c   :  { %251 = vmatprep.subr.bf16.mxu0 %v264_v8 }
  0x1f   :  { %252 = vmatpush3.bf16.msra.mxu0 %v264_v8 }
  0x22   :  { %254 = vmatmul.mubr.bf16.vlgmr.msra.gmra.mrb[0].mxu0 %v266_v9 }
  0xf5   :  { %v255_v11 = vpop.f32.mrb[0].mxu0 }
  0xf6   :  { %v145_v12 = vadd.f32 %v255_v11, %v204_v10  ;;  %v136_v13 = vpop.f32.mrb[1].mxu0 }
  0xf7   :  { %v137_v14 = vadd.f32 %v204_v10, %v136_v13  ;;  %v256_v15 = vpop.f32.mrb[2].mxu0 }
  0xf8   :  { %v217_v16 = vmul.f32 -1.442695, %v145_v12  ;;  %v148_v17 = vadd.f32 %v256_v15, %v204_v10  ;;  %v139_v18 = vpop.f32.mrb[3].mxu0 }
  0xf9   :  { %v215_v19 = vmul.f32 -1.442695, %v137_v14  ;;  %v140_v20 = vadd.f32 %v204_v10, %v139_v18 }
  0xfa   :  { %267 = vpow2.f32 %v217_v16  ;;  %v218_v21 = vmul.f32 -1.442695, %v148_v17 }
  0xfb   :  { %269 = vpow2.f32 %v215_v19  ;;  %v216_v22 = vmul.f32 -1.442695, %v140_v20 }
  0xfc   :  { %271 = vpow2.f32 %v218_v21 }
  0xfd   :  { %273 = vpow2.f32 %v216_v22 }
 0x104   :  { %v268_v23 = vpop.eup %267 }
 0x105   :  { %v270_v24 = vpop.eup %269  ;;  %v165_v25 = vadd.f32 1.0, %v268_v23 }
 0x106   :  { %v272_v26 = vpop.eup %271  ;;  %v163_v27 = vadd.f32 1.0, %v270_v24 }
 0x107   :  { %v274_v28 = vpop.eup %273  ;;  %275 = vrcp.f32 %v165_v25  ;;  %v166_v29 = vadd.f32 1.0, %v272_v26 }
 0x108   :  { %277 = vrcp.f32 %v163_v27  ;;  %v164_v30 = vadd.f32 1.0, %v274_v28 }
 0x109   :  { %279 = vrcp.f32 %v166_v29 }
 0x10a   :  { %281 = vrcp.f32 %v164_v30 }
 0x111   :  { %v276_v31 = vpop.eup %275 }
 0x112   :  { %v278_v32 = vpop.eup %277  ;;  %v177_v33 = vmul.f32 %v276_v31, %v145_v12 }
 0x113   :  { %v280_v34 = vpop.eup %279  ;;  %v175_v35 = vmul.f32 %v278_v32, %v137_v14 }
 0x114   :  { %v282_v36 = vpop.eup %281  ;;  %v225_v37 = vpack.c.bf16 %v177_v33, %v177_v33  ;;  %v178_v38 = vmul.f32 %v280_v34, %v148_v17 }
 0x115   :  { %v223_v39 = vpack.c.bf16 %v175_v35, %v175_v35  ;;  %v176_v40 = vmul.f32 %v282_v36, %v140_v20 }
 0x116   :  { %198 = vst.msk [vmem:[%s351_s3 + $0x8] sm:$0xf] %vm195_vm0, %v225_v37  ;;  %v226_v41 = vpack.c.bf16 %v178_v38, %v178_v38 }
 0x117   :  { %196 = vst.msk [vmem:[%s351_s3] sm:$0xf] %vm195_vm0, %v223_v39  ;;  %v224_v42 = vpack.c.bf16 %v176_v40, %v176_v40 }
 0x118   :  { %199 = vst.msk [vmem:[%s351_s3 + $0xc] sm:$0xf] %vm195_vm0, %v226_v41 }
 0x119   :  { %197 = vst.msk [vmem:[%s351_s3 + $0x4] sm:$0xf] %vm195_vm0, %v224_v42 }

// kernel: yolox_forward.37
= control target key start
LH: loop header
LB: loop body
LE: loop exit
PB: predicated region body
PF: predicated region fallthrough
CT: control target
= control target key end

     0   :  { %s3138_s1 = inlined_call_operand.vmem [shape: bf16[2304,128], index: 1, kind: input, shape index: {}]   ;;  %s3139_s0 = inlined_call_operand.vmem [shape: bf16[32,2304], index: 0, kind: input, shape index: {}]   ;;  %s3140_s2 = inlined_call_operand.vmem [shape: f32[1,128], index: 2, kind: input, shape index: {}]   ;;  %s3141_s3 = inlined_call_operand.vmem [shape: bf16[32,128], index: 3, kind: output, shape index: {}]  }
   0x1   :  { %v2355_v0 = vld [vmem:[%s3138_s1 + $0x40] sm:$0xff]   ;;  %v2359_v4 = vld [vmem:[%s3138_s1 + $0x48] sm:$0xff]   ;;  %v2363_v8 = vld [vmem:[%s3138_s1 + $0x50] sm:$0xff]  }
   0x2   :  { %v2356_v1 = vld [vmem:[%s3138_s1 + $0xc0] sm:$0xff]   ;;  %2087 = vmatprep.subr.bf16.mxu0 %v2355_v0  ;;  %v2360_v5 = vld [vmem:[%s3138_s1 + $0xc8] sm:$0xff]   ;;  %v2364_v9 = vld [vmem:[%s3138_s1 + $0xd0] sm:$0xff]  }
   0x3   :  { %v2357_v2 = vld [vmem:[%s3138_s1] sm:$0xff]   ;;  %2115 = vmatprep.subr.bf16.mxu1 %v2356_v1  ;;  %v2361_v6 = vld [vmem:[%s3138_s1 + $0x8] sm:$0xff]   ;;  %v2365_v10 = vld [vmem:[%s3138_s1 + $0x10] sm:$0xff]  }
   0x4   :  { %v2358_v3 = vld [vmem:[%s3138_s1 + $0x80] sm:$0xff]   ;;  %2088 = vmatpush3.bf16.msra.mxu0 %v2357_v2  ;;  %v2362_v7 = vld [vmem:[%s3138_s1 + $0x88] sm:$0xff]   ;;  %v2366_v11 = vld [vmem:[%s3138_s1 + $0x90] sm:$0xff]  }
   0x5   :  { %2116 = vmatpush3.bf16.msra.mxu1 %v2358_v3  ;;  %2089 = vmatprep.subr.bf16.mxu0 %v2359_v4  ;;  %v2367_v12 = vld [vmem:[%s3138_s1 + $0x58] sm:$0xff]   ;;  %v2371_v16 = vld [vmem:[%s3138_s1 + $0x60] sm:$0xff]   ;;  %v2375_v20 = vld [vmem:[%s3138_s1 + $0x68] sm:$0xff]  }
   0x6   :  { %2117 = vmatprep.subr.bf16.mxu1 %v2360_v5  ;;  %v2368_v13 = vld [vmem:[%s3138_s1 + $0xd8] sm:$0xff]   ;;  %v2372_v17 = vld [vmem:[%s3138_s1 + $0xe0] sm:$0xff]   ;;  %v2376_v21 = vld [vmem:[%s3138_s1 + $0xe8] sm:$0xff]  }
   0x7   :  { %v2369_v14 = vld [vmem:[%s3138_s1 + $0x18] sm:$0xff]   ;;  %v2373_v18 = vld [vmem:[%s3138_s1 + $0x20] sm:$0xff]   ;;  %v2377_v22 = vld [vmem:[%s3138_s1 + $0x28] sm:$0xff]  }
   0x8   :  { %2090 = vmatpush3.bf16.msra.mxu0 %v2361_v6  ;;  %v2370_v15 = vld [vmem:[%s3138_s1 + $0x98] sm:$0xff]   ;;  %v2374_v19 = vld [vmem:[%s3138_s1 + $0xa0] sm:$0xff]   ;;  %v2378_v23 = vld [vmem:[%s3138_s1 + $0xa8] sm:$0xff]  }
   0x9   :  { %2118 = vmatpush3.bf16.msra.mxu1 %v2362_v7  ;;  %2091 = vmatprep.subr.bf16.mxu0 %v2363_v8  ;;  %v2379_v24 = vld [vmem:[%s3138_s1 + $0x70] sm:$0xff]   ;;  %v2383_v28 = vld [vmem:[%s3138_s1 + $0x78] sm:$0xff]   ;;  %v2387_v32 = vld [vmem:[%s3139_s0] ss:$72 sps:$4 sm:$0xff]  }
   0xa   :  { %2119 = vmatprep.subr.bf16.mxu1 %v2364_v9  ;;  %v2380_v25 = vld [vmem:[%s3138_s1 + $0xf0] sm:$0xff]   ;;  %v2384_v29 = vld [vmem:[%s3138_s1 + $0xf8] sm:$0xff]   ;;  %v2389_v33 = vld [vmem:[%s3139_s0 + $0x4] ss:$72 sps:$4 sm:$0xff]  }
   0xb   :  { %v2381_v26 = vld [vmem:[%s3138_s1 + $0x30] sm:$0xff]   ;;  %v2385_v30 = vld [vmem:[%s3138_s1 + $0x38] sm:$0xff]   ;;  %1422 = vmatprep.mubr.bf16.mxu0 %v2389_v33  ;;  %v2393_v36 = vld [vmem:[%s3138_s1 + $0x140] sm:$0xff]  }
   0xc   :  { %2092 = vmatpush3.bf16.msra.mxu0 %v2365_v10  ;;  %v2382_v27 = vld [vmem:[%s3138_s1 + $0xb0] sm:$0xff]   ;;  %v2386_v31 = vld [vmem:[%s3138_s1 + $0xb8] sm:$0xff]   ;;  %v2394_v37 = vld [vmem:[%s3138_s1 + $0x1c0] sm:$0xff]  }
   0xd   :  { %2120 = vmatpush3.bf16.msra.mxu1 %v2366_v11  ;;  %2093 = vmatprep.subr.bf16.mxu0 %v2367_v12  ;;  %v2390_v34 = vld [vmem:[%s3139_s0 + $0x8] ss:$72 sps:$4 sm:$0xff]   ;;  %v2392_v35 = vld [vmem:[%s3139_s0 + $0xc] ss:$72 sps:$4 sm:$0xff]   ;;  %v2395_v38 = vld [vmem:[%s3138_s1 + $0x100] sm:$0xff]  }
   0xe   :  { %2121 = vmatprep.subr.bf16.mxu1 %v2368_v13  ;;  %1471 = vmatprep.mubr.bf16.mxu1 %v2392_v35  ;;  %v2396_v39 = vld [vmem:[%s3138_s1 + $0x180] sm:$0xff]   ;;  %v2397_v40 = vld [vmem:[%s3138_s1 + $0x148] sm:$0xff]   ;;  %v2401_v44 = vld [vmem:[%s3138_s1 + $0x150] sm:$0xff]  }
   0xf   :  { %v2398_v41 = vld [vmem:[%s3138_s1 + $0x1c8] sm:$0xff]   ;;  %v2402_v45 = vld [vmem:[%s3138_s1 + $0x1d0] sm:$0xff]   ;;  %v2405_v48 = vld [vmem:[%s3138_s1 + $0x158] sm:$0xff]  }
  0x10   :  { %2094 = vmatpush3.bf16.msra.mxu0 %v2369_v14  ;;  %v2399_v42 = vld [vmem:[%s3138_s1 + $0x108] sm:$0xff]   ;;  %v2403_v46 = vld [vmem:[%s3138_s1 + $0x110] sm:$0xff]   ;;  %v2406_v49 = vld [vmem:[%s3138_s1 + $0x1d8] sm:$0xff]  }
  0x11   :  { %2122 = vmatpush3.bf16.msra.mxu1 %v2370_v15  ;;  %2095 = vmatprep.subr.bf16.mxu0 %v2371_v16  ;;  %v2400_v43 = vld [vmem:[%s3138_s1 + $0x188] sm:$0xff]   ;;  %v2404_v47 = vld [vmem:[%s3138_s1 + $0x190] sm:$0xff]   ;;  %v2407_v50 = vld [vmem:[%s3138_s1 + $0x118] sm:$0xff]  }
  0x12   :  { %2123 = vmatprep.subr.bf16.mxu1 %v2372_v17  ;;  %v2408_v51 = vld [vmem:[%s3138_s1 + $0x198] sm:$0xff]   ;;  %v2409_v52 = vld [vmem:[%s3138_s1 + $0x160] sm:$0xff]   ;;  %v2416_v58 = vld [vmem:[%s3138_s1 + $0x168] sm:$0xff]  }
  0x13   :  { %v2410_v53 = vld [vmem:[%s3138_s1 + $0x1e0] sm:$0xff]   ;;  %v2413_v56 = vld [vmem:[%s3139_s0 + $0x94] ss:$72 sps:$4 sm:$0xff]   ;;  %v2415_v57 = vld [vmem:[%s3139_s0 + $0x90] ss:$72 sps:$4 sm:$0xff]  }
  0x14   :  { %2096 = vmatpush3.bf16.msra.mxu0 %v2373_v18  ;;  %v2411_v54 = vld [vmem:[%s3138_s1 + $0x120] sm:$0xff]   ;;  %v2417_v59 = vld [vmem:[%s3138_s1 + $0x1e8] sm:$0xff]   ;;  %v2423_v0 = vld [vmem:[%s3138_s1 + $0x170] sm:$0xff]  }
  0x15   :  { %2124 = vmatpush3.bf16.msra.mxu1 %v2374_v19  ;;  %2097 = vmatprep.subr.bf16.mxu0 %v2375_v20  ;;  %v2412_v55 = vld [vmem:[%s3138_s1 + $0x1a0] sm:$0xff]   ;;  %v2420_v61 = vld [vmem:[%s3138_s1 + $0x128] sm:$0xff]   ;;  %v2424_v1 = vld [vmem:[%s3138_s1 + $0x1f0] sm:$0xff]  }
  0x16   :  { %2125 = vmatprep.subr.bf16.mxu1 %v2376_v21  ;;  %v2418_v60 = vld [vmem:[%s3139_s0 + $0x9c] ss:$72 sps:$4 sm:$0xff]   ;;  %v2421_v62 = vld [vmem:[%s3138_s1 + $0x1a8] sm:$0xff]   ;;  %v2422_v63 = vld [vmem:[%s3139_s0 + $0x98] ss:$72 sps:$4 sm:$0xff]  }
  0x17   :  { %v2425_v2 = vld [vmem:[%s3138_s1 + $0x130] sm:$0xff]   ;;  %v2427_v4 = vld [vmem:[%s3138_s1 + $0x178] sm:$0xff]   ;;  %v2437_v12 = vld [vmem:[%s3138_s1 + $0x240] sm:$0xff]  }
  0x18   :  { %2098 = vmatpush3.bf16.msra.mxu0 %v2377_v22  ;;  %v2426_v3 = vld [vmem:[%s3138_s1 + $0x1b0] sm:$0xff]   ;;  %v2428_v5 = vld [vmem:[%s3138_s1 + $0x1f8] sm:$0xff]   ;;  %v2438_v13 = vld [vmem:[%s3138_s1 + $0x2c0] sm:$0xff]  }
  0x19   :  { %2126 = vmatpush3.bf16.msra.mxu1 %v2378_v23  ;;  %2099 = vmatprep.subr.bf16.mxu0 %v2379_v24  ;;  %v2429_v6 = vld [vmem:[%s3138_s1 + $0x138] sm:$0xff]   ;;  %v2439_v14 = vld [vmem:[%s3138_s1 + $0x200] sm:$0xff]   ;;  %v2441_v16 = vld [vmem:[%s3138_s1 + $0x248] sm:$0xff]  }
  0x1a   :  { %2127 = vmatprep.subr.bf16.mxu1 %v2380_v25  ;;  %v2430_v7 = vld [vmem:[%s3138_s1 + $0x1b8] sm:$0xff]   ;;  %v2440_v15 = vld [vmem:[%s3138_s1 + $0x280] sm:$0xff]   ;;  %v2442_v17 = vld [vmem:[%s3138_s1 + $0x2c8] sm:$0xff]  }
  0x1b   :  { %v2431_v8 = vld [vmem:[%s3139_s0 + $0x10] ss:$72 sps:$4 sm:$0xff]   ;;  %v2433_v9 = vld [vmem:[%s3139_s0 + $0x14] ss:$72 sps:$4 sm:$0xff]   ;;  %v2443_v18 = vld [vmem:[%s3138_s1 + $0x208] sm:$0xff]  }
  0x1c   :  { %2100 = vmatpush3.bf16.msra.mxu0 %v2381_v26  ;;  %v2434_v10 = vld [vmem:[%s3139_s0 + $0x18] ss:$72 sps:$4 sm:$0xff]   ;;  %v2436_v11 = vld [vmem:[%s3139_s0 + $0x1c] ss:$72 sps:$4 sm:$0xff]   ;;  %v2444_v19 = vld [vmem:[%s3138_s1 + $0x288] sm:$0xff]  }
  0x1d   :  { %2128 = vmatpush3.bf16.msra.mxu1 %v2382_v27  ;;  %2101 = vmatprep.subr.bf16.mxu0 %v2383_v28  ;;  %v2445_v20 = vld [vmem:[%s3139_s0 + $0xa4] ss:$72 sps:$4 sm:$0xff]   ;;  %v2447_v21 = vld [vmem:[%s3139_s0 + $0xa0] ss:$72 sps:$4 sm:$0xff]   ;;  %v2448_v22 = vld [vmem:[%s3138_s1 + $0x250] sm:$0xff]  }
  0x1e   :  { %2129 = vmatprep.subr.bf16.mxu1 %v2384_v29  ;;  %v2449_v23 = vld [vmem:[%s3138_s1 + $0x2d0] sm:$0xff]   ;;  %v2455_v28 = vld [vmem:[%s3138_s1 + $0x258] sm:$0xff]   ;;  %v2460_v33 = vld [vmem:[%s3138_s1 + $0x2e0] sm:$0xff]  }
  0x1f   :  { %v2450_v24 = vld [vmem:[%s3139_s0 + $0xac] ss:$72 sps:$4 sm:$0xff]   ;;  %v2454_v27 = vld [vmem:[%s3139_s0 + $0xa8] ss:$72 sps:$4 sm:$0xff]   ;;  %v2456_v29 = vld [vmem:[%s3138_s1 + $0x2d8] sm:$0xff]  }
  0x20   :  { %2102 = vmatpush3.bf16.msra.mxu0 %v2385_v30  ;;  %v2452_v25 = vld [vmem:[%s3138_s1 + $0x210] sm:$0xff]   ;;  %v2457_v30 = vld [vmem:[%s3138_s1 + $0x218] sm:$0xff]   ;;  %v2462_v35 = vld [vmem:[%s3138_s1 + $0x2a0] sm:$0xff]  }
  0x21   :  { %2130 = vmatpush3.bf16.msra.mxu1 %v2386_v31  ;;  %2143 = vmatprep.subr.bf16.mxu0 %v2393_v36  ;;  %v2453_v26 = vld [vmem:[%s3138_s1 + $0x290] sm:$0xff]   ;;  %v2458_v31 = vld [vmem:[%s3138_s1 + $0x298] sm:$0xff]   ;;  %v2463_v36 = vld [vmem:[%s3138_s1 + $0x268] sm:$0xff]  }
  0x22   :  { %2171 = vmatprep.subr.bf16.mxu1 %v2394_v37  ;;  %v2464_v37 = vld [vmem:[%s3138_s1 + $0x2e8] sm:$0xff]  }
  0x23   :  { %1423 = vmatmul.mubr.bf16.vlgmr.msra.gmra.mrb[0].mxu0 %v2387_v32  ;;  %v2459_v32 = vld [vmem:[%s3138_s1 + $0x260] sm:$0xff]  }
  0x24   :  { %1472 = vmatmul.mubr.bf16.vlgmr.msra.gmra.mrb[0].mxu1 %v2390_v34  ;;  %2144 = vmatpush3.bf16.msra.mxu0 %v2395_v38  ;;  %v2461_v34 = vld [vmem:[%s3138_s1 + $0x220] sm:$0xff]   ;;  %v2465_v38 = vld [vmem:[%s3138_s1 + $0x228] sm:$0xff]  }
  0x25   :  { %2172 = vmatpush3.bf16.msra.mxu1 %v2396_v39  ;;  %2145 = vmatprep.subr.bf16.mxu0 %v2397_v40  ;;  %v2466_v39 = vld [vmem:[%s3138_s1 + $0x2a8] sm:$0xff]   ;;  %v2467_v40 = vld [vmem:[%s3138_s1 + $0x270] sm:$0xff]  }
  0x26   :  { %2173 = vmatprep.subr.bf16.mxu1 %v2398_v41  ;;  %1430 = vmatprep.mubr.bf16.mxu0 %v2413_v56  ;;  %v2468_v41 = vld [vmem:[%s3138_s1 + $0x2f0] sm:$0xff]   ;;  %v2485_v56 = vld [vmem:[%s3138_s1 + $0x348] sm:$0xff]  }
  0x27   :  { %1479 = vmatprep.mubr.bf16.mxu1 %v2418_v60  ;;  %v2489_v60 = vld [vmem:[%s3139_s0 + $0xb4] ss:$72 sps:$4 sm:$0xff]  }
  0x28   :  { %2146 = vmatpush3.bf16.msra.mxu0 %v2399_v42  ;;  %v2469_v42 = vld [vmem:[%s3138_s1 + $0x230] sm:$0xff]  }
  0x29   :  { %2174 = vmatpush3.bf16.msra.mxu1 %v2400_v43  ;;  %2147 = vmatprep.subr.bf16.mxu0 %v2401_v44  ;;  %v2470_v43 = vld [vmem:[%s3138_s1 + $0x2b0] sm:$0xff]   ;;  %v2471_v44 = vld [vmem:[%s3138_s1 + $0x278] sm:$0xff]  }
  0x2a   :  { %2175 = vmatprep.subr.bf16.mxu1 %v2402_v45  ;;  %v2472_v45 = vld [vmem:[%s3138_s1 + $0x2f8] sm:$0xff]  }
  0x2b   :  { %1431 = vmatmul.mubr.bf16.gmra.mrb[4].mxu0 %v2415_v57  ;;  %v2486_v57 = vld [vmem:[%s3138_s1 + $0x3c8] sm:$0xff]  }
  0x2c   :  { %2148 = vmatpush3.bf16.msra.mxu0 %v2403_v46  ;;  %1480 = vmatmul.mubr.bf16.gmra.mrb[4].mxu1 %v2422_v63  ;;  %v2473_v46 = vld [vmem:[%s3138_s1 + $0x238] sm:$0xff]   ;;  %v2493_v63 = vld [vmem:[%s3138_s1 + $0x3d0] sm:$0xff]  }
  0x2d   :  { %2176 = vmatpush3.bf16.msra.mxu1 %v2404_v47  ;;  %2149 = vmatprep.subr.bf16.mxu0 %v2405_v48  ;;  %v2474_v47 = vld [vmem:[%s3138_s1 + $0x2b8] sm:$0xff]   ;;  %v2475_v48 = vld [vmem:[%s3139_s0 + $0x20] ss:$72 sps:$4 sm:$0xff]  }
  0x2e   :  { %2177 = vmatprep.subr.bf16.mxu1 %v2406_v49  ;;  %1520 = vmatprep.mubr.bf16.mxu0 %v2433_v9  ;;  %v2477_v49 = vld [vmem:[%s3139_s0 + $0x24] ss:$72 sps:$4 sm:$0xff]  }
  0x2f   :  { %1569 = vmatprep.mubr.bf16.mxu1 %v2436_v11  ;;  %v2504_v9 = vld [vmem:[%s3138_s1 + $0x3e0] sm:$0xff]  }
  0x30   :  { %2150 = vmatpush3.bf16.msra.mxu0 %v2407_v50  ;;  %v2478_v50 = vld [vmem:[%s3139_s0 + $0x28] ss:$72 sps:$4 sm:$0xff]   ;;  %v2506_v11 = vld [vmem:[%s3138_s1 + $0x3a0] sm:$0xff]  }
  0x31   :  { %2178 = vmatpush3.bf16.msra.mxu1 %v2408_v51  ;;  %2151 = vmatprep.subr.bf16.mxu0 %v2409_v52  ;;  %v2480_v51 = vld [vmem:[%s3139_s0 + $0x2c] ss:$72 sps:$4 sm:$0xff]   ;;  %v2481_v52 = vld [vmem:[%s3138_s1 + $0x340] sm:$0xff]  }
  0x32   :  { %2179 = vmatprep.subr.bf16.mxu1 %v2410_v53  ;;  %v2482_v53 = vld [vmem:[%s3138_s1 + $0x3c0] sm:$0xff]  }
  0x34   :  { %2152 = vmatpush3.bf16.msra.mxu0 %v2411_v54  ;;  %v2483_v54 = vld [vmem:[%s3138_s1 + $0x300] sm:$0xff]  }
  0x35   :  { %2180 = vmatpush3.bf16.msra.mxu1 %v2412_v55  ;;  %2153 = vmatprep.subr.bf16.mxu0 %v2416_v58  ;;  %v2484_v55 = vld [vmem:[%s3138_s1 + $0x380] sm:$0xff]   ;;  %v2487_v58 = vld [vmem:[%s3138_s1 + $0x308] sm:$0xff]  }
  0x36   :  { %2181 = vmatprep.subr.bf16.mxu1 %v2417_v59  ;;  %v2488_v59 = vld [vmem:[%s3138_s1 + $0x388] sm:$0xff]  }
  0x38   :  { %2154 = vmatpush3.bf16.msra.mxu0 %v2420_v61  ;;  %v2491_v61 = vld [vmem:[%s3139_s0 + $0xb0] ss:$72 sps:$4 sm:$0xff]  }
  0x39   :  { %2182 = vmatpush3.bf16.msra.mxu1 %v2421_v62  ;;  %2155 = vmatprep.subr.bf16.mxu0 %v2423_v0  ;;  %v2492_v62 = vld [vmem:[%s3138_s1 + $0x350] sm:$0xff]   ;;  %v2494_v0 = vld [vmem:[%s3139_s0 + $0xbc] ss:$72 sps:$4 sm:$0xff]  }
  0x3a   :  { %2183 = vmatprep.subr.bf16.mxu1 %v2424_v1  ;;  %v2496_v1 = vld [vmem:[%s3138_s1 + $0x310] sm:$0xff]  }
  0x3c   :  { %2156 = vmatpush3.bf16.msra.mxu0 %v2425_v2  ;;  %v2497_v2 = vld [vmem:[%s3138_s1 + $0x390] sm:$0xff]  }
  0x3d   :  { %2184 = vmatpush3.bf16.msra.mxu1 %v2426_v3  ;;  %2157 = vmatprep.subr.bf16.mxu0 %v2427_v4  ;;  %v2498_v3 = vld [vmem:[%s3139_s0 + $0xb8] ss:$72 sps:$4 sm:$0xff]  }
  0x3e   :  { %2185 = vmatprep.subr.bf16.mxu1 %v2428_v5  ;;  %v2499_v4 = vld [vmem:[%s3138_s1 + $0x358] sm:$0xff]  }
  0x3f   :  { %v2500_v5 = vld [vmem:[%s3138_s1 + $0x3d8] sm:$0xff]  }
  0x40   :  { %2158 = vmatpush3.bf16.msra.mxu0 %v2429_v6  ;;  %v2501_v6 = vld [vmem:[%s3138_s1 + $0x318] sm:$0xff]  }
  0x41   :  { %2186 = vmatpush3.bf16.msra.mxu1 %v2430_v7  ;;  %2199 = vmatprep.subr.bf16.mxu0 %v2437_v12  ;;  %v2502_v7 = vld [vmem:[%s3138_s1 + $0x398] sm:$0xff]   ;;  %v2507_v12 = vld [vmem:[%s3138_s1 + $0x368] sm:$0xff]  }
  0x42   :  { %2227 = vmatprep.subr.bf16.mxu1 %v2438_v13  ;;  %v2508_v13 = vld [vmem:[%s3138_s1 + $0x3e8] sm:$0xff]  }
  0x43   :  { %1521 = vmatmul.mubr.bf16.vlgmr.msra.gmra.mrb[8].mxu0 %v2431_v8  ;;  %v2503_v8 = vld [vmem:[%s3138_s1 + $0x360] sm:$0xff]  }
  0x44   :  { %1570 = vmatmul.mubr.bf16.vlgmr.msra.gmra.mrb[8].mxu1 %v2434_v10  ;;  %2200 = vmatpush3.bf16.msra.mxu0 %v2439_v14  ;;  %v2505_v10 = vld [vmem:[%s3138_s1 + $0x320] sm:$0xff]   ;;  %v2509_v14 = vld [vmem:[%s3138_s1 + $0x328] sm:$0xff]  }
  0x45   :  { %2228 = vmatpush3.bf16.msra.mxu1 %v2440_v15  ;;  %2201 = vmatprep.subr.bf16.mxu0 %v2441_v16  ;;  %v2510_v15 = vld [vmem:[%s3138_s1 + $0x3a8] sm:$0xff]   ;;  %v2511_v16 = vld [vmem:[%s3138_s1 + $0x370] sm:$0xff]  }
  0x46   :  { %2229 = vmatprep.subr.bf16.mxu1 %v2442_v17  ;;  %1528 = vmatprep.mubr.bf16.mxu0 %v2445_v20  ;;  %v2512_v17 = vld [vmem:[%s3138_s1 + $0x3f0] sm:$0xff]   ;;  %v2515_v20 = vld [vmem:[%s3138_s1 + $0x378] sm:$0xff]  }
  0x47   :  { %1577 = vmatprep.mubr.bf16.mxu1 %v2450_v24  ;;  %v2519_v24 = vld [vmem:[%s3139_s0 + $0x30] ss:$72 sps:$4 sm:$0xff]  }
  0x48   :  { %2202 = vmatpush3.bf16.msra.mxu0 %v2443_v18  ;;  %v2513_v18 = vld [vmem:[%s3138_s1 + $0x330] sm:$0xff]  }
  0x49   :  { %2230 = vmatpush3.bf16.msra.mxu1 %v2444_v19  ;;  %2203 = vmatprep.subr.bf16.mxu0 %v2448_v22  ;;  %v2514_v19 = vld [vmem:[%s3138_s1 + $0x3b0] sm:$0xff]   ;;  %v2517_v22 = vld [vmem:[%s3138_s1 + $0x338] sm:$0xff]  }
  0x4a   :  { %2231 = vmatprep.subr.bf16.mxu1 %v2449_v23  ;;  %v2518_v23 = vld [vmem:[%s3138_s1 + $0x3b8] sm:$0xff]  }
  0x4b   :  { %1529 = vmatmul.mubr.bf16.gmra.mrb[12].mxu0 %v2447_v21  ;;  %v2516_v21 = vld [vmem:[%s3138_s1 + $0x3f8] sm:$0xff]  }
  0x4c   :  { %2204 = vmatpush3.bf16.msra.mxu0 %v2452_v25  ;;  %1578 = vmatmul.mubr.bf16.gmra.mrb[12].mxu1 %v2454_v27  ;;  %v2521_v25 = vld [vmem:[%s3139_s0 + $0x34] ss:$72 sps:$4 sm:$0xff]  }
  0x4d   :  { %2232 = vmatpush3.bf16.msra.mxu1 %v2453_v26  ;;  %2205 = vmatprep.subr.bf16.mxu0 %v2455_v28  ;;  %v2522_v26 = vld [vmem:[%s3139_s0 + $0x38] ss:$72 sps:$4 sm:$0xff]   ;;  %v2524_v27 = vld [vmem:[%s3139_s0 + $0x3c] ss:$72 sps:$4 sm:$0xff]  }
  0x4e   :  { %2233 = vmatprep.subr.bf16.mxu1 %v2456_v29  ;;  %1618 = vmatprep.mubr.bf16.mxu0 %v2477_v49  ;;  %v2525_v28 = vld [vmem:[%s3138_s1 + $0x440] sm:$0xff]   ;;  %v2546_v49 = vld [vmem:[%s3138_s1 + $0x438] sm:$0xff]  }
  0x4f   :  { %1667 = vmatprep.mubr.bf16.mxu1 %v2480_v51  ;;  %v2526_v29 = vld [vmem:[%s3138_s1 + $0x400] sm:$0xff]   ;;  %v2550_v51 = vld [vmem:[%s3139_s0 + $0xd0] ss:$72 sps:$4 sm:$0xff]  }
  0x50   :  { %2206 = vmatpush3.bf16.msra.mxu0 %v2457_v30  ;;  %v2527_v30 = vld [vmem:[%s3138_s1 + $0x448] sm:$0xff]  }
  0x51   :  { %2234 = vmatpush3.bf16.msra.mxu1 %v2458_v31  ;;  %2207 = vmatprep.subr.bf16.mxu0 %v2459_v32  ;;  %v2528_v31 = vld [vmem:[%s3138_s1 + $0x408] sm:$0xff]  }
  0x52   :  { %2235 = vmatprep.subr.bf16.mxu1 %v2460_v33  ;;  %v2529_v32 = vld [vmem:[%s3139_s0 + $0xc4] ss:$72 sps:$4 sm:$0xff]   ;;  %v2531_v33 = vld [vmem:[%s3139_s0 + $0xc0] ss:$72 sps:$4 sm:$0xff]  }
  0x54   :  { %2208 = vmatpush3.bf16.msra.mxu0 %v2461_v34  ;;  %v2532_v34 = vld [vmem:[%s3138_s1 + $0x450] sm:$0xff]  }
  0x55   :  { %2236 = vmatpush3.bf16.msra.mxu1 %v2462_v35  ;;  %2209 = vmatprep.subr.bf16.mxu0 %v2463_v36  ;;  %v2533_v35 = vld [vmem:[%s3139_s0 + $0xcc] ss:$72 sps:$4 sm:$0xff]  }
  0x56   :  { %2237 = vmatprep.subr.bf16.mxu1 %v2464_v37  ;;  %v2535_v36 = vld [vmem:[%s3138_s1 + $0x410] sm:$0xff]  }
  0x57   :  { %v2536_v37 = vld [vmem:[%s3139_s0 + $0xc8] ss:$72 sps:$4 sm:$0xff]  }
  0x58   :  { %2210 = vmatpush3.bf16.msra.mxu0 %v2465_v38  ;;  %v2537_v38 = vld [vmem:[%s3138_s1 + $0x458] sm:$0xff]  }
  0x59   :  { %2238 = vmatpush3.bf16.msra.mxu1 %v2466_v39  ;;  %2211 = vmatprep.subr.bf16.mxu0 %v2467_v40  ;;  %v2538_v39 = vld [vmem:[%s3138_s1 + $0x418] sm:$0xff]   ;;  %v2539_v40 = vld [vmem:[%s3138_s1 + $0x460] sm:$0xff]  }
  0x5a   :  { %2239 = vmatprep.subr.bf16.mxu1 %v2468_v41  ;;  %v2540_v41 = vld [vmem:[%s3138_s1 + $0x420] sm:$0xff]  }
  0x5c   :  { %2212 = vmatpush3.bf16.msra.mxu0 %v2469_v42  ;;  %v2541_v42 = vld [vmem:[%s3138_s1 + $0x468] sm:$0xff]  }
  0x5d   :  { %2240 = vmatpush3.bf16.msra.mxu1 %v2470_v43  ;;  %2213 = vmatprep.subr.bf16.mxu0 %v2471_v44  ;;  %v2542_v43 = vld [vmem:[%s3138_s1 + $0x428] sm:$0xff]  }
  0x5e   :  { %2241 = vmatprep.subr.bf16.mxu1 %v2472_v45  ;;  %v2549_v44 = vld [vmem:[%s3139_s0 + $0x44] ss:$72 sps:$4 sm:$0xff]   ;;  %v2543_v45 = vld [vmem:[%s3138_s1 + $0x470] sm:$0xff]  }
  0x60   :  { %2214 = vmatpush3.bf16.msra.mxu0 %v2473_v46  ;;  %v2552_v46 = vld [vmem:[%s3139_s0 + $0xd4] ss:$72 sps:$4 sm:$0xff]  }
  0x61   :  { %2242 = vmatpush3.bf16.msra.mxu1 %v2474_v47  ;;  %2255 = vmatprep.subr.bf16.mxu0 %v2481_v52  ;;  %v2544_v47 = vld [vmem:[%s3138_s1 + $0x430] sm:$0xff]  }
  0x62   :  { %2283 = vmatprep.subr.bf16.mxu1 %v2482_v53 }
  0x63   :  { %1619 = vmatmul.mubr.bf16.vlgmr.msra.gmra.mrb[16].mxu0 %v2475_v48  ;;  %v2545_v48 = vld [vmem:[%s3138_s1 + $0x478] sm:$0xff]  }
  0x64   :  { %1668 = vmatmul.mubr.bf16.vlgmr.msra.gmra.mrb[16].mxu1 %v2478_v50  ;;  %2256 = vmatpush3.bf16.msra.mxu0 %v2483_v54  ;;  %v2547_v50 = vld [vmem:[%s3139_s0 + $0x40] ss:$72 sps:$4 sm:$0xff]  }
  0x65   :  { %2284 = vmatpush3.bf16.msra.mxu1 %v2484_v55  ;;  %2257 = vmatprep.subr.bf16.mxu0 %v2485_v56  ;;  %v1883_v54 = vld [vmem:[%s3140_s2] ss:$0 sm:$0xff] }
  0x66   :  { %2285 = vmatprep.subr.bf16.mxu1 %v2486_v57  ;;  %1626 = vmatprep.mubr.bf16.mxu0 %v2489_v60 }
  0x67   :  { %1675 = vmatprep.mubr.bf16.mxu1 %v2494_v0 }
  0x68   :  { %2258 = vmatpush3.bf16.msra.mxu0 %v2487_v58 }
  0x69   :  { %2286 = vmatpush3.bf16.msra.mxu1 %v2488_v59  ;;  %2259 = vmatprep.subr.bf16.mxu0 %v2492_v62 }
  0x6a   :  { %2287 = vmatprep.subr.bf16.mxu1 %v2493_v63 }
  0x6b   :  { %1627 = vmatmul.mubr.bf16.gmra.mrb[20].mxu0 %v2491_v61 }
  0x6c   :  { %2260 = vmatpush3.bf16.msra.mxu0 %v2496_v1  ;;  %1676 = vmatmul.mubr.bf16.gmra.mrb[20].mxu1 %v2498_v3 }
  0x6d   :  { %2288 = vmatpush3.bf16.msra.mxu1 %v2497_v2  ;;  %2261 = vmatprep.subr.bf16.mxu0 %v2499_v4 }
  0x6e   :  { %2289 = vmatprep.subr.bf16.mxu1 %v2500_v5  ;;  %1716 = vmatprep.mubr.bf16.mxu0 %v2521_v25 }
  0x6f   :  { %1765 = vmatprep.mubr.bf16.mxu1 %v2524_v27 }
  0x70   :  { %2262 = vmatpush3.bf16.msra.mxu0 %v2501_v6 }
  0x71   :  { %2290 = vmatpush3.bf16.msra.mxu1 %v2502_v7  ;;  %2263 = vmatprep.subr.bf16.mxu0 %v2503_v8 }
  0x72   :  { %2291 = vmatprep.subr.bf16.mxu1 %v2504_v9 }
  0x74   :  { %2264 = vmatpush3.bf16.msra.mxu0 %v2505_v10 }
  0x75   :  { %2292 = vmatpush3.bf16.msra.mxu1 %v2506_v11  ;;  %2265 = vmatprep.subr.bf16.mxu0 %v2507_v12 }
  0x76   :  { %2293 = vmatprep.subr.bf16.mxu1 %v2508_v13 }
  0x78   :  { %2266 = vmatpush3.bf16.msra.mxu0 %v2509_v14 }
  0x79   :  { %2294 = vmatpush3.bf16.msra.mxu1 %v2510_v15  ;;  %2267 = vmatprep.subr.bf16.mxu0 %v2511_v16 }
  0x7a   :  { %2295 = vmatprep.subr.bf16.mxu1 %v2512_v17 }
  0x7c   :  { %2268 = vmatpush3.bf16.msra.mxu0 %v2513_v18 }
  0x7d   :  { %2296 = vmatpush3.bf16.msra.mxu1 %v2514_v19  ;;  %2269 = vmatprep.subr.bf16.mxu0 %v2515_v20 }
  0x7e   :  { %2297 = vmatprep.subr.bf16.mxu1 %v2516_v21 }
  0x80   :  { %2270 = vmatpush3.bf16.msra.mxu0 %v2517_v22 }
  0x81   :  { %2298 = vmatpush3.bf16.msra.mxu1 %v2518_v23  ;;  %2311 = vmatprep.subr.bf16.mxu0 %v2525_v28 }
  0x82   :  { %2339 = vmatprep.subr.bf16.mxu1 %v2525_v28 }
  0x83   :  { %1717 = vmatmul.mubr.bf16.vlgmr.msra.gmra.mrb[24].mxu0 %v2519_v24 }
  0x84   :  { %1766 = vmatmul.mubr.bf16.vlgmr.msra.gmra.mrb[24].mxu1 %v2522_v26  ;;  %2312 = vmatpush3.bf16.msra.mxu0 %v2526_v29 }
  0x85   :  { %2347 = vmatpush3.bf16.msra.mxu1 %v2526_v29  ;;  %2313 = vmatprep.subr.bf16.mxu0 %v2527_v30 }
  0x86   :  { %2340 = vmatprep.subr.bf16.mxu1 %v2527_v30  ;;  %1724 = vmatprep.mubr.bf16.mxu0 %v2529_v32 }
  0x87   :  { %1773 = vmatprep.mubr.bf16.mxu1 %v2533_v35 }
  0x88   :  { %2314 = vmatpush3.bf16.msra.mxu0 %v2528_v31 }
  0x89   :  { %2348 = vmatpush3.bf16.msra.mxu1 %v2528_v31  ;;  %2315 = vmatprep.subr.bf16.mxu0 %v2532_v34 }
  0x8a   :  { %2341 = vmatprep.subr.bf16.mxu1 %v2532_v34 }
  0x8b   :  { %1725 = vmatmul.mubr.bf16.gmra.mrb[28].mxu0 %v2531_v33 }
  0x8c   :  { %2316 = vmatpush3.bf16.msra.mxu0 %v2535_v36  ;;  %1774 = vmatmul.mubr.bf16.gmra.mrb[28].mxu1 %v2536_v37 }
  0x8d   :  { %2349 = vmatpush3.bf16.msra.mxu1 %v2535_v36  ;;  %2317 = vmatprep.subr.bf16.mxu0 %v2537_v38 }
  0x8e   :  { %2342 = vmatprep.subr.bf16.mxu1 %v2537_v38  ;;  %1814 = vmatprep.mubr.bf16.mxu0 %v2549_v44 }
  0x8f   :  { %1822 = vmatprep.mubr.bf16.mxu1 %v2552_v46 }
  0x90   :  { %2318 = vmatpush3.bf16.msra.mxu0 %v2538_v39 }
  0x91   :  { %2350 = vmatpush3.bf16.msra.mxu1 %v2538_v39  ;;  %2319 = vmatprep.subr.bf16.mxu0 %v2539_v40 }
  0x92   :  { %2343 = vmatprep.subr.bf16.mxu1 %v2539_v40 }
  0x94   :  { %2320 = vmatpush3.bf16.msra.mxu0 %v2540_v41 }
  0x95   :  { %2351 = vmatpush3.bf16.msra.mxu1 %v2540_v41  ;;  %2321 = vmatprep.subr.bf16.mxu0 %v2541_v42 }
  0x96   :  { %2344 = vmatprep.subr.bf16.mxu1 %v2541_v42 }
  0x98   :  { %2322 = vmatpush3.bf16.msra.mxu0 %v2542_v43 }
  0x99   :  { %2352 = vmatpush3.bf16.msra.mxu1 %v2542_v43  ;;  %2323 = vmatprep.subr.bf16.mxu0 %v2543_v45 }
  0x9a   :  { %2345 = vmatprep.subr.bf16.mxu1 %v2543_v45 }
  0x9c   :  { %2324 = vmatpush3.bf16.msra.mxu0 %v2544_v47 }
  0x9d   :  { %2353 = vmatpush3.bf16.msra.mxu1 %v2544_v47  ;;  %2325 = vmatprep.subr.bf16.mxu0 %v2545_v48 }
  0x9e   :  { %2346 = vmatprep.subr.bf16.mxu1 %v2545_v48 }
  0xa0   :  { %2326 = vmatpush3.bf16.msra.mxu0 %v2546_v49 }
  0xa1   :  { %2354 = vmatpush3.bf16.msra.mxu1 %v2546_v49 }
  0xa3   :  { %1815 = vmatmul.mubr.bf16.vlgmr.msra.gmra.mrb[32].mxu0 %v2547_v50 }
  0xa4   :  { %1823 = vmatmul.mubr.bf16.vlgmr.msra.gmra.mrb[32].mxu1 %v2550_v51 }
  0xf6   :  { %v2103_v52 = vpop.f32.mrb[0].mxu0 }
  0xf7   :  { %v2131_v53 = vpop.f32.mrb[0].mxu1  ;;  %v2104_v55 = vpop.f32.mrb[1].mxu0 }
  0xf8   :  { %v2105_v56 = vadd.f32 %v2104_v55, %v2103_v52  ;;  %v2132_v57 = vpop.f32.mrb[1].mxu1  ;;  %v2106_v58 = vpop.f32.mrb[2].mxu0 }
  0xf9   :  { %v2133_v59 = vadd.f32 %v2132_v57, %v2131_v53  ;;  %v2134_v60 = vpop.f32.mrb[2].mxu1  ;;  %v2107_v61 = vpop.f32.mrb[3].mxu0 }
  0xfa   :  { %v1425_v62 = vadd.f32 %v2105_v56, %v1883_v54  ;;  %v2108_v63 = vadd.f32 %v2107_v61, %v2106_v58  ;;  %v2135_v0 = vpop.f32.mrb[3].mxu1 }
  0xfb   :  { %v2136_v1 = vadd.f32 %v2135_v0, %v2134_v60 }
  0xfc   :  { %v1474_v2 = vadd.f32 %v2133_v59, %v1425_v62  ;;  %v1428_v3 = vadd.f32 %v2108_v63, %v1883_v54 }
  0xfe   :  { %v1477_v4 = vadd.f32 %v2136_v1, %v1428_v3  ;;  %v2109_v5 = vpop.f32.mrb[4].mxu0 }
  0xff   :  { %v2110_v6 = vpop.f32.mrb[5].mxu0  ;;  %v2137_v12 = vpop.f32.mrb[4].mxu1 }
 0x100   :  { %v2111_v7 = vadd.f32 %v2110_v6, %v2109_v5  ;;  %v2112_v8 = vpop.f32.mrb[6].mxu0  ;;  %v2138_v13 = vpop.f32.mrb[5].mxu1 }
 0x101   :  { %v2113_v9 = vpop.f32.mrb[7].mxu0  ;;  %v2139_v15 = vadd.f32 %v2138_v13, %v2137_v12  ;;  %v2140_v16 = vpop.f32.mrb[6].mxu1 }
 0x102   :  { %v2114_v10 = vadd.f32 %v2113_v9, %v2112_v8  ;;  %v1433_v11 = vadd.f32 %v2111_v7, %v1883_v54  ;;  %v2141_v17 = vpop.f32.mrb[7].mxu1 }
 0x103   :  { %v2142_v19 = vadd.f32 %v2141_v17, %v2140_v16 }
 0x104   :  { %v1436_v14 = vadd.f32 %v2114_v10, %v1883_v54  ;;  %v1482_v18 = vadd.f32 %v2139_v15, %v1433_v11 }
 0x106   :  { %v1485_v20 = vadd.f32 %v2142_v19, %v1436_v14 }
 0x116   :  { %v2159_v21 = vpop.f32.mrb[8].mxu0 }
 0x117   :  { %v2187_v22 = vpop.f32.mrb[8].mxu1  ;;  %v2160_v23 = vpop.f32.mrb[9].mxu0 }
 0x118   :  { %v2161_v24 = vadd.f32 %v2160_v23, %v2159_v21  ;;  %v2188_v25 = vpop.f32.mrb[9].mxu1  ;;  %v2162_v26 = vpop.f32.mrb[10].mxu0 }
 0x119   :  { %v2189_v27 = vadd.f32 %v2188_v25, %v2187_v22  ;;  %v2190_v28 = vpop.f32.mrb[10].mxu1  ;;  %v2163_v29 = vpop.f32.mrb[11].mxu0 }
 0x11a   :  { %v1523_v30 = vadd.f32 %v2161_v24, %v1474_v2  ;;  %v2164_v31 = vadd.f32 %v2163_v29, %v2162_v26  ;;  %v2191_v32 = vpop.f32.mrb[11].mxu1 }
 0x11b   :  { %v2192_v33 = vadd.f32 %v2191_v32, %v2190_v28 }
 0x11c   :  { %v1572_v34 = vadd.f32 %v2189_v27, %v1523_v30  ;;  %v1526_v35 = vadd.f32 %v2164_v31, %v1477_v4 }
 0x11e   :  { %v1575_v36 = vadd.f32 %v2192_v33, %v1526_v35  ;;  %v2165_v37 = vpop.f32.mrb[12].mxu0 }
 0x11f   :  { %v2166_v38 = vpop.f32.mrb[13].mxu0  ;;  %v2193_v44 = vpop.f32.mrb[12].mxu1 }
 0x120   :  { %v2167_v39 = vadd.f32 %v2166_v38, %v2165_v37  ;;  %v2168_v40 = vpop.f32.mrb[14].mxu0  ;;  %v2194_v46 = vpop.f32.mrb[13].mxu1 }
 0x121   :  { %v2169_v41 = vpop.f32.mrb[15].mxu0  ;;  %v2195_v47 = vadd.f32 %v2194_v46, %v2193_v44  ;;  %v2196_v48 = vpop.f32.mrb[14].mxu1 }
 0x122   :  { %v1531_v42 = vadd.f32 %v2167_v39, %v1482_v18  ;;  %v2170_v43 = vadd.f32 %v2169_v41, %v2168_v40  ;;  %v2197_v49 = vpop.f32.mrb[15].mxu1 }
 0x123   :  { %v2198_v51 = vadd.f32 %v2197_v49, %v2196_v48 }
 0x124   :  { %v1534_v45 = vadd.f32 %v2170_v43, %v1485_v20  ;;  %v1580_v50 = vadd.f32 %v2195_v47, %v1531_v42 }
 0x126   :  { %v1583_v52 = vadd.f32 %v2198_v51, %v1534_v45 }
 0x136   :  { %v2215_v53 = vpop.f32.mrb[16].mxu0 }
 0x137   :  { %v2216_v54 = vpop.f32.mrb[17].mxu0  ;;  %v2243_v55 = vpop.f32.mrb[16].mxu1 }
 0x138   :  { %v2217_v56 = vadd.f32 %v2216_v54, %v2215_v53  ;;  %v2218_v57 = vpop.f32.mrb[18].mxu0  ;;  %v2244_v58 = vpop.f32.mrb[17].mxu1 }
 0x139   :  { %v2219_v59 = vpop.f32.mrb[19].mxu0  ;;  %v2245_v61 = vadd.f32 %v2244_v58, %v2243_v55  ;;  %v2246_v62 = vpop.f32.mrb[18].mxu1 }
 0x13a   :  { %v1621_v60 = vadd.f32 %v2217_v56, %v1572_v34  ;;  %v2220_v63 = vadd.f32 %v2219_v59, %v2218_v57  ;;  %v2247_v0 = vpop.f32.mrb[19].mxu1 }
 0x13b   :  { %v2248_v3 = vadd.f32 %v2247_v0, %v2246_v62 }
 0x13c   :  { %v1670_v1 = vadd.f32 %v2245_v61, %v1621_v60  ;;  %v1624_v2 = vadd.f32 %v2220_v63, %v1575_v36 }
 0x13e   :  { %v1673_v4 = vadd.f32 %v2248_v3, %v1624_v2  ;;  %v2221_v5 = vpop.f32.mrb[20].mxu0 }
 0x13f   :  { %v2222_v6 = vpop.f32.mrb[21].mxu0  ;;  %v2249_v12 = vpop.f32.mrb[20].mxu1 }
 0x140   :  { %v2223_v7 = vadd.f32 %v2222_v6, %v2221_v5  ;;  %v2224_v8 = vpop.f32.mrb[22].mxu0  ;;  %v2250_v14 = vpop.f32.mrb[21].mxu1 }
 0x141   :  { %v2225_v9 = vpop.f32.mrb[23].mxu0  ;;  %v2251_v15 = vadd.f32 %v2250_v14, %v2249_v12  ;;  %v2252_v16 = vpop.f32.mrb[22].mxu1 }
 0x142   :  { %v1629_v10 = vadd.f32 %v2223_v7, %v1580_v50  ;;  %v2226_v11 = vadd.f32 %v2225_v9, %v2224_v8  ;;  %v2253_v17 = vpop.f32.mrb[23].mxu1 }
 0x143   :  { %v2254_v19 = vadd.f32 %v2253_v17, %v2252_v16 }
 0x144   :  { %v1632_v13 = vadd.f32 %v2226_v11, %v1583_v52  ;;  %v1678_v18 = vadd.f32 %v2251_v15, %v1629_v10 }
 0x146   :  { %v1681_v20 = vadd.f32 %v2254_v19, %v1632_v13 }
 0x156   :  { %v2271_v21 = vpop.f32.mrb[24].mxu0 }
 0x157   :  { %v2299_v22 = vpop.f32.mrb[24].mxu1  ;;  %v2272_v23 = vpop.f32.mrb[25].mxu0 }
 0x158   :  { %v2273_v24 = vadd.f32 %v2272_v23, %v2271_v21  ;;  %v2300_v25 = vpop.f32.mrb[25].mxu1  ;;  %v2274_v26 = vpop.f32.mrb[26].mxu0 }
 0x159   :  { %v2301_v27 = vadd.f32 %v2300_v25, %v2299_v22  ;;  %v2302_v28 = vpop.f32.mrb[26].mxu1  ;;  %v2275_v29 = vpop.f32.mrb[27].mxu0 }
 0x15a   :  { %v1719_v30 = vadd.f32 %v2273_v24, %v1670_v1  ;;  %v2276_v31 = vadd.f32 %v2275_v29, %v2274_v26  ;;  %v2303_v32 = vpop.f32.mrb[27].mxu1 }
 0x15b   :  { %v2304_v33 = vadd.f32 %v2303_v32, %v2302_v28 }
 0x15c   :  { %v1768_v34 = vadd.f32 %v2301_v27, %v1719_v30  ;;  %v1722_v35 = vadd.f32 %v2276_v31, %v1673_v4 }
 0x15e   :  { %v1771_v36 = vadd.f32 %v2304_v33, %v1722_v35  ;;  %v2277_v37 = vpop.f32.mrb[28].mxu0 }
 0x15f   :  { %v2278_v38 = vpop.f32.mrb[29].mxu0  ;;  %v2305_v41 = vpop.f32.mrb[28].mxu1 }
 0x160   :  { %v2279_v39 = vadd.f32 %v2278_v38, %v2277_v37  ;;  %v2280_v40 = vpop.f32.mrb[30].mxu0  ;;  %v2306_v43 = vpop.f32.mrb[29].mxu1 }
 0x161   :  { %v2281_v42 = vpop.f32.mrb[31].mxu0  ;;  %v2307_v46 = vadd.f32 %v2306_v43, %v2305_v41  ;;  %v2308_v47 = vpop.f32.mrb[30].mxu1 }
 0x162   :  { %v1727_v44 = vadd.f32 %v2279_v39, %v1678_v18  ;;  %v2282_v45 = vadd.f32 %v2281_v42, %v2280_v40  ;;  %v2309_v48 = vpop.f32.mrb[31].mxu1 }
 0x163   :  { %v2310_v51 = vadd.f32 %v2309_v48, %v2308_v47 }
 0x164   :  { %v1730_v49 = vadd.f32 %v2282_v45, %v1681_v20  ;;  %v1776_v50 = vadd.f32 %v2307_v46, %v1727_v44 }
 0x166   :  { %v1779_v52 = vadd.f32 %v2310_v51, %v1730_v49 }
 0x176   :  { %v2327_v53 = vpop.f32.mrb[32].mxu0 }
 0x177   :  { %v2333_v54 = vpop.f32.mrb[32].mxu1  ;;  %v2328_v55 = vpop.f32.mrb[33].mxu0 }
 0x178   :  { %v2329_v56 = vadd.f32 %v2328_v55, %v2327_v53  ;;  %v2334_v57 = vpop.f32.mrb[33].mxu1  ;;  %v2330_v58 = vpop.f32.mrb[34].mxu0 }
 0x179   :  { %v2335_v59 = vadd.f32 %v2334_v57, %v2333_v54  ;;  %v2336_v60 = vpop.f32.mrb[34].mxu1  ;;  %v2331_v61 = vpop.f32.mrb[35].mxu0 }
 0x17a   :  { %v1817_v62 = vadd.f32 %v2329_v56, %v1768_v34  ;;  %v2332_v63 = vadd.f32 %v2331_v61, %v2330_v58  ;;  %v2337_v0 = vpop.f32.mrb[35].mxu1 }
 0x17b   :  { %v1825_v1 = vadd.f32 %v2335_v59, %v1776_v50  ;;  %v2338_v2 = vadd.f32 %v2337_v0, %v2336_v60 }
 0x17c   :  { %v2064_v3 = vmul.f32 -1.442695, %v1817_v62  ;;  %v1820_v4 = vadd.f32 %v2332_v63, %v1771_v36 }
 0x17d   :  { %v2066_v5 = vmul.f32 -1.442695, %v1825_v1  ;;  %v1828_v6 = vadd.f32 %v2338_v2, %v1779_v52 }
 0x17e   :  { %2553 = vpow2.f32 %v2064_v3  ;;  %v2065_v7 = vmul.f32 -1.442695, %v1820_v4 }
 0x17f   :  { %2555 = vpow2.f32 %v2066_v5  ;;  %v2067_v8 = vmul.f32 -1.442695, %v1828_v6 }
 0x180   :  { %2557 = vpow2.f32 %v2065_v7 }
 0x181   :  { %2559 = vpow2.f32 %v2067_v8 }
 0x188   :  { %v2554_v9 = vpop.eup %2553 }
 0x189   :  { %v2556_v10 = vpop.eup %2555  ;;  %v1843_v11 = vadd.f32 1.0, %v2554_v9 }
 0x18a   :  { %v2558_v12 = vpop.eup %2557  ;;  %v1845_v13 = vadd.f32 1.0, %v2556_v10 }
 0x18b   :  { %v2560_v14 = vpop.eup %2559  ;;  %2561 = vrcp.f32 %v1843_v11  ;;  %v1844_v15 = vadd.f32 1.0, %v2558_v12 }
 0x18c   :  { %2563 = vrcp.f32 %v1845_v13  ;;  %v1846_v16 = vadd.f32 1.0, %v2560_v14 }
 0x18d   :  { %2565 = vrcp.f32 %v1844_v15 }
 0x18e   :  { %2567 = vrcp.f32 %v1846_v16 }
 0x195   :  { %v2562_v17 = vpop.eup %2561 }
 0x196   :  { %v2564_v18 = vpop.eup %2563  ;;  %v1855_v21 = vmul.f32 %v2562_v17, %v1817_v62 }
 0x197   :  { %v2566_v19 = vpop.eup %2565  ;;  %v1857_v23 = vmul.f32 %v2564_v18, %v1825_v1 }
 0x198   :  { %v2568_v20 = vpop.eup %2567  ;;  %v1856_v22 = vmul.f32 %v2566_v19, %v1820_v4 }
 0x199   :  { %v1858_v24 = vmul.f32 %v2568_v20, %v1828_v6 }
 0x19a   :  { %v2079_v25 = vpack.c.bf16 %v1856_v22, %v1855_v21 }
 0x19b   :  { %v2084_v26 = vpack.c.bf16 %v1858_v24, %v1857_v23 }
 0x19c   :  { %2080 = vst [vmem:[%s3141_s3] sm:$0xff] %v2079_v25  }
 0x19d   :  { %2086 = vst [vmem:[%s3141_s3 + $0x8] sm:$0xff] %v2084_v26  }

// kernel: yolox_forward.40
= control target key start
LH: loop header
LB: loop body
LE: loop exit
PB: predicated region body
PF: predicated region fallthrough
CT: control target
= control target key end

     0   :  { %vm372_vm0 = vcmask 523264   ;;  %vm570_vm1 = vcmask 519168   ;;  %s953_s1 = inlined_call_operand.vmem [shape: bf16[576,64], index: 1, kind: input, shape index: {}]   ;;  %s954_s0 = inlined_call_operand.vmem [shape: bf16[32,576], index: 0, kind: input, shape index: {}]   ;;  %s955_s2 = inlined_call_operand.vmem [shape: f32[1,64], index: 2, kind: input, shape index: {}]   ;;  %s956_s3 = inlined_call_operand.vmem [shape: bf16[32,64], index: 3, kind: output, shape index: {}]  }
   0x1   :  { %v714_v0 = vld [vmem:[%s953_s1 + $0x40] sm:$0xff]   ;;  %v718_v4 = vld [vmem:[%s953_s1 + $0x48] sm:$0xff]   ;;  %v722_v8 = vld [vmem:[%s953_s1 + $0x50] sm:$0xff]  }
   0x2   :  { %v715_v1 = vld [vmem:[%s953_s1] sm:$0xff]   ;;  %640 = vmatprep.subr.bf16.mxu0 %v714_v0  ;;  %v719_v5 = vld [vmem:[%s953_s1 + $0x8] sm:$0xff]   ;;  %v723_v9 = vld [vmem:[%s953_s1 + $0x10] sm:$0xff]  }
   0x3   :  { %v716_v2 = vld [vmem:[%s953_s1 + $0xc0] sm:$0xff]   ;;  %641 = vmatpush3.bf16.msra.mxu0 %v715_v1  ;;  %v720_v6 = vld [vmem:[%s953_s1 + $0xc8] sm:$0xff]   ;;  %v724_v10 = vld [vmem:[%s953_s1 + $0xd0] sm:$0xff]  }
   0x4   :  { %v717_v3 = vld [vmem:[%s953_s1 + $0x80] sm:$0xff]   ;;  %668 = vmatprep.subr.bf16.mxu1 %v716_v2  ;;  %642 = vmatprep.subr.bf16.mxu0 %v718_v4  ;;  %v721_v7 = vld [vmem:[%s953_s1 + $0x88] sm:$0xff]   ;;  %v725_v11 = vld [vmem:[%s953_s1 + $0x90] sm:$0xff]  }
   0x5   :  { %669 = vmatpush3.bf16.msra.mxu1 %v717_v3  ;;  %v726_v12 = vld [vmem:[%s953_s1 + $0x58] sm:$0xff]   ;;  %v730_v16 = vld [vmem:[%s953_s1 + $0x60] sm:$0xff]   ;;  %v734_v20 = vld [vmem:[%s953_s1 + $0x68] sm:$0xff]  }
   0x6   :  { %670 = vmatprep.subr.bf16.mxu1 %v720_v6  ;;  %v727_v13 = vld [vmem:[%s953_s1 + $0x18] sm:$0xff]   ;;  %v731_v17 = vld [vmem:[%s953_s1 + $0x20] sm:$0xff]   ;;  %v735_v21 = vld [vmem:[%s953_s1 + $0x28] sm:$0xff]  }
   0x7   :  { %643 = vmatpush3.bf16.msra.mxu0 %v719_v5  ;;  %v728_v14 = vld [vmem:[%s953_s1 + $0xd8] sm:$0xff]   ;;  %v732_v18 = vld [vmem:[%s953_s1 + $0xe0] sm:$0xff]   ;;  %v736_v22 = vld [vmem:[%s953_s1 + $0xe8] sm:$0xff]  }
   0x8   :  { %644 = vmatprep.subr.bf16.mxu0 %v722_v8  ;;  %v729_v15 = vld [vmem:[%s953_s1 + $0x98] sm:$0xff]   ;;  %v733_v19 = vld [vmem:[%s953_s1 + $0xa0] sm:$0xff]   ;;  %v737_v23 = vld [vmem:[%s953_s1 + $0xa8] sm:$0xff]  }
   0x9   :  { %671 = vmatpush3.bf16.msra.mxu1 %v721_v7  ;;  %v738_v24 = vld [vmem:[%s953_s1 + $0x70] sm:$0xff]   ;;  %v742_v28 = vld [vmem:[%s953_s1 + $0x78] sm:$0xff]   ;;  %v749_v34 = vld [vmem:[%s953_s1 + $0x100] sm:$0xff]  }
   0xa   :  { %672 = vmatprep.subr.bf16.mxu1 %v724_v10  ;;  %v739_v25 = vld [vmem:[%s953_s1 + $0x30] sm:$0xff]   ;;  %v743_v29 = vld [vmem:[%s953_s1 + $0x38] sm:$0xff]   ;;  %v752_v36 = vld [vmem:[%s954_s0 + $0xc] ss:$20 sps:$4 sm:$0xff]  }
   0xb   :  { %645 = vmatpush3.bf16.msra.mxu0 %v723_v9  ;;  %v740_v26 = vld [vmem:[%s953_s1 + $0xf0] sm:$0xff]   ;;  %v744_v30 = vld [vmem:[%s953_s1 + $0xf8] sm:$0xff]   ;;  %v753_v37 = vld [vmem:[%s953_s1 + $0x108] sm:$0xff]   ;;  %460 = vmatprep.mubr.bf16.mxu1 %v752_v36 }
   0xc   :  { %646 = vmatprep.subr.bf16.mxu0 %v726_v12  ;;  %v741_v27 = vld [vmem:[%s953_s1 + $0xb0] sm:$0xff]   ;;  %v747_v32 = vld [vmem:[%s954_s0 + $0x4] ss:$20 sps:$4 sm:$0xff]   ;;  %v750_v35 = vld [vmem:[%s954_s0 + $0x8] ss:$20 sps:$4 sm:$0xff]  }
   0xd   :  { %673 = vmatpush3.bf16.msra.mxu1 %v725_v11  ;;  %v745_v31 = vld [vmem:[%s954_s0] ss:$20 sps:$4 sm:$0xff]   ;;  %v748_v33 = vld [vmem:[%s953_s1 + $0xb8] sm:$0xff]   ;;  %411 = vmatprep.mubr.bf16.mxu0 %v747_v32  ;;  %v760_v42 = vld [vmem:[%s954_s0 + $0x30] ss:$20 sps:$4 sm:$0xff]  }
   0xe   :  { %674 = vmatprep.subr.bf16.mxu1 %v728_v14  ;;  %v754_v38 = vld [vmem:[%s954_s0 + $0x2c] ss:$20 sps:$4 sm:$0xff]   ;;  %v756_v39 = vld [vmem:[%s954_s0 + $0x28] ss:$20 sps:$4 sm:$0xff]   ;;  %v757_v40 = vld [vmem:[%s953_s1 + $0x110] sm:$0xff]  }
   0xf   :  { %647 = vmatpush3.bf16.msra.mxu0 %v727_v13  ;;  %v758_v41 = vld [vmem:[%s954_s0 + $0x34] ss:$20 sps:$4 sm:$0xff]   ;;  %v761_v43 = vld [vmem:[%s953_s1 + $0x118] sm:$0xff]   ;;  %v762_v44 = vld [vmem:[%s954_s0 + $0x10] ss:$20 sps:$4 sm:$0xff]  }
  0x10   :  { %648 = vmatprep.subr.bf16.mxu0 %v730_v16  ;;  %v763_v45 = vld [vmem:[%s954_s0 + $0x38] ss:$20 sps:$4 sm:$0xff]   ;;  %v579_v47 = vld [vmem:[%s955_s2] ss:$0 sm:$0xff] }
  0x11   :  { %675 = vmatpush3.bf16.msra.mxu1 %v729_v15 }
  0x12   :  { %676 = vmatprep.subr.bf16.mxu1 %v732_v18 }
  0x13   :  { %649 = vmatpush3.bf16.msra.mxu0 %v731_v17 }
  0x14   :  { %650 = vmatprep.subr.bf16.mxu0 %v734_v20 }
  0x15   :  { %677 = vmatpush3.bf16.msra.mxu1 %v733_v19 }
  0x16   :  { %678 = vmatprep.subr.bf16.mxu1 %v736_v22 }
  0x17   :  { %651 = vmatpush3.bf16.msra.mxu0 %v735_v21 }
  0x18   :  { %652 = vmatprep.subr.bf16.mxu0 %v738_v24 }
  0x19   :  { %679 = vmatpush3.bf16.msra.mxu1 %v737_v23 }
  0x1a   :  { %680 = vmatprep.subr.bf16.mxu1 %v740_v26 }
  0x1b   :  { %653 = vmatpush3.bf16.msra.mxu0 %v739_v25 }
  0x1c   :  { %654 = vmatprep.subr.bf16.mxu0 %v742_v28 }
  0x1d   :  { %681 = vmatpush3.bf16.msra.mxu1 %v741_v27 }
  0x1e   :  { %682 = vmatprep.subr.bf16.mxu1 %v744_v30 }
  0x1f   :  { %655 = vmatpush3.bf16.msra.mxu0 %v743_v29 }
  0x20   :  { %702 = vmatprep.subr.bf16.mxu0 %v749_v34 }
  0x21   :  { %683 = vmatpush3.bf16.msra.mxu1 %v748_v33 }
  0x22   :  { %412 = vmatmul.mubr.bf16.vlgmr.msra.gmra.mrb[0].mxu0 %v745_v31 }
  0x23   :  { %703 = vmatpush3.bf16.msra.mxu0 %v749_v34  ;;  %419 = vmatprep.mubr.bf16.mxu0 %v754_v38 }
  0x24   :  { %461 = vmatmul.mubr.bf16.vlgmr.msra.gmra.mrb[0].mxu1 %v750_v35  ;;  %704 = vmatprep.subr.bf16.mxu0 %v753_v37 }
  0x25   :  { %468 = vmatprep.mubr.bf16.mxu1 %v758_v41 }
  0x27   :  { %705 = vmatpush3.bf16.msra.mxu0 %v753_v37 }
  0x28   :  { %706 = vmatprep.subr.bf16.mxu0 %v757_v40 }
  0x2a   :  { %420 = vmatmul.mubr.bf16.gmra.mrb[4].mxu0 %v756_v39 }
  0x2b   :  { %710 = vmatprep.mubr.msk.bf16.mxu0 %vm372_vm0, %v762_v44  ;;  %707 = vmatpush3.bf16.msra.mxu0 %v757_v40 }
  0x2c   :  { %469 = vmatmul.mubr.bf16.gmra.mrb[4].mxu1 %v760_v42  ;;  %708 = vmatprep.subr.bf16.mxu0 %v761_v43 }
  0x2f   :  { %709 = vmatpush3.bf16.msra.mxu0 %v761_v43 }
  0x32   :  { %711 = vmatmul.mubr.msk.bf16.vlgmr.msra.gmra.mrb[8].mxu0 %vm372_vm0, %v763_v45 }
  0xf5   :  { %v656_v46 = vpop.f32.mrb[0].mxu0 }
  0xf6   :  { %v657_v48 = vpop.f32.mrb[1].mxu0 }
  0xf7   :  { %v658_v49 = vadd.f32 %v657_v48, %v656_v46  ;;  %v659_v50 = vpop.f32.mrb[2].mxu0  ;;  %v684_v51 = vpop.f32.mrb[0].mxu1 }
  0xf8   :  { %v660_v52 = vpop.f32.mrb[3].mxu0  ;;  %v685_v55 = vpop.f32.mrb[1].mxu1 }
  0xf9   :  { %v414_v53 = vadd.f32 %v658_v49, %v579_v47  ;;  %v661_v54 = vadd.f32 %v660_v52, %v659_v50  ;;  %v686_v56 = vadd.f32 %v685_v55, %v684_v51  ;;  %v687_v57 = vpop.f32.mrb[2].mxu1 }
  0xfa   :  { %v688_v59 = vpop.f32.mrb[3].mxu1 }
  0xfb   :  { %v417_v58 = vadd.f32 %v661_v54, %v579_v47  ;;  %v689_v60 = vadd.f32 %v688_v59, %v687_v57  ;;  %v463_v61 = vadd.f32 %v686_v56, %v414_v53 }
  0xfd   :  { %v662_v62 = vpop.f32.mrb[4].mxu0  ;;  %v466_v0 = vadd.f32 %v689_v60, %v417_v58 }
  0xfe   :  { %v663_v63 = vpop.f32.mrb[5].mxu0 }
  0xff   :  { %v664_v1 = vadd.f32 %v663_v63, %v662_v62  ;;  %v665_v2 = vpop.f32.mrb[6].mxu0  ;;  %v690_v3 = vpop.f32.mrb[4].mxu1 }
 0x100   :  { %v666_v4 = vpop.f32.mrb[7].mxu0  ;;  %v691_v7 = vpop.f32.mrb[5].mxu1 }
 0x101   :  { %v422_v5 = vadd.f32 %v664_v1, %v579_v47  ;;  %v667_v6 = vadd.f32 %v666_v4, %v665_v2  ;;  %v692_v8 = vadd.f32 %v691_v7, %v690_v3  ;;  %v693_v9 = vpop.f32.mrb[6].mxu1 }
 0x102   :  { %v694_v11 = vpop.f32.mrb[7].mxu1 }
 0x103   :  { %v425_v10 = vadd.f32 %v667_v6, %v579_v47  ;;  %v695_v12 = vadd.f32 %v694_v11, %v693_v9  ;;  %v471_v13 = vadd.f32 %v692_v8, %v422_v5 }
 0x105   :  { %v712_v14 = vpop.f32.mrb[8].mxu0  ;;  %v474_v15 = vadd.f32 %v695_v12, %v425_v10 }
 0x106   :  { %v520_v16 = vadd.f32 %v712_v14, %v471_v13  ;;  %v511_v17 = vpop.f32.mrb[9].mxu0 }
 0x107   :  { %v512_v18 = vadd.f32 %v511_v17, %v463_v61  ;;  %v713_v19 = vpop.f32.mrb[10].mxu0 }
 0x108   :  { %v630_v20 = vmul.f32 -1.442695, %v520_v16  ;;  %v523_v21 = vadd.f32 %v713_v19, %v474_v15  ;;  %v514_v22 = vpop.f32.mrb[11].mxu0 }
 0x109   :  { %v628_v23 = vmul.f32 -1.442695, %v512_v18  ;;  %v515_v24 = vadd.f32 %v514_v22, %v466_v0 }
 0x10a   :  { %764 = vpow2.f32 %v630_v20  ;;  %v631_v25 = vmul.f32 -1.442695, %v523_v21 }
 0x10b   :  { %766 = vpow2.f32 %v628_v23  ;;  %v629_v26 = vmul.f32 -1.442695, %v515_v24 }
 0x10c   :  { %768 = vpow2.f32 %v631_v25 }
 0x10d   :  { %770 = vpow2.f32 %v629_v26 }
 0x114   :  { %v765_v27 = vpop.eup %764 }
 0x115   :  { %v767_v28 = vpop.eup %766  ;;  %v540_v29 = vadd.f32 1.0, %v765_v27 }
 0x116   :  { %v769_v30 = vpop.eup %768  ;;  %v538_v31 = vadd.f32 1.0, %v767_v28 }
 0x117   :  { %v771_v32 = vpop.eup %770  ;;  %772 = vrcp.f32 %v540_v29  ;;  %v541_v33 = vadd.f32 1.0, %v769_v30 }
 0x118   :  { %774 = vrcp.f32 %v538_v31  ;;  %v539_v34 = vadd.f32 1.0, %v771_v32 }
 0x119   :  { %776 = vrcp.f32 %v541_v33 }
 0x11a   :  { %778 = vrcp.f32 %v539_v34 }
 0x121   :  { %v773_v35 = vpop.eup %772 }
 0x122   :  { %v775_v36 = vpop.eup %774  ;;  %v552_v37 = vmul.f32 %v773_v35, %v520_v16 }
 0x123   :  { %v777_v38 = vpop.eup %776  ;;  %v550_v39 = vmul.f32 %v775_v36, %v512_v18 }
 0x124   :  { %v779_v40 = vpop.eup %778  ;;  %v638_v41 = vpack.c.bf16 %v552_v37, %v552_v37  ;;  %v553_v42 = vmul.f32 %v777_v38, %v523_v21 }
 0x125   :  { %v636_v43 = vpack.c.bf16 %v550_v39, %v550_v39  ;;  %v551_v44 = vmul.f32 %v779_v40, %v515_v24 }
 0x126   :  { %573 = vst.msk [vmem:[%s956_s3 + $0x8] sm:$0xf] %vm570_vm1, %v638_v41  ;;  %v639_v45 = vpack.c.bf16 %v553_v42, %v553_v42 }
 0x127   :  { %571 = vst.msk [vmem:[%s956_s3] sm:$0xf] %vm570_vm1, %v636_v43  ;;  %v637_v46 = vpack.c.bf16 %v551_v44, %v551_v44 }
 0x128   :  { %574 = vst.msk [vmem:[%s956_s3 + $0xc] sm:$0xf] %vm570_vm1, %v639_v45 }
 0x129   :  { %572 = vst.msk [vmem:[%s956_s3 + $0x4] sm:$0xf] %vm570_vm1, %v637_v46 }

// kernel: yolox_forward.39
= control target key start
LH: loop header
LB: loop body
LE: loop exit
PB: predicated region body
PF: predicated region fallthrough
CT: control target
= control target key end

     0   :  { %vm1707_vm0 = vcmask 519168   ;;  %s3160_s1 = inlined_call_operand.vmem [shape: bf16[1152,64], index: 1, kind: input, shape index: {}]   ;;  %s3161_s0 = inlined_call_operand.vmem [shape: bf16[128,1152], index: 0, kind: input, shape index: {}]   ;;  %s3162_s2 = inlined_call_operand.vmem [shape: f32[1,64], index: 2, kind: input, shape index: {}]   ;;  %s3163_s3 = inlined_call_operand.vmem [shape: bf16[128,64], index: 3, kind: output, shape index: {}]  }
   0x1   :  { %v2241_v0 = vld [vmem:[%s3160_s1 + $0x40] sm:$0xff]   ;;  %v2245_v4 = vld [vmem:[%s3160_s1 + $0x48] sm:$0xff]   ;;  %v2249_v8 = vld [vmem:[%s3160_s1 + $0x50] sm:$0xff]  }
   0x2   :  { %v2242_v1 = vld [vmem:[%s3160_s1 + $0xc0] sm:$0xff]   ;;  %1921 = vmatprep.subr.bf16.mxu0 %v2241_v0  ;;  %v2246_v5 = vld [vmem:[%s3160_s1 + $0xc8] sm:$0xff]   ;;  %v2250_v9 = vld [vmem:[%s3160_s1 + $0xd0] sm:$0xff]  }
   0x3   :  { %v2243_v2 = vld [vmem:[%s3160_s1] sm:$0xff]   ;;  %1985 = vmatprep.subr.bf16.mxu1 %v2242_v1  ;;  %v2247_v6 = vld [vmem:[%s3160_s1 + $0x8] sm:$0xff]   ;;  %v2251_v10 = vld [vmem:[%s3160_s1 + $0x10] sm:$0xff]  }
   0x4   :  { %v2244_v3 = vld [vmem:[%s3160_s1 + $0x80] sm:$0xff]   ;;  %1922 = vmatpush3.bf16.msra.mxu0 %v2243_v2  ;;  %v2248_v7 = vld [vmem:[%s3160_s1 + $0x88] sm:$0xff]   ;;  %v2252_v11 = vld [vmem:[%s3160_s1 + $0x90] sm:$0xff]  }
   0x5   :  { %1986 = vmatpush3.bf16.msra.mxu1 %v2244_v3  ;;  %1923 = vmatprep.subr.bf16.mxu0 %v2245_v4  ;;  %v2253_v12 = vld [vmem:[%s3160_s1 + $0x58] sm:$0xff]   ;;  %v2257_v16 = vld [vmem:[%s3160_s1 + $0x60] sm:$0xff]   ;;  %v2261_v20 = vld [vmem:[%s3160_s1 + $0x68] sm:$0xff]  }
   0x6   :  { %1987 = vmatprep.subr.bf16.mxu1 %v2246_v5  ;;  %v2254_v13 = vld [vmem:[%s3160_s1 + $0xd8] sm:$0xff]   ;;  %v2258_v17 = vld [vmem:[%s3160_s1 + $0xe0] sm:$0xff]   ;;  %v2262_v21 = vld [vmem:[%s3160_s1 + $0xe8] sm:$0xff]  }
   0x7   :  { %v2255_v14 = vld [vmem:[%s3160_s1 + $0x18] sm:$0xff]   ;;  %v2259_v18 = vld [vmem:[%s3160_s1 + $0x20] sm:$0xff]   ;;  %v2263_v22 = vld [vmem:[%s3160_s1 + $0x28] sm:$0xff]  }
   0x8   :  { %1924 = vmatpush3.bf16.msra.mxu0 %v2247_v6  ;;  %v2256_v15 = vld [vmem:[%s3160_s1 + $0x98] sm:$0xff]   ;;  %v2260_v19 = vld [vmem:[%s3160_s1 + $0xa0] sm:$0xff]   ;;  %v2264_v23 = vld [vmem:[%s3160_s1 + $0xa8] sm:$0xff]  }
   0x9   :  { %1988 = vmatpush3.bf16.msra.mxu1 %v2248_v7  ;;  %1925 = vmatprep.subr.bf16.mxu0 %v2249_v8  ;;  %v2265_v24 = vld [vmem:[%s3160_s1 + $0x70] sm:$0xff]   ;;  %v2269_v28 = vld [vmem:[%s3160_s1 + $0x78] sm:$0xff]   ;;  %v2273_v32 = vld [vmem:[%s3161_s0] ss:$36 sps:$4 sm:$0xff]  }
   0xa   :  { %1989 = vmatprep.subr.bf16.mxu1 %v2250_v9  ;;  %v2266_v25 = vld [vmem:[%s3160_s1 + $0xf0] sm:$0xff]   ;;  %v2270_v29 = vld [vmem:[%s3160_s1 + $0xf8] sm:$0xff]   ;;  %v2275_v33 = vld [vmem:[%s3161_s0 + $0x4] ss:$36 sps:$4 sm:$0xff]  }
   0xb   :  { %v2267_v26 = vld [vmem:[%s3160_s1 + $0x30] sm:$0xff]   ;;  %v2271_v30 = vld [vmem:[%s3160_s1 + $0x38] sm:$0xff]   ;;  %v2276_v34 = vld [vmem:[%s3161_s0 + $0x8] ss:$36 sps:$4 sm:$0xff]   ;;  %1078 = vmatprep.mubr.bf16.mxu0 %v2275_v33 }
   0xc   :  { %1926 = vmatpush3.bf16.msra.mxu0 %v2251_v10  ;;  %v2268_v27 = vld [vmem:[%s3160_s1 + $0xb0] sm:$0xff]   ;;  %v2272_v31 = vld [vmem:[%s3160_s1 + $0xb8] sm:$0xff]   ;;  %v2279_v36 = vld [vmem:[%s3160_s1 + $0x140] sm:$0xff]  }
   0xd   :  { %1990 = vmatpush3.bf16.msra.mxu1 %v2252_v11  ;;  %1927 = vmatprep.subr.bf16.mxu0 %v2253_v12  ;;  %v2278_v35 = vld [vmem:[%s3161_s0 + $0xc] ss:$36 sps:$4 sm:$0xff]   ;;  %v2280_v37 = vld [vmem:[%s3160_s1 + $0x1c0] sm:$0xff]   ;;  %v2285_v41 = vld [vmem:[%s3161_s0 + $0x54] ss:$36 sps:$4 sm:$0xff]  }
   0xe   :  { %1991 = vmatprep.subr.bf16.mxu1 %v2254_v13  ;;  %1175 = vmatprep.mubr.bf16.mxu1 %v2278_v35  ;;  %v2281_v38 = vld [vmem:[%s3160_s1 + $0x100] sm:$0xff]   ;;  %v2283_v40 = vld [vmem:[%s3161_s0 + $0x4c] ss:$36 sps:$4 sm:$0xff]   ;;  %v2293_v48 = vld [vmem:[%s3161_s0 + $0x94] ss:$36 sps:$4 sm:$0xff]  }
   0xf   :  { %v2282_v39 = vld [vmem:[%s3160_s1 + $0x180] sm:$0xff]   ;;  %v2287_v42 = vld [vmem:[%s3161_s0 + $0x48] ss:$36 sps:$4 sm:$0xff]   ;;  %v2288_v43 = vld [vmem:[%s3161_s0 + $0x50] ss:$36 sps:$4 sm:$0xff]  }
  0x10   :  { %1928 = vmatpush3.bf16.msra.mxu0 %v2255_v14  ;;  %v2289_v44 = vld [vmem:[%s3160_s1 + $0x148] sm:$0xff]   ;;  %v2295_v49 = vld [vmem:[%s3161_s0 + $0x9c] ss:$36 sps:$4 sm:$0xff]   ;;  %v2297_v50 = vld [vmem:[%s3161_s0 + $0x90] ss:$36 sps:$4 sm:$0xff]  }
  0x11   :  { %1992 = vmatpush3.bf16.msra.mxu1 %v2256_v15  ;;  %1929 = vmatprep.subr.bf16.mxu0 %v2257_v16  ;;  %v2290_v45 = vld [vmem:[%s3160_s1 + $0x1c8] sm:$0xff]   ;;  %v2298_v51 = vld [vmem:[%s3161_s0 + $0x98] ss:$36 sps:$4 sm:$0xff]   ;;  %v2299_v52 = vld [vmem:[%s3160_s1 + $0x150] sm:$0xff]  }
  0x12   :  { %1993 = vmatprep.subr.bf16.mxu1 %v2258_v17  ;;  %v2291_v46 = vld [vmem:[%s3160_s1 + $0x108] sm:$0xff]   ;;  %v2300_v53 = vld [vmem:[%s3160_s1 + $0x1d0] sm:$0xff]   ;;  %v2303_v56 = vld [vmem:[%s3161_s0 + $0xdc] ss:$36 sps:$4 sm:$0xff]  }
  0x13   :  { %v2292_v47 = vld [vmem:[%s3160_s1 + $0x188] sm:$0xff]   ;;  %v2301_v54 = vld [vmem:[%s3160_s1 + $0x110] sm:$0xff]   ;;  %v2307_v58 = vld [vmem:[%s3161_s0 + $0xd8] ss:$36 sps:$4 sm:$0xff]  }
  0x14   :  { %1930 = vmatpush3.bf16.msra.mxu0 %v2259_v18  ;;  %v2302_v55 = vld [vmem:[%s3160_s1 + $0x190] sm:$0xff]   ;;  %v2305_v57 = vld [vmem:[%s3161_s0 + $0xe4] ss:$36 sps:$4 sm:$0xff]   ;;  %v2309_v60 = vld [vmem:[%s3160_s1 + $0x158] sm:$0xff]  }
  0x15   :  { %1994 = vmatpush3.bf16.msra.mxu1 %v2260_v19  ;;  %1931 = vmatprep.subr.bf16.mxu0 %v2261_v20  ;;  %v2308_v59 = vld [vmem:[%s3161_s0 + $0xe0] ss:$36 sps:$4 sm:$0xff]   ;;  %v2310_v61 = vld [vmem:[%s3160_s1 + $0x1d8] sm:$0xff]   ;;  %v2315_v1 = vld [vmem:[%s3161_s0 + $0x12c] ss:$36 sps:$4 sm:$0xff]  }
  0x16   :  { %1995 = vmatprep.subr.bf16.mxu1 %v2262_v21  ;;  %v2311_v62 = vld [vmem:[%s3160_s1 + $0x118] sm:$0xff]   ;;  %v2313_v0 = vld [vmem:[%s3161_s0 + $0x124] ss:$36 sps:$4 sm:$0xff]   ;;  %v2323_v8 = vld [vmem:[%s3161_s0 + $0x16c] ss:$36 sps:$4 sm:$0xff]  }
  0x17   :  { %v2312_v63 = vld [vmem:[%s3160_s1 + $0x198] sm:$0xff]   ;;  %v2317_v2 = vld [vmem:[%s3161_s0 + $0x120] ss:$36 sps:$4 sm:$0xff]   ;;  %v2318_v4 = vld [vmem:[%s3161_s0 + $0x128] ss:$36 sps:$4 sm:$0xff]  }
  0x18   :  { %1932 = vmatpush3.bf16.msra.mxu0 %v2263_v22  ;;  %v2319_v3 = vld [vmem:[%s3160_s1 + $0x160] sm:$0xff]   ;;  %v2325_v9 = vld [vmem:[%s3161_s0 + $0x174] ss:$36 sps:$4 sm:$0xff]   ;;  %v2329_v10 = vld [vmem:[%s3160_s1 + $0x168] sm:$0xff]  }
  0x19   :  { %1996 = vmatpush3.bf16.msra.mxu1 %v2264_v23  ;;  %1933 = vmatprep.subr.bf16.mxu0 %v2265_v24  ;;  %v2320_v5 = vld [vmem:[%s3160_s1 + $0x1e0] sm:$0xff]   ;;  %v2330_v11 = vld [vmem:[%s3160_s1 + $0x1e8] sm:$0xff]   ;;  %v2328_v15 = vld [vmem:[%s3161_s0 + $0x170] ss:$36 sps:$4 sm:$0xff]  }
  0x1a   :  { %1997 = vmatprep.subr.bf16.mxu1 %v2266_v25  ;;  %v2321_v6 = vld [vmem:[%s3160_s1 + $0x120] sm:$0xff]   ;;  %v2327_v12 = vld [vmem:[%s3161_s0 + $0x168] ss:$36 sps:$4 sm:$0xff]   ;;  %v2333_v16 = vld [vmem:[%s3161_s0 + $0x1b4] ss:$36 sps:$4 sm:$0xff]  }
  0x1b   :  { %v2322_v7 = vld [vmem:[%s3160_s1 + $0x1a0] sm:$0xff]   ;;  %v2331_v13 = vld [vmem:[%s3160_s1 + $0x128] sm:$0xff]   ;;  %v2339_v18 = vld [vmem:[%s3160_s1 + $0x170] sm:$0xff]  }
  0x1c   :  { %1934 = vmatpush3.bf16.msra.mxu0 %v2267_v26  ;;  %v2332_v14 = vld [vmem:[%s3160_s1 + $0x1a8] sm:$0xff]   ;;  %v2335_v17 = vld [vmem:[%s3161_s0 + $0x1bc] ss:$36 sps:$4 sm:$0xff]   ;;  %v2340_v19 = vld [vmem:[%s3160_s1 + $0x1f0] sm:$0xff]  }
  0x1d   :  { %1998 = vmatpush3.bf16.msra.mxu1 %v2268_v27  ;;  %1935 = vmatprep.subr.bf16.mxu0 %v2269_v28  ;;  %v2341_v20 = vld [vmem:[%s3160_s1 + $0x130] sm:$0xff]   ;;  %v2338_v23 = vld [vmem:[%s3161_s0 + $0x1b8] ss:$36 sps:$4 sm:$0xff]   ;;  %v2345_v25 = vld [vmem:[%s3161_s0 + $0x204] ss:$36 sps:$4 sm:$0xff]  }
  0x1e   :  { %1999 = vmatprep.subr.bf16.mxu1 %v2270_v29  ;;  %v2342_v21 = vld [vmem:[%s3160_s1 + $0x1b0] sm:$0xff]   ;;  %v2343_v24 = vld [vmem:[%s3161_s0 + $0x1fc] ss:$36 sps:$4 sm:$0xff]  }
  0x1f   :  { %v2337_v22 = vld [vmem:[%s3161_s0 + $0x1b0] ss:$36 sps:$4 sm:$0xff]   ;;  %v2349_v26 = vld [vmem:[%s3160_s1 + $0x178] sm:$0xff]  }
  0x20   :  { %1936 = vmatpush3.bf16.msra.mxu0 %v2271_v30  ;;  %v2350_v27 = vld [vmem:[%s3160_s1 + $0x1f8] sm:$0xff]   ;;  %v2353_v35 = vld [vmem:[%s3161_s0 + $0x10] ss:$36 sps:$4 sm:$0xff]  }
  0x21   :  { %2000 = vmatpush3.bf16.msra.mxu1 %v2272_v31  ;;  %2049 = vmatprep.subr.bf16.mxu0 %v2279_v36  ;;  %v2351_v28 = vld [vmem:[%s3160_s1 + $0x138] sm:$0xff]   ;;  %v2348_v31 = vld [vmem:[%s3161_s0 + $0x200] ss:$36 sps:$4 sm:$0xff]  }
  0x22   :  { %2113 = vmatprep.subr.bf16.mxu1 %v2280_v37  ;;  %v2352_v29 = vld [vmem:[%s3160_s1 + $0x1b8] sm:$0xff]  }
  0x23   :  { %1079 = vmatmul.mubr.bf16.vlgmr.msra.gmra.mrb[0].mxu0 %v2273_v32  ;;  %v2347_v30 = vld [vmem:[%s3161_s0 + $0x1f8] ss:$36 sps:$4 sm:$0xff]   ;;  %v2359_v32 = vld [vmem:[%s3160_s1 + $0x200] sm:$0xff]  }
  0x24   :  { %1176 = vmatmul.mubr.bf16.vlgmr.msra.gmra.mrb[0].mxu1 %v2276_v34  ;;  %2050 = vmatpush3.bf16.msra.mxu0 %v2281_v38  ;;  %v2355_v33 = vld [vmem:[%s3161_s0 + $0x14] ss:$36 sps:$4 sm:$0xff]   ;;  %v2358_v34 = vld [vmem:[%s3161_s0 + $0x1c] ss:$36 sps:$4 sm:$0xff]   ;;  %v2362_v38 = vld [vmem:[%s3161_s0 + $0x64] ss:$36 sps:$4 sm:$0xff]  }
  0x25   :  { %2114 = vmatpush3.bf16.msra.mxu1 %v2282_v39  ;;  %1086 = vmatprep.mubr.bf16.mxu0 %v2283_v40  ;;  %v2356_v36 = vld [vmem:[%s3161_s0 + $0x18] ss:$36 sps:$4 sm:$0xff]   ;;  %v2366_v39 = vld [vmem:[%s3160_s1 + $0x208] sm:$0xff]   ;;  %v2373_v40 = vld [vmem:[%s3160_s1 + $0x210] sm:$0xff]  }
  0x26   :  { %1183 = vmatprep.mubr.bf16.mxu1 %v2285_v41  ;;  %2051 = vmatprep.subr.bf16.mxu0 %v2289_v44  ;;  %v2360_v37 = vld [vmem:[%s3161_s0 + $0x5c] ss:$36 sps:$4 sm:$0xff]   ;;  %v2369_v44 = vld [vmem:[%s3161_s0 + $0xac] ss:$36 sps:$4 sm:$0xff]  }
  0x27   :  { %2115 = vmatprep.subr.bf16.mxu1 %v2290_v45  ;;  %v2364_v41 = vld [vmem:[%s3161_s0 + $0x58] ss:$36 sps:$4 sm:$0xff]  }
  0x28   :  { %2052 = vmatpush3.bf16.msra.mxu0 %v2291_v46  ;;  %v2380_v45 = vld [vmem:[%s3160_s1 + $0x218] sm:$0xff]   ;;  %v2387_v46 = vld [vmem:[%s3160_s1 + $0x220] sm:$0xff]  }
  0x29   :  { %2116 = vmatpush3.bf16.msra.mxu1 %v2292_v47  ;;  %2053 = vmatprep.subr.bf16.mxu0 %v2299_v52  ;;  %v2371_v47 = vld [vmem:[%s3161_s0 + $0xa0] ss:$36 sps:$4 sm:$0xff]   ;;  %v2378_v52 = vld [vmem:[%s3161_s0 + $0xe8] ss:$36 sps:$4 sm:$0xff]  }
  0x2a   :  { %2117 = vmatprep.subr.bf16.mxu1 %v2300_v53  ;;  %v2401_v53 = vld [vmem:[%s3160_s1 + $0x230] sm:$0xff]  }
  0x2b   :  { %1087 = vmatmul.mubr.bf16.gmra.mrb[4].mxu0 %v2287_v42  ;;  %v2365_v42 = vld [vmem:[%s3161_s0 + $0x60] ss:$36 sps:$4 sm:$0xff]  }
  0x2c   :  { %1184 = vmatmul.mubr.bf16.gmra.mrb[4].mxu1 %v2288_v43  ;;  %1094 = vmatprep.mubr.bf16.mxu0 %v2293_v48  ;;  %v2367_v43 = vld [vmem:[%s3161_s0 + $0xa4] ss:$36 sps:$4 sm:$0xff]  }
  0x2d   :  { %1191 = vmatprep.mubr.bf16.mxu1 %v2295_v49  ;;  %2054 = vmatpush3.bf16.msra.mxu0 %v2301_v54  ;;  %v2372_v48 = vld [vmem:[%s3161_s0 + $0xa8] ss:$36 sps:$4 sm:$0xff]   ;;  %v2379_v54 = vld [vmem:[%s3161_s0 + $0xf0] ss:$36 sps:$4 sm:$0xff]  }
  0x2e   :  { %2118 = vmatpush3.bf16.msra.mxu1 %v2302_v55  ;;  %2055 = vmatprep.subr.bf16.mxu0 %v2309_v60  ;;  %v2374_v49 = vld [vmem:[%s3161_s0 + $0xec] ss:$36 sps:$4 sm:$0xff]   ;;  %v2381_v55 = vld [vmem:[%s3161_s0 + $0x134] ss:$36 sps:$4 sm:$0xff]   ;;  %v2388_v60 = vld [vmem:[%s3161_s0 + $0x17c] ss:$36 sps:$4 sm:$0xff]  }
  0x2f   :  { %2119 = vmatprep.subr.bf16.mxu1 %v2310_v61  ;;  %v2390_v61 = vld [vmem:[%s3161_s0 + $0x184] ss:$36 sps:$4 sm:$0xff]  }
  0x31   :  { %2056 = vmatpush3.bf16.msra.mxu0 %v2311_v62  ;;  %v2392_v62 = vld [vmem:[%s3161_s0 + $0x178] ss:$36 sps:$4 sm:$0xff]  }
  0x32   :  { %2120 = vmatpush3.bf16.msra.mxu1 %v2312_v63  ;;  %2057 = vmatprep.subr.bf16.mxu0 %v2319_v3  ;;  %v2393_v63 = vld [vmem:[%s3161_s0 + $0x180] ss:$36 sps:$4 sm:$0xff]   ;;  %v2400_v3 = vld [vmem:[%s3161_s0 + $0x1c8] ss:$36 sps:$4 sm:$0xff]  }
  0x33   :  { %1095 = vmatmul.mubr.bf16.gmra.mrb[8].mxu0 %v2297_v50  ;;  %2121 = vmatprep.subr.bf16.mxu1 %v2320_v5  ;;  %v2376_v50 = vld [vmem:[%s3161_s0 + $0xf4] ss:$36 sps:$4 sm:$0xff]  }
  0x34   :  { %1192 = vmatmul.mubr.bf16.gmra.mrb[8].mxu1 %v2298_v51  ;;  %1102 = vmatprep.mubr.bf16.mxu0 %v2303_v56  ;;  %v2394_v51 = vld [vmem:[%s3160_s1 + $0x228] sm:$0xff]   ;;  %v2383_v56 = vld [vmem:[%s3161_s0 + $0x13c] ss:$36 sps:$4 sm:$0xff]   ;;  %v2404_v5 = vld [vmem:[%s3161_s0 + $0x214] ss:$36 sps:$4 sm:$0xff]  }
  0x35   :  { %1199 = vmatprep.mubr.bf16.mxu1 %v2305_v57  ;;  %2058 = vmatpush3.bf16.msra.mxu0 %v2321_v6  ;;  %v2408_v57 = vld [vmem:[%s3160_s1 + $0x238] sm:$0xff]   ;;  %v2406_v6 = vld [vmem:[%s3161_s0 + $0x208] ss:$36 sps:$4 sm:$0xff]  }
  0x36   :  { %2122 = vmatpush3.bf16.msra.mxu1 %v2322_v7  ;;  %2059 = vmatprep.subr.bf16.mxu0 %v2329_v10  ;;  %v2407_v7 = vld [vmem:[%s3161_s0 + $0x210] ss:$36 sps:$4 sm:$0xff]   ;;  %v2411_v10 = vld [vmem:[%s3161_s0 + $0x68] ss:$36 sps:$4 sm:$0xff]  }
  0x37   :  { %2123 = vmatprep.subr.bf16.mxu1 %v2330_v11  ;;  %v2412_v11 = vld [vmem:[%s3161_s0 + $0x188] ss:$36 sps:$4 sm:$0xff]  }
  0x39   :  { %2060 = vmatpush3.bf16.msra.mxu0 %v2331_v13  ;;  %v2414_v13 = vld [vmem:[%s3161_s0 + $0x1d0] ss:$36 sps:$4 sm:$0xff]  }
  0x3a   :  { %2124 = vmatpush3.bf16.msra.mxu1 %v2332_v14  ;;  %2061 = vmatprep.subr.bf16.mxu0 %v2339_v18  ;;  %v2415_v14 = vld [vmem:[%s3161_s0 + $0xf8] ss:$36 sps:$4 sm:$0xff]   ;;  %v2936_v18 = vld [vmem:[%s3162_s2] ss:$0 sm:$0xff] }
  0x3b   :  { %1103 = vmatmul.mubr.bf16.gmra.mrb[12].mxu0 %v2307_v58  ;;  %2125 = vmatprep.subr.bf16.mxu1 %v2340_v19  ;;  %v2385_v58 = vld [vmem:[%s3161_s0 + $0x130] ss:$36 sps:$4 sm:$0xff]  }
  0x3c   :  { %1200 = vmatmul.mubr.bf16.gmra.mrb[12].mxu1 %v2308_v59  ;;  %1110 = vmatprep.mubr.bf16.mxu0 %v2313_v0  ;;  %v2386_v59 = vld [vmem:[%s3161_s0 + $0x138] ss:$36 sps:$4 sm:$0xff]   ;;  %v2395_v0 = vld [vmem:[%s3161_s0 + $0x1c4] ss:$36 sps:$4 sm:$0xff]  }
  0x3d   :  { %1207 = vmatprep.mubr.bf16.mxu1 %v2315_v1  ;;  %2062 = vmatpush3.bf16.msra.mxu0 %v2341_v20  ;;  %v2397_v1 = vld [vmem:[%s3161_s0 + $0x1cc] ss:$36 sps:$4 sm:$0xff]  }
  0x3e   :  { %2126 = vmatpush3.bf16.msra.mxu1 %v2342_v21  ;;  %2063 = vmatprep.subr.bf16.mxu0 %v2349_v26 }
  0x3f   :  { %2127 = vmatprep.subr.bf16.mxu1 %v2350_v27 }
  0x41   :  { %2064 = vmatpush3.bf16.msra.mxu0 %v2351_v28 }
  0x42   :  { %2128 = vmatpush3.bf16.msra.mxu1 %v2352_v29  ;;  %2193 = vmatprep.subr.bf16.mxu0 %v2359_v32 }
  0x43   :  { %1111 = vmatmul.mubr.bf16.gmra.mrb[16].mxu0 %v2317_v2  ;;  %2225 = vmatprep.subr.bf16.mxu1 %v2359_v32  ;;  %v2399_v2 = vld [vmem:[%s3161_s0 + $0x1c0] ss:$36 sps:$4 sm:$0xff]  }
  0x44   :  { %1208 = vmatmul.mubr.bf16.gmra.mrb[16].mxu1 %v2318_v4  ;;  %1118 = vmatprep.mubr.bf16.mxu0 %v2323_v8  ;;  %v2402_v4 = vld [vmem:[%s3161_s0 + $0x20c] ss:$36 sps:$4 sm:$0xff]   ;;  %v2409_v8 = vld [vmem:[%s3161_s0 + $0x20] ss:$36 sps:$4 sm:$0xff]  }
  0x45   :  { %1215 = vmatprep.mubr.bf16.mxu1 %v2325_v9  ;;  %v2410_v9 = vld [vmem:[%s3161_s0 + $0x140] ss:$36 sps:$4 sm:$0xff]  }
  0x4b   :  { %1119 = vmatmul.mubr.bf16.gmra.mrb[20].mxu0 %v2327_v12  ;;  %v2413_v12 = vld [vmem:[%s3161_s0 + $0xb0] ss:$36 sps:$4 sm:$0xff]  }
  0x4c   :  { %1216 = vmatmul.mubr.bf16.gmra.mrb[20].mxu1 %v2328_v15  ;;  %1126 = vmatprep.mubr.bf16.mxu0 %v2333_v16  ;;  %v2416_v15 = vld [vmem:[%s3161_s0 + $0x218] ss:$36 sps:$4 sm:$0xff]  }
  0x4d   :  { %1223 = vmatprep.mubr.bf16.mxu1 %v2335_v17 }
  0x53   :  { %1127 = vmatmul.mubr.bf16.gmra.mrb[24].mxu0 %v2337_v22 }
  0x54   :  { %1224 = vmatmul.mubr.bf16.gmra.mrb[24].mxu1 %v2338_v23  ;;  %1134 = vmatprep.mubr.bf16.mxu0 %v2343_v24 }
  0x55   :  { %1231 = vmatprep.mubr.bf16.mxu1 %v2345_v25 }
  0x5b   :  { %1135 = vmatmul.mubr.bf16.gmra.mrb[28].mxu0 %v2347_v30 }
  0x5c   :  { %1232 = vmatmul.mubr.bf16.gmra.mrb[28].mxu1 %v2348_v31  ;;  %1272 = vmatprep.mubr.bf16.mxu0 %v2355_v33 }
  0x5d   :  { %1369 = vmatprep.mubr.bf16.mxu1 %v2358_v34 }
  0x63   :  { %1273 = vmatmul.mubr.bf16.vlgmr.msra.gmra.mrb[32].mxu0 %v2353_v35 }
  0x64   :  { %1370 = vmatmul.mubr.bf16.vlgmr.msra.gmra.mrb[32].mxu1 %v2356_v36  ;;  %2194 = vmatpush3.bf16.msra.mxu0 %v2359_v32 }
  0x65   :  { %2233 = vmatpush3.bf16.msra.mxu1 %v2359_v32  ;;  %1280 = vmatprep.mubr.bf16.mxu0 %v2360_v37 }
  0x66   :  { %1377 = vmatprep.mubr.bf16.mxu1 %v2362_v38  ;;  %2195 = vmatprep.subr.bf16.mxu0 %v2366_v39 }
  0x67   :  { %2226 = vmatprep.subr.bf16.mxu1 %v2366_v39 }
  0x68   :  { %2196 = vmatpush3.bf16.msra.mxu0 %v2366_v39 }
  0x69   :  { %2234 = vmatpush3.bf16.msra.mxu1 %v2366_v39  ;;  %2197 = vmatprep.subr.bf16.mxu0 %v2373_v40 }
  0x6a   :  { %2227 = vmatprep.subr.bf16.mxu1 %v2373_v40 }
  0x6b   :  { %1281 = vmatmul.mubr.bf16.gmra.mrb[36].mxu0 %v2364_v41 }
  0x6c   :  { %1378 = vmatmul.mubr.bf16.gmra.mrb[36].mxu1 %v2365_v42  ;;  %1288 = vmatprep.mubr.bf16.mxu0 %v2367_v43 }
  0x6d   :  { %1385 = vmatprep.mubr.bf16.mxu1 %v2369_v44  ;;  %2198 = vmatpush3.bf16.msra.mxu0 %v2373_v40 }
  0x6e   :  { %2235 = vmatpush3.bf16.msra.mxu1 %v2373_v40  ;;  %2199 = vmatprep.subr.bf16.mxu0 %v2380_v45 }
  0x6f   :  { %2228 = vmatprep.subr.bf16.mxu1 %v2380_v45 }
  0x71   :  { %2200 = vmatpush3.bf16.msra.mxu0 %v2380_v45 }
  0x72   :  { %2236 = vmatpush3.bf16.msra.mxu1 %v2380_v45  ;;  %2201 = vmatprep.subr.bf16.mxu0 %v2387_v46 }
  0x73   :  { %1289 = vmatmul.mubr.bf16.gmra.mrb[40].mxu0 %v2371_v47  ;;  %2229 = vmatprep.subr.bf16.mxu1 %v2387_v46 }
  0x74   :  { %1386 = vmatmul.mubr.bf16.gmra.mrb[40].mxu1 %v2372_v48  ;;  %1296 = vmatprep.mubr.bf16.mxu0 %v2374_v49 }
  0x75   :  { %1393 = vmatprep.mubr.bf16.mxu1 %v2376_v50  ;;  %2202 = vmatpush3.bf16.msra.mxu0 %v2387_v46 }
  0x76   :  { %2237 = vmatpush3.bf16.msra.mxu1 %v2387_v46  ;;  %2203 = vmatprep.subr.bf16.mxu0 %v2394_v51 }
  0x77   :  { %2230 = vmatprep.subr.bf16.mxu1 %v2394_v51 }
  0x79   :  { %2204 = vmatpush3.bf16.msra.mxu0 %v2394_v51 }
  0x7a   :  { %2238 = vmatpush3.bf16.msra.mxu1 %v2394_v51  ;;  %2205 = vmatprep.subr.bf16.mxu0 %v2401_v53 }
  0x7b   :  { %1297 = vmatmul.mubr.bf16.gmra.mrb[44].mxu0 %v2378_v52  ;;  %2231 = vmatprep.subr.bf16.mxu1 %v2401_v53 }
  0x7c   :  { %1394 = vmatmul.mubr.bf16.gmra.mrb[44].mxu1 %v2379_v54  ;;  %1304 = vmatprep.mubr.bf16.mxu0 %v2381_v55 }
  0x7d   :  { %1401 = vmatprep.mubr.bf16.mxu1 %v2383_v56  ;;  %2206 = vmatpush3.bf16.msra.mxu0 %v2401_v53 }
  0x7e   :  { %2239 = vmatpush3.bf16.msra.mxu1 %v2401_v53  ;;  %2207 = vmatprep.subr.bf16.mxu0 %v2408_v57 }
  0x7f   :  { %2232 = vmatprep.subr.bf16.mxu1 %v2408_v57 }
  0x81   :  { %2208 = vmatpush3.bf16.msra.mxu0 %v2408_v57 }
  0x82   :  { %2240 = vmatpush3.bf16.msra.mxu1 %v2408_v57 }
  0x83   :  { %1305 = vmatmul.mubr.bf16.gmra.mrb[48].mxu0 %v2385_v58 }
  0x84   :  { %1402 = vmatmul.mubr.bf16.gmra.mrb[48].mxu1 %v2386_v59  ;;  %1312 = vmatprep.mubr.bf16.mxu0 %v2388_v60 }
  0x85   :  { %1409 = vmatprep.mubr.bf16.mxu1 %v2390_v61 }
  0x8b   :  { %1313 = vmatmul.mubr.bf16.gmra.mrb[52].mxu0 %v2392_v62 }
  0x8c   :  { %1410 = vmatmul.mubr.bf16.gmra.mrb[52].mxu1 %v2393_v63  ;;  %1320 = vmatprep.mubr.bf16.mxu0 %v2395_v0 }
  0x8d   :  { %1417 = vmatprep.mubr.bf16.mxu1 %v2397_v1 }
  0x93   :  { %1321 = vmatmul.mubr.bf16.gmra.mrb[56].mxu0 %v2399_v2 }
  0x94   :  { %1418 = vmatmul.mubr.bf16.gmra.mrb[56].mxu1 %v2400_v3  ;;  %1328 = vmatprep.mubr.bf16.mxu0 %v2402_v4 }
  0x95   :  { %1425 = vmatprep.mubr.bf16.mxu1 %v2404_v5 }
  0x9b   :  { %1329 = vmatmul.mubr.bf16.gmra.mrb[60].mxu0 %v2406_v6 }
  0x9c   :  { %1426 = vmatmul.mubr.bf16.gmra.mrb[60].mxu1 %v2407_v7  ;;  %2209 = vmatprep.mubr.bf16.mxu0 %v2409_v8 }
  0x9d   :  { %2217 = vmatprep.mubr.bf16.mxu1 %v2410_v9 }
  0xa3   :  { %2210 = vmatmul.mubr.bf16.vlgmr.msra.gmra.mrb[64].mxu0 %v2411_v10 }
  0xa4   :  { %2218 = vmatmul.mubr.bf16.vlgmr.msra.gmra.mrb[64].mxu1 %v2412_v11  ;;  %2213 = vmatprep.mubr.bf16.mxu0 %v2413_v12 }
  0xa5   :  { %2221 = vmatprep.mubr.bf16.mxu1 %v2414_v13 }
  0xab   :  { %2214 = vmatmul.mubr.bf16.gmra.mrb[68].mxu0 %v2415_v14 }
  0xac   :  { %2222 = vmatmul.mubr.bf16.gmra.mrb[68].mxu1 %v2416_v15 }
  0xf6   :  { %v1937_v16 = vpop.f32.mrb[0].mxu0 }
  0xf7   :  { %v2001_v17 = vpop.f32.mrb[0].mxu1  ;;  %v1938_v19 = vpop.f32.mrb[1].mxu0 }
  0xf8   :  { %v1939_v20 = vadd.f32 %v1938_v19, %v1937_v16  ;;  %v2002_v21 = vpop.f32.mrb[1].mxu1  ;;  %v1940_v22 = vpop.f32.mrb[2].mxu0 }
  0xf9   :  { %v2003_v23 = vadd.f32 %v2002_v21, %v2001_v17  ;;  %v2004_v24 = vpop.f32.mrb[2].mxu1  ;;  %v1941_v25 = vpop.f32.mrb[3].mxu0 }
  0xfa   :  { %v1081_v26 = vadd.f32 %v1939_v20, %v2936_v18  ;;  %v1942_v27 = vadd.f32 %v1941_v25, %v1940_v22  ;;  %v2005_v28 = vpop.f32.mrb[3].mxu1 }
  0xfb   :  { %v2006_v29 = vadd.f32 %v2005_v28, %v2004_v24 }
  0xfc   :  { %v2939_v30 = vadd.f32 %v2003_v23, %v1081_v26  ;;  %v1084_v31 = vadd.f32 %v1942_v27, %v2936_v18 }
  0xfe   :  { %v2942_v32 = vadd.f32 %v2006_v29, %v1084_v31  ;;  %v1943_v33 = vpop.f32.mrb[4].mxu0 }
  0xff   :  { %v2007_v34 = vpop.f32.mrb[4].mxu1  ;;  %v1944_v35 = vpop.f32.mrb[5].mxu0 }
 0x100   :  { %v1945_v36 = vadd.f32 %v1944_v35, %v1943_v33  ;;  %v2008_v37 = vpop.f32.mrb[5].mxu1  ;;  %v1946_v38 = vpop.f32.mrb[6].mxu0 }
 0x101   :  { %v2009_v39 = vadd.f32 %v2008_v37, %v2007_v34  ;;  %v2010_v40 = vpop.f32.mrb[6].mxu1  ;;  %v1947_v41 = vpop.f32.mrb[7].mxu0 }
 0x102   :  { %v1089_v42 = vadd.f32 %v1945_v36, %v2936_v18  ;;  %v1948_v43 = vadd.f32 %v1947_v41, %v1946_v38  ;;  %v2011_v44 = vpop.f32.mrb[7].mxu1 }
 0x103   :  { %v2012_v45 = vadd.f32 %v2011_v44, %v2010_v40 }
 0x104   :  { %v2945_v46 = vadd.f32 %v2009_v39, %v1089_v42  ;;  %v1092_v47 = vadd.f32 %v1948_v43, %v2936_v18 }
 0x106   :  { %v2948_v48 = vadd.f32 %v2012_v45, %v1092_v47  ;;  %v1949_v49 = vpop.f32.mrb[8].mxu0 }
 0x107   :  { %v2013_v50 = vpop.f32.mrb[8].mxu1  ;;  %v1950_v51 = vpop.f32.mrb[9].mxu0 }
 0x108   :  { %v1951_v52 = vadd.f32 %v1950_v51, %v1949_v49  ;;  %v2014_v53 = vpop.f32.mrb[9].mxu1  ;;  %v1952_v54 = vpop.f32.mrb[10].mxu0 }
 0x109   :  { %v2015_v55 = vadd.f32 %v2014_v53, %v2013_v50  ;;  %v2016_v56 = vpop.f32.mrb[10].mxu1  ;;  %v1953_v57 = vpop.f32.mrb[11].mxu0 }
 0x10a   :  { %v1097_v58 = vadd.f32 %v1951_v52, %v2936_v18  ;;  %v1954_v59 = vadd.f32 %v1953_v57, %v1952_v54  ;;  %v2017_v60 = vpop.f32.mrb[11].mxu1 }
 0x10b   :  { %v2018_v61 = vadd.f32 %v2017_v60, %v2016_v56 }
 0x10c   :  { %v2951_v62 = vadd.f32 %v2015_v55, %v1097_v58  ;;  %v1100_v63 = vadd.f32 %v1954_v59, %v2936_v18 }
 0x10e   :  { %v2954_v0 = vadd.f32 %v2018_v61, %v1100_v63  ;;  %v1955_v1 = vpop.f32.mrb[12].mxu0 }
 0x10f   :  { %v2019_v2 = vpop.f32.mrb[12].mxu1  ;;  %v1956_v3 = vpop.f32.mrb[13].mxu0 }
 0x110   :  { %v1957_v4 = vadd.f32 %v1956_v3, %v1955_v1  ;;  %v2020_v5 = vpop.f32.mrb[13].mxu1  ;;  %v1958_v6 = vpop.f32.mrb[14].mxu0 }
 0x111   :  { %v2021_v7 = vadd.f32 %v2020_v5, %v2019_v2  ;;  %v2022_v8 = vpop.f32.mrb[14].mxu1  ;;  %v1959_v9 = vpop.f32.mrb[15].mxu0 }
 0x112   :  { %v1105_v10 = vadd.f32 %v1957_v4, %v2936_v18  ;;  %v1960_v11 = vadd.f32 %v1959_v9, %v1958_v6  ;;  %v2023_v12 = vpop.f32.mrb[15].mxu1 }
 0x113   :  { %v2024_v13 = vadd.f32 %v2023_v12, %v2022_v8 }
 0x114   :  { %v2957_v14 = vadd.f32 %v2021_v7, %v1105_v10  ;;  %v1108_v15 = vadd.f32 %v1960_v11, %v2936_v18 }
 0x116   :  { %v2960_v16 = vadd.f32 %v2024_v13, %v1108_v15  ;;  %v1961_v17 = vpop.f32.mrb[16].mxu0 }
 0x117   :  { %v2025_v19 = vpop.f32.mrb[16].mxu1  ;;  %v1962_v20 = vpop.f32.mrb[17].mxu0 }
 0x118   :  { %v1963_v21 = vadd.f32 %v1962_v20, %v1961_v17  ;;  %v2026_v22 = vpop.f32.mrb[17].mxu1  ;;  %v1964_v23 = vpop.f32.mrb[18].mxu0 }
 0x119   :  { %v2027_v24 = vadd.f32 %v2026_v22, %v2025_v19  ;;  %v2028_v25 = vpop.f32.mrb[18].mxu1  ;;  %v1965_v26 = vpop.f32.mrb[19].mxu0 }
 0x11a   :  { %v1113_v27 = vadd.f32 %v1963_v21, %v2936_v18  ;;  %v1966_v28 = vadd.f32 %v1965_v26, %v1964_v23  ;;  %v2029_v29 = vpop.f32.mrb[19].mxu1 }
 0x11b   :  { %v2030_v31 = vadd.f32 %v2029_v29, %v2028_v25 }
 0x11c   :  { %v2963_v33 = vadd.f32 %v2027_v24, %v1113_v27  ;;  %v1116_v34 = vadd.f32 %v1966_v28, %v2936_v18 }
 0x11e   :  { %v2966_v35 = vadd.f32 %v2030_v31, %v1116_v34  ;;  %v1967_v36 = vpop.f32.mrb[20].mxu0 }
 0x11f   :  { %v2031_v37 = vpop.f32.mrb[20].mxu1  ;;  %v1968_v38 = vpop.f32.mrb[21].mxu0 }
 0x120   :  { %v1969_v39 = vadd.f32 %v1968_v38, %v1967_v36  ;;  %v2032_v40 = vpop.f32.mrb[21].mxu1  ;;  %v1970_v41 = vpop.f32.mrb[22].mxu0 }
 0x121   :  { %v2033_v42 = vadd.f32 %v2032_v40, %v2031_v37  ;;  %v2034_v43 = vpop.f32.mrb[22].mxu1  ;;  %v1971_v44 = vpop.f32.mrb[23].mxu0 }
 0x122   :  { %v1121_v45 = vadd.f32 %v1969_v39, %v2936_v18  ;;  %v1972_v47 = vadd.f32 %v1971_v44, %v1970_v41  ;;  %v2035_v49 = vpop.f32.mrb[23].mxu1 }
 0x123   :  { %v2036_v50 = vadd.f32 %v2035_v49, %v2034_v43 }
 0x124   :  { %v2969_v51 = vadd.f32 %v2033_v42, %v1121_v45  ;;  %v1124_v52 = vadd.f32 %v1972_v47, %v2936_v18 }
 0x126   :  { %v2972_v53 = vadd.f32 %v2036_v50, %v1124_v52  ;;  %v1973_v54 = vpop.f32.mrb[24].mxu0 }
 0x127   :  { %v2037_v55 = vpop.f32.mrb[24].mxu1  ;;  %v1974_v56 = vpop.f32.mrb[25].mxu0 }
 0x128   :  { %v1975_v57 = vadd.f32 %v1974_v56, %v1973_v54  ;;  %v2038_v58 = vpop.f32.mrb[25].mxu1  ;;  %v1976_v59 = vpop.f32.mrb[26].mxu0 }
 0x129   :  { %v2039_v60 = vadd.f32 %v2038_v58, %v2037_v55  ;;  %v2040_v61 = vpop.f32.mrb[26].mxu1  ;;  %v1977_v63 = vpop.f32.mrb[27].mxu0 }
 0x12a   :  { %v1129_v1 = vadd.f32 %v1975_v57, %v2936_v18  ;;  %v1978_v2 = vadd.f32 %v1977_v63, %v1976_v59  ;;  %v2041_v3 = vpop.f32.mrb[27].mxu1 }
 0x12b   :  { %v2042_v4 = vadd.f32 %v2041_v3, %v2040_v61 }
 0x12c   :  { %v2975_v5 = vadd.f32 %v2039_v60, %v1129_v1  ;;  %v1132_v6 = vadd.f32 %v1978_v2, %v2936_v18 }
 0x12e   :  { %v2978_v7 = vadd.f32 %v2042_v4, %v1132_v6  ;;  %v1979_v8 = vpop.f32.mrb[28].mxu0 }
 0x12f   :  { %v2043_v9 = vpop.f32.mrb[28].mxu1  ;;  %v1980_v10 = vpop.f32.mrb[29].mxu0 }
 0x130   :  { %v1981_v11 = vadd.f32 %v1980_v10, %v1979_v8  ;;  %v2044_v12 = vpop.f32.mrb[29].mxu1  ;;  %v1982_v13 = vpop.f32.mrb[30].mxu0 }
 0x131   :  { %v2045_v15 = vadd.f32 %v2044_v12, %v2043_v9  ;;  %v2046_v17 = vpop.f32.mrb[30].mxu1  ;;  %v1983_v19 = vpop.f32.mrb[31].mxu0 }
 0x132   :  { %v1137_v20 = vadd.f32 %v1981_v11, %v2936_v18  ;;  %v1984_v21 = vadd.f32 %v1983_v19, %v1982_v13  ;;  %v2047_v22 = vpop.f32.mrb[31].mxu1 }
 0x133   :  { %v2048_v23 = vadd.f32 %v2047_v22, %v2046_v17 }
 0x134   :  { %v2981_v24 = vadd.f32 %v2045_v15, %v1137_v20  ;;  %v1140_v25 = vadd.f32 %v1984_v21, %v2936_v18 }
 0x136   :  { %v2984_v26 = vadd.f32 %v2048_v23, %v1140_v25  ;;  %v2065_v27 = vpop.f32.mrb[32].mxu0 }
 0x137   :  { %v2129_v28 = vpop.f32.mrb[32].mxu1  ;;  %v2066_v29 = vpop.f32.mrb[33].mxu0 }
 0x138   :  { %v2067_v31 = vadd.f32 %v2066_v29, %v2065_v27  ;;  %v2130_v34 = vpop.f32.mrb[33].mxu1  ;;  %v2068_v36 = vpop.f32.mrb[34].mxu0 }
 0x139   :  { %v2131_v37 = vadd.f32 %v2130_v34, %v2129_v28  ;;  %v2132_v38 = vpop.f32.mrb[34].mxu1  ;;  %v2069_v39 = vpop.f32.mrb[35].mxu0 }
 0x13a   :  { %v1275_v40 = vadd.f32 %v2067_v31, %v2939_v30  ;;  %v2070_v41 = vadd.f32 %v2069_v39, %v2068_v36  ;;  %v2133_v42 = vpop.f32.mrb[35].mxu1 }
 0x13b   :  { %v2134_v43 = vadd.f32 %v2133_v42, %v2132_v38 }
 0x13c   :  { %v1278_v44 = vadd.f32 %v2070_v41, %v2942_v32  ;;  %v2988_v45 = vadd.f32 %v2131_v37, %v1275_v40 }
 0x13e   :  { %v2071_v18 = vpop.f32.mrb[36].mxu0  ;;  %v2990_v47 = vadd.f32 %v2134_v43, %v1278_v44 }
 0x13f   :  { %v2135_v49 = vpop.f32.mrb[36].mxu1  ;;  %v2072_v50 = vpop.f32.mrb[37].mxu0 }
 0x140   :  { %v2073_v52 = vadd.f32 %v2072_v50, %v2071_v18  ;;  %v2136_v54 = vpop.f32.mrb[37].mxu1  ;;  %v2074_v55 = vpop.f32.mrb[38].mxu0 }
 0x141   :  { %v2137_v56 = vadd.f32 %v2136_v54, %v2135_v49  ;;  %v2138_v57 = vpop.f32.mrb[38].mxu1  ;;  %v2075_v58 = vpop.f32.mrb[39].mxu0 }
 0x142   :  { %v1283_v30 = vadd.f32 %v2073_v52, %v2945_v46  ;;  %v2076_v59 = vadd.f32 %v2075_v58, %v2074_v55  ;;  %v2139_v60 = vpop.f32.mrb[39].mxu1 }
 0x143   :  { %v2140_v61 = vadd.f32 %v2139_v60, %v2138_v57 }
 0x144   :  { %v1286_v32 = vadd.f32 %v2076_v59, %v2948_v48  ;;  %v2994_v63 = vadd.f32 %v2137_v56, %v1283_v30 }
 0x146   :  { %v2077_v1 = vpop.f32.mrb[40].mxu0  ;;  %v2996_v2 = vadd.f32 %v2140_v61, %v1286_v32 }
 0x147   :  { %v2141_v3 = vpop.f32.mrb[40].mxu1  ;;  %v2078_v4 = vpop.f32.mrb[41].mxu0 }
 0x148   :  { %v2079_v6 = vadd.f32 %v2078_v4, %v2077_v1  ;;  %v2142_v8 = vpop.f32.mrb[41].mxu1  ;;  %v2080_v9 = vpop.f32.mrb[42].mxu0 }
 0x149   :  { %v2143_v10 = vadd.f32 %v2142_v8, %v2141_v3  ;;  %v2144_v11 = vpop.f32.mrb[42].mxu1  ;;  %v2081_v12 = vpop.f32.mrb[43].mxu0 }
 0x14a   :  { %v1291_v46 = vadd.f32 %v2079_v6, %v2951_v62  ;;  %v2082_v13 = vadd.f32 %v2081_v12, %v2080_v9  ;;  %v2145_v15 = vpop.f32.mrb[43].mxu1 }
 0x14b   :  { %v2146_v17 = vadd.f32 %v2145_v15, %v2144_v11 }
 0x14c   :  { %v1294_v48 = vadd.f32 %v2082_v13, %v2954_v0  ;;  %v3000_v19 = vadd.f32 %v2143_v10, %v1291_v46 }
 0x14e   :  { %v2083_v20 = vpop.f32.mrb[44].mxu0  ;;  %v3002_v21 = vadd.f32 %v2146_v17, %v1294_v48 }
 0x14f   :  { %v2147_v22 = vpop.f32.mrb[44].mxu1  ;;  %v2084_v23 = vpop.f32.mrb[45].mxu0 }
 0x150   :  { %v2085_v25 = vadd.f32 %v2084_v23, %v2083_v20  ;;  %v2148_v27 = vpop.f32.mrb[45].mxu1  ;;  %v2086_v28 = vpop.f32.mrb[46].mxu0 }
 0x151   :  { %v2149_v29 = vadd.f32 %v2148_v27, %v2147_v22  ;;  %v2150_v31 = vpop.f32.mrb[46].mxu1  ;;  %v2087_v34 = vpop.f32.mrb[47].mxu0 }
 0x152   :  { %v1299_v62 = vadd.f32 %v2085_v25, %v2957_v14  ;;  %v2088_v36 = vadd.f32 %v2087_v34, %v2086_v28  ;;  %v2151_v37 = vpop.f32.mrb[47].mxu1 }
 0x153   :  { %v2152_v38 = vadd.f32 %v2151_v37, %v2150_v31 }
 0x154   :  { %v1302_v0 = vadd.f32 %v2088_v36, %v2960_v16  ;;  %v3006_v39 = vadd.f32 %v2149_v29, %v1299_v62 }
 0x156   :  { %v2089_v40 = vpop.f32.mrb[48].mxu0  ;;  %v3008_v41 = vadd.f32 %v2152_v38, %v1302_v0 }
 0x157   :  { %v2153_v42 = vpop.f32.mrb[48].mxu1  ;;  %v2090_v43 = vpop.f32.mrb[49].mxu0 }
 0x158   :  { %v2091_v44 = vadd.f32 %v2090_v43, %v2089_v40  ;;  %v2154_v18 = vpop.f32.mrb[49].mxu1  ;;  %v2092_v49 = vpop.f32.mrb[50].mxu0 }
 0x159   :  { %v2155_v50 = vadd.f32 %v2154_v18, %v2153_v42  ;;  %v2156_v52 = vpop.f32.mrb[50].mxu1  ;;  %v2093_v54 = vpop.f32.mrb[51].mxu0 }
 0x15a   :  { %v1307_v14 = vadd.f32 %v2091_v44, %v2963_v33  ;;  %v2094_v55 = vadd.f32 %v2093_v54, %v2092_v49  ;;  %v2157_v56 = vpop.f32.mrb[51].mxu1 }
 0x15b   :  { %v2158_v57 = vadd.f32 %v2157_v56, %v2156_v52 }
 0x15c   :  { %v1310_v16 = vadd.f32 %v2094_v55, %v2966_v35  ;;  %v1404_v58 = vadd.f32 %v2155_v50, %v1307_v14 }
 0x15e   :  { %v2095_v30 = vpop.f32.mrb[52].mxu0  ;;  %v3012_v59 = vadd.f32 %v2158_v57, %v1310_v16 }
 0x15f   :  { %v2159_v60 = vpop.f32.mrb[52].mxu1  ;;  %v2096_v61 = vpop.f32.mrb[53].mxu0 }
 0x160   :  { %v2097_v32 = vadd.f32 %v2096_v61, %v2095_v30  ;;  %v2160_v1 = vpop.f32.mrb[53].mxu1  ;;  %v2098_v3 = vpop.f32.mrb[54].mxu0 }
 0x161   :  { %v2161_v4 = vadd.f32 %v2160_v1, %v2159_v60  ;;  %v2162_v6 = vpop.f32.mrb[54].mxu1  ;;  %v2099_v8 = vpop.f32.mrb[55].mxu0 }
 0x162   :  { %v1315_v9 = vadd.f32 %v2097_v32, %v2969_v51  ;;  %v2100_v33 = vadd.f32 %v2099_v8, %v2098_v3  ;;  %v2163_v10 = vpop.f32.mrb[55].mxu1 }
 0x163   :  { %v2164_v11 = vadd.f32 %v2163_v10, %v2162_v6 }
 0x164   :  { %v1318_v12 = vadd.f32 %v2100_v33, %v2972_v53  ;;  %v1412_v35 = vadd.f32 %v2161_v4, %v1315_v9 }
 0x166   :  { %v2101_v46 = vpop.f32.mrb[56].mxu0  ;;  %v1415_v13 = vadd.f32 %v2164_v11, %v1318_v12 }
 0x167   :  { %v2165_v15 = vpop.f32.mrb[56].mxu1  ;;  %v2102_v17 = vpop.f32.mrb[57].mxu0 }
 0x168   :  { %v2103_v48 = vadd.f32 %v2102_v17, %v2101_v46  ;;  %v2166_v20 = vpop.f32.mrb[57].mxu1  ;;  %v2104_v22 = vpop.f32.mrb[58].mxu0 }
 0x169   :  { %v2167_v23 = vadd.f32 %v2166_v20, %v2165_v15  ;;  %v2168_v25 = vpop.f32.mrb[58].mxu1  ;;  %v2105_v27 = vpop.f32.mrb[59].mxu0 }
 0x16a   :  { %v1323_v28 = vadd.f32 %v2103_v48, %v2975_v5  ;;  %v2106_v29 = vadd.f32 %v2105_v27, %v2104_v22  ;;  %v2169_v51 = vpop.f32.mrb[59].mxu1 }
 0x16b   :  { %v2170_v31 = vadd.f32 %v2169_v51, %v2168_v25 }
 0x16c   :  { %v1326_v34 = vadd.f32 %v2106_v29, %v2978_v7  ;;  %v1420_v62 = vadd.f32 %v2167_v23, %v1323_v28 }
 0x16e   :  { %v2107_v53 = vpop.f32.mrb[60].mxu0  ;;  %v3018_v36 = vadd.f32 %v2170_v31, %v1326_v34 }
 0x16f   :  { %v2171_v37 = vpop.f32.mrb[60].mxu1  ;;  %v2108_v38 = vpop.f32.mrb[61].mxu0 }
 0x170   :  { %v2109_v0 = vadd.f32 %v2108_v38, %v2107_v53  ;;  %v2172_v40 = vpop.f32.mrb[61].mxu1  ;;  %v2110_v42 = vpop.f32.mrb[62].mxu0 }
 0x171   :  { %v2173_v43 = vadd.f32 %v2172_v40, %v2171_v37  ;;  %v2174_v44 = vpop.f32.mrb[62].mxu1  ;;  %v2111_v18 = vpop.f32.mrb[63].mxu0 }
 0x172   :  { %v1331_v49 = vadd.f32 %v2109_v0, %v2981_v24  ;;  %v2112_v5 = vadd.f32 %v2111_v18, %v2110_v42  ;;  %v2175_v50 = vpop.f32.mrb[63].mxu1 }
 0x173   :  { %v2176_v52 = vadd.f32 %v2175_v50, %v2174_v44 }
 0x174   :  { %v1334_v54 = vadd.f32 %v2112_v5, %v2984_v26  ;;  %v1428_v7 = vadd.f32 %v2173_v43, %v1331_v49 }
 0x176   :  { %v2211_v14 = vpop.f32.mrb[64].mxu0  ;;  %v1431_v55 = vadd.f32 %v2176_v52, %v1334_v54 }
 0x177   :  { %v3023_v56 = vadd.f32 %v2211_v14, %v2994_v63  ;;  %v2219_v57 = vpop.f32.mrb[64].mxu1  ;;  %v1468_v16 = vpop.f32.mrb[65].mxu0 }
 0x178   :  { %v3025_v30 = vadd.f32 %v2219_v57, %v1412_v35  ;;  %v3028_v60 = vadd.f32 %v1468_v16, %v2988_v45  ;;  %v1500_v61 = vpop.f32.mrb[65].mxu1  ;;  %v2212_v24 = vpop.f32.mrb[66].mxu0 }
 0x179   :  { %v1875_v32 = vmul.f32 -1.442695, %v3023_v56  ;;  %v3031_v1 = vadd.f32 %v1500_v61, %v1404_v58  ;;  %v3034_v26 = vadd.f32 %v2212_v24, %v2996_v2  ;;  %v2220_v3 = vpop.f32.mrb[66].mxu1  ;;  %v1471_v4 = vpop.f32.mrb[67].mxu0 }
 0x17a   :  { %v1883_v63 = vmul.f32 -1.442695, %v3025_v30  ;;  %v1873_v6 = vmul.f32 -1.442695, %v3028_v60  ;;  %v3038_v8 = vadd.f32 %v2220_v3, %v1415_v13  ;;  %v3041_v45 = vadd.f32 %v1471_v4, %v2990_v47  ;;  %v1503_v9 = vpop.f32.mrb[67].mxu1 }
 0x17b   :  { %2417 = vpow2.f32 %v1875_v32  ;;  %v1881_v33 = vmul.f32 -1.442695, %v3031_v1  ;;  %v1876_v58 = vmul.f32 -1.442695, %v3034_v26  ;;  %v3046_v2 = vadd.f32 %v1503_v9, %v3012_v59 }
 0x17c   :  { %2419 = vpow2.f32 %v1883_v63  ;;  %v1884_v10 = vmul.f32 -1.442695, %v3038_v8  ;;  %v1874_v11 = vmul.f32 -1.442695, %v3041_v45 }
 0x17d   :  { %2421 = vpow2.f32 %v1873_v6  ;;  %v1882_v12 = vmul.f32 -1.442695, %v3046_v2 }
 0x17e   :  { %2423 = vpow2.f32 %v1881_v33  ;;  %v2215_v47 = vpop.f32.mrb[68].mxu0 }
 0x17f   :  { %2425 = vpow2.f32 %v1876_v58  ;;  %v3052_v35 = vadd.f32 %v2215_v47, %v3006_v39  ;;  %v2223_v46 = vpop.f32.mrb[68].mxu1  ;;  %v1484_v13 = vpop.f32.mrb[69].mxu0 }
 0x180   :  { %2427 = vpow2.f32 %v1884_v10  ;;  %v3054_v15 = vadd.f32 %v2223_v46, %v1428_v7  ;;  %v3057_v59 = vadd.f32 %v1484_v13, %v3000_v19  ;;  %v1516_v17 = vpop.f32.mrb[69].mxu1  ;;  %v2216_v48 = vpop.f32.mrb[70].mxu0 }
 0x181   :  { %2429 = vpow2.f32 %v1874_v11  ;;  %v1879_v20 = vmul.f32 -1.442695, %v3052_v35  ;;  %v3060_v22 = vadd.f32 %v1516_v17, %v1420_v62  ;;  %v3063_v23 = vadd.f32 %v2216_v48, %v3008_v41  ;;  %v2224_v39 = vpop.f32.mrb[70].mxu1  ;;  %v1487_v25 = vpop.f32.mrb[71].mxu0 }
 0x182   :  { %2431 = vpow2.f32 %v1882_v12  ;;  %v1887_v27 = vmul.f32 -1.442695, %v3054_v15  ;;  %v1877_v28 = vmul.f32 -1.442695, %v3057_v59  ;;  %v3067_v29 = vadd.f32 %v2224_v39, %v1431_v55  ;;  %v1519_v19 = vpop.f32.mrb[71].mxu1 }
 0x183   :  { %2433 = vpow2.f32 %v1879_v20  ;;  %v1885_v51 = vmul.f32 -1.442695, %v3060_v22  ;;  %v1880_v31 = vmul.f32 -1.442695, %v3063_v23  ;;  %v3072_v34 = vadd.f32 %v1487_v25, %v3002_v21 }
 0x184   :  { %2435 = vpow2.f32 %v1887_v27  ;;  %v3075_v41 = vadd.f32 %v1519_v19, %v3018_v36  ;;  %v1888_v3 = vmul.f32 -1.442695, %v3067_v29 }
 0x185   :  { %v2418_v62 = vpop.eup %2417  ;;  %2437 = vpow2.f32 %v1877_v28  ;;  %v1878_v6 = vmul.f32 -1.442695, %v3072_v34 }
 0x186   :  { %v2420_v53 = vpop.eup %2419  ;;  %v1581_v37 = vadd.f32 1.0, %v2418_v62  ;;  %2439 = vpow2.f32 %v1885_v51  ;;  %v1886_v58 = vmul.f32 -1.442695, %v3075_v41 }
 0x187   :  { %v2422_v38 = vpop.eup %2421  ;;  %v1589_v0 = vadd.f32 1.0, %v2420_v53  ;;  %2441 = vpow2.f32 %v1880_v31 }
 0x188   :  { %v2424_v40 = vpop.eup %2423  ;;  %2443 = vrcp.f32 %v1581_v37  ;;  %v1579_v42 = vadd.f32 1.0, %v2422_v38 }
 0x189   :  { %v2426_v43 = vpop.eup %2425  ;;  %2445 = vrcp.f32 %v1589_v0  ;;  %v1587_v44 = vadd.f32 1.0, %v2424_v40 }
 0x18a   :  { %v2428_v21 = vpop.eup %2427  ;;  %2447 = vrcp.f32 %v1579_v42  ;;  %v1582_v18 = vadd.f32 1.0, %v2426_v43 }
 0x18b   :  { %v2430_v49 = vpop.eup %2429  ;;  %2449 = vrcp.f32 %v1587_v44  ;;  %v1590_v36 = vadd.f32 1.0, %v2428_v21 }
 0x18c   :  { %v2432_v5 = vpop.eup %2431  ;;  %2451 = vrcp.f32 %v1582_v18  ;;  %v1580_v50 = vadd.f32 1.0, %v2430_v49 }
 0x18d   :  { %v2434_v52 = vpop.eup %2433  ;;  %2453 = vrcp.f32 %v1590_v36  ;;  %v1588_v54 = vadd.f32 1.0, %v2432_v5 }
 0x18e   :  { %v2436_v7 = vpop.eup %2435  ;;  %2455 = vrcp.f32 %v1580_v50  ;;  %v1585_v14 = vadd.f32 1.0, %v2434_v52 }
 0x18f   :  { %v2438_v55 = vpop.eup %2437  ;;  %2457 = vrcp.f32 %v1588_v54  ;;  %v1593_v57 = vadd.f32 1.0, %v2436_v7 }
 0x190   :  { %v2440_v16 = vpop.eup %2439  ;;  %2459 = vrcp.f32 %v1585_v14  ;;  %v1583_v61 = vadd.f32 1.0, %v2438_v55 }
 0x191   :  { %v2442_v24 = vpop.eup %2441  ;;  %2461 = vrcp.f32 %v1593_v57  ;;  %v1591_v32 = vadd.f32 1.0, %v2440_v16 }
 0x192   :  { %v2444_v4 = vpop.eup %2443  ;;  %2463 = vrcp.f32 %v1583_v61  ;;  %v1586_v63 = vadd.f32 1.0, %v2442_v24 }
 0x193   :  { %v2446_v9 = vpop.eup %2445  ;;  %v1629_v33 = vmul.f32 %v2444_v4, %v3023_v56  ;;  %2465 = vrcp.f32 %v1591_v32 }
 0x194   :  { %v2448_v10 = vpop.eup %2447  ;;  %v1637_v11 = vmul.f32 %v2446_v9, %v3025_v30  ;;  %2467 = vrcp.f32 %v1586_v63 }
 0x195   :  { %v2450_v12 = vpop.eup %2449  ;;  %v1907_v47 = vpack.c.bf16 %v1629_v33, %v1629_v33  ;;  %v1627_v46 = vmul.f32 %v2448_v10, %v3028_v60  ;;  %2469 = vpow2.f32 %v1888_v3 }
 0x196   :  { %v2452_v13 = vpop.eup %2451  ;;  %v1915_v17 = vpack.c.bf16 %v1637_v11, %v1637_v11  ;;  %v1635_v48 = vmul.f32 %v2450_v12, %v3031_v1  ;;  %2471 = vpow2.f32 %v1878_v6 }
 0x197   :  { %v2454_v20 = vpop.eup %2453  ;;  %1710 = vst.msk [vmem:[%s3163_s3 + $0x8] sm:$0xf] %vm1707_vm0, %v1907_v47  ;;  %v1905_v56 = vpack.c.bf16 %v1627_v46, %v1627_v46  ;;  %v1630_v30 = vmul.f32 %v2452_v13, %v3034_v26  ;;  %2473 = vpow2.f32 %v1886_v58 }
 0x198   :  { %v2456_v39 = vpop.eup %2455  ;;  %1718 = vst.msk [vmem:[%s3163_s3 + $0x28] sm:$0xf] %vm1707_vm0, %v1915_v17  ;;  %v1913_v60 = vpack.c.bf16 %v1635_v48, %v1635_v48  ;;  %v1638_v1 = vmul.f32 %v2454_v20, %v3038_v8 }
 0x199   :  { %v2458_v25 = vpop.eup %2457  ;;  %1708 = vst.msk [vmem:[%s3163_s3] sm:$0xf] %vm1707_vm0, %v1905_v56  ;;  %v1908_v27 = vpack.c.bf16 %v1630_v30, %v1630_v30  ;;  %v1628_v28 = vmul.f32 %v2456_v39, %v3041_v45 }
 0x19a   :  { %v2460_v26 = vpop.eup %2459  ;;  %1716 = vst.msk [vmem:[%s3163_s3 + $0x20] sm:$0xf] %vm1707_vm0, %v1913_v60  ;;  %v1916_v19 = vpack.c.bf16 %v1638_v1, %v1638_v1  ;;  %v1636_v51 = vmul.f32 %v2458_v25, %v3046_v2 }
 0x19b   :  { %v2462_v31 = vpop.eup %2461  ;;  %1711 = vst.msk [vmem:[%s3163_s3 + $0xc] sm:$0xf] %vm1707_vm0, %v1908_v27  ;;  %v1906_v8 = vpack.c.bf16 %v1628_v28, %v1628_v28  ;;  %v1633_v62 = vmul.f32 %v2460_v26, %v3052_v35 }
 0x19c   :  { %v2464_v53 = vpop.eup %2463  ;;  %1719 = vst.msk [vmem:[%s3163_s3 + $0x2c] sm:$0xf] %vm1707_vm0, %v1916_v19  ;;  %v1914_v45 = vpack.c.bf16 %v1636_v51, %v1636_v51  ;;  %v1641_v37 = vmul.f32 %v2462_v31, %v3054_v15 }
 0x19d   :  { %v2466_v38 = vpop.eup %2465  ;;  %1709 = vst.msk [vmem:[%s3163_s3 + $0x4] sm:$0xf] %vm1707_vm0, %v1906_v8  ;;  %v1911_v2 = vpack.c.bf16 %v1633_v62, %v1633_v62  ;;  %v1631_v0 = vmul.f32 %v2464_v53, %v3057_v59 }
 0x19e   :  { %v2468_v40 = vpop.eup %2467  ;;  %1717 = vst.msk [vmem:[%s3163_s3 + $0x24] sm:$0xf] %vm1707_vm0, %v1914_v45  ;;  %v1919_v35 = vpack.c.bf16 %v1641_v37, %v1641_v37  ;;  %v1639_v42 = vmul.f32 %v2466_v38, %v3060_v22 }
 0x19f   :  { %v2470_v43 = vpop.eup %2469  ;;  %1714 = vst.msk [vmem:[%s3163_s3 + $0x18] sm:$0xf] %vm1707_vm0, %v1911_v2  ;;  %v1909_v15 = vpack.c.bf16 %v1631_v0, %v1631_v0  ;;  %v1634_v44 = vmul.f32 %v2468_v40, %v3063_v23 }
 0x1a0   :  { %v2472_v21 = vpop.eup %2471  ;;  %1722 = vst.msk [vmem:[%s3163_s3 + $0x38] sm:$0xf] %vm1707_vm0, %v1919_v35  ;;  %v1917_v59 = vpack.c.bf16 %v1639_v42, %v1639_v42  ;;  %v1594_v18 = vadd.f32 1.0, %v2470_v43 }
 0x1a1   :  { %v2474_v49 = vpop.eup %2473  ;;  %1712 = vst.msk [vmem:[%s3163_s3 + $0x10] sm:$0xf] %vm1707_vm0, %v1909_v15  ;;  %v1912_v22 = vpack.c.bf16 %v1634_v44, %v1634_v44  ;;  %v1584_v36 = vadd.f32 1.0, %v2472_v21 }
 0x1a2   :  { %1720 = vst.msk [vmem:[%s3163_s3 + $0x30] sm:$0xf] %vm1707_vm0, %v1917_v59  ;;  %2475 = vrcp.f32 %v1594_v18  ;;  %v1592_v23 = vadd.f32 1.0, %v2474_v49 }
 0x1a3   :  { %1715 = vst.msk [vmem:[%s3163_s3 + $0x1c] sm:$0xf] %vm1707_vm0, %v1912_v22  ;;  %2477 = vrcp.f32 %v1584_v36 }
 0x1a4   :  { %2479 = vrcp.f32 %v1592_v23 }
 0x1ac   :  { %v2476_v5 = vpop.eup %2475 }
 0x1ad   :  { %v2478_v50 = vpop.eup %2477  ;;  %v1642_v52 = vmul.f32 %v2476_v5, %v3067_v29 }
 0x1ae   :  { %v2480_v54 = vpop.eup %2479  ;;  %v1632_v7 = vmul.f32 %v2478_v50, %v3072_v34 }
 0x1af   :  { %v1920_v14 = vpack.c.bf16 %v1642_v52, %v1642_v52  ;;  %v1640_v55 = vmul.f32 %v2480_v54, %v3075_v41 }
 0x1b0   :  { %v1910_v57 = vpack.c.bf16 %v1632_v7, %v1632_v7 }
 0x1b1   :  { %1723 = vst.msk [vmem:[%s3163_s3 + $0x3c] sm:$0xf] %vm1707_vm0, %v1920_v14  ;;  %v1918_v16 = vpack.c.bf16 %v1640_v55, %v1640_v55 }
 0x1b2   :  { %1713 = vst.msk [vmem:[%s3163_s3 + $0x14] sm:$0xf] %vm1707_vm0, %v1910_v57 }
 0x1b3   :  { %1721 = vst.msk [vmem:[%s3163_s3 + $0x34] sm:$0xf] %vm1707_vm0, %v1918_v16 }

// kernel: yolox_forward.42
= control target key start
LH: loop header
LB: loop body
LE: loop exit
PB: predicated region body
PF: predicated region fallthrough
CT: control target
= control target key end

     0   :  { %vm1136_vm0 = vmmov 0   ;;  %s1394_s1 = inlined_call_operand.vmem [shape: bf16[1152,128], index: 1, kind: input, shape index: {}]   ;;  %s1395_s0 = inlined_call_operand.vmem [shape: bf16[8,1152], index: 0, kind: input, shape index: {}]   ;;  %s1396_s2 = inlined_call_operand.vmem [shape: f32[1,128], index: 2, kind: input, shape index: {}]   ;;  %s1397_s3 = inlined_call_operand.vmem [shape: bf16[8,128], index: 3, kind: output, shape index: {}]  }
   0x1   :  { %v1050_v0 = vld [vmem:[%s1394_s1 + $0x40] sm:$0xff]   ;;  %v1054_v4 = vld [vmem:[%s1394_s1 + $0x48] sm:$0xff]   ;;  %v1058_v8 = vld [vmem:[%s1394_s1 + $0x50] sm:$0xff]  }
   0x2   :  { %v1051_v1 = vld [vmem:[%s1394_s1] sm:$0xff]   ;;  %931 = vmatprep.subr.bf16.mxu0 %v1050_v0  ;;  %v1055_v5 = vld [vmem:[%s1394_s1 + $0x8] sm:$0xff]   ;;  %v1059_v9 = vld [vmem:[%s1394_s1 + $0x10] sm:$0xff]  }
   0x3   :  { %v1052_v2 = vld [vmem:[%s1394_s1 + $0xc0] sm:$0xff]   ;;  %932 = vmatpush3.bf16.msra.mxu0 %v1051_v1  ;;  %v1056_v6 = vld [vmem:[%s1394_s1 + $0xc8] sm:$0xff]   ;;  %v1060_v10 = vld [vmem:[%s1394_s1 + $0xd0] sm:$0xff]  }
   0x4   :  { %v1053_v3 = vld [vmem:[%s1394_s1 + $0x80] sm:$0xff]   ;;  %953 = vmatprep.subr.bf16.mxu1 %v1052_v2  ;;  %933 = vmatprep.subr.bf16.mxu0 %v1054_v4  ;;  %v1057_v7 = vld [vmem:[%s1394_s1 + $0x88] sm:$0xff]   ;;  %v1061_v11 = vld [vmem:[%s1394_s1 + $0x90] sm:$0xff]  }
   0x5   :  { %954 = vmatpush3.bf16.msra.mxu1 %v1053_v3  ;;  %v1062_v12 = vld [vmem:[%s1394_s1 + $0x58] sm:$0xff]   ;;  %v1066_v16 = vld [vmem:[%s1394_s1 + $0x60] sm:$0xff]   ;;  %v1070_v20 = vld [vmem:[%s1394_s1 + $0x68] sm:$0xff]  }
   0x6   :  { %955 = vmatprep.subr.bf16.mxu1 %v1056_v6  ;;  %v1063_v13 = vld [vmem:[%s1394_s1 + $0x18] sm:$0xff]   ;;  %v1067_v17 = vld [vmem:[%s1394_s1 + $0x20] sm:$0xff]   ;;  %v1071_v21 = vld [vmem:[%s1394_s1 + $0x28] sm:$0xff]  }
   0x7   :  { %934 = vmatpush3.bf16.msra.mxu0 %v1055_v5  ;;  %v1064_v14 = vld [vmem:[%s1394_s1 + $0xd8] sm:$0xff]   ;;  %v1068_v18 = vld [vmem:[%s1394_s1 + $0xe0] sm:$0xff]   ;;  %v1072_v22 = vld [vmem:[%s1394_s1 + $0xe8] sm:$0xff]  }
   0x8   :  { %935 = vmatprep.subr.bf16.mxu0 %v1058_v8  ;;  %v1065_v15 = vld [vmem:[%s1394_s1 + $0x98] sm:$0xff]   ;;  %v1069_v19 = vld [vmem:[%s1394_s1 + $0xa0] sm:$0xff]   ;;  %v1073_v23 = vld [vmem:[%s1394_s1 + $0xa8] sm:$0xff]  }
   0x9   :  { %956 = vmatpush3.bf16.msra.mxu1 %v1057_v7  ;;  %v1074_v24 = vld [vmem:[%s1394_s1 + $0x70] sm:$0xff]   ;;  %v1078_v28 = vld [vmem:[%s1394_s1 + $0x78] sm:$0xff]   ;;  %v15_v31 = vld [vmem:[%s1395_s0] sm:$0xff] }
   0xa   :  { %957 = vmatprep.subr.bf16.mxu1 %v1060_v10  ;;  %v1075_v25 = vld [vmem:[%s1394_s1 + $0x30] sm:$0xff]   ;;  %v1079_v29 = vld [vmem:[%s1394_s1 + $0x38] sm:$0xff]   ;;  %v849_v32 = vcombine.low %v15_v31, %v15_v31  ;;  %v850_v33 = vcombine.high %v15_v31, %v15_v31  ;;  %v1084_v35 = vld [vmem:[%s1394_s1 + $0x140] sm:$0xff]  }
   0xb   :  { %936 = vmatpush3.bf16.msra.mxu0 %v1059_v9  ;;  %v1076_v26 = vld [vmem:[%s1394_s1 + $0xf0] sm:$0xff]   ;;  %v1080_v30 = vld [vmem:[%s1394_s1 + $0xf8] sm:$0xff]   ;;  %v16_v36 = vld [vmem:[%s1395_s0 + $0x8] sm:$0xff]  ;;  %v1135_v9 = vmov 0.0  }
   0xc   :  { %937 = vmatprep.subr.bf16.mxu0 %v1062_v12  ;;  %v1077_v27 = vld [vmem:[%s1394_s1 + $0xb0] sm:$0xff]   ;;  %v1083_v34 = vld [vmem:[%s1394_s1 + $0xb8] sm:$0xff]   ;;  %667 = vmatprep.mubr.bf16.mxu0 %v850_v33  ;;  %v851_v37 = vcombine.low %v16_v36, %v16_v36  ;;  %v852_v38 = vcombine.high %v16_v36, %v16_v36  ;;  %v1087_v39 = vld [vmem:[%s1394_s1 + $0x100] sm:$0xff]  }
   0xd   :  { %958 = vmatpush3.bf16.msra.mxu1 %v1061_v11  ;;  %v1088_v40 = vld [vmem:[%s1394_s1 + $0x1c0] sm:$0xff]   ;;  %v1090_v42 = vld [vmem:[%s1394_s1 + $0x148] sm:$0xff]   ;;  %v1094_v46 = vld [vmem:[%s1394_s1 + $0x150] sm:$0xff]  }
   0xe   :  { %959 = vmatprep.subr.bf16.mxu1 %v1064_v14  ;;  %707 = vmatprep.mubr.bf16.mxu1 %v852_v38  ;;  %v1089_v41 = vld [vmem:[%s1394_s1 + $0x180] sm:$0xff]   ;;  %v1091_v43 = vld [vmem:[%s1394_s1 + $0x108] sm:$0xff]   ;;  %v1095_v47 = vld [vmem:[%s1394_s1 + $0x110] sm:$0xff]  }
   0xf   :  { %938 = vmatpush3.bf16.msra.mxu0 %v1063_v13  ;;  %v1092_v44 = vld [vmem:[%s1394_s1 + $0x1c8] sm:$0xff]   ;;  %v1096_v48 = vld [vmem:[%s1394_s1 + $0x1d0] sm:$0xff]   ;;  %v1098_v50 = vld [vmem:[%s1394_s1 + $0x158] sm:$0xff]  }
  0x10   :  { %939 = vmatprep.subr.bf16.mxu0 %v1066_v16  ;;  %v1093_v45 = vld [vmem:[%s1394_s1 + $0x188] sm:$0xff]   ;;  %v1097_v49 = vld [vmem:[%s1394_s1 + $0x190] sm:$0xff]   ;;  %v1099_v51 = vld [vmem:[%s1394_s1 + $0x118] sm:$0xff]  }
  0x11   :  { %960 = vmatpush3.bf16.msra.mxu1 %v1065_v15  ;;  %v1100_v52 = vld [vmem:[%s1394_s1 + $0x1d8] sm:$0xff]   ;;  %v1102_v54 = vld [vmem:[%s1394_s1 + $0x160] sm:$0xff]   ;;  %v1106_v58 = vld [vmem:[%s1394_s1 + $0x168] sm:$0xff]  }
  0x12   :  { %961 = vmatprep.subr.bf16.mxu1 %v1068_v18  ;;  %v1101_v53 = vld [vmem:[%s1394_s1 + $0x198] sm:$0xff]   ;;  %v1103_v55 = vld [vmem:[%s1394_s1 + $0x120] sm:$0xff]   ;;  %v1107_v59 = vld [vmem:[%s1394_s1 + $0x128] sm:$0xff]  }
  0x13   :  { %940 = vmatpush3.bf16.msra.mxu0 %v1067_v17  ;;  %v1104_v56 = vld [vmem:[%s1394_s1 + $0x1e0] sm:$0xff]   ;;  %v1108_v60 = vld [vmem:[%s1394_s1 + $0x1e8] sm:$0xff]   ;;  %v1110_v62 = vld [vmem:[%s1394_s1 + $0x170] sm:$0xff]  }
  0x14   :  { %941 = vmatprep.subr.bf16.mxu0 %v1070_v20  ;;  %v1105_v57 = vld [vmem:[%s1394_s1 + $0x1a0] sm:$0xff]   ;;  %v1109_v61 = vld [vmem:[%s1394_s1 + $0x1a8] sm:$0xff]   ;;  %v1111_v63 = vld [vmem:[%s1394_s1 + $0x130] sm:$0xff]  }
  0x15   :  { %962 = vmatpush3.bf16.msra.mxu1 %v1069_v19  ;;  %v1112_v0 = vld [vmem:[%s1394_s1 + $0x1f0] sm:$0xff]   ;;  %v1114_v2 = vld [vmem:[%s1394_s1 + $0x178] sm:$0xff]   ;;  %v1122_v13 = vld [vmem:[%s1394_s1 + $0x200] sm:$0xff]  }
  0x16   :  { %963 = vmatprep.subr.bf16.mxu1 %v1072_v22  ;;  %v1113_v1 = vld [vmem:[%s1394_s1 + $0x1b0] sm:$0xff]   ;;  %v1115_v3 = vld [vmem:[%s1394_s1 + $0x138] sm:$0xff]   ;;  %v1123_v14 = vld [vmem:[%s1394_s1 + $0x208] sm:$0xff]  }
  0x17   :  { %942 = vmatpush3.bf16.msra.mxu0 %v1071_v21  ;;  %v1116_v4 = vld [vmem:[%s1394_s1 + $0x1f8] sm:$0xff]   ;;  %v17_v5 = vld [vmem:[%s1395_s0 + $0x10] sm:$0xff]  ;;  %v1126_v17 = vld [vmem:[%s1394_s1 + $0x220] sm:$0xff]  }
  0x18   :  { %943 = vmatprep.subr.bf16.mxu0 %v1074_v24  ;;  %v853_v6 = vcombine.low %v17_v5, %v17_v5  ;;  %v854_v7 = vcombine.high %v17_v5, %v17_v5  ;;  %v1119_v8 = vld [vmem:[%s1394_s1 + $0x1b8] sm:$0xff]   ;;  %v1124_v15 = vld [vmem:[%s1394_s1 + $0x210] sm:$0xff]   ;;  %v1127_v18 = vld [vmem:[%s1394_s1 + $0x228] sm:$0xff]  }
  0x19   :  { %964 = vmatpush3.bf16.msra.mxu1 %v1073_v23  ;;  %v18_v10 = vld [vmem:[%s1395_s0 + $0x18] sm:$0xff]  ;;  %v1128_v19 = vld [vmem:[%s1394_s1 + $0x230] sm:$0xff]   ;;  %v1130_v21 = vld [vmem:[%s1395_s0 + $0x20] ss:$0 sps:$4 sm:$0xff]  }
  0x1a   :  { %965 = vmatprep.subr.bf16.mxu1 %v1076_v26  ;;  %v855_v11 = vcombine.low %v18_v10, %v18_v10  ;;  %v856_v12 = vcombine.high %v18_v10, %v18_v10  ;;  %v1125_v16 = vld [vmem:[%s1394_s1 + $0x218] sm:$0xff]   ;;  %v848_v23 = vld [vmem:[%s1396_s2] ss:$0 sm:$0xff] }
  0x1b   :  { %944 = vmatpush3.bf16.msra.mxu0 %v1075_v25  ;;  %v1129_v20 = vld [vmem:[%s1394_s1 + $0x238] sm:$0xff]  }
  0x1c   :  { %945 = vmatprep.subr.bf16.mxu0 %v1078_v28 }
  0x1d   :  { %966 = vmatpush3.bf16.msra.mxu1 %v1077_v27 }
  0x1e   :  { %967 = vmatprep.subr.bf16.mxu1 %v1080_v30 }
  0x1f   :  { %946 = vmatpush3.bf16.msra.mxu0 %v1079_v29 }
  0x20   :  { %975 = vmatprep.subr.bf16.mxu0 %v1084_v35 }
  0x21   :  { %968 = vmatpush3.bf16.msra.mxu1 %v1083_v34 }
  0x22   :  { %668 = vmatmul.mubr.bf16.vlgmr.msra.gmra.mrb[0].mxu0 %v849_v32  ;;  %997 = vmatprep.subr.bf16.mxu1 %v1088_v40 }
  0x23   :  { %976 = vmatpush3.bf16.msra.mxu0 %v1087_v39  ;;  %747 = vmatprep.mubr.bf16.mxu0 %v854_v7 }
  0x24   :  { %708 = vmatmul.mubr.bf16.vlgmr.msra.gmra.mrb[0].mxu1 %v851_v37  ;;  %977 = vmatprep.subr.bf16.mxu0 %v1090_v42 }
  0x25   :  { %998 = vmatpush3.bf16.msra.mxu1 %v1089_v41  ;;  %787 = vmatprep.mubr.bf16.mxu1 %v856_v12 }
  0x26   :  { %999 = vmatprep.subr.bf16.mxu1 %v1092_v44 }
  0x27   :  { %978 = vmatpush3.bf16.msra.mxu0 %v1091_v43 }
  0x28   :  { %979 = vmatprep.subr.bf16.mxu0 %v1094_v46 }
  0x29   :  { %1000 = vmatpush3.bf16.msra.mxu1 %v1093_v45 }
  0x2a   :  { %1001 = vmatprep.subr.bf16.mxu1 %v1096_v48 }
  0x2b   :  { %980 = vmatpush3.bf16.msra.mxu0 %v1095_v47 }
  0x2c   :  { %981 = vmatprep.subr.bf16.mxu0 %v1098_v50 }
  0x2d   :  { %1002 = vmatpush3.bf16.msra.mxu1 %v1097_v49 }
  0x2e   :  { %1003 = vmatprep.subr.bf16.mxu1 %v1100_v52 }
  0x2f   :  { %982 = vmatpush3.bf16.msra.mxu0 %v1099_v51 }
  0x30   :  { %983 = vmatprep.subr.bf16.mxu0 %v1102_v54 }
  0x31   :  { %1004 = vmatpush3.bf16.msra.mxu1 %v1101_v53 }
  0x32   :  { %1005 = vmatprep.subr.bf16.mxu1 %v1104_v56 }
  0x33   :  { %984 = vmatpush3.bf16.msra.mxu0 %v1103_v55 }
  0x34   :  { %985 = vmatprep.subr.bf16.mxu0 %v1106_v58 }
  0x35   :  { %1006 = vmatpush3.bf16.msra.mxu1 %v1105_v57 }
  0x36   :  { %1007 = vmatprep.subr.bf16.mxu1 %v1108_v60 }
  0x37   :  { %986 = vmatpush3.bf16.msra.mxu0 %v1107_v59 }
  0x38   :  { %987 = vmatprep.subr.bf16.mxu0 %v1110_v62 }
  0x39   :  { %1008 = vmatpush3.bf16.msra.mxu1 %v1109_v61 }
  0x3a   :  { %1009 = vmatprep.subr.bf16.mxu1 %v1112_v0 }
  0x3b   :  { %988 = vmatpush3.bf16.msra.mxu0 %v1111_v63 }
  0x3c   :  { %989 = vmatprep.subr.bf16.mxu0 %v1114_v2 }
  0x3d   :  { %1010 = vmatpush3.bf16.msra.mxu1 %v1113_v1 }
  0x3e   :  { %1011 = vmatprep.subr.bf16.mxu1 %v1116_v4 }
  0x3f   :  { %990 = vmatpush3.bf16.msra.mxu0 %v1115_v3 }
  0x40   :  { %1028 = vmatprep.subr.bf16.mxu0 %v1135_v9 }
  0x41   :  { %1012 = vmatpush3.bf16.msra.mxu1 %v1119_v8 }
  0x42   :  { %748 = vmatmul.mubr.bf16.vlgmr.msra.gmra.mrb[4].mxu0 %v853_v6 }
  0x43   :  { %1029 = vmatpush3.bf16.msra.mxu0 %v1122_v13  ;;  %1044 = vmatprep.mubr.msk.bf16.mxu0 %vm1136_vm0, %v1135_v9 }
  0x44   :  { %788 = vmatmul.mubr.bf16.vlgmr.msra.gmra.mrb[4].mxu1 %v855_v11  ;;  %1030 = vmatprep.subr.bf16.mxu0 %v1135_v9 }
  0x47   :  { %1031 = vmatpush3.bf16.msra.mxu0 %v1123_v14 }
  0x48   :  { %1032 = vmatprep.subr.bf16.mxu0 %v1135_v9 }
  0x4b   :  { %1033 = vmatpush3.bf16.msra.mxu0 %v1124_v15 }
  0x4c   :  { %1034 = vmatprep.subr.bf16.mxu0 %v1135_v9 }
  0x4f   :  { %1035 = vmatpush3.bf16.msra.mxu0 %v1125_v16 }
  0x50   :  { %1036 = vmatprep.subr.bf16.mxu0 %v1135_v9 }
  0x53   :  { %1037 = vmatpush3.bf16.msra.mxu0 %v1126_v17 }
  0x54   :  { %1038 = vmatprep.subr.bf16.mxu0 %v1135_v9 }
  0x57   :  { %1039 = vmatpush3.bf16.msra.mxu0 %v1127_v18 }
  0x58   :  { %1040 = vmatprep.subr.bf16.mxu0 %v1135_v9 }
  0x5b   :  { %1041 = vmatpush3.bf16.msra.mxu0 %v1128_v19 }
  0x5c   :  { %1042 = vmatprep.subr.bf16.mxu0 %v1135_v9 }
  0x5f   :  { %1043 = vmatpush3.bf16.msra.mxu0 %v1129_v20 }
  0x62   :  { %1045 = vmatmul.mubr.bf16.vlgmr.msra.gmra.mrb[8].mxu0 %v1130_v21 }
  0xf5   :  { %v947_v22 = vpop.f32.mrb[0].mxu0 }
  0xf6   :  { %v948_v24 = vpop.f32.mrb[1].mxu0 }
  0xf7   :  { %v949_v25 = vadd.f32 %v948_v24, %v947_v22  ;;  %v950_v26 = vpop.f32.mrb[2].mxu0  ;;  %v969_v27 = vpop.f32.mrb[0].mxu1 }
  0xf8   :  { %v951_v28 = vpop.f32.mrb[3].mxu0  ;;  %v970_v29 = vpop.f32.mrb[1].mxu1 }
  0xf9   :  { %v670_v30 = vadd.f32 %v949_v25, %v848_v23  ;;  %v971_v31 = vadd.f32 %v970_v29, %v969_v27  ;;  %v972_v32 = vpop.f32.mrb[2].mxu1 }
  0xfa   :  { %v973_v33 = vpop.f32.mrb[3].mxu1 }
  0xfb   :  { %v710_v34 = vadd.f32 %v971_v31, %v670_v30 }
 0x115   :  { %v991_v35 = vpop.f32.mrb[4].mxu0 }
 0x116   :  { %v992_v36 = vpop.f32.mrb[5].mxu0 }
 0x117   :  { %v993_v37 = vadd.f32 %v992_v36, %v991_v35  ;;  %v994_v38 = vpop.f32.mrb[6].mxu0  ;;  %v1013_v39 = vpop.f32.mrb[4].mxu1 }
 0x118   :  { %v995_v40 = vpop.f32.mrb[7].mxu0  ;;  %v1014_v41 = vpop.f32.mrb[5].mxu1 }
 0x119   :  { %v750_v42 = vadd.f32 %v993_v37, %v710_v34  ;;  %v1015_v43 = vadd.f32 %v1014_v41, %v1013_v39  ;;  %v1016_v44 = vpop.f32.mrb[6].mxu1 }
 0x11a   :  { %v1017_v45 = vpop.f32.mrb[7].mxu1 }
 0x11b   :  { %v790_v46 = vadd.f32 %v1015_v43, %v750_v42 }
 0x135   :  { %v829_v47 = vpop.f32.mrb[8].mxu0 }
 0x136   :  { %v830_v48 = vadd.f32 %v829_v47, %v790_v46  ;;  %v1046_v49 = vpop.f32.mrb[9].mxu0 }
 0x137   :  { %v832_v50 = vpop.f32.mrb[10].mxu0 }
 0x138   :  { %v930_v51 = vmul.f32 -1.442695, %v830_v48  ;;  %v1047_v52 = vpop.f32.mrb[11].mxu0 }
 0x13a   :  { %1131 = vpow2.f32 %v930_v51 }
 0x144   :  { %v1132_v53 = vpop.eup %1131 }
 0x145   :  { %v838_v54 = vadd.f32 1.0, %v1132_v53 }
 0x147   :  { %1133 = vrcp.f32 %v838_v54 }
 0x151   :  { %v1134_v55 = vpop.eup %1133 }
 0x152   :  { %v841_v56 = vmul.f32 %v1134_v55, %v830_v48 }
 0x154   :  { %v842_v57 = vpack.c.bf16 %v841_v56, %v841_v56 }
 0x156   :  { %843 = vst [vmem:[%s1397_s3] sm:$0xf] %v842_v57 }

// kernel: yolox_forward.41
= control target key start
LH: loop header
LB: loop body
LE: loop exit
PB: predicated region body
PF: predicated region fallthrough
CT: control target
= control target key end

     0   :  { %s1676_s1 = inlined_call_operand.vmem [shape: bf16[1152,128], index: 1, kind: input, shape index: {}]   ;;  %s1677_s0 = inlined_call_operand.vmem [shape: bf16[32,1152], index: 0, kind: input, shape index: {}]   ;;  %s1678_s2 = inlined_call_operand.vmem [shape: f32[1,128], index: 2, kind: input, shape index: {}]   ;;  %s1679_s3 = inlined_call_operand.vmem [shape: bf16[32,128], index: 3, kind: output, shape index: {}]  }
   0x1   :  { %v1263_v0 = vld [vmem:[%s1676_s1 + $0x40] sm:$0xff]   ;;  %v1267_v4 = vld [vmem:[%s1676_s1 + $0x48] sm:$0xff]   ;;  %v1271_v8 = vld [vmem:[%s1676_s1 + $0x50] sm:$0xff]  }
   0x2   :  { %v1264_v1 = vld [vmem:[%s1676_s1] sm:$0xff]   ;;  %1121 = vmatprep.subr.bf16.mxu0 %v1263_v0  ;;  %v1268_v5 = vld [vmem:[%s1676_s1 + $0x8] sm:$0xff]   ;;  %v1272_v9 = vld [vmem:[%s1676_s1 + $0x10] sm:$0xff]  }
   0x3   :  { %v1265_v2 = vld [vmem:[%s1676_s1 + $0xc0] sm:$0xff]   ;;  %1122 = vmatpush3.bf16.msra.mxu0 %v1264_v1  ;;  %v1269_v6 = vld [vmem:[%s1676_s1 + $0xc8] sm:$0xff]   ;;  %v1273_v10 = vld [vmem:[%s1676_s1 + $0xd0] sm:$0xff]  }
   0x4   :  { %v1266_v3 = vld [vmem:[%s1676_s1 + $0x80] sm:$0xff]   ;;  %1149 = vmatprep.subr.bf16.mxu1 %v1265_v2  ;;  %1123 = vmatprep.subr.bf16.mxu0 %v1267_v4  ;;  %v1270_v7 = vld [vmem:[%s1676_s1 + $0x88] sm:$0xff]   ;;  %v1274_v11 = vld [vmem:[%s1676_s1 + $0x90] sm:$0xff]  }
   0x5   :  { %1150 = vmatpush3.bf16.msra.mxu1 %v1266_v3  ;;  %v1275_v12 = vld [vmem:[%s1676_s1 + $0x58] sm:$0xff]   ;;  %v1279_v16 = vld [vmem:[%s1676_s1 + $0x60] sm:$0xff]   ;;  %v1283_v20 = vld [vmem:[%s1676_s1 + $0x68] sm:$0xff]  }
   0x6   :  { %1151 = vmatprep.subr.bf16.mxu1 %v1269_v6  ;;  %v1276_v13 = vld [vmem:[%s1676_s1 + $0x18] sm:$0xff]   ;;  %v1280_v17 = vld [vmem:[%s1676_s1 + $0x20] sm:$0xff]   ;;  %v1284_v21 = vld [vmem:[%s1676_s1 + $0x28] sm:$0xff]  }
   0x7   :  { %1124 = vmatpush3.bf16.msra.mxu0 %v1268_v5  ;;  %v1277_v14 = vld [vmem:[%s1676_s1 + $0xd8] sm:$0xff]   ;;  %v1281_v18 = vld [vmem:[%s1676_s1 + $0xe0] sm:$0xff]   ;;  %v1285_v22 = vld [vmem:[%s1676_s1 + $0xe8] sm:$0xff]  }
   0x8   :  { %1125 = vmatprep.subr.bf16.mxu0 %v1271_v8  ;;  %v1278_v15 = vld [vmem:[%s1676_s1 + $0x98] sm:$0xff]   ;;  %v1282_v19 = vld [vmem:[%s1676_s1 + $0xa0] sm:$0xff]   ;;  %v1286_v23 = vld [vmem:[%s1676_s1 + $0xa8] sm:$0xff]  }
   0x9   :  { %1152 = vmatpush3.bf16.msra.mxu1 %v1270_v7  ;;  %v1287_v24 = vld [vmem:[%s1676_s1 + $0x70] sm:$0xff]   ;;  %v1291_v28 = vld [vmem:[%s1676_s1 + $0x78] sm:$0xff]   ;;  %v1294_v31 = vld [vmem:[%s1677_s0] ss:$36 sps:$4 sm:$0xff]  }
   0xa   :  { %1153 = vmatprep.subr.bf16.mxu1 %v1273_v10  ;;  %v1288_v25 = vld [vmem:[%s1676_s1 + $0x30] sm:$0xff]   ;;  %v1292_v29 = vld [vmem:[%s1676_s1 + $0x38] sm:$0xff]   ;;  %v1296_v32 = vld [vmem:[%s1677_s0 + $0x4] ss:$36 sps:$4 sm:$0xff]  }
   0xb   :  { %1126 = vmatpush3.bf16.msra.mxu0 %v1272_v9  ;;  %v1289_v26 = vld [vmem:[%s1676_s1 + $0xf0] sm:$0xff]   ;;  %v1293_v30 = vld [vmem:[%s1676_s1 + $0xf8] sm:$0xff]   ;;  %742 = vmatprep.mubr.bf16.mxu0 %v1296_v32  ;;  %v1298_v34 = vld [vmem:[%s1676_s1 + $0x140] sm:$0xff]  }
   0xc   :  { %1127 = vmatprep.subr.bf16.mxu0 %v1275_v12  ;;  %v1290_v27 = vld [vmem:[%s1676_s1 + $0xb0] sm:$0xff]   ;;  %v1297_v33 = vld [vmem:[%s1676_s1 + $0xb8] sm:$0xff]   ;;  %v1299_v35 = vld [vmem:[%s1677_s0 + $0x8] ss:$36 sps:$4 sm:$0xff]  }
   0xd   :  { %1154 = vmatpush3.bf16.msra.mxu1 %v1274_v11  ;;  %v1301_v36 = vld [vmem:[%s1677_s0 + $0xc] ss:$36 sps:$4 sm:$0xff]   ;;  %v1302_v37 = vld [vmem:[%s1676_s1 + $0x100] sm:$0xff]   ;;  %v1313_v48 = vld [vmem:[%s1676_s1 + $0x158] sm:$0xff]  }
   0xe   :  { %1155 = vmatprep.subr.bf16.mxu1 %v1277_v14  ;;  %791 = vmatprep.mubr.bf16.mxu1 %v1301_v36  ;;  %v1303_v38 = vld [vmem:[%s1676_s1 + $0x1c0] sm:$0xff]   ;;  %v1305_v40 = vld [vmem:[%s1676_s1 + $0x148] sm:$0xff]   ;;  %v1309_v44 = vld [vmem:[%s1676_s1 + $0x150] sm:$0xff]  }
   0xf   :  { %1128 = vmatpush3.bf16.msra.mxu0 %v1276_v13  ;;  %v1304_v39 = vld [vmem:[%s1676_s1 + $0x180] sm:$0xff]   ;;  %v1306_v41 = vld [vmem:[%s1676_s1 + $0x108] sm:$0xff]   ;;  %v1310_v45 = vld [vmem:[%s1676_s1 + $0x110] sm:$0xff]  }
  0x10   :  { %1129 = vmatprep.subr.bf16.mxu0 %v1279_v16  ;;  %v1307_v42 = vld [vmem:[%s1676_s1 + $0x1c8] sm:$0xff]   ;;  %v1311_v46 = vld [vmem:[%s1676_s1 + $0x1d0] sm:$0xff]   ;;  %v1314_v49 = vld [vmem:[%s1676_s1 + $0x118] sm:$0xff]  }
  0x11   :  { %1156 = vmatpush3.bf16.msra.mxu1 %v1278_v15  ;;  %v1308_v43 = vld [vmem:[%s1676_s1 + $0x188] sm:$0xff]   ;;  %v1312_v47 = vld [vmem:[%s1676_s1 + $0x190] sm:$0xff]   ;;  %v1315_v50 = vld [vmem:[%s1676_s1 + $0x1d8] sm:$0xff]  }
  0x12   :  { %1157 = vmatprep.subr.bf16.mxu1 %v1281_v18  ;;  %v1316_v51 = vld [vmem:[%s1676_s1 + $0x198] sm:$0xff]   ;;  %v1317_v52 = vld [vmem:[%s1676_s1 + $0x160] sm:$0xff]   ;;  %v1321_v56 = vld [vmem:[%s1676_s1 + $0x168] sm:$0xff]  }
  0x13   :  { %1130 = vmatpush3.bf16.msra.mxu0 %v1280_v17  ;;  %v1318_v53 = vld [vmem:[%s1676_s1 + $0x120] sm:$0xff]   ;;  %v1322_v57 = vld [vmem:[%s1677_s0 + $0x4c] ss:$36 sps:$4 sm:$0xff]   ;;  %v1327_v61 = vld [vmem:[%s1677_s0 + $0x54] ss:$36 sps:$4 sm:$0xff]  }
  0x14   :  { %1131 = vmatprep.subr.bf16.mxu0 %v1283_v20  ;;  %v1319_v54 = vld [vmem:[%s1676_s1 + $0x1e0] sm:$0xff]   ;;  %v1324_v58 = vld [vmem:[%s1676_s1 + $0x128] sm:$0xff]   ;;  %v1330_v63 = vld [vmem:[%s1677_s0 + $0x50] ss:$36 sps:$4 sm:$0xff]  }
  0x15   :  { %1158 = vmatpush3.bf16.msra.mxu1 %v1282_v19  ;;  %v1320_v55 = vld [vmem:[%s1676_s1 + $0x1a0] sm:$0xff]   ;;  %v1325_v59 = vld [vmem:[%s1677_s0 + $0x48] ss:$36 sps:$4 sm:$0xff]   ;;  %v1331_v0 = vld [vmem:[%s1676_s1 + $0x170] sm:$0xff]  }
  0x16   :  { %1159 = vmatprep.subr.bf16.mxu1 %v1285_v22  ;;  %v1326_v60 = vld [vmem:[%s1676_s1 + $0x1e8] sm:$0xff]   ;;  %v1332_v1 = vld [vmem:[%s1676_s1 + $0x130] sm:$0xff]   ;;  %v1335_v4 = vld [vmem:[%s1676_s1 + $0x178] sm:$0xff]  }
  0x17   :  { %1132 = vmatpush3.bf16.msra.mxu0 %v1284_v21  ;;  %v1329_v62 = vld [vmem:[%s1676_s1 + $0x1a8] sm:$0xff]   ;;  %v1333_v2 = vld [vmem:[%s1676_s1 + $0x1f0] sm:$0xff]   ;;  %v1336_v5 = vld [vmem:[%s1676_s1 + $0x138] sm:$0xff]  }
  0x18   :  { %1133 = vmatprep.subr.bf16.mxu0 %v1287_v24  ;;  %v1334_v3 = vld [vmem:[%s1676_s1 + $0x1b0] sm:$0xff]   ;;  %v1337_v6 = vld [vmem:[%s1676_s1 + $0x1f8] sm:$0xff]   ;;  %v1342_v10 = vld [vmem:[%s1676_s1 + $0x200] sm:$0xff]  }
  0x19   :  { %1160 = vmatpush3.bf16.msra.mxu1 %v1286_v23  ;;  %v1338_v7 = vld [vmem:[%s1677_s0 + $0x10] ss:$36 sps:$4 sm:$0xff]   ;;  %v1341_v9 = vld [vmem:[%s1676_s1 + $0x1b8] sm:$0xff]   ;;  %v1346_v13 = vld [vmem:[%s1676_s1 + $0x208] sm:$0xff]  }
  0x1a   :  { %1161 = vmatprep.subr.bf16.mxu1 %v1289_v26  ;;  %v1340_v8 = vld [vmem:[%s1677_s0 + $0x14] ss:$36 sps:$4 sm:$0xff]   ;;  %v1345_v12 = vld [vmem:[%s1677_s0 + $0x1c] ss:$36 sps:$4 sm:$0xff]   ;;  %v1351_v17 = vld [vmem:[%s1677_s0 + $0x64] ss:$36 sps:$4 sm:$0xff]  }
  0x1b   :  { %1134 = vmatpush3.bf16.msra.mxu0 %v1288_v25  ;;  %v1343_v11 = vld [vmem:[%s1677_s0 + $0x18] ss:$36 sps:$4 sm:$0xff]   ;;  %v1350_v16 = vld [vmem:[%s1676_s1 + $0x210] sm:$0xff]   ;;  %v1353_v18 = vld [vmem:[%s1677_s0 + $0x60] ss:$36 sps:$4 sm:$0xff]  }
  0x1c   :  { %1135 = vmatprep.subr.bf16.mxu0 %v1291_v28  ;;  %v1347_v14 = vld [vmem:[%s1677_s0 + $0x5c] ss:$36 sps:$4 sm:$0xff]   ;;  %v1356_v22 = vld [vmem:[%s1676_s1 + $0x228] sm:$0xff]   ;;  %v1357_v23 = vld [vmem:[%s1676_s1 + $0x230] sm:$0xff]  }
  0x1d   :  { %1162 = vmatpush3.bf16.msra.mxu1 %v1290_v27  ;;  %v1349_v15 = vld [vmem:[%s1677_s0 + $0x58] ss:$36 sps:$4 sm:$0xff]   ;;  %v1355_v20 = vld [vmem:[%s1676_s1 + $0x220] sm:$0xff]   ;;  %v1360_v25 = vld [vmem:[%s1677_s0 + $0x68] ss:$36 sps:$4 sm:$0xff]  }
  0x1e   :  { %1163 = vmatprep.subr.bf16.mxu1 %v1293_v30  ;;  %v1354_v19 = vld [vmem:[%s1676_s1 + $0x218] sm:$0xff]   ;;  %v1359_v21 = vld [vmem:[%s1677_s0 + $0x20] ss:$36 sps:$4 sm:$0xff]  }
  0x1f   :  { %1136 = vmatpush3.bf16.msra.mxu0 %v1292_v29  ;;  %v1358_v24 = vld [vmem:[%s1676_s1 + $0x238] sm:$0xff]   ;;  %v1007_v27 = vld [vmem:[%s1678_s2] ss:$0 sm:$0xff] }
  0x20   :  { %1177 = vmatprep.subr.bf16.mxu0 %v1298_v34 }
  0x21   :  { %1164 = vmatpush3.bf16.msra.mxu1 %v1297_v33 }
  0x22   :  { %743 = vmatmul.mubr.bf16.vlgmr.msra.gmra.mrb[0].mxu0 %v1294_v31  ;;  %1205 = vmatprep.subr.bf16.mxu1 %v1303_v38 }
  0x23   :  { %1178 = vmatpush3.bf16.msra.mxu0 %v1302_v37  ;;  %750 = vmatprep.mubr.bf16.mxu0 %v1322_v57 }
  0x24   :  { %792 = vmatmul.mubr.bf16.vlgmr.msra.gmra.mrb[0].mxu1 %v1299_v35  ;;  %1179 = vmatprep.subr.bf16.mxu0 %v1305_v40 }
  0x25   :  { %1206 = vmatpush3.bf16.msra.mxu1 %v1304_v39  ;;  %799 = vmatprep.mubr.bf16.mxu1 %v1327_v61 }
  0x26   :  { %1207 = vmatprep.subr.bf16.mxu1 %v1307_v42 }
  0x27   :  { %1180 = vmatpush3.bf16.msra.mxu0 %v1306_v41 }
  0x28   :  { %1181 = vmatprep.subr.bf16.mxu0 %v1309_v44 }
  0x29   :  { %1208 = vmatpush3.bf16.msra.mxu1 %v1308_v43 }
  0x2a   :  { %1209 = vmatprep.subr.bf16.mxu1 %v1311_v46  ;;  %751 = vmatmul.mubr.bf16.gmra.mrb[4].mxu0 %v1325_v59 }
  0x2b   :  { %1182 = vmatpush3.bf16.msra.mxu0 %v1310_v45  ;;  %840 = vmatprep.mubr.bf16.mxu0 %v1340_v8 }
  0x2c   :  { %1183 = vmatprep.subr.bf16.mxu0 %v1313_v48  ;;  %800 = vmatmul.mubr.bf16.gmra.mrb[4].mxu1 %v1330_v63 }
  0x2d   :  { %1210 = vmatpush3.bf16.msra.mxu1 %v1312_v47  ;;  %889 = vmatprep.mubr.bf16.mxu1 %v1345_v12 }
  0x2e   :  { %1211 = vmatprep.subr.bf16.mxu1 %v1315_v50 }
  0x2f   :  { %1184 = vmatpush3.bf16.msra.mxu0 %v1314_v49 }
  0x30   :  { %1185 = vmatprep.subr.bf16.mxu0 %v1317_v52 }
  0x31   :  { %1212 = vmatpush3.bf16.msra.mxu1 %v1316_v51 }
  0x32   :  { %1213 = vmatprep.subr.bf16.mxu1 %v1319_v54 }
  0x33   :  { %1186 = vmatpush3.bf16.msra.mxu0 %v1318_v53 }
  0x34   :  { %1187 = vmatprep.subr.bf16.mxu0 %v1321_v56 }
  0x35   :  { %1214 = vmatpush3.bf16.msra.mxu1 %v1320_v55 }
  0x36   :  { %1215 = vmatprep.subr.bf16.mxu1 %v1326_v60 }
  0x37   :  { %1188 = vmatpush3.bf16.msra.mxu0 %v1324_v58 }
  0x38   :  { %1189 = vmatprep.subr.bf16.mxu0 %v1331_v0 }
  0x39   :  { %1216 = vmatpush3.bf16.msra.mxu1 %v1329_v62 }
  0x3a   :  { %1217 = vmatprep.subr.bf16.mxu1 %v1333_v2 }
  0x3b   :  { %1190 = vmatpush3.bf16.msra.mxu0 %v1332_v1 }
  0x3c   :  { %1191 = vmatprep.subr.bf16.mxu0 %v1335_v4 }
  0x3d   :  { %1218 = vmatpush3.bf16.msra.mxu1 %v1334_v3 }
  0x3e   :  { %1219 = vmatprep.subr.bf16.mxu1 %v1337_v6 }
  0x3f   :  { %1192 = vmatpush3.bf16.msra.mxu0 %v1336_v5 }
  0x40   :  { %1243 = vmatprep.subr.bf16.mxu0 %v1342_v10 }
  0x41   :  { %1220 = vmatpush3.bf16.msra.mxu1 %v1341_v9 }
  0x42   :  { %841 = vmatmul.mubr.bf16.vlgmr.msra.gmra.mrb[8].mxu0 %v1338_v7 }
  0x43   :  { %1244 = vmatpush3.bf16.msra.mxu0 %v1342_v10  ;;  %848 = vmatprep.mubr.bf16.mxu0 %v1347_v14 }
  0x44   :  { %890 = vmatmul.mubr.bf16.vlgmr.msra.gmra.mrb[8].mxu1 %v1343_v11  ;;  %1245 = vmatprep.subr.bf16.mxu0 %v1346_v13 }
  0x45   :  { %897 = vmatprep.mubr.bf16.mxu1 %v1351_v17 }
  0x47   :  { %1246 = vmatpush3.bf16.msra.mxu0 %v1346_v13 }
  0x48   :  { %1247 = vmatprep.subr.bf16.mxu0 %v1350_v16 }
  0x4a   :  { %849 = vmatmul.mubr.bf16.gmra.mrb[12].mxu0 %v1349_v15 }
  0x4b   :  { %1248 = vmatpush3.bf16.msra.mxu0 %v1350_v16  ;;  %1259 = vmatprep.mubr.bf16.mxu0 %v1359_v21 }
  0x4c   :  { %898 = vmatmul.mubr.bf16.gmra.mrb[12].mxu1 %v1353_v18  ;;  %1249 = vmatprep.subr.bf16.mxu0 %v1354_v19 }
  0x4f   :  { %1250 = vmatpush3.bf16.msra.mxu0 %v1354_v19 }
  0x50   :  { %1251 = vmatprep.subr.bf16.mxu0 %v1355_v20 }
  0x53   :  { %1252 = vmatpush3.bf16.msra.mxu0 %v1355_v20 }
  0x54   :  { %1253 = vmatprep.subr.bf16.mxu0 %v1356_v22 }
  0x57   :  { %1254 = vmatpush3.bf16.msra.mxu0 %v1356_v22 }
  0x58   :  { %1255 = vmatprep.subr.bf16.mxu0 %v1357_v23 }
  0x5b   :  { %1256 = vmatpush3.bf16.msra.mxu0 %v1357_v23 }
  0x5c   :  { %1257 = vmatprep.subr.bf16.mxu0 %v1358_v24 }
  0x5f   :  { %1258 = vmatpush3.bf16.msra.mxu0 %v1358_v24 }
  0x62   :  { %1260 = vmatmul.mubr.bf16.vlgmr.msra.gmra.mrb[16].mxu0 %v1360_v25 }
  0xf5   :  { %v1137_v26 = vpop.f32.mrb[0].mxu0 }
  0xf6   :  { %v1138_v28 = vpop.f32.mrb[1].mxu0 }
  0xf7   :  { %v1139_v29 = vadd.f32 %v1138_v28, %v1137_v26  ;;  %v1140_v30 = vpop.f32.mrb[2].mxu0  ;;  %v1165_v31 = vpop.f32.mrb[0].mxu1 }
  0xf8   :  { %v1141_v32 = vpop.f32.mrb[3].mxu0  ;;  %v1166_v35 = vpop.f32.mrb[1].mxu1 }
  0xf9   :  { %v745_v33 = vadd.f32 %v1139_v29, %v1007_v27  ;;  %v1142_v34 = vadd.f32 %v1141_v32, %v1140_v30  ;;  %v1167_v36 = vadd.f32 %v1166_v35, %v1165_v31  ;;  %v1168_v37 = vpop.f32.mrb[2].mxu1 }
  0xfa   :  { %v1169_v39 = vpop.f32.mrb[3].mxu1 }
  0xfb   :  { %v748_v38 = vadd.f32 %v1142_v34, %v1007_v27  ;;  %v794_v40 = vadd.f32 %v1167_v36, %v745_v33  ;;  %v1170_v41 = vadd.f32 %v1169_v39, %v1168_v37 }
  0xfd   :  { %v797_v42 = vadd.f32 %v1170_v41, %v748_v38  ;;  %v1143_v43 = vpop.f32.mrb[4].mxu0 }
  0xfe   :  { %v1144_v44 = vpop.f32.mrb[5].mxu0 }
  0xff   :  { %v1145_v45 = vadd.f32 %v1144_v44, %v1143_v43  ;;  %v1146_v46 = vpop.f32.mrb[6].mxu0  ;;  %v1171_v47 = vpop.f32.mrb[4].mxu1 }
 0x100   :  { %v1147_v48 = vpop.f32.mrb[7].mxu0  ;;  %v1172_v51 = vpop.f32.mrb[5].mxu1 }
 0x101   :  { %v753_v49 = vadd.f32 %v1145_v45, %v1007_v27  ;;  %v1148_v50 = vadd.f32 %v1147_v48, %v1146_v46  ;;  %v1173_v52 = vadd.f32 %v1172_v51, %v1171_v47  ;;  %v1174_v53 = vpop.f32.mrb[6].mxu1 }
 0x102   :  { %v1175_v55 = vpop.f32.mrb[7].mxu1 }
 0x103   :  { %v756_v54 = vadd.f32 %v1148_v50, %v1007_v27  ;;  %v802_v56 = vadd.f32 %v1173_v52, %v753_v49  ;;  %v1176_v57 = vadd.f32 %v1175_v55, %v1174_v53 }
 0x105   :  { %v805_v58 = vadd.f32 %v1176_v57, %v756_v54 }
 0x115   :  { %v1193_v59 = vpop.f32.mrb[8].mxu0 }
 0x116   :  { %v1194_v60 = vpop.f32.mrb[9].mxu0 }
 0x117   :  { %v1195_v61 = vadd.f32 %v1194_v60, %v1193_v59  ;;  %v1196_v62 = vpop.f32.mrb[10].mxu0  ;;  %v1221_v63 = vpop.f32.mrb[8].mxu1 }
 0x118   :  { %v1197_v0 = vpop.f32.mrb[11].mxu0  ;;  %v1222_v3 = vpop.f32.mrb[9].mxu1 }
 0x119   :  { %v843_v1 = vadd.f32 %v1195_v61, %v794_v40  ;;  %v1198_v2 = vadd.f32 %v1197_v0, %v1196_v62  ;;  %v1223_v4 = vadd.f32 %v1222_v3, %v1221_v63  ;;  %v1224_v5 = vpop.f32.mrb[10].mxu1 }
 0x11a   :  { %v1225_v7 = vpop.f32.mrb[11].mxu1 }
 0x11b   :  { %v846_v6 = vadd.f32 %v1198_v2, %v797_v42  ;;  %v1226_v8 = vadd.f32 %v1225_v7, %v1224_v5  ;;  %v892_v9 = vadd.f32 %v1223_v4, %v843_v1 }
 0x11d   :  { %v1199_v10 = vpop.f32.mrb[12].mxu0  ;;  %v895_v12 = vadd.f32 %v1226_v8, %v846_v6 }
 0x11e   :  { %v1200_v11 = vpop.f32.mrb[13].mxu0 }
 0x11f   :  { %v1201_v13 = vadd.f32 %v1200_v11, %v1199_v10  ;;  %v1202_v14 = vpop.f32.mrb[14].mxu0  ;;  %v1227_v15 = vpop.f32.mrb[12].mxu1 }
 0x120   :  { %v1203_v16 = vpop.f32.mrb[15].mxu0  ;;  %v1228_v19 = vpop.f32.mrb[13].mxu1 }
 0x121   :  { %v851_v17 = vadd.f32 %v1201_v13, %v802_v56  ;;  %v1204_v18 = vadd.f32 %v1203_v16, %v1202_v14  ;;  %v1229_v20 = vadd.f32 %v1228_v19, %v1227_v15  ;;  %v1230_v21 = vpop.f32.mrb[14].mxu1 }
 0x122   :  { %v1231_v23 = vpop.f32.mrb[15].mxu1 }
 0x123   :  { %v854_v22 = vadd.f32 %v1204_v18, %v805_v58  ;;  %v1232_v24 = vadd.f32 %v1231_v23, %v1230_v21  ;;  %v900_v25 = vadd.f32 %v1229_v20, %v851_v17 }
 0x125   :  { %v903_v26 = vadd.f32 %v1232_v24, %v854_v22 }
 0x135   :  { %v1261_v27 = vpop.f32.mrb[16].mxu0 }
 0x136   :  { %v949_v28 = vadd.f32 %v1261_v27, %v900_v25  ;;  %v940_v29 = vpop.f32.mrb[17].mxu0 }
 0x137   :  { %v941_v30 = vadd.f32 %v940_v29, %v892_v9  ;;  %v1262_v31 = vpop.f32.mrb[18].mxu0 }
 0x138   :  { %v1100_v32 = vmul.f32 -1.442695, %v949_v28  ;;  %v952_v33 = vadd.f32 %v1262_v31, %v903_v26  ;;  %v943_v34 = vpop.f32.mrb[19].mxu0 }
 0x139   :  { %v1098_v35 = vmul.f32 -1.442695, %v941_v30  ;;  %v944_v36 = vadd.f32 %v943_v34, %v895_v12 }
 0x13a   :  { %1361 = vpow2.f32 %v1100_v32  ;;  %v1101_v37 = vmul.f32 -1.442695, %v952_v33 }
 0x13b   :  { %1363 = vpow2.f32 %v1098_v35  ;;  %v1099_v38 = vmul.f32 -1.442695, %v944_v36 }
 0x13c   :  { %1365 = vpow2.f32 %v1101_v37 }
 0x13d   :  { %1367 = vpow2.f32 %v1099_v38 }
 0x144   :  { %v1362_v39 = vpop.eup %1361 }
 0x145   :  { %v1364_v40 = vpop.eup %1363  ;;  %v969_v41 = vadd.f32 1.0, %v1362_v39 }
 0x146   :  { %v1366_v42 = vpop.eup %1365  ;;  %v967_v43 = vadd.f32 1.0, %v1364_v40 }
 0x147   :  { %v1368_v44 = vpop.eup %1367  ;;  %1369 = vrcp.f32 %v969_v41  ;;  %v970_v45 = vadd.f32 1.0, %v1366_v42 }
 0x148   :  { %1371 = vrcp.f32 %v967_v43  ;;  %v968_v46 = vadd.f32 1.0, %v1368_v44 }
 0x149   :  { %1373 = vrcp.f32 %v970_v45 }
 0x14a   :  { %1375 = vrcp.f32 %v968_v46 }
 0x151   :  { %v1370_v47 = vpop.eup %1369 }
 0x152   :  { %v1372_v48 = vpop.eup %1371  ;;  %v981_v51 = vmul.f32 %v1370_v47, %v949_v28 }
 0x153   :  { %v1374_v49 = vpop.eup %1373  ;;  %v979_v53 = vmul.f32 %v1372_v48, %v941_v30 }
 0x154   :  { %v1376_v50 = vpop.eup %1375  ;;  %v982_v52 = vmul.f32 %v1374_v49, %v952_v33 }
 0x155   :  { %v980_v54 = vmul.f32 %v1376_v50, %v944_v36 }
 0x156   :  { %v1118_v55 = vpack.c.bf16 %v982_v52, %v981_v51 }
 0x157   :  { %v1113_v56 = vpack.c.bf16 %v980_v54, %v979_v53 }
 0x158   :  { %1120 = vst [vmem:[%s1679_s3 + $0x8] sm:$0xff] %v1118_v55  }
 0x159   :  { %1114 = vst [vmem:[%s1679_s3] sm:$0xff] %v1113_v56  }

// kernel: yolox_forward.56
= control target key start
LH: loop header
LB: loop body
LE: loop exit
PB: predicated region body
PF: predicated region fallthrough
CT: control target
= control target key end

     0   :  { %vm206_vm0 = vcmask 519168   ;;  %s353_s1 = inlined_call_operand.vmem [shape: bf16[256,64], index: 1, kind: input, shape index: {}]   ;;  %s354_s0 = inlined_call_operand.vmem [shape: bf16[8,256], index: 0, kind: input, shape index: {}]   ;;  %s355_s2 = inlined_call_operand.vmem [shape: f32[1,64], index: 2, kind: input, shape index: {}]   ;;  %s356_s3 = inlined_call_operand.vmem [shape: bf16[8,64], index: 3, kind: output, shape index: {}]  }
   0x1   :  { %v254_v0 = vld [vmem:[%s353_s1 + $0x40] sm:$0xff]   ;;  %v256_v2 = vld [vmem:[%s353_s1 + $0x48] sm:$0xff]   ;;  %v258_v4 = vld [vmem:[%s353_s1 + $0x50] sm:$0xff]  }
   0x2   :  { %v255_v1 = vld [vmem:[%s353_s1] sm:$0xff]   ;;  %232 = vmatprep.subr.bf16.mxu0 %v254_v0  ;;  %v257_v3 = vld [vmem:[%s353_s1 + $0x8] sm:$0xff]   ;;  %v259_v5 = vld [vmem:[%s353_s1 + $0x10] sm:$0xff]  }
   0x3   :  { %233 = vmatpush3.bf16.msra.mxu0 %v255_v1  ;;  %v260_v6 = vld [vmem:[%s353_s1 + $0x58] sm:$0xff]   ;;  %v262_v8 = vld [vmem:[%s353_s1 + $0x60] sm:$0xff]   ;;  %v264_v10 = vld [vmem:[%s353_s1 + $0x68] sm:$0xff]  }
   0x4   :  { %234 = vmatprep.subr.bf16.mxu0 %v256_v2  ;;  %v261_v7 = vld [vmem:[%s353_s1 + $0x18] sm:$0xff]   ;;  %v263_v9 = vld [vmem:[%s353_s1 + $0x20] sm:$0xff]   ;;  %v265_v13 = vld [vmem:[%s353_s1 + $0x28] sm:$0xff]  }
   0x5   :  { %v15_v11 = vld [vmem:[%s354_s0] sm:$0xff]  ;;  %v266_v14 = vld [vmem:[%s353_s1 + $0x70] sm:$0xff]   ;;  %v268_v16 = vld [vmem:[%s353_s1 + $0x78] sm:$0xff]  }
   0x6   :  { %v214_v12 = vcombine.high %v15_v11, %v15_v11  ;;  %v267_v15 = vld [vmem:[%s353_s1 + $0x30] sm:$0xff]   ;;  %v269_v17 = vld [vmem:[%s353_s1 + $0x38] sm:$0xff]   ;;  %v213_v18 = vcombine.low %v15_v11, %v15_v11  ;;  %v212_v20 = vld [vmem:[%s355_s2] ss:$0 sm:$0xff] }
   0x7   :  { %235 = vmatpush3.bf16.msra.mxu0 %v257_v3 }
   0x8   :  { %236 = vmatprep.subr.bf16.mxu0 %v258_v4  ;;  %190 = vmatprep.mubr.bf16.mxu0 %v214_v12 }
   0xb   :  { %237 = vmatpush3.bf16.msra.mxu0 %v259_v5 }
   0xc   :  { %238 = vmatprep.subr.bf16.mxu0 %v260_v6 }
   0xf   :  { %239 = vmatpush3.bf16.msra.mxu0 %v261_v7 }
  0x10   :  { %240 = vmatprep.subr.bf16.mxu0 %v262_v8 }
  0x13   :  { %241 = vmatpush3.bf16.msra.mxu0 %v263_v9 }
  0x14   :  { %242 = vmatprep.subr.bf16.mxu0 %v264_v10 }
  0x17   :  { %243 = vmatpush3.bf16.msra.mxu0 %v265_v13 }
  0x18   :  { %244 = vmatprep.subr.bf16.mxu0 %v266_v14 }
  0x1b   :  { %245 = vmatpush3.bf16.msra.mxu0 %v267_v15 }
  0x1c   :  { %246 = vmatprep.subr.bf16.mxu0 %v268_v16 }
  0x1f   :  { %247 = vmatpush3.bf16.msra.mxu0 %v269_v17 }
  0x22   :  { %191 = vmatmul.mubr.bf16.vlgmr.msra.gmra.mrb[0].mxu0 %v213_v18 }
  0xf5   :  { %v248_v19 = vpop.f32.mrb[0].mxu0 }
  0xf6   :  { %v249_v21 = vpop.f32.mrb[1].mxu0 }
  0xf7   :  { %v250_v22 = vadd.f32 %v249_v21, %v248_v19  ;;  %v251_v23 = vpop.f32.mrb[2].mxu0 }
  0xf8   :  { %v252_v24 = vpop.f32.mrb[3].mxu0 }
  0xf9   :  { %v193_v25 = vadd.f32 %v250_v22, %v212_v20 }
  0xfb   :  { %v231_v26 = vmul.f32 -1.442695, %v193_v25 }
  0xfd   :  { %272 = vpow2.f32 %v231_v26 }
 0x107   :  { %v273_v27 = vpop.eup %272 }
 0x108   :  { %v201_v28 = vadd.f32 1.0, %v273_v27 }
 0x10a   :  { %274 = vrcp.f32 %v201_v28 }
 0x114   :  { %v275_v29 = vpop.eup %274 }
 0x115   :  { %v204_v30 = vmul.f32 %v275_v29, %v193_v25 }
 0x117   :  { %v205_v31 = vpack.c.bf16 %v204_v30, %v204_v30 }
 0x119   :  { %207 = vst.msk [vmem:[%s356_s3] sm:$0xf] %vm206_vm0, %v205_v31 }

// kernel: yolox_forward.61
= control target key start
LH: loop header
LB: loop body
LE: loop exit
PB: predicated region body
PF: predicated region fallthrough
CT: control target
= control target key end

     0   :  { %v217_v1 = vmov 0.0   ;;  %vm218_vm0 = vmmov 0   ;;  %s282_s0 = inlined_call_operand.vmem [shape: bf16[8,128], index: 0, kind: input, shape index: {}]   ;;  %s283_s1 = inlined_call_operand.vmem [shape: bf16[128,9], index: 1, kind: input, shape index: {}]   ;;  %s284_s2 = inlined_call_operand.vmem [shape: f32[1,9], index: 2, kind: input, shape index: {}]   ;;  %s285_s3 = inlined_call_operand.hbm [shape: f32[8,9], index: 3, kind: output, shape index: {}]  }
   0x1   :  { %v185_v0 = vld [vmem:[%s283_s1] sm:$0xff]   ;;  %162 = vmatprep.subr.bf16.mxu0 %v217_v1  ;;  %v186_v2 = vld [vmem:[%s283_s1 + $0x8] sm:$0xff]   ;;  %178 = vmatprep.mubr.msk.bf16.mxu0 %vm218_vm0, %v217_v1  ;;  %v187_v3 = vld [vmem:[%s283_s1 + $0x10] sm:$0xff]  }
   0x2   :  { %163 = vmatpush3.bf16.msra.mxu0 %v185_v0 }
   0x3   :  { %164 = vmatprep.subr.bf16.mxu0 %v217_v1 }
   0x6   :  { %165 = vmatpush3.bf16.msra.mxu0 %v186_v2 }
   0x7   :  { %166 = vmatprep.subr.bf16.mxu0 %v217_v1 }
   0x8   :  { %8 = vsyncpa [#allocation3], 0  ;;  %v188_v4 = vld [vmem:[%s283_s1 + $0x18] sm:$0xff]   ;;  %v189_v5 = vld [vmem:[%s283_s1 + $0x20] sm:$0xff]   ;;  %s219_s5 = smov [#allocation2]   ;;  %vm128_vm1 = vcmask 72704  }
   0x9   :  { %v190_v6 = vld [vmem:[%s283_s1 + $0x28] sm:$0xff]   ;;  %v191_v7 = vld [vmem:[%s283_s1 + $0x30] sm:$0xff]   ;;  %v192_v8 = vld [vmem:[%s283_s1 + $0x38] sm:$0xff]   ;;  %s136_s6 = sshll.u32 %s219_s5, 4  ;;  %s137_s6 = int_to_ptr.vmem [resolvable:$true] %s136_s6 }
   0xa   :  { %167 = vmatpush3.bf16.msra.mxu0 %v187_v3  ;;  %v16_v9 = vld [vmem:[%s282_s0] sm:$0xf]  ;;  %s193_s1 = scalar_lea.vmem %s137_s6, 128  ;;  %p198_p1 = scmp.lt.s32.totalorder %s137_s6, %s137_s6 }
   0xb   :  { %168 = vmatprep.subr.bf16.mxu0 %v217_v1  ;;  %v144_v10 = vld [vmem:[%s284_s2] ss:$0 sm:$0xff]  ;;  %p194_p0 = scmp.ne.s32.totalorder %s137_s6, %s193_s1  ;;  %p199_p2 = scmp.lt.s32.totalorder %s193_s1, %s193_s1 }
   0xd   :  { %p200_p3 = por %p199_p2, %p198_p1 }
   0xe   :  { %169 = vmatpush3.bf16.msra.mxu0 %v188_v4 }
   0xf   :  { %170 = vmatprep.subr.bf16.mxu0 %v217_v1  ;;  %p201_p4 = pnand %p200_p3, %p194_p0 }
  0x12   :  { %171 = vmatpush3.bf16.msra.mxu0 %v189_v5 }
  0x13   :  { %172 = vmatprep.subr.bf16.mxu0 %v217_v1 }
  0x16   :  { %173 = vmatpush3.bf16.msra.mxu0 %v190_v6 }
  0x17   :  { %174 = vmatprep.subr.bf16.mxu0 %v217_v1 }
  0x1a   :  { %175 = vmatpush3.bf16.msra.mxu0 %v191_v7 }
  0x1b   :  { %176 = vmatprep.subr.bf16.mxu0 %v217_v1 }
  0x1e   :  { %177 = vmatpush3.bf16.msra.mxu0 %v192_v8 }
  0x21   :  { %179 = vmatmul.mubr.bf16.vlgmr.msra.gmra.mrb[0].mxu0 %v16_v9 }
  0xf4   :  { %v122_v11 = vpop.f32.mrb[0].mxu0 }
  0xf5   :  { %v123_v12 = vadd.f32 %v144_v10, %v122_v11  ;;  %v180_v13 = vpop.f32.mrb[1].mxu0 }
  0xf6   :  { %v125_v14 = vpop.f32.mrb[2].mxu0 }
  0xf7   :  { %v181_v15 = vpop.f32.mrb[3].mxu0  ;;  %129 = vst.msk [vmem:[#allocation2] sm:$0xff] %vm128_vm1, %v123_v12 }
  0xf8   :  { %204 = shalt.err (!%p201_p4)
}
  0xf9   :  { %s205_s2 = scalar_lea.hbm %s285_s3, 128 }
  0xfa   :  { %p206_p5 = scmp.ne.s32.totalorder %s285_s3, %s205_s2  ;;  %p209_p6 = scmp.lt.u32.totalorder %s205_s2, %s285_s3 }
  0xfc   :  { %p211_p7 = pnand %p209_p6, %p206_p5 }
  0xfe   :  { %214 = shalt.err (!%p211_p7)
}
  0xff   :  { %139 = dma.vmem_to_hbm [thread:$0]  %s137_s6, 128, %s285_s3, [#allocation3]  }
 0x100   :  { %215 = dma.done.wait [#allocation3], 128  }
 0x101   :  { %216 = vsyncadd [#allocation3], 4294967168 }
 0x102   :  { %143 = vsyncpa [#allocation3], 1 }

// kernel: yolox_forward.59
= control target key start
LH: loop header
LB: loop body
LE: loop exit
PB: predicated region body
PF: predicated region fallthrough
CT: control target
= control target key end

     0   :  { %v620_v35 = vmov 0.0   ;;  %vm621_vm0 = vmmov 0   ;;  %vm330_vm1 = vcmask 523264   ;;  %vm462_vm2 = vcmask 519168   ;;  %s765_s1 = inlined_call_operand.vmem [shape: bf16[576,64], index: 1, kind: input, shape index: {}]   ;;  %s766_s0 = inlined_call_operand.vmem [shape: bf16[8,576], index: 0, kind: input, shape index: {}]   ;;  %s767_s2 = inlined_call_operand.vmem [shape: f32[1,64], index: 2, kind: input, shape index: {}]   ;;  %s768_s3 = inlined_call_operand.vmem [shape: bf16[8,64], index: 3, kind: output, shape index: {}]  }
   0x1   :  { %v575_v0 = vld [vmem:[%s765_s1 + $0x40] sm:$0xff]   ;;  %v579_v4 = vld [vmem:[%s765_s1 + $0x48] sm:$0xff]   ;;  %v583_v8 = vld [vmem:[%s765_s1 + $0x50] sm:$0xff]  }
   0x2   :  { %v576_v1 = vld [vmem:[%s765_s1] sm:$0xff]   ;;  %512 = vmatprep.subr.bf16.mxu0 %v575_v0  ;;  %v580_v5 = vld [vmem:[%s765_s1 + $0x8] sm:$0xff]   ;;  %v584_v9 = vld [vmem:[%s765_s1 + $0x10] sm:$0xff]  }
   0x3   :  { %v577_v2 = vld [vmem:[%s765_s1 + $0xc0] sm:$0xff]   ;;  %513 = vmatpush3.bf16.msra.mxu0 %v576_v1  ;;  %v581_v6 = vld [vmem:[%s765_s1 + $0xc8] sm:$0xff]   ;;  %v585_v10 = vld [vmem:[%s765_s1 + $0xd0] sm:$0xff]  }
   0x4   :  { %v578_v3 = vld [vmem:[%s765_s1 + $0x80] sm:$0xff]   ;;  %534 = vmatprep.subr.bf16.mxu1 %v577_v2  ;;  %514 = vmatprep.subr.bf16.mxu0 %v579_v4  ;;  %v582_v7 = vld [vmem:[%s765_s1 + $0x88] sm:$0xff]   ;;  %v586_v11 = vld [vmem:[%s765_s1 + $0x90] sm:$0xff]  }
   0x5   :  { %535 = vmatpush3.bf16.msra.mxu1 %v578_v3  ;;  %v587_v12 = vld [vmem:[%s765_s1 + $0x58] sm:$0xff]   ;;  %v591_v16 = vld [vmem:[%s765_s1 + $0x60] sm:$0xff]   ;;  %v595_v20 = vld [vmem:[%s765_s1 + $0x68] sm:$0xff]  }
   0x6   :  { %536 = vmatprep.subr.bf16.mxu1 %v581_v6  ;;  %v588_v13 = vld [vmem:[%s765_s1 + $0x18] sm:$0xff]   ;;  %v592_v17 = vld [vmem:[%s765_s1 + $0x20] sm:$0xff]   ;;  %v596_v21 = vld [vmem:[%s765_s1 + $0x28] sm:$0xff]  }
   0x7   :  { %515 = vmatpush3.bf16.msra.mxu0 %v580_v5  ;;  %v589_v14 = vld [vmem:[%s765_s1 + $0xd8] sm:$0xff]   ;;  %v593_v18 = vld [vmem:[%s765_s1 + $0xe0] sm:$0xff]   ;;  %v597_v22 = vld [vmem:[%s765_s1 + $0xe8] sm:$0xff]  }
   0x8   :  { %516 = vmatprep.subr.bf16.mxu0 %v583_v8  ;;  %v590_v15 = vld [vmem:[%s765_s1 + $0x98] sm:$0xff]   ;;  %v594_v19 = vld [vmem:[%s765_s1 + $0xa0] sm:$0xff]   ;;  %v598_v23 = vld [vmem:[%s765_s1 + $0xa8] sm:$0xff]  }
   0x9   :  { %537 = vmatpush3.bf16.msra.mxu1 %v582_v7  ;;  %v599_v24 = vld [vmem:[%s765_s1 + $0x70] sm:$0xff]   ;;  %v603_v28 = vld [vmem:[%s765_s1 + $0x78] sm:$0xff]   ;;  %v15_v31 = vld [vmem:[%s766_s0] sm:$0xff] }
   0xa   :  { %538 = vmatprep.subr.bf16.mxu1 %v585_v10  ;;  %v600_v25 = vld [vmem:[%s765_s1 + $0x30] sm:$0xff]   ;;  %v604_v29 = vld [vmem:[%s765_s1 + $0x38] sm:$0xff]   ;;  %v469_v32 = vcombine.low %v15_v31, %v15_v31  ;;  %v470_v33 = vcombine.high %v15_v31, %v15_v31  ;;  %v16_v36 = vld [vmem:[%s766_s0 + $0x8] sm:$0xff] }
   0xb   :  { %517 = vmatpush3.bf16.msra.mxu0 %v584_v9  ;;  %v601_v26 = vld [vmem:[%s765_s1 + $0xf0] sm:$0xff]   ;;  %v605_v30 = vld [vmem:[%s765_s1 + $0xf8] sm:$0xff]   ;;  %v471_v37 = vcombine.low %v16_v36, %v16_v36  ;;  %v472_v38 = vcombine.high %v16_v36, %v16_v36  ;;  %v612_v39 = vld [vmem:[%s765_s1 + $0x100] sm:$0xff]  }
   0xc   :  { %518 = vmatprep.subr.bf16.mxu0 %v587_v12  ;;  %v602_v27 = vld [vmem:[%s765_s1 + $0xb0] sm:$0xff]   ;;  %v609_v34 = vld [vmem:[%s765_s1 + $0xb8] sm:$0xff]   ;;  %366 = vmatprep.mubr.bf16.mxu0 %v470_v33  ;;  %v613_v40 = vld [vmem:[%s765_s1 + $0x108] sm:$0xff]  }
   0xd   :  { %539 = vmatpush3.bf16.msra.mxu1 %v586_v11  ;;  %406 = vmatprep.mubr.bf16.mxu1 %v472_v38  ;;  %v614_v41 = vld [vmem:[%s765_s1 + $0x110] sm:$0xff]   ;;  %v615_v42 = vld [vmem:[%s765_s1 + $0x118] sm:$0xff]   ;;  %v468_v45 = vld [vmem:[%s767_s2] ss:$0 sm:$0xff] }
   0xe   :  { %540 = vmatprep.subr.bf16.mxu1 %v589_v14  ;;  %v608_v43 = vld [vmem:[%s766_s0 + $0x10] ss:$0 sps:$4 sm:$0xff]  }
   0xf   :  { %519 = vmatpush3.bf16.msra.mxu0 %v588_v13 }
  0x10   :  { %520 = vmatprep.subr.bf16.mxu0 %v591_v16 }
  0x11   :  { %541 = vmatpush3.bf16.msra.mxu1 %v590_v15 }
  0x12   :  { %542 = vmatprep.subr.bf16.mxu1 %v593_v18 }
  0x13   :  { %521 = vmatpush3.bf16.msra.mxu0 %v592_v17 }
  0x14   :  { %522 = vmatprep.subr.bf16.mxu0 %v595_v20 }
  0x15   :  { %543 = vmatpush3.bf16.msra.mxu1 %v594_v19 }
  0x16   :  { %544 = vmatprep.subr.bf16.mxu1 %v597_v22 }
  0x17   :  { %523 = vmatpush3.bf16.msra.mxu0 %v596_v21 }
  0x18   :  { %524 = vmatprep.subr.bf16.mxu0 %v599_v24 }
  0x19   :  { %545 = vmatpush3.bf16.msra.mxu1 %v598_v23 }
  0x1a   :  { %546 = vmatprep.subr.bf16.mxu1 %v601_v26 }
  0x1b   :  { %525 = vmatpush3.bf16.msra.mxu0 %v600_v25 }
  0x1c   :  { %526 = vmatprep.subr.bf16.mxu0 %v603_v28 }
  0x1d   :  { %547 = vmatpush3.bf16.msra.mxu1 %v602_v27 }
  0x1e   :  { %548 = vmatprep.subr.bf16.mxu1 %v605_v30 }
  0x1f   :  { %527 = vmatpush3.bf16.msra.mxu0 %v604_v29 }
  0x20   :  { %561 = vmatprep.subr.bf16.mxu0 %v620_v35 }
  0x21   :  { %549 = vmatpush3.bf16.msra.mxu1 %v609_v34 }
  0x22   :  { %367 = vmatmul.mubr.bf16.vlgmr.msra.gmra.mrb[0].mxu0 %v469_v32 }
  0x23   :  { %562 = vmatpush3.bf16.msra.mxu0 %v612_v39  ;;  %569 = vmatprep.mubr.msk.bf16.mxu0 %vm621_vm0, %v620_v35 }
  0x24   :  { %407 = vmatmul.mubr.bf16.vlgmr.msra.gmra.mrb[0].mxu1 %v471_v37  ;;  %563 = vmatprep.subr.bf16.mxu0 %v620_v35 }
  0x27   :  { %564 = vmatpush3.bf16.msra.mxu0 %v613_v40 }
  0x28   :  { %565 = vmatprep.subr.bf16.mxu0 %v620_v35 }
  0x2b   :  { %566 = vmatpush3.bf16.msra.mxu0 %v614_v41 }
  0x2c   :  { %567 = vmatprep.subr.bf16.mxu0 %v620_v35 }
  0x2f   :  { %568 = vmatpush3.bf16.msra.mxu0 %v615_v42 }
  0x32   :  { %570 = vmatmul.mubr.msk.bf16.vlgmr.msra.gmra.mrb[4].mxu0 %vm330_vm1, %v608_v43 }
  0xf5   :  { %v528_v44 = vpop.f32.mrb[0].mxu0 }
  0xf6   :  { %v529_v46 = vpop.f32.mrb[1].mxu0 }
  0xf7   :  { %v530_v47 = vadd.f32 %v529_v46, %v528_v44  ;;  %v531_v48 = vpop.f32.mrb[2].mxu0  ;;  %v550_v49 = vpop.f32.mrb[0].mxu1 }
  0xf8   :  { %v532_v50 = vpop.f32.mrb[3].mxu0  ;;  %v551_v51 = vpop.f32.mrb[1].mxu1 }
  0xf9   :  { %v369_v52 = vadd.f32 %v530_v47, %v468_v45  ;;  %v552_v53 = vadd.f32 %v551_v51, %v550_v49  ;;  %v553_v54 = vpop.f32.mrb[2].mxu1 }
  0xfa   :  { %v554_v55 = vpop.f32.mrb[3].mxu1 }
  0xfb   :  { %v409_v56 = vadd.f32 %v552_v53, %v369_v52 }
 0x105   :  { %v448_v57 = vpop.f32.mrb[4].mxu0 }
 0x106   :  { %v449_v58 = vadd.f32 %v448_v57, %v409_v56  ;;  %v571_v59 = vpop.f32.mrb[5].mxu0 }
 0x107   :  { %v451_v60 = vpop.f32.mrb[6].mxu0 }
 0x108   :  { %v511_v61 = vmul.f32 -1.442695, %v449_v58  ;;  %v572_v62 = vpop.f32.mrb[7].mxu0 }
 0x10a   :  { %616 = vpow2.f32 %v511_v61 }
 0x114   :  { %v617_v63 = vpop.eup %616 }
 0x115   :  { %v457_v0 = vadd.f32 1.0, %v617_v63 }
 0x117   :  { %618 = vrcp.f32 %v457_v0 }
 0x121   :  { %v619_v1 = vpop.eup %618 }
 0x122   :  { %v460_v2 = vmul.f32 %v619_v1, %v449_v58 }
 0x124   :  { %v461_v3 = vpack.c.bf16 %v460_v2, %v460_v2 }
 0x126   :  { %463 = vst.msk [vmem:[%s768_s3] sm:$0xf] %vm462_vm2, %v461_v3 }

// kernel: yolox_forward.43
= control target key start
LH: loop header
LB: loop body
LE: loop exit
PB: predicated region body
PF: predicated region fallthrough
CT: control target
= control target key end

     0   :  { %s3981_s1 = inlined_call_operand.vmem [shape: bf16[2304,256], index: 1, kind: input, shape index: {}]   ;;  %s3982_s0 = inlined_call_operand.vmem [shape: bf16[8,2304], index: 0, kind: input, shape index: {}]   ;;  %s3983_s2 = inlined_call_operand.vmem [shape: f32[1,256], index: 2, kind: input, shape index: {}]   ;;  %s3984_s3 = inlined_call_operand.vmem [shape: bf16[8,256], index: 3, kind: output, shape index: {}]  }
   0x1   :  { %v2564_v0 = vld [vmem:[%s3981_s1 + $0x4] ss:$8 sps:$4 sm:$0xff]   ;;  %v2568_v2 = vld [vmem:[%s3981_s1] ss:$8 sps:$4 sm:$0xff]   ;;  %v2570_v4 = vld [vmem:[%s3981_s1 + $0x14] ss:$8 sps:$4 sm:$0xff]  }
   0x2   :  { %v2566_v1 = vld [vmem:[%s3981_s1 + $0x404] ss:$8 sps:$4 sm:$0xff]   ;;  %1826 = vmatprep.subr.bf16.mxu1 %v2564_v0  ;;  %v2569_v3 = vld [vmem:[%s3981_s1 + $0x400] ss:$8 sps:$4 sm:$0xff]   ;;  %v2572_v5 = vld [vmem:[%s3981_s1 + $0x414] ss:$8 sps:$4 sm:$0xff]  }
   0x3   :  { %1990 = vmatprep.subr.bf16.mxu0 %v2566_v1  ;;  %1827 = vmatpush1.bf16.msra.mxu1 %v2568_v2  ;;  %v2574_v6 = vld [vmem:[%s3981_s1 + $0x10] ss:$8 sps:$4 sm:$0xff]   ;;  %v2576_v8 = vld [vmem:[%s3981_s1 + $0x24] ss:$8 sps:$4 sm:$0xff]   ;;  %v2580_v10 = vld [vmem:[%s3981_s1 + $0x20] ss:$8 sps:$4 sm:$0xff]  }
   0x4   :  { %1991 = vmatpush1.bf16.msra.mxu0 %v2569_v3  ;;  %1828 = vmatprep.subr.bf16.mxu1 %v2570_v4  ;;  %v2575_v7 = vld [vmem:[%s3981_s1 + $0x410] ss:$8 sps:$4 sm:$0xff]   ;;  %v2578_v9 = vld [vmem:[%s3981_s1 + $0x424] ss:$8 sps:$4 sm:$0xff]   ;;  %v2581_v11 = vld [vmem:[%s3981_s1 + $0x420] ss:$8 sps:$4 sm:$0xff]  }
   0x5   :  { %1992 = vmatprep.subr.bf16.mxu0 %v2572_v5  ;;  %v2582_v12 = vld [vmem:[%s3981_s1 + $0x34] ss:$8 sps:$4 sm:$0xff]   ;;  %v2586_v14 = vld [vmem:[%s3981_s1 + $0x30] ss:$8 sps:$4 sm:$0xff]   ;;  %v2588_v16 = vld [vmem:[%s3981_s1 + $0x44] ss:$8 sps:$4 sm:$0xff]  }
   0x6   :  { %v2584_v13 = vld [vmem:[%s3981_s1 + $0x434] ss:$8 sps:$4 sm:$0xff]   ;;  %v2587_v15 = vld [vmem:[%s3981_s1 + $0x430] ss:$8 sps:$4 sm:$0xff]   ;;  %v2590_v17 = vld [vmem:[%s3981_s1 + $0x444] ss:$8 sps:$4 sm:$0xff]  }
   0x7   :  { %1829 = vmatpush1.bf16.msra.mxu1 %v2574_v6  ;;  %v2592_v18 = vld [vmem:[%s3981_s1 + $0x40] ss:$8 sps:$4 sm:$0xff]   ;;  %v2594_v20 = vld [vmem:[%s3981_s1 + $0x54] ss:$8 sps:$4 sm:$0xff]   ;;  %v2598_v22 = vld [vmem:[%s3981_s1 + $0x50] ss:$8 sps:$4 sm:$0xff]  }
   0x8   :  { %1993 = vmatpush1.bf16.msra.mxu0 %v2575_v7  ;;  %1830 = vmatprep.subr.bf16.mxu1 %v2576_v8  ;;  %v2593_v19 = vld [vmem:[%s3981_s1 + $0x440] ss:$8 sps:$4 sm:$0xff]   ;;  %v2596_v21 = vld [vmem:[%s3981_s1 + $0x454] ss:$8 sps:$4 sm:$0xff]   ;;  %v2599_v23 = vld [vmem:[%s3981_s1 + $0x450] ss:$8 sps:$4 sm:$0xff]  }
   0x9   :  { %1994 = vmatprep.subr.bf16.mxu0 %v2578_v9  ;;  %v2600_v24 = vld [vmem:[%s3981_s1 + $0x64] ss:$8 sps:$4 sm:$0xff]   ;;  %v2604_v26 = vld [vmem:[%s3981_s1 + $0x60] ss:$8 sps:$4 sm:$0xff]   ;;  %v2606_v28 = vld [vmem:[%s3981_s1 + $0x74] ss:$8 sps:$4 sm:$0xff]  }
   0xa   :  { %v2602_v25 = vld [vmem:[%s3981_s1 + $0x464] ss:$8 sps:$4 sm:$0xff]   ;;  %v2605_v27 = vld [vmem:[%s3981_s1 + $0x460] ss:$8 sps:$4 sm:$0xff]   ;;  %v2608_v29 = vld [vmem:[%s3981_s1 + $0x474] ss:$8 sps:$4 sm:$0xff]  }
   0xb   :  { %1831 = vmatpush1.bf16.msra.mxu1 %v2580_v10  ;;  %v2610_v30 = vld [vmem:[%s3981_s1 + $0x70] ss:$8 sps:$4 sm:$0xff]   ;;  %v2612_v32 = vld [vmem:[%s3981_s1 + $0x84] ss:$8 sps:$4 sm:$0xff]   ;;  %v2616_v34 = vld [vmem:[%s3981_s1 + $0x80] ss:$8 sps:$4 sm:$0xff]  }
   0xc   :  { %1995 = vmatpush1.bf16.msra.mxu0 %v2581_v11  ;;  %1832 = vmatprep.subr.bf16.mxu1 %v2582_v12  ;;  %v2611_v31 = vld [vmem:[%s3981_s1 + $0x470] ss:$8 sps:$4 sm:$0xff]   ;;  %v2614_v33 = vld [vmem:[%s3981_s1 + $0x484] ss:$8 sps:$4 sm:$0xff]   ;;  %v2617_v35 = vld [vmem:[%s3981_s1 + $0x480] ss:$8 sps:$4 sm:$0xff]  }
   0xd   :  { %1996 = vmatprep.subr.bf16.mxu0 %v2584_v13  ;;  %v2618_v36 = vld [vmem:[%s3981_s1 + $0x94] ss:$8 sps:$4 sm:$0xff]   ;;  %v2622_v38 = vld [vmem:[%s3981_s1 + $0x90] ss:$8 sps:$4 sm:$0xff]   ;;  %v2624_v40 = vld [vmem:[%s3981_s1 + $0xa4] ss:$8 sps:$4 sm:$0xff]  }
   0xe   :  { %v2620_v37 = vld [vmem:[%s3981_s1 + $0x494] ss:$8 sps:$4 sm:$0xff]   ;;  %v2623_v39 = vld [vmem:[%s3981_s1 + $0x490] ss:$8 sps:$4 sm:$0xff]   ;;  %v2626_v41 = vld [vmem:[%s3981_s1 + $0x4a4] ss:$8 sps:$4 sm:$0xff]  }
   0xf   :  { %1833 = vmatpush1.bf16.msra.mxu1 %v2586_v14  ;;  %v2628_v42 = vld [vmem:[%s3981_s1 + $0xa0] ss:$8 sps:$4 sm:$0xff]   ;;  %v2630_v44 = vld [vmem:[%s3981_s1 + $0xb4] ss:$8 sps:$4 sm:$0xff]   ;;  %v2634_v47 = vld [vmem:[%s3981_s1 + $0xb0] ss:$8 sps:$4 sm:$0xff]  }
  0x10   :  { %1997 = vmatpush1.bf16.msra.mxu0 %v2587_v15  ;;  %1834 = vmatprep.subr.bf16.mxu1 %v2588_v16  ;;  %v2629_v43 = vld [vmem:[%s3981_s1 + $0x4a0] ss:$8 sps:$4 sm:$0xff]   ;;  %v2632_v45 = vld [vmem:[%s3981_s1 + $0x4b4] ss:$8 sps:$4 sm:$0xff]   ;;  %v2635_v49 = vld [vmem:[%s3981_s1 + $0x4b0] ss:$8 sps:$4 sm:$0xff]  }
  0x11   :  { %1998 = vmatprep.subr.bf16.mxu0 %v2590_v17  ;;  %v14_v46 = vld [vmem:[%s3982_s0] sm:$0xff]  ;;  %v2642_v56 = vld [vmem:[%s3981_s1 + $0xd4] ss:$8 sps:$4 sm:$0xff]   ;;  %v2646_v58 = vld [vmem:[%s3981_s1 + $0xd0] ss:$8 sps:$4 sm:$0xff]  }
  0x12   :  { %v2223_v48 = vcombine.high %v14_v46, %v14_v46  ;;  %v18_v50 = vld [vmem:[%s3982_s0 + $0x20] sm:$0xff]  ;;  %v2644_v57 = vld [vmem:[%s3981_s1 + $0x4d4] ss:$8 sps:$4 sm:$0xff]   ;;  %v2647_v59 = vld [vmem:[%s3981_s1 + $0x4d0] ss:$8 sps:$4 sm:$0xff]   ;;  %v2222_v6 = vcombine.low %v14_v46, %v14_v46 }
  0x13   :  { %1835 = vmatpush1.bf16.msra.mxu1 %v2592_v18  ;;  %v2636_v51 = vld [vmem:[%s3981_s1 + $0xc4] ss:$8 sps:$4 sm:$0xff]   ;;  %v2231_v53 = vcombine.high %v18_v50, %v18_v50  ;;  %v2640_v54 = vld [vmem:[%s3981_s1 + $0xc0] ss:$8 sps:$4 sm:$0xff]   ;;  %v2654_v0 = vld [vmem:[%s3981_s1 + $0xf4] ss:$8 sps:$4 sm:$0xff]   ;;  %v2230_v7 = vcombine.low %v18_v50, %v18_v50 }
  0x14   :  { %1999 = vmatpush1.bf16.msra.mxu0 %v2593_v19  ;;  %1836 = vmatprep.subr.bf16.mxu1 %v2594_v20  ;;  %v2638_v52 = vld [vmem:[%s3981_s1 + $0x4c4] ss:$8 sps:$4 sm:$0xff]   ;;  %v2641_v55 = vld [vmem:[%s3981_s1 + $0x4c0] ss:$8 sps:$4 sm:$0xff]   ;;  %v2656_v1 = vld [vmem:[%s3981_s1 + $0x4f4] ss:$8 sps:$4 sm:$0xff]  }
  0x15   :  { %2000 = vmatprep.subr.bf16.mxu0 %v2596_v21  ;;  %1858 = vmatprep.mubr.bf16.mxu1 %v2223_v48  ;;  %v2648_v60 = vld [vmem:[%s3981_s1 + $0xe4] ss:$8 sps:$4 sm:$0xff]   ;;  %v2652_v62 = vld [vmem:[%s3981_s1 + $0xe0] ss:$8 sps:$4 sm:$0xff]   ;;  %v2658_v2 = vld [vmem:[%s3981_s1 + $0xf0] ss:$8 sps:$4 sm:$0xff]  }
  0x16   :  { %2022 = vmatprep.mubr.bf16.mxu0 %v2231_v53  ;;  %v2650_v61 = vld [vmem:[%s3981_s1 + $0x4e4] ss:$8 sps:$4 sm:$0xff]   ;;  %v2653_v63 = vld [vmem:[%s3981_s1 + $0x4e0] ss:$8 sps:$4 sm:$0xff]   ;;  %v2659_v3 = vld [vmem:[%s3981_s1 + $0x4f0] ss:$8 sps:$4 sm:$0xff]  }
  0x17   :  { %1837 = vmatpush1.bf16.msra.mxu1 %v2598_v22  ;;  %v2664_v4 = vld [vmem:[%s3981_s1 + $0x104] ss:$8 sps:$4 sm:$0xff]   ;;  %v2662_v8 = vld [vmem:[%s3981_s1 + $0x100] ss:$8 sps:$4 sm:$0xff]   ;;  %v2672_v10 = vld [vmem:[%s3981_s1 + $0x114] ss:$8 sps:$4 sm:$0xff]  }
  0x18   :  { %2001 = vmatpush1.bf16.msra.mxu0 %v2599_v23  ;;  %1838 = vmatprep.subr.bf16.mxu1 %v2600_v24  ;;  %v2669_v5 = vld [vmem:[%s3981_s1 + $0x504] ss:$8 sps:$4 sm:$0xff]   ;;  %v2667_v9 = vld [vmem:[%s3981_s1 + $0x500] ss:$8 sps:$4 sm:$0xff]   ;;  %v2675_v11 = vld [vmem:[%s3981_s1 + $0x514] ss:$8 sps:$4 sm:$0xff]  }
  0x19   :  { %2002 = vmatprep.subr.bf16.mxu0 %v2602_v25  ;;  %v2670_v12 = vld [vmem:[%s3981_s1 + $0x110] ss:$8 sps:$4 sm:$0xff]   ;;  %v2678_v14 = vld [vmem:[%s3981_s1 + $0x124] ss:$8 sps:$4 sm:$0xff]   ;;  %v2676_v16 = vld [vmem:[%s3981_s1 + $0x120] ss:$8 sps:$4 sm:$0xff]  }
  0x1a   :  { %v2673_v13 = vld [vmem:[%s3981_s1 + $0x510] ss:$8 sps:$4 sm:$0xff]   ;;  %v2681_v15 = vld [vmem:[%s3981_s1 + $0x524] ss:$8 sps:$4 sm:$0xff]   ;;  %v2679_v17 = vld [vmem:[%s3981_s1 + $0x520] ss:$8 sps:$4 sm:$0xff]  }
  0x1b   :  { %1839 = vmatpush1.bf16.msra.mxu1 %v2604_v26  ;;  %v2684_v18 = vld [vmem:[%s3981_s1 + $0x134] ss:$8 sps:$4 sm:$0xff]   ;;  %v2682_v20 = vld [vmem:[%s3981_s1 + $0x130] ss:$8 sps:$4 sm:$0xff]   ;;  %v2690_v22 = vld [vmem:[%s3981_s1 + $0x144] ss:$8 sps:$4 sm:$0xff]  }
  0x1c   :  { %2003 = vmatpush1.bf16.msra.mxu0 %v2605_v27  ;;  %1840 = vmatprep.subr.bf16.mxu1 %v2606_v28  ;;  %v2687_v19 = vld [vmem:[%s3981_s1 + $0x534] ss:$8 sps:$4 sm:$0xff]   ;;  %v2685_v21 = vld [vmem:[%s3981_s1 + $0x530] ss:$8 sps:$4 sm:$0xff]   ;;  %v2693_v23 = vld [vmem:[%s3981_s1 + $0x544] ss:$8 sps:$4 sm:$0xff]  }
  0x1d   :  { %2004 = vmatprep.subr.bf16.mxu0 %v2608_v29  ;;  %v2688_v24 = vld [vmem:[%s3981_s1 + $0x140] ss:$8 sps:$4 sm:$0xff]   ;;  %v2696_v26 = vld [vmem:[%s3981_s1 + $0x154] ss:$8 sps:$4 sm:$0xff]   ;;  %v2694_v28 = vld [vmem:[%s3981_s1 + $0x150] ss:$8 sps:$4 sm:$0xff]  }
  0x1e   :  { %v2691_v25 = vld [vmem:[%s3981_s1 + $0x540] ss:$8 sps:$4 sm:$0xff]   ;;  %v2699_v27 = vld [vmem:[%s3981_s1 + $0x554] ss:$8 sps:$4 sm:$0xff]   ;;  %v2697_v29 = vld [vmem:[%s3981_s1 + $0x550] ss:$8 sps:$4 sm:$0xff]  }
  0x1f   :  { %1841 = vmatpush1.bf16.msra.mxu1 %v2610_v30  ;;  %v2702_v30 = vld [vmem:[%s3981_s1 + $0x164] ss:$8 sps:$4 sm:$0xff]   ;;  %v2720_v46 = vld [vmem:[%s3981_s1 + $0x194] ss:$8 sps:$4 sm:$0xff]   ;;  %v2718_v48 = vld [vmem:[%s3981_s1 + $0x190] ss:$8 sps:$4 sm:$0xff]  }
  0x20   :  { %2005 = vmatpush1.bf16.msra.mxu0 %v2611_v31  ;;  %1842 = vmatprep.subr.bf16.mxu1 %v2612_v32  ;;  %v2705_v31 = vld [vmem:[%s3981_s1 + $0x564] ss:$8 sps:$4 sm:$0xff]   ;;  %v2727_v53 = vld [vmem:[%s3981_s1 + $0x5a0] ss:$8 sps:$4 sm:$0xff]  }
  0x21   :  { %2006 = vmatprep.subr.bf16.mxu0 %v2614_v33  ;;  %v3321_v32 = vld [vmem:[%s3982_s0 + $0x8] sm:$0xff] }
  0x22   :  { %v2700_v33 = vld [vmem:[%s3981_s1 + $0x160] ss:$8 sps:$4 sm:$0xff]   ;;  %v2726_v50 = vld [vmem:[%s3981_s1 + $0x1a4] ss:$8 sps:$4 sm:$0xff]  }
  0x23   :  { %1843 = vmatpush1.bf16.msra.mxu1 %v2616_v34  ;;  %v2703_v34 = vld [vmem:[%s3981_s1 + $0x560] ss:$8 sps:$4 sm:$0xff]  }
  0x24   :  { %2007 = vmatpush1.bf16.msra.mxu0 %v2617_v35  ;;  %1844 = vmatprep.subr.bf16.mxu1 %v2618_v36  ;;  %v2225_v35 = vcombine.high %v3321_v32, %v3321_v32  ;;  %v3334_v36 = vld [vmem:[%s3982_s0 + $0x28] sm:$0xff] }
  0x25   :  { %2008 = vmatprep.subr.bf16.mxu0 %v2620_v37  ;;  %v2708_v37 = vld [vmem:[%s3981_s1 + $0x174] ss:$8 sps:$4 sm:$0xff]  }
  0x27   :  { %1845 = vmatpush1.bf16.msra.mxu1 %v2622_v38  ;;  %v2233_v38 = vcombine.high %v3334_v36, %v3334_v36 }
  0x28   :  { %2009 = vmatpush1.bf16.msra.mxu0 %v2623_v39  ;;  %1846 = vmatprep.subr.bf16.mxu1 %v2624_v40  ;;  %v2711_v39 = vld [vmem:[%s3981_s1 + $0x574] ss:$8 sps:$4 sm:$0xff]   ;;  %v2706_v40 = vld [vmem:[%s3981_s1 + $0x170] ss:$8 sps:$4 sm:$0xff]  }
  0x29   :  { %2010 = vmatprep.subr.bf16.mxu0 %v2626_v41  ;;  %v2709_v41 = vld [vmem:[%s3981_s1 + $0x570] ss:$8 sps:$4 sm:$0xff]  }
  0x2b   :  { %1847 = vmatpush1.bf16.msra.mxu1 %v2628_v42  ;;  %v2714_v42 = vld [vmem:[%s3981_s1 + $0x184] ss:$8 sps:$4 sm:$0xff]  }
  0x2c   :  { %2011 = vmatpush1.bf16.msra.mxu0 %v2629_v43  ;;  %1848 = vmatprep.subr.bf16.mxu1 %v2630_v44  ;;  %v2717_v43 = vld [vmem:[%s3981_s1 + $0x584] ss:$8 sps:$4 sm:$0xff]   ;;  %v2712_v44 = vld [vmem:[%s3981_s1 + $0x180] ss:$8 sps:$4 sm:$0xff]  }
  0x2d   :  { %2012 = vmatprep.subr.bf16.mxu0 %v2632_v45  ;;  %v2715_v45 = vld [vmem:[%s3981_s1 + $0x580] ss:$8 sps:$4 sm:$0xff]  }
  0x2f   :  { %1849 = vmatpush1.bf16.msra.mxu1 %v2634_v47  ;;  %v2723_v47 = vld [vmem:[%s3981_s1 + $0x594] ss:$8 sps:$4 sm:$0xff]  }
  0x30   :  { %2013 = vmatpush1.bf16.msra.mxu0 %v2635_v49  ;;  %1850 = vmatprep.subr.bf16.mxu1 %v2636_v51  ;;  %v2721_v49 = vld [vmem:[%s3981_s1 + $0x590] ss:$8 sps:$4 sm:$0xff]   ;;  %v2729_v51 = vld [vmem:[%s3981_s1 + $0x5a4] ss:$8 sps:$4 sm:$0xff]  }
  0x31   :  { %2014 = vmatprep.subr.bf16.mxu0 %v2638_v52  ;;  %v2724_v52 = vld [vmem:[%s3981_s1 + $0x1a0] ss:$8 sps:$4 sm:$0xff]  }
  0x33   :  { %1851 = vmatpush1.bf16.msra.mxu1 %v2640_v54  ;;  %v2732_v54 = vld [vmem:[%s3981_s1 + $0x1b4] ss:$8 sps:$4 sm:$0xff]  }
  0x34   :  { %2015 = vmatpush1.bf16.msra.mxu0 %v2641_v55  ;;  %1852 = vmatprep.subr.bf16.mxu1 %v2642_v56  ;;  %v2735_v55 = vld [vmem:[%s3981_s1 + $0x5b4] ss:$8 sps:$4 sm:$0xff]   ;;  %v2730_v56 = vld [vmem:[%s3981_s1 + $0x1b0] ss:$8 sps:$4 sm:$0xff]  }
  0x35   :  { %2016 = vmatprep.subr.bf16.mxu0 %v2644_v57  ;;  %v2733_v57 = vld [vmem:[%s3981_s1 + $0x5b0] ss:$8 sps:$4 sm:$0xff]  }
  0x37   :  { %1853 = vmatpush1.bf16.msra.mxu1 %v2646_v58  ;;  %v2738_v58 = vld [vmem:[%s3981_s1 + $0x1c4] ss:$8 sps:$4 sm:$0xff]  }
  0x38   :  { %2017 = vmatpush1.bf16.msra.mxu0 %v2647_v59  ;;  %1854 = vmatprep.subr.bf16.mxu1 %v2648_v60  ;;  %v2741_v59 = vld [vmem:[%s3981_s1 + $0x5c4] ss:$8 sps:$4 sm:$0xff]   ;;  %v2736_v60 = vld [vmem:[%s3981_s1 + $0x1c0] ss:$8 sps:$4 sm:$0xff]  }
  0x39   :  { %2018 = vmatprep.subr.bf16.mxu0 %v2650_v61  ;;  %v2739_v61 = vld [vmem:[%s3981_s1 + $0x5c0] ss:$8 sps:$4 sm:$0xff]  }
  0x3b   :  { %1855 = vmatpush1.bf16.msra.mxu1 %v2652_v62  ;;  %v2744_v62 = vld [vmem:[%s3981_s1 + $0x1d4] ss:$8 sps:$4 sm:$0xff]  }
  0x3c   :  { %2019 = vmatpush1.bf16.msra.mxu0 %v2653_v63  ;;  %1856 = vmatprep.subr.bf16.mxu1 %v2654_v0  ;;  %v2747_v63 = vld [vmem:[%s3981_s1 + $0x5d4] ss:$8 sps:$4 sm:$0xff]   ;;  %v2742_v0 = vld [vmem:[%s3981_s1 + $0x1d0] ss:$8 sps:$4 sm:$0xff]  }
  0x3d   :  { %2020 = vmatprep.subr.bf16.mxu0 %v2656_v1  ;;  %v2745_v1 = vld [vmem:[%s3981_s1 + $0x5d0] ss:$8 sps:$4 sm:$0xff]  }
  0x3f   :  { %1857 = vmatpush1.bf16.msra.mxu1 %v2658_v2  ;;  %v2750_v2 = vld [vmem:[%s3981_s1 + $0x1e4] ss:$8 sps:$4 sm:$0xff]  }
  0x40   :  { %2021 = vmatpush1.bf16.msra.mxu0 %v2659_v3  ;;  %1867 = vmatprep.subr.bf16.mxu1 %v2664_v4  ;;  %v2753_v3 = vld [vmem:[%s3981_s1 + $0x5e4] ss:$8 sps:$4 sm:$0xff]   ;;  %v2748_v4 = vld [vmem:[%s3981_s1 + $0x1e0] ss:$8 sps:$4 sm:$0xff]  }
  0x41   :  { %2031 = vmatprep.subr.bf16.mxu0 %v2669_v5  ;;  %v2751_v5 = vld [vmem:[%s3981_s1 + $0x5e0] ss:$8 sps:$4 sm:$0xff]  }
  0x42   :  { %1859 = vmatmul.mubr.bf16.vlgmr.msra.gmra.mrb[0].mxu1 %v2222_v6  ;;  %v2756_v6 = vld [vmem:[%s3981_s1 + $0x1f4] ss:$8 sps:$4 sm:$0xff]  }
  0x43   :  { %2023 = vmatmul.mubr.bf16.vlgmr.msra.gmra.mrb[0].mxu0 %v2230_v7  ;;  %1868 = vmatpush1.bf16.msra.mxu1 %v2662_v8  ;;  %v2759_v7 = vld [vmem:[%s3981_s1 + $0x5f4] ss:$8 sps:$4 sm:$0xff]   ;;  %v2754_v8 = vld [vmem:[%s3981_s1 + $0x1f0] ss:$8 sps:$4 sm:$0xff]  }
  0x44   :  { %2032 = vmatpush1.bf16.msra.mxu0 %v2667_v9  ;;  %1869 = vmatprep.subr.bf16.mxu1 %v2672_v10  ;;  %v2757_v9 = vld [vmem:[%s3981_s1 + $0x5f0] ss:$8 sps:$4 sm:$0xff]   ;;  %v2764_v10 = vld [vmem:[%s3981_s1 + $0x204] ss:$8 sps:$4 sm:$0xff]  }
  0x45   :  { %2033 = vmatprep.subr.bf16.mxu0 %v2675_v11  ;;  %1899 = vmatprep.mubr.bf16.mxu1 %v2225_v35  ;;  %v2769_v11 = vld [vmem:[%s3981_s1 + $0x604] ss:$8 sps:$4 sm:$0xff]   ;;  %v2791_v35 = vld [vmem:[%s3981_s1 + $0x640] ss:$8 sps:$4 sm:$0xff]  }
  0x46   :  { %2063 = vmatprep.mubr.bf16.mxu0 %v2233_v38  ;;  %v2794_v38 = vld [vmem:[%s3981_s1 + $0x250] ss:$8 sps:$4 sm:$0xff]  }
  0x47   :  { %1870 = vmatpush1.bf16.msra.mxu1 %v2670_v12  ;;  %v2224_v12 = vcombine.low %v3321_v32, %v3321_v32  ;;  %v2790_v32 = vld [vmem:[%s3981_s1 + $0x244] ss:$8 sps:$4 sm:$0xff]  }
  0x48   :  { %2034 = vmatpush1.bf16.msra.mxu0 %v2673_v13  ;;  %1871 = vmatprep.subr.bf16.mxu1 %v2678_v14  ;;  %v2762_v13 = vld [vmem:[%s3981_s1 + $0x200] ss:$8 sps:$4 sm:$0xff]   ;;  %v2232_v14 = vcombine.low %v3334_v36, %v3334_v36  ;;  %v2796_v36 = vld [vmem:[%s3981_s1 + $0x254] ss:$8 sps:$4 sm:$0xff]  }
  0x49   :  { %2035 = vmatprep.subr.bf16.mxu0 %v2681_v15  ;;  %v2767_v15 = vld [vmem:[%s3981_s1 + $0x600] ss:$8 sps:$4 sm:$0xff]  }
  0x4b   :  { %1872 = vmatpush1.bf16.msra.mxu1 %v2676_v16  ;;  %v2772_v16 = vld [vmem:[%s3981_s1 + $0x214] ss:$8 sps:$4 sm:$0xff]  }
  0x4c   :  { %2036 = vmatpush1.bf16.msra.mxu0 %v2679_v17  ;;  %1873 = vmatprep.subr.bf16.mxu1 %v2684_v18  ;;  %v2775_v17 = vld [vmem:[%s3981_s1 + $0x614] ss:$8 sps:$4 sm:$0xff]  }
  0x4d   :  { %2037 = vmatprep.subr.bf16.mxu0 %v2687_v19  ;;  %v3471_v18 = vld [vmem:[%s3982_s0 + $0x10] sm:$0xff] }
  0x4e   :  { %v2227_v19 = vcombine.high %v3471_v18, %v3471_v18 }
  0x4f   :  { %1874 = vmatpush1.bf16.msra.mxu1 %v2682_v20  ;;  %v3478_v20 = vld [vmem:[%s3982_s0 + $0x30] sm:$0xff] }
  0x50   :  { %2038 = vmatpush1.bf16.msra.mxu0 %v2685_v21  ;;  %1875 = vmatprep.subr.bf16.mxu1 %v2690_v22  ;;  %v2770_v21 = vld [vmem:[%s3981_s1 + $0x210] ss:$8 sps:$4 sm:$0xff]  }
  0x51   :  { %2039 = vmatprep.subr.bf16.mxu0 %v2693_v23  ;;  %v2773_v22 = vld [vmem:[%s3981_s1 + $0x610] ss:$8 sps:$4 sm:$0xff]   ;;  %v2235_v23 = vcombine.high %v3478_v20, %v3478_v20 }
  0x53   :  { %1876 = vmatpush1.bf16.msra.mxu1 %v2688_v24  ;;  %v2778_v24 = vld [vmem:[%s3981_s1 + $0x224] ss:$8 sps:$4 sm:$0xff]  }
  0x54   :  { %2040 = vmatpush1.bf16.msra.mxu0 %v2691_v25  ;;  %1877 = vmatprep.subr.bf16.mxu1 %v2696_v26  ;;  %v2781_v25 = vld [vmem:[%s3981_s1 + $0x624] ss:$8 sps:$4 sm:$0xff]   ;;  %v2776_v26 = vld [vmem:[%s3981_s1 + $0x220] ss:$8 sps:$4 sm:$0xff]  }
  0x55   :  { %2041 = vmatprep.subr.bf16.mxu0 %v2699_v27  ;;  %v2779_v27 = vld [vmem:[%s3981_s1 + $0x620] ss:$8 sps:$4 sm:$0xff]  }
  0x57   :  { %1878 = vmatpush1.bf16.msra.mxu1 %v2694_v28  ;;  %v2784_v28 = vld [vmem:[%s3981_s1 + $0x234] ss:$8 sps:$4 sm:$0xff]  }
  0x58   :  { %2042 = vmatpush1.bf16.msra.mxu0 %v2697_v29  ;;  %1879 = vmatprep.subr.bf16.mxu1 %v2702_v30  ;;  %v2787_v29 = vld [vmem:[%s3981_s1 + $0x634] ss:$8 sps:$4 sm:$0xff]   ;;  %v2782_v30 = vld [vmem:[%s3981_s1 + $0x230] ss:$8 sps:$4 sm:$0xff]  }
  0x59   :  { %2043 = vmatprep.subr.bf16.mxu0 %v2705_v31  ;;  %v2785_v31 = vld [vmem:[%s3981_s1 + $0x630] ss:$8 sps:$4 sm:$0xff]  }
  0x5b   :  { %1880 = vmatpush1.bf16.msra.mxu1 %v2700_v33  ;;  %v2793_v33 = vld [vmem:[%s3981_s1 + $0x644] ss:$8 sps:$4 sm:$0xff]  }
  0x5c   :  { %2044 = vmatpush1.bf16.msra.mxu0 %v2703_v34  ;;  %1881 = vmatprep.subr.bf16.mxu1 %v2708_v37  ;;  %v2788_v34 = vld [vmem:[%s3981_s1 + $0x240] ss:$8 sps:$4 sm:$0xff]   ;;  %v2799_v37 = vld [vmem:[%s3981_s1 + $0x654] ss:$8 sps:$4 sm:$0xff]  }
  0x5d   :  { %2045 = vmatprep.subr.bf16.mxu0 %v2711_v39  ;;  %v2797_v39 = vld [vmem:[%s3981_s1 + $0x650] ss:$8 sps:$4 sm:$0xff]  }
  0x5f   :  { %1882 = vmatpush1.bf16.msra.mxu1 %v2706_v40  ;;  %v2802_v40 = vld [vmem:[%s3981_s1 + $0x264] ss:$8 sps:$4 sm:$0xff]  }
  0x60   :  { %2046 = vmatpush1.bf16.msra.mxu0 %v2709_v41  ;;  %1883 = vmatprep.subr.bf16.mxu1 %v2714_v42  ;;  %v2805_v41 = vld [vmem:[%s3981_s1 + $0x664] ss:$8 sps:$4 sm:$0xff]   ;;  %v2800_v42 = vld [vmem:[%s3981_s1 + $0x260] ss:$8 sps:$4 sm:$0xff]  }
  0x61   :  { %2047 = vmatprep.subr.bf16.mxu0 %v2717_v43  ;;  %v2803_v43 = vld [vmem:[%s3981_s1 + $0x660] ss:$8 sps:$4 sm:$0xff]  }
  0x63   :  { %1884 = vmatpush1.bf16.msra.mxu1 %v2712_v44  ;;  %v2808_v44 = vld [vmem:[%s3981_s1 + $0x274] ss:$8 sps:$4 sm:$0xff]  }
  0x64   :  { %2048 = vmatpush1.bf16.msra.mxu0 %v2715_v45  ;;  %1885 = vmatprep.subr.bf16.mxu1 %v2720_v46  ;;  %v2811_v45 = vld [vmem:[%s3981_s1 + $0x674] ss:$8 sps:$4 sm:$0xff]   ;;  %v2806_v46 = vld [vmem:[%s3981_s1 + $0x270] ss:$8 sps:$4 sm:$0xff]  }
  0x65   :  { %2049 = vmatprep.subr.bf16.mxu0 %v2723_v47  ;;  %v2809_v47 = vld [vmem:[%s3981_s1 + $0x670] ss:$8 sps:$4 sm:$0xff]  }
  0x67   :  { %1886 = vmatpush1.bf16.msra.mxu1 %v2718_v48  ;;  %v2814_v48 = vld [vmem:[%s3981_s1 + $0x284] ss:$8 sps:$4 sm:$0xff]  }
  0x68   :  { %2050 = vmatpush1.bf16.msra.mxu0 %v2721_v49  ;;  %1887 = vmatprep.subr.bf16.mxu1 %v2726_v50  ;;  %v2817_v49 = vld [vmem:[%s3981_s1 + $0x684] ss:$8 sps:$4 sm:$0xff]   ;;  %v2812_v50 = vld [vmem:[%s3981_s1 + $0x280] ss:$8 sps:$4 sm:$0xff]  }
  0x69   :  { %2051 = vmatprep.subr.bf16.mxu0 %v2729_v51  ;;  %v2815_v51 = vld [vmem:[%s3981_s1 + $0x680] ss:$8 sps:$4 sm:$0xff]  }
  0x6b   :  { %1888 = vmatpush1.bf16.msra.mxu1 %v2724_v52  ;;  %v2820_v52 = vld [vmem:[%s3981_s1 + $0x294] ss:$8 sps:$4 sm:$0xff]  }
  0x6c   :  { %2052 = vmatpush1.bf16.msra.mxu0 %v2727_v53  ;;  %1889 = vmatprep.subr.bf16.mxu1 %v2732_v54  ;;  %v2823_v53 = vld [vmem:[%s3981_s1 + $0x694] ss:$8 sps:$4 sm:$0xff]   ;;  %v2818_v54 = vld [vmem:[%s3981_s1 + $0x290] ss:$8 sps:$4 sm:$0xff]  }
  0x6d   :  { %2053 = vmatprep.subr.bf16.mxu0 %v2735_v55  ;;  %v2821_v55 = vld [vmem:[%s3981_s1 + $0x690] ss:$8 sps:$4 sm:$0xff]  }
  0x6f   :  { %1890 = vmatpush1.bf16.msra.mxu1 %v2730_v56  ;;  %v2826_v56 = vld [vmem:[%s3981_s1 + $0x2a4] ss:$8 sps:$4 sm:$0xff]  }
  0x70   :  { %2054 = vmatpush1.bf16.msra.mxu0 %v2733_v57  ;;  %1891 = vmatprep.subr.bf16.mxu1 %v2738_v58  ;;  %v2829_v57 = vld [vmem:[%s3981_s1 + $0x6a4] ss:$8 sps:$4 sm:$0xff]   ;;  %v2824_v58 = vld [vmem:[%s3981_s1 + $0x2a0] ss:$8 sps:$4 sm:$0xff]  }
  0x71   :  { %2055 = vmatprep.subr.bf16.mxu0 %v2741_v59  ;;  %v2827_v59 = vld [vmem:[%s3981_s1 + $0x6a0] ss:$8 sps:$4 sm:$0xff]  }
  0x73   :  { %1892 = vmatpush1.bf16.msra.mxu1 %v2736_v60  ;;  %v2832_v60 = vld [vmem:[%s3981_s1 + $0x2b4] ss:$8 sps:$4 sm:$0xff]  }
  0x74   :  { %2056 = vmatpush1.bf16.msra.mxu0 %v2739_v61  ;;  %1893 = vmatprep.subr.bf16.mxu1 %v2744_v62  ;;  %v2835_v61 = vld [vmem:[%s3981_s1 + $0x6b4] ss:$8 sps:$4 sm:$0xff]   ;;  %v2830_v62 = vld [vmem:[%s3981_s1 + $0x2b0] ss:$8 sps:$4 sm:$0xff]  }
  0x75   :  { %2057 = vmatprep.subr.bf16.mxu0 %v2747_v63  ;;  %v2833_v63 = vld [vmem:[%s3981_s1 + $0x6b0] ss:$8 sps:$4 sm:$0xff]  }
  0x77   :  { %1894 = vmatpush1.bf16.msra.mxu1 %v2742_v0  ;;  %v2838_v0 = vld [vmem:[%s3981_s1 + $0x2c4] ss:$8 sps:$4 sm:$0xff]  }
  0x78   :  { %2058 = vmatpush1.bf16.msra.mxu0 %v2745_v1  ;;  %1895 = vmatprep.subr.bf16.mxu1 %v2750_v2  ;;  %v2841_v1 = vld [vmem:[%s3981_s1 + $0x6c4] ss:$8 sps:$4 sm:$0xff]   ;;  %v2836_v2 = vld [vmem:[%s3981_s1 + $0x2c0] ss:$8 sps:$4 sm:$0xff]  }
  0x79   :  { %2059 = vmatprep.subr.bf16.mxu0 %v2753_v3  ;;  %v2839_v3 = vld [vmem:[%s3981_s1 + $0x6c0] ss:$8 sps:$4 sm:$0xff]  }
  0x7b   :  { %1896 = vmatpush1.bf16.msra.mxu1 %v2748_v4  ;;  %v2844_v4 = vld [vmem:[%s3981_s1 + $0x2d4] ss:$8 sps:$4 sm:$0xff]  }
  0x7c   :  { %2060 = vmatpush1.bf16.msra.mxu0 %v2751_v5  ;;  %1897 = vmatprep.subr.bf16.mxu1 %v2756_v6  ;;  %v2847_v5 = vld [vmem:[%s3981_s1 + $0x6d4] ss:$8 sps:$4 sm:$0xff]   ;;  %v2842_v6 = vld [vmem:[%s3981_s1 + $0x2d0] ss:$8 sps:$4 sm:$0xff]  }
  0x7d   :  { %2061 = vmatprep.subr.bf16.mxu0 %v2759_v7  ;;  %v2845_v7 = vld [vmem:[%s3981_s1 + $0x6d0] ss:$8 sps:$4 sm:$0xff]  }
  0x7f   :  { %1898 = vmatpush1.bf16.msra.mxu1 %v2754_v8  ;;  %v2850_v8 = vld [vmem:[%s3981_s1 + $0x2e4] ss:$8 sps:$4 sm:$0xff]  }
  0x80   :  { %2062 = vmatpush1.bf16.msra.mxu0 %v2757_v9  ;;  %1908 = vmatprep.subr.bf16.mxu1 %v2764_v10  ;;  %v2853_v9 = vld [vmem:[%s3981_s1 + $0x6e4] ss:$8 sps:$4 sm:$0xff]   ;;  %v2848_v10 = vld [vmem:[%s3981_s1 + $0x2e0] ss:$8 sps:$4 sm:$0xff]  }
  0x81   :  { %2072 = vmatprep.subr.bf16.mxu0 %v2769_v11  ;;  %v2851_v11 = vld [vmem:[%s3981_s1 + $0x6e0] ss:$8 sps:$4 sm:$0xff]  }
  0x82   :  { %1900 = vmatmul.mubr.bf16.vlgmr.msra.gmra.mrb[0].mxu1 %v2224_v12  ;;  %v2856_v12 = vld [vmem:[%s3981_s1 + $0x2f4] ss:$8 sps:$4 sm:$0xff]  }
  0x83   :  { %2064 = vmatmul.mubr.bf16.vlgmr.msra.gmra.mrb[0].mxu0 %v2232_v14  ;;  %1909 = vmatpush1.bf16.msra.mxu1 %v2762_v13  ;;  %v2859_v13 = vld [vmem:[%s3981_s1 + $0x6f4] ss:$8 sps:$4 sm:$0xff]   ;;  %v2854_v14 = vld [vmem:[%s3981_s1 + $0x2f0] ss:$8 sps:$4 sm:$0xff]  }
  0x84   :  { %2073 = vmatpush1.bf16.msra.mxu0 %v2767_v15  ;;  %1910 = vmatprep.subr.bf16.mxu1 %v2772_v16  ;;  %v2857_v15 = vld [vmem:[%s3981_s1 + $0x6f0] ss:$8 sps:$4 sm:$0xff]   ;;  %v2864_v16 = vld [vmem:[%s3981_s1 + $0x304] ss:$8 sps:$4 sm:$0xff]  }
  0x85   :  { %2074 = vmatprep.subr.bf16.mxu0 %v2775_v17  ;;  %1940 = vmatprep.mubr.bf16.mxu1 %v2227_v19  ;;  %v2869_v17 = vld [vmem:[%s3981_s1 + $0x704] ss:$8 sps:$4 sm:$0xff]   ;;  %v2862_v19 = vld [vmem:[%s3981_s1 + $0x300] ss:$8 sps:$4 sm:$0xff]  }
  0x86   :  { %2104 = vmatprep.mubr.bf16.mxu0 %v2235_v23  ;;  %v2234_v23 = vcombine.low %v3478_v20, %v3478_v20 }
  0x87   :  { %1911 = vmatpush1.bf16.msra.mxu1 %v2770_v21  ;;  %v2867_v21 = vld [vmem:[%s3981_s1 + $0x700] ss:$8 sps:$4 sm:$0xff]  }
  0x88   :  { %2075 = vmatpush1.bf16.msra.mxu0 %v2773_v22  ;;  %1912 = vmatprep.subr.bf16.mxu1 %v2778_v24  ;;  %v2226_v22 = vcombine.low %v3471_v18, %v3471_v18  ;;  %v3675_v24 = vld [vmem:[%s3982_s0 + $0x18] sm:$0xff] }
  0x89   :  { %2076 = vmatprep.subr.bf16.mxu0 %v2781_v25  ;;  %v3680_v25 = vld [vmem:[%s3982_s0 + $0x38] sm:$0xff]  ;;  %v2229_v20 = vcombine.high %v3675_v24, %v3675_v24 }
  0x8a   :  { %v2875_v18 = vld [vmem:[%s3981_s1 + $0x714] ss:$8 sps:$4 sm:$0xff]  }
  0x8b   :  { %1913 = vmatpush1.bf16.msra.mxu1 %v2776_v26  ;;  %v2872_v26 = vld [vmem:[%s3981_s1 + $0x314] ss:$8 sps:$4 sm:$0xff]  }
  0x8c   :  { %2077 = vmatpush1.bf16.msra.mxu0 %v2779_v27  ;;  %1914 = vmatprep.subr.bf16.mxu1 %v2784_v28  ;;  %v2237_v27 = vcombine.high %v3680_v25, %v3680_v25  ;;  %v2870_v28 = vld [vmem:[%s3981_s1 + $0x310] ss:$8 sps:$4 sm:$0xff]  }
  0x8d   :  { %2078 = vmatprep.subr.bf16.mxu0 %v2787_v29  ;;  %v2873_v29 = vld [vmem:[%s3981_s1 + $0x710] ss:$8 sps:$4 sm:$0xff]  }
  0x8f   :  { %1915 = vmatpush1.bf16.msra.mxu1 %v2782_v30  ;;  %v2878_v30 = vld [vmem:[%s3981_s1 + $0x324] ss:$8 sps:$4 sm:$0xff]  }
  0x90   :  { %2079 = vmatpush1.bf16.msra.mxu0 %v2785_v31  ;;  %1916 = vmatprep.subr.bf16.mxu1 %v2790_v32  ;;  %v2881_v31 = vld [vmem:[%s3981_s1 + $0x724] ss:$8 sps:$4 sm:$0xff]   ;;  %v2876_v32 = vld [vmem:[%s3981_s1 + $0x320] ss:$8 sps:$4 sm:$0xff]  }
  0x91   :  { %2080 = vmatprep.subr.bf16.mxu0 %v2793_v33  ;;  %v2879_v33 = vld [vmem:[%s3981_s1 + $0x720] ss:$8 sps:$4 sm:$0xff]  }
  0x93   :  { %1917 = vmatpush1.bf16.msra.mxu1 %v2788_v34  ;;  %v2884_v34 = vld [vmem:[%s3981_s1 + $0x334] ss:$8 sps:$4 sm:$0xff]  }
  0x94   :  { %2081 = vmatpush1.bf16.msra.mxu0 %v2791_v35  ;;  %1918 = vmatprep.subr.bf16.mxu1 %v2796_v36  ;;  %v2887_v35 = vld [vmem:[%s3981_s1 + $0x734] ss:$8 sps:$4 sm:$0xff]   ;;  %v2882_v36 = vld [vmem:[%s3981_s1 + $0x330] ss:$8 sps:$4 sm:$0xff]  }
  0x95   :  { %2082 = vmatprep.subr.bf16.mxu0 %v2799_v37  ;;  %v2885_v37 = vld [vmem:[%s3981_s1 + $0x730] ss:$8 sps:$4 sm:$0xff]  }
  0x97   :  { %1919 = vmatpush1.bf16.msra.mxu1 %v2794_v38  ;;  %v2890_v38 = vld [vmem:[%s3981_s1 + $0x344] ss:$8 sps:$4 sm:$0xff]  }
  0x98   :  { %2083 = vmatpush1.bf16.msra.mxu0 %v2797_v39  ;;  %1920 = vmatprep.subr.bf16.mxu1 %v2802_v40  ;;  %v2893_v39 = vld [vmem:[%s3981_s1 + $0x744] ss:$8 sps:$4 sm:$0xff]   ;;  %v2888_v40 = vld [vmem:[%s3981_s1 + $0x340] ss:$8 sps:$4 sm:$0xff]  }
  0x99   :  { %2084 = vmatprep.subr.bf16.mxu0 %v2805_v41  ;;  %v2891_v41 = vld [vmem:[%s3981_s1 + $0x740] ss:$8 sps:$4 sm:$0xff]  }
  0x9b   :  { %1921 = vmatpush1.bf16.msra.mxu1 %v2800_v42  ;;  %v2896_v42 = vld [vmem:[%s3981_s1 + $0x354] ss:$8 sps:$4 sm:$0xff]  }
  0x9c   :  { %2085 = vmatpush1.bf16.msra.mxu0 %v2803_v43  ;;  %1922 = vmatprep.subr.bf16.mxu1 %v2808_v44  ;;  %v2899_v43 = vld [vmem:[%s3981_s1 + $0x754] ss:$8 sps:$4 sm:$0xff]   ;;  %v2894_v44 = vld [vmem:[%s3981_s1 + $0x350] ss:$8 sps:$4 sm:$0xff]  }
  0x9d   :  { %2086 = vmatprep.subr.bf16.mxu0 %v2811_v45  ;;  %v2897_v45 = vld [vmem:[%s3981_s1 + $0x750] ss:$8 sps:$4 sm:$0xff]  }
  0x9f   :  { %1923 = vmatpush1.bf16.msra.mxu1 %v2806_v46  ;;  %v2902_v46 = vld [vmem:[%s3981_s1 + $0x364] ss:$8 sps:$4 sm:$0xff]  }
  0xa0   :  { %2087 = vmatpush1.bf16.msra.mxu0 %v2809_v47  ;;  %1924 = vmatprep.subr.bf16.mxu1 %v2814_v48  ;;  %v2905_v47 = vld [vmem:[%s3981_s1 + $0x764] ss:$8 sps:$4 sm:$0xff]   ;;  %v2900_v48 = vld [vmem:[%s3981_s1 + $0x360] ss:$8 sps:$4 sm:$0xff]  }
  0xa1   :  { %2088 = vmatprep.subr.bf16.mxu0 %v2817_v49  ;;  %v2903_v49 = vld [vmem:[%s3981_s1 + $0x760] ss:$8 sps:$4 sm:$0xff]  }
  0xa3   :  { %1925 = vmatpush1.bf16.msra.mxu1 %v2812_v50  ;;  %v2908_v50 = vld [vmem:[%s3981_s1 + $0x374] ss:$8 sps:$4 sm:$0xff]  }
  0xa4   :  { %2089 = vmatpush1.bf16.msra.mxu0 %v2815_v51  ;;  %1926 = vmatprep.subr.bf16.mxu1 %v2820_v52  ;;  %v2911_v51 = vld [vmem:[%s3981_s1 + $0x774] ss:$8 sps:$4 sm:$0xff]   ;;  %v2906_v52 = vld [vmem:[%s3981_s1 + $0x370] ss:$8 sps:$4 sm:$0xff]  }
  0xa5   :  { %2090 = vmatprep.subr.bf16.mxu0 %v2823_v53  ;;  %v2909_v53 = vld [vmem:[%s3981_s1 + $0x770] ss:$8 sps:$4 sm:$0xff]  }
  0xa7   :  { %1927 = vmatpush1.bf16.msra.mxu1 %v2818_v54  ;;  %v2914_v54 = vld [vmem:[%s3981_s1 + $0x384] ss:$8 sps:$4 sm:$0xff]  }
  0xa8   :  { %2091 = vmatpush1.bf16.msra.mxu0 %v2821_v55  ;;  %1928 = vmatprep.subr.bf16.mxu1 %v2826_v56  ;;  %v2917_v55 = vld [vmem:[%s3981_s1 + $0x784] ss:$8 sps:$4 sm:$0xff]   ;;  %v2912_v56 = vld [vmem:[%s3981_s1 + $0x380] ss:$8 sps:$4 sm:$0xff]  }
  0xa9   :  { %2092 = vmatprep.subr.bf16.mxu0 %v2829_v57  ;;  %v2915_v57 = vld [vmem:[%s3981_s1 + $0x780] ss:$8 sps:$4 sm:$0xff]  }
  0xab   :  { %1929 = vmatpush1.bf16.msra.mxu1 %v2824_v58  ;;  %v2920_v58 = vld [vmem:[%s3981_s1 + $0x394] ss:$8 sps:$4 sm:$0xff]  }
  0xac   :  { %2093 = vmatpush1.bf16.msra.mxu0 %v2827_v59  ;;  %1930 = vmatprep.subr.bf16.mxu1 %v2832_v60  ;;  %v2923_v59 = vld [vmem:[%s3981_s1 + $0x794] ss:$8 sps:$4 sm:$0xff]   ;;  %v2918_v60 = vld [vmem:[%s3981_s1 + $0x390] ss:$8 sps:$4 sm:$0xff]  }
  0xad   :  { %2094 = vmatprep.subr.bf16.mxu0 %v2835_v61  ;;  %v2921_v61 = vld [vmem:[%s3981_s1 + $0x790] ss:$8 sps:$4 sm:$0xff]  }
  0xaf   :  { %1931 = vmatpush1.bf16.msra.mxu1 %v2830_v62  ;;  %v2926_v62 = vld [vmem:[%s3981_s1 + $0x3a4] ss:$8 sps:$4 sm:$0xff]  }
  0xb0   :  { %2095 = vmatpush1.bf16.msra.mxu0 %v2833_v63  ;;  %1932 = vmatprep.subr.bf16.mxu1 %v2838_v0  ;;  %v2929_v63 = vld [vmem:[%s3981_s1 + $0x7a4] ss:$8 sps:$4 sm:$0xff]   ;;  %v2924_v0 = vld [vmem:[%s3981_s1 + $0x3a0] ss:$8 sps:$4 sm:$0xff]  }
  0xb1   :  { %2096 = vmatprep.subr.bf16.mxu0 %v2841_v1  ;;  %v2927_v1 = vld [vmem:[%s3981_s1 + $0x7a0] ss:$8 sps:$4 sm:$0xff]  }
  0xb3   :  { %1933 = vmatpush1.bf16.msra.mxu1 %v2836_v2  ;;  %v2932_v2 = vld [vmem:[%s3981_s1 + $0x3b4] ss:$8 sps:$4 sm:$0xff]  }
  0xb4   :  { %2097 = vmatpush1.bf16.msra.mxu0 %v2839_v3  ;;  %1934 = vmatprep.subr.bf16.mxu1 %v2844_v4  ;;  %v2935_v3 = vld [vmem:[%s3981_s1 + $0x7b4] ss:$8 sps:$4 sm:$0xff]   ;;  %v2930_v4 = vld [vmem:[%s3981_s1 + $0x3b0] ss:$8 sps:$4 sm:$0xff]  }
  0xb5   :  { %2098 = vmatprep.subr.bf16.mxu0 %v2847_v5  ;;  %v2933_v5 = vld [vmem:[%s3981_s1 + $0x7b0] ss:$8 sps:$4 sm:$0xff]  }
  0xb7   :  { %1935 = vmatpush1.bf16.msra.mxu1 %v2842_v6  ;;  %v2938_v6 = vld [vmem:[%s3981_s1 + $0x3c4] ss:$8 sps:$4 sm:$0xff]  }
  0xb8   :  { %2099 = vmatpush1.bf16.msra.mxu0 %v2845_v7  ;;  %1936 = vmatprep.subr.bf16.mxu1 %v2850_v8  ;;  %v2941_v7 = vld [vmem:[%s3981_s1 + $0x7c4] ss:$8 sps:$4 sm:$0xff]   ;;  %v2936_v8 = vld [vmem:[%s3981_s1 + $0x3c0] ss:$8 sps:$4 sm:$0xff]  }
  0xb9   :  { %2100 = vmatprep.subr.bf16.mxu0 %v2853_v9  ;;  %v2939_v9 = vld [vmem:[%s3981_s1 + $0x7c0] ss:$8 sps:$4 sm:$0xff]  }
  0xbb   :  { %1937 = vmatpush1.bf16.msra.mxu1 %v2848_v10  ;;  %v2944_v10 = vld [vmem:[%s3981_s1 + $0x3d4] ss:$8 sps:$4 sm:$0xff]  }
  0xbc   :  { %2101 = vmatpush1.bf16.msra.mxu0 %v2851_v11  ;;  %1938 = vmatprep.subr.bf16.mxu1 %v2856_v12  ;;  %v2947_v11 = vld [vmem:[%s3981_s1 + $0x7d4] ss:$8 sps:$4 sm:$0xff]   ;;  %v2942_v12 = vld [vmem:[%s3981_s1 + $0x3d0] ss:$8 sps:$4 sm:$0xff]  }
  0xbd   :  { %2102 = vmatprep.subr.bf16.mxu0 %v2859_v13  ;;  %v2945_v13 = vld [vmem:[%s3981_s1 + $0x7d0] ss:$8 sps:$4 sm:$0xff]  }
  0xbf   :  { %1939 = vmatpush1.bf16.msra.mxu1 %v2854_v14  ;;  %v2950_v14 = vld [vmem:[%s3981_s1 + $0x3e4] ss:$8 sps:$4 sm:$0xff]  }
  0xc0   :  { %2103 = vmatpush1.bf16.msra.mxu0 %v2857_v15  ;;  %1949 = vmatprep.subr.bf16.mxu1 %v2864_v16  ;;  %v2953_v15 = vld [vmem:[%s3981_s1 + $0x7e4] ss:$8 sps:$4 sm:$0xff]   ;;  %v2948_v16 = vld [vmem:[%s3981_s1 + $0x3e0] ss:$8 sps:$4 sm:$0xff]  }
  0xc1   :  { %2113 = vmatprep.subr.bf16.mxu0 %v2869_v17  ;;  %v2951_v17 = vld [vmem:[%s3981_s1 + $0x7e0] ss:$8 sps:$4 sm:$0xff]  }
  0xc2   :  { %1941 = vmatmul.mubr.bf16.vlgmr.msra.gmra.mrb[0].mxu1 %v2226_v22  ;;  %v2954_v22 = vld [vmem:[%s3981_s1 + $0x3f0] ss:$8 sps:$4 sm:$0xff]  }
  0xc3   :  { %2105 = vmatmul.mubr.bf16.vlgmr.msra.gmra.mrb[0].mxu0 %v2234_v23  ;;  %1950 = vmatpush1.bf16.msra.mxu1 %v2862_v19  ;;  %v2956_v19 = vld [vmem:[%s3981_s1 + $0x3f4] ss:$8 sps:$4 sm:$0xff]   ;;  %v2957_v23 = vld [vmem:[%s3981_s1 + $0x7f0] ss:$8 sps:$4 sm:$0xff]  }
  0xc4   :  { %2114 = vmatpush1.bf16.msra.mxu0 %v2867_v21  ;;  %1951 = vmatprep.subr.bf16.mxu1 %v2872_v26  ;;  %v2959_v21 = vld [vmem:[%s3981_s1 + $0x7f4] ss:$8 sps:$4 sm:$0xff]   ;;  %v2966_v26 = vld [vmem:[%s3981_s1 + $0x804] ss:$8 sps:$4 sm:$0xff]  }
  0xc5   :  { %2115 = vmatprep.subr.bf16.mxu0 %v2875_v18  ;;  %1981 = vmatprep.mubr.bf16.mxu1 %v2229_v20  ;;  %v3872_v18 = vld [vmem:[%s3982_s0 + $0x40] sm:$0xff]  ;;  %v2228_v20 = vcombine.low %v3675_v24, %v3675_v24  ;;  %v2967_v24 = vld [vmem:[%s3981_s1 + $0x810] ss:$8 sps:$4 sm:$0xff]  }
  0xc6   :  { %2145 = vmatprep.mubr.bf16.mxu0 %v2237_v27  ;;  %v2236_v27 = vcombine.low %v3680_v25, %v3680_v25  ;;  %v2972_v25 = vld [vmem:[%s3981_s1 + $0x824] ss:$8 sps:$4 sm:$0xff]  }
  0xc7   :  { %1952 = vmatpush1.bf16.msra.mxu1 %v2870_v28  ;;  %v2964_v28 = vld [vmem:[%s3981_s1 + $0x800] ss:$8 sps:$4 sm:$0xff]  }
  0xc8   :  { %2116 = vmatpush1.bf16.msra.mxu0 %v2873_v29  ;;  %1953 = vmatprep.subr.bf16.mxu1 %v2878_v30  ;;  %v2239_v29 = vcombine.high %v3872_v18, %v3872_v18  ;;  %v2969_v30 = vld [vmem:[%s3981_s1 + $0x814] ss:$8 sps:$4 sm:$0xff]  }
  0xc9   :  { %2117 = vmatprep.subr.bf16.mxu0 %v2881_v31  ;;  %v2970_v31 = vld [vmem:[%s3981_s1 + $0x820] ss:$8 sps:$4 sm:$0xff]  }
  0xcb   :  { %1954 = vmatpush1.bf16.msra.mxu1 %v2876_v32  ;;  %v2975_v32 = vld [vmem:[%s3981_s1 + $0x834] ss:$8 sps:$4 sm:$0xff]  }
  0xcc   :  { %2118 = vmatpush1.bf16.msra.mxu0 %v2879_v33  ;;  %1955 = vmatprep.subr.bf16.mxu1 %v2884_v34  ;;  %v2973_v33 = vld [vmem:[%s3981_s1 + $0x830] ss:$8 sps:$4 sm:$0xff]   ;;  %v2978_v34 = vld [vmem:[%s3981_s1 + $0x844] ss:$8 sps:$4 sm:$0xff]  }
  0xcd   :  { %2119 = vmatprep.subr.bf16.mxu0 %v2887_v35  ;;  %v2976_v35 = vld [vmem:[%s3981_s1 + $0x840] ss:$8 sps:$4 sm:$0xff]  }
  0xcf   :  { %1956 = vmatpush1.bf16.msra.mxu1 %v2882_v36  ;;  %v2981_v36 = vld [vmem:[%s3981_s1 + $0x854] ss:$8 sps:$4 sm:$0xff]  }
  0xd0   :  { %2120 = vmatpush1.bf16.msra.mxu0 %v2885_v37  ;;  %1957 = vmatprep.subr.bf16.mxu1 %v2890_v38  ;;  %v2979_v37 = vld [vmem:[%s3981_s1 + $0x850] ss:$8 sps:$4 sm:$0xff]   ;;  %v2984_v38 = vld [vmem:[%s3981_s1 + $0x864] ss:$8 sps:$4 sm:$0xff]  }
  0xd1   :  { %2121 = vmatprep.subr.bf16.mxu0 %v2893_v39  ;;  %v2982_v39 = vld [vmem:[%s3981_s1 + $0x860] ss:$8 sps:$4 sm:$0xff]  }
  0xd3   :  { %1958 = vmatpush1.bf16.msra.mxu1 %v2888_v40  ;;  %v2987_v40 = vld [vmem:[%s3981_s1 + $0x874] ss:$8 sps:$4 sm:$0xff]  }
  0xd4   :  { %2122 = vmatpush1.bf16.msra.mxu0 %v2891_v41  ;;  %1959 = vmatprep.subr.bf16.mxu1 %v2896_v42  ;;  %v2985_v41 = vld [vmem:[%s3981_s1 + $0x870] ss:$8 sps:$4 sm:$0xff]   ;;  %v2990_v42 = vld [vmem:[%s3981_s1 + $0x884] ss:$8 sps:$4 sm:$0xff]  }
  0xd5   :  { %2123 = vmatprep.subr.bf16.mxu0 %v2899_v43  ;;  %v2988_v43 = vld [vmem:[%s3981_s1 + $0x880] ss:$8 sps:$4 sm:$0xff]  }
  0xd7   :  { %1960 = vmatpush1.bf16.msra.mxu1 %v2894_v44  ;;  %v2993_v44 = vld [vmem:[%s3981_s1 + $0x894] ss:$8 sps:$4 sm:$0xff]  }
  0xd8   :  { %2124 = vmatpush1.bf16.msra.mxu0 %v2897_v45  ;;  %1961 = vmatprep.subr.bf16.mxu1 %v2902_v46  ;;  %v2991_v45 = vld [vmem:[%s3981_s1 + $0x890] ss:$8 sps:$4 sm:$0xff]   ;;  %v2996_v46 = vld [vmem:[%s3981_s1 + $0x8a4] ss:$8 sps:$4 sm:$0xff]  }
  0xd9   :  { %2125 = vmatprep.subr.bf16.mxu0 %v2905_v47  ;;  %v2994_v47 = vld [vmem:[%s3981_s1 + $0x8a0] ss:$8 sps:$4 sm:$0xff]  }
  0xdb   :  { %1962 = vmatpush1.bf16.msra.mxu1 %v2900_v48  ;;  %v2999_v48 = vld [vmem:[%s3981_s1 + $0x8b4] ss:$8 sps:$4 sm:$0xff]  }
  0xdc   :  { %2126 = vmatpush1.bf16.msra.mxu0 %v2903_v49  ;;  %1963 = vmatprep.subr.bf16.mxu1 %v2908_v50  ;;  %v2997_v49 = vld [vmem:[%s3981_s1 + $0x8b0] ss:$8 sps:$4 sm:$0xff]   ;;  %v3002_v50 = vld [vmem:[%s3981_s1 + $0x8c4] ss:$8 sps:$4 sm:$0xff]  }
  0xdd   :  { %2127 = vmatprep.subr.bf16.mxu0 %v2911_v51  ;;  %v3000_v51 = vld [vmem:[%s3981_s1 + $0x8c0] ss:$8 sps:$4 sm:$0xff]  }
  0xdf   :  { %1964 = vmatpush1.bf16.msra.mxu1 %v2906_v52  ;;  %v3005_v52 = vld [vmem:[%s3981_s1 + $0x8d4] ss:$8 sps:$4 sm:$0xff]  }
  0xe0   :  { %2128 = vmatpush1.bf16.msra.mxu0 %v2909_v53  ;;  %1965 = vmatprep.subr.bf16.mxu1 %v2914_v54  ;;  %v3003_v53 = vld [vmem:[%s3981_s1 + $0x8d0] ss:$8 sps:$4 sm:$0xff]   ;;  %v3008_v54 = vld [vmem:[%s3981_s1 + $0x8e4] ss:$8 sps:$4 sm:$0xff]  }
  0xe1   :  { %2129 = vmatprep.subr.bf16.mxu0 %v2917_v55  ;;  %v3006_v55 = vld [vmem:[%s3981_s1 + $0x8e0] ss:$8 sps:$4 sm:$0xff]  }
  0xe3   :  { %1966 = vmatpush1.bf16.msra.mxu1 %v2912_v56  ;;  %v3011_v56 = vld [vmem:[%s3981_s1 + $0x8f4] ss:$8 sps:$4 sm:$0xff]  }
  0xe4   :  { %2130 = vmatpush1.bf16.msra.mxu0 %v2915_v57  ;;  %1967 = vmatprep.subr.bf16.mxu1 %v2920_v58  ;;  %v3009_v57 = vld [vmem:[%s3981_s1 + $0x8f0] ss:$8 sps:$4 sm:$0xff]   ;;  %v2238_v58 = vcombine.low %v3872_v18, %v3872_v18 }
  0xe5   :  { %2131 = vmatprep.subr.bf16.mxu0 %v2923_v59 }
  0xe7   :  { %1968 = vmatpush1.bf16.msra.mxu1 %v2918_v60 }
  0xe8   :  { %2132 = vmatpush1.bf16.msra.mxu0 %v2921_v61  ;;  %1969 = vmatprep.subr.bf16.mxu1 %v2926_v62 }
  0xe9   :  { %2133 = vmatprep.subr.bf16.mxu0 %v2929_v63  ;;  %v313_v63 = vlaneseq }
  0xeb   :  { %1970 = vmatpush1.bf16.msra.mxu1 %v2924_v0  ;;  %v314_v0 = vshrl.u32 %v313_v63, 7 }
  0xec   :  { %2134 = vmatpush1.bf16.msra.mxu0 %v2927_v1  ;;  %1971 = vmatprep.subr.bf16.mxu1 %v2932_v2  ;;  %v311_v2 = vld [vmem:[%s3983_s2] sm:$0x3] }
  0xed   :  { %2135 = vmatprep.subr.bf16.mxu0 %v2935_v3  ;;  %v315_v1 = vsub.s32 0, %v314_v0  ;;  %v319_v3 = vsub.s32 1, %v314_v0 }
  0xef   :  { %1972 = vmatpush1.bf16.msra.mxu1 %v2930_v4  ;;  %v316_v4 = vrot.slane %v311_v2, %v315_v1 }
  0xf0   :  { %2136 = vmatpush1.bf16.msra.mxu0 %v2933_v5  ;;  %1973 = vmatprep.subr.bf16.mxu1 %v2938_v6  ;;  %v320_v5 = vrot.slane %v311_v2, %v319_v3 }
  0xf1   :  { %2137 = vmatprep.subr.bf16.mxu0 %v2941_v7 }
  0xf3   :  { %1974 = vmatpush1.bf16.msra.mxu1 %v2936_v8 }
  0xf4   :  { %2138 = vmatpush1.bf16.msra.mxu0 %v2939_v9  ;;  %1975 = vmatprep.subr.bf16.mxu1 %v2944_v10 }
  0xf5   :  { %2139 = vmatprep.subr.bf16.mxu0 %v2947_v11 }
  0xf7   :  { %1976 = vmatpush1.bf16.msra.mxu1 %v2942_v12 }
  0xf8   :  { %2140 = vmatpush1.bf16.msra.mxu0 %v2945_v13  ;;  %1977 = vmatprep.subr.bf16.mxu1 %v2950_v14 }
  0xf9   :  { %2141 = vmatprep.subr.bf16.mxu0 %v2953_v15 }
  0xfb   :  { %1978 = vmatpush1.bf16.msra.mxu1 %v2948_v16 }
  0xfc   :  { %2142 = vmatpush1.bf16.msra.mxu0 %v2951_v17  ;;  %1979 = vmatprep.subr.bf16.mxu1 %v2956_v19 }
  0xfd   :  { %2143 = vmatprep.subr.bf16.mxu0 %v2959_v21 }
  0xff   :  { %1980 = vmatpush1.bf16.msra.mxu1 %v2954_v22 }
 0x100   :  { %2144 = vmatpush1.bf16.msra.mxu0 %v2957_v23 }
 0x101   :  { %2154 = vmatprep.subr.bf16.mxu0 %v2966_v26 }
 0x102   :  { %1982 = vmatmul.mubr.bf16.vlgmr.msra.gmra.mrb[0].mxu1 %v2228_v20 }
 0x103   :  { %2146 = vmatmul.mubr.bf16.vlgmr.msra.gmra.mrb[0].mxu0 %v2236_v27 }
 0x104   :  { %2155 = vmatpush1.bf16.msra.mxu0 %v2964_v28  ;;  %2186 = vmatprep.mubr.bf16.mxu0 %v2239_v29 }
 0x105   :  { %2156 = vmatprep.subr.bf16.mxu0 %v2969_v30 }
 0x108   :  { %2157 = vmatpush1.bf16.msra.mxu0 %v2967_v24 }
 0x109   :  { %2158 = vmatprep.subr.bf16.mxu0 %v2972_v25 }
 0x10c   :  { %2159 = vmatpush1.bf16.msra.mxu0 %v2970_v31 }
 0x10d   :  { %2160 = vmatprep.subr.bf16.mxu0 %v2975_v32 }
 0x110   :  { %2161 = vmatpush1.bf16.msra.mxu0 %v2973_v33 }
 0x111   :  { %2162 = vmatprep.subr.bf16.mxu0 %v2978_v34 }
 0x114   :  { %2163 = vmatpush1.bf16.msra.mxu0 %v2976_v35 }
 0x115   :  { %2164 = vmatprep.subr.bf16.mxu0 %v2981_v36 }
 0x118   :  { %2165 = vmatpush1.bf16.msra.mxu0 %v2979_v37 }
 0x119   :  { %2166 = vmatprep.subr.bf16.mxu0 %v2984_v38 }
 0x11c   :  { %2167 = vmatpush1.bf16.msra.mxu0 %v2982_v39 }
 0x11d   :  { %2168 = vmatprep.subr.bf16.mxu0 %v2987_v40 }
 0x120   :  { %2169 = vmatpush1.bf16.msra.mxu0 %v2985_v41 }
 0x121   :  { %2170 = vmatprep.subr.bf16.mxu0 %v2990_v42 }
 0x124   :  { %2171 = vmatpush1.bf16.msra.mxu0 %v2988_v43 }
 0x125   :  { %2172 = vmatprep.subr.bf16.mxu0 %v2993_v44 }
 0x128   :  { %2173 = vmatpush1.bf16.msra.mxu0 %v2991_v45 }
 0x129   :  { %2174 = vmatprep.subr.bf16.mxu0 %v2996_v46 }
 0x12c   :  { %2175 = vmatpush1.bf16.msra.mxu0 %v2994_v47 }
 0x12d   :  { %2176 = vmatprep.subr.bf16.mxu0 %v2999_v48 }
 0x130   :  { %2177 = vmatpush1.bf16.msra.mxu0 %v2997_v49 }
 0x131   :  { %2178 = vmatprep.subr.bf16.mxu0 %v3002_v50 }
 0x134   :  { %2179 = vmatpush1.bf16.msra.mxu0 %v3000_v51 }
 0x135   :  { %2180 = vmatprep.subr.bf16.mxu0 %v3005_v52 }
 0x138   :  { %2181 = vmatpush1.bf16.msra.mxu0 %v3003_v53 }
 0x139   :  { %2182 = vmatprep.subr.bf16.mxu0 %v3008_v54 }
 0x13c   :  { %2183 = vmatpush1.bf16.msra.mxu0 %v3006_v55 }
 0x13d   :  { %2184 = vmatprep.subr.bf16.mxu0 %v3011_v56 }
 0x140   :  { %2185 = vmatpush1.bf16.msra.mxu0 %v3009_v57 }
 0x143   :  { %2187 = vmatmul.mubr.bf16.vlgmr.msra.gmra.mrb[0].mxu0 %v2238_v58 }
 0x1d5   :  { %v1983_v59 = vpop.f32.mrb[0].mxu1 }
 0x1d6   :  { %v1985_v60 = vpop.f32.mrb[1].mxu1  ;;  %v2532_v6 = vadd.f32 %v1983_v59, %v316_v4 }
 0x1d7   :  { %v1987_v61 = vpop.f32.mrb[2].mxu1  ;;  %v2534_v7 = vadd.f32 %v1985_v60, %v320_v5 }
 0x1d8   :  { %v1988_v62 = vpop.f32.mrb[3].mxu1 }
 0x216   :  { %v2188_v8 = vpop.f32.mrb[0].mxu0 }
 0x217   :  { %v2533_v9 = vadd.f32 %v2532_v6, %v2188_v8  ;;  %v2190_v10 = vpop.f32.mrb[1].mxu0 }
 0x218   :  { %v2535_v11 = vadd.f32 %v2534_v7, %v2190_v10  ;;  %v2192_v12 = vpop.f32.mrb[2].mxu0 }
 0x219   :  { %v2528_v13 = vmul.f32 -1.442695, %v2533_v9  ;;  %v2193_v14 = vpop.f32.mrb[3].mxu0 }
 0x21a   :  { %v2529_v15 = vmul.f32 -1.442695, %v2535_v11 }
 0x21b   :  { %3014 = vpow2.f32 %v2528_v13 }
 0x21c   :  { %3016 = vpow2.f32 %v2529_v15 }
 0x225   :  { %v3015_v16 = vpop.eup %3014 }
 0x226   :  { %v3017_v17 = vpop.eup %3016  ;;  %v2201_v19 = vadd.f32 1.0, %v3015_v16 }
 0x227   :  { %v2202_v21 = vadd.f32 1.0, %v3017_v17 }
 0x228   :  { %3018 = vrcp.f32 %v2201_v19 }
 0x229   :  { %3020 = vrcp.f32 %v2202_v21 }
 0x232   :  { %v3019_v22 = vpop.eup %3018 }
 0x233   :  { %v3021_v23 = vpop.eup %3020  ;;  %v2207_v26 = vmul.f32 %v3019_v22, %v2533_v9 }
 0x234   :  { %v2208_v18 = vmul.f32 %v3021_v23, %v2535_v11 }
 0x236   :  { %v2531_v20 = vpack.c.bf16 %v2208_v18, %v2207_v26 }
 0x238   :  { %2217 = vst [vmem:[%s3984_s3] sm:$0xff] %v2531_v20 }

// kernel: yolox_forward.55
= control target key start
LH: loop header
LB: loop body
LE: loop exit
PB: predicated region body
PF: predicated region fallthrough
CT: control target
= control target key end

     0   :  { %s319_s0 = inlined_call_operand.vmem [shape: bf16[32,128], index: 0, kind: input, shape index: {}]   ;;  %s320_s1 = inlined_call_operand.vmem [shape: bf16[128,9], index: 1, kind: input, shape index: {}]   ;;  %s321_s2 = inlined_call_operand.vmem [shape: f32[1,9], index: 2, kind: input, shape index: {}]   ;;  %s322_s3 = inlined_call_operand.hbm [shape: f32[32,9], index: 3, kind: output, shape index: {}]  }
   0x1   :  { %v217_v0 = vld [vmem:[%s320_s1] sm:$0xff]   ;;  %v218_v1 = vld [vmem:[%s320_s1 + $0x8] sm:$0xff]   ;;  %v219_v2 = vld [vmem:[%s320_s1 + $0x10] sm:$0xff]  }
   0x2   :  { %194 = vmatprep.subr.bf16.mxu0 %v217_v0  ;;  %v220_v3 = vld [vmem:[%s320_s1 + $0x18] sm:$0xff]   ;;  %v225_v4 = vld [vmem:[%s319_s0] sm:$0xff]  }
   0x3   :  { %195 = vmatpush3.bf16.msra.mxu0 %v217_v0  ;;  %210 = vmatprep.mubr.bf16.mxu0 %v225_v4 }
   0x4   :  { %196 = vmatprep.subr.bf16.mxu0 %v218_v1 }
   0x7   :  { %197 = vmatpush3.bf16.msra.mxu0 %v218_v1 }
   0x8   :  { %198 = vmatprep.subr.bf16.mxu0 %v219_v2 }
   0x9   :  { %8 = vsyncpa [#allocation3], 0  ;;  %v221_v5 = vld [vmem:[%s320_s1 + $0x20] sm:$0xff]   ;;  %v222_v6 = vld [vmem:[%s320_s1 + $0x28] sm:$0xff]   ;;  %vm152_vm0 = vcmask 72704   ;;  %s251_s7 = smov [#allocation2]  }
   0xa   :  { %v223_v7 = vld [vmem:[%s320_s1 + $0x30] sm:$0xff]   ;;  %v224_v8 = vld [vmem:[%s320_s1 + $0x38] sm:$0xff]   ;;  %v226_v9 = vld [vmem:[%s319_s0 + $0x8] sm:$0xff]   ;;  %s162_s8 = sshll.u32 %s251_s7, 4  ;;  %s163_s8 = int_to_ptr.vmem [resolvable:$true] %s162_s8 }
   0xb   :  { %199 = vmatpush3.bf16.msra.mxu0 %v219_v2  ;;  %v173_v10 = vld [vmem:[%s321_s2] ss:$0 sm:$0xff]  ;;  %s227_s0 = scalar_lea.vmem %s163_s8, 512  ;;  %p232_p1 = scmp.lt.s32.totalorder %s163_s8, %s163_s8 }
   0xc   :  { %200 = vmatprep.subr.bf16.mxu0 %v220_v3  ;;  %p228_p0 = scmp.ne.s32.totalorder %s163_s8, %s227_s0  ;;  %p233_p2 = scmp.lt.s32.totalorder %s227_s0, %s227_s0 }
   0xe   :  { %p234_p3 = por %p233_p2, %p232_p1 }
   0xf   :  { %201 = vmatpush3.bf16.msra.mxu0 %v220_v3 }
  0x10   :  { %202 = vmatprep.subr.bf16.mxu0 %v221_v5  ;;  %p235_p4 = pnand %p234_p3, %p228_p0 }
  0x13   :  { %203 = vmatpush3.bf16.msra.mxu0 %v221_v5 }
  0x14   :  { %204 = vmatprep.subr.bf16.mxu0 %v222_v6 }
  0x17   :  { %205 = vmatpush3.bf16.msra.mxu0 %v222_v6 }
  0x18   :  { %206 = vmatprep.subr.bf16.mxu0 %v223_v7 }
  0x1b   :  { %207 = vmatpush3.bf16.msra.mxu0 %v223_v7 }
  0x1c   :  { %208 = vmatprep.subr.bf16.mxu0 %v224_v8 }
  0x1f   :  { %209 = vmatpush3.bf16.msra.mxu0 %v224_v8 }
  0x22   :  { %211 = vmatmul.mubr.bf16.vlgmr.msra.gmra.mrb[0].mxu0 %v226_v9 }
  0xf5   :  { %v212_v11 = vpop.f32.mrb[0].mxu0 }
  0xf6   :  { %v146_v12 = vadd.f32 %v212_v11, %v173_v10  ;;  %v137_v13 = vpop.f32.mrb[1].mxu0 }
  0xf7   :  { %v138_v14 = vadd.f32 %v173_v10, %v137_v13  ;;  %v213_v15 = vpop.f32.mrb[2].mxu0 }
  0xf8   :  { %155 = vst.msk [vmem:[#allocation2 + $0x10] sm:$0xff] %vm152_vm0, %v146_v12  ;;  %v149_v16 = vadd.f32 %v213_v15, %v173_v10  ;;  %v140_v17 = vpop.f32.mrb[3].mxu0 }
  0xf9   :  { %153 = vst.msk [vmem:[#allocation2] sm:$0xff] %vm152_vm0, %v138_v14  ;;  %v141_v18 = vadd.f32 %v173_v10, %v140_v17 }
  0xfa   :  { %156 = vst.msk [vmem:[#allocation2 + $0x18] sm:$0xff] %vm152_vm0, %v149_v16 }
  0xfb   :  { %154 = vst.msk [vmem:[#allocation2 + $0x8] sm:$0xff] %vm152_vm0, %v141_v18 }
  0xfc   :  { %238 = shalt.err (!%p235_p4)
}
  0xfd   :  { %s239_s9 = scalar_lea.hbm %s322_s3, 512 }
  0xfe   :  { %p240_p5 = scmp.ne.s32.totalorder %s322_s3, %s239_s9  ;;  %p243_p6 = scmp.lt.u32.totalorder %s239_s9, %s322_s3 }
 0x100   :  { %p245_p7 = pnand %p243_p6, %p240_p5 }
 0x102   :  { %248 = shalt.err (!%p245_p7)
}
 0x103   :  { %s252_s14 = smov 128   ;;  %s253_s15 = smov 8  }
 0x104   :  { %168 = dma.vmem_to_hbm [thread:$0]  %s163_s8, 512, %s322_s3, [#allocation3], %s252_s14, %s252_s14, %s253_s15  }
 0x105   :  { %249 = dma.done.wait [#allocation3], 512  }
 0x106   :  { %250 = vsyncadd [#allocation3], 4294966784 }
 0x107   :  { %172 = vsyncpa [#allocation3], 1 }

// kernel: yolox_forward.44
= control target key start
LH: loop header
LB: loop body
LE: loop exit
PB: predicated region body
PF: predicated region fallthrough
CT: control target
= control target key end

     0   :  { %vm110_vm0 = vcmask 523264   ;;  %vm408_vm1 = vcmask 519168   ;;  %s831_s1 = inlined_call_operand.vmem [shape: bf16[64,64], index: 1, kind: input, shape index: {}]   ;;  %s832_s0 = inlined_call_operand.vmem [shape: bf16[128,64], index: 0, kind: input, shape index: {}]   ;;  %s833_s2 = inlined_call_operand.vmem [shape: f32[1,64], index: 2, kind: input, shape index: {}]   ;;  %s834_s3 = inlined_call_operand.vmem [shape: bf16[128,64], index: 3, kind: output, shape index: {}]  }
   0x1   :  { %v542_v0 = vld [vmem:[%s831_s1] sm:$0xff]   ;;  %v543_v1 = vld [vmem:[%s831_s1 + $0x8] sm:$0xff]   ;;  %v544_v2 = vld [vmem:[%s831_s1 + $0x10] sm:$0xff]  }
   0x2   :  { %510 = vmatprep.subr.bf16.mxu0 %v542_v0  ;;  %534 = vmatprep.subr.bf16.mxu1 %v542_v0  ;;  %v546_v3 = vld [vmem:[%s832_s0] sm:$0xff]   ;;  %v545_v5 = vld [vmem:[%s831_s1 + $0x18] sm:$0xff]   ;;  %v548_v6 = vld [vmem:[%s832_s0 + $0x8] sm:$0xff]  }
   0x3   :  { %511 = vmatpush3.bf16.msra.mxu0 %v542_v0  ;;  %538 = vmatpush3.bf16.msra.mxu1 %v542_v0  ;;  %v547_v4 = vld [vmem:[%s832_s0 + $0x20] sm:$0xff]   ;;  %v549_v7 = vld [vmem:[%s832_s0 + $0x28] sm:$0xff]   ;;  %v550_v8 = vld [vmem:[%s832_s0 + $0x10] sm:$0xff]  }
   0x4   :  { %512 = vmatprep.subr.bf16.mxu0 %v543_v1  ;;  %535 = vmatprep.subr.bf16.mxu1 %v543_v1  ;;  %v551_v9 = vld [vmem:[%s832_s0 + $0x30] sm:$0xff]   ;;  %v552_v10 = vld [vmem:[%s832_s0 + $0x18] sm:$0xff]   ;;  %v685_v12 = vld [vmem:[%s833_s2] ss:$0 sm:$0xff] }
   0x5   :  { %518 = vmatprep.mubr.msk.bf16.mxu0 %vm110_vm0, %v546_v3  ;;  %526 = vmatprep.mubr.msk.bf16.mxu1 %vm110_vm0, %v547_v4  ;;  %v553_v11 = vld [vmem:[%s832_s0 + $0x38] sm:$0xff]  }
   0x7   :  { %513 = vmatpush3.bf16.msra.mxu0 %v543_v1  ;;  %539 = vmatpush3.bf16.msra.mxu1 %v543_v1 }
   0x8   :  { %514 = vmatprep.subr.bf16.mxu0 %v544_v2  ;;  %536 = vmatprep.subr.bf16.mxu1 %v544_v2 }
   0xb   :  { %515 = vmatpush3.bf16.msra.mxu0 %v544_v2  ;;  %540 = vmatpush3.bf16.msra.mxu1 %v544_v2 }
   0xc   :  { %516 = vmatprep.subr.bf16.mxu0 %v545_v5  ;;  %537 = vmatprep.subr.bf16.mxu1 %v545_v5 }
   0xf   :  { %517 = vmatpush3.bf16.msra.mxu0 %v545_v5  ;;  %541 = vmatpush3.bf16.msra.mxu1 %v545_v5 }
  0x12   :  { %519 = vmatmul.mubr.msk.bf16.vlgmr.msra.gmra.mrb[0].mxu0 %vm110_vm0, %v548_v6  ;;  %527 = vmatmul.mubr.msk.bf16.vlgmr.msra.gmra.mrb[0].mxu1 %vm110_vm0, %v549_v7 }
  0x13   :  { %522 = vmatprep.mubr.msk.bf16.mxu0 %vm110_vm0, %v550_v8  ;;  %530 = vmatprep.mubr.msk.bf16.mxu1 %vm110_vm0, %v551_v9 }
  0x1a   :  { %523 = vmatmul.mubr.msk.bf16.gmra.mrb[4].mxu0 %vm110_vm0, %v552_v10  ;;  %531 = vmatmul.mubr.msk.bf16.gmra.mrb[4].mxu1 %vm110_vm0, %v553_v11 }
  0xe5   :  { %v520_v13 = vpop.f32.mrb[0].mxu0  ;;  %v528_v14 = vpop.f32.mrb[0].mxu1 }
  0xe6   :  { %v688_v15 = vadd.f32 %v520_v13, %v685_v12  ;;  %v691_v16 = vadd.f32 %v528_v14, %v685_v12  ;;  %v169_v17 = vpop.f32.mrb[1].mxu0  ;;  %v201_v18 = vpop.f32.mrb[1].mxu1 }
  0xe7   :  { %v694_v19 = vadd.f32 %v685_v12, %v169_v17  ;;  %v697_v20 = vadd.f32 %v685_v12, %v201_v18  ;;  %v521_v21 = vpop.f32.mrb[2].mxu0  ;;  %v529_v22 = vpop.f32.mrb[2].mxu1 }
  0xe8   :  { %v452_v23 = vmul.f32 -1.442695, %v688_v15  ;;  %v460_v24 = vmul.f32 -1.442695, %v691_v16  ;;  %v702_v25 = vadd.f32 %v521_v21, %v685_v12  ;;  %v705_v26 = vadd.f32 %v529_v22, %v685_v12  ;;  %v172_v27 = vpop.f32.mrb[3].mxu0  ;;  %v204_v28 = vpop.f32.mrb[3].mxu1 }
  0xe9   :  { %v450_v29 = vmul.f32 -1.442695, %v694_v19  ;;  %v458_v30 = vmul.f32 -1.442695, %v697_v20  ;;  %v710_v31 = vadd.f32 %v685_v12, %v172_v27  ;;  %v713_v32 = vadd.f32 %v685_v12, %v204_v28 }
  0xea   :  { %554 = vpow2.f32 %v452_v23  ;;  %v453_v33 = vmul.f32 -1.442695, %v702_v25  ;;  %v461_v34 = vmul.f32 -1.442695, %v705_v26 }
  0xeb   :  { %556 = vpow2.f32 %v460_v24  ;;  %v451_v35 = vmul.f32 -1.442695, %v710_v31  ;;  %v459_v36 = vmul.f32 -1.442695, %v713_v32 }
  0xec   :  { %558 = vpow2.f32 %v450_v29 }
  0xed   :  { %560 = vpow2.f32 %v458_v30  ;;  %v524_v37 = vpop.f32.mrb[4].mxu0  ;;  %v532_v38 = vpop.f32.mrb[4].mxu1 }
  0xee   :  { %562 = vpow2.f32 %v453_v33  ;;  %v720_v39 = vadd.f32 %v524_v37, %v685_v12  ;;  %v723_v40 = vadd.f32 %v532_v38, %v685_v12  ;;  %v185_v41 = vpop.f32.mrb[5].mxu0  ;;  %v217_v42 = vpop.f32.mrb[5].mxu1 }
  0xef   :  { %564 = vpow2.f32 %v461_v34  ;;  %v726_v43 = vadd.f32 %v685_v12, %v185_v41  ;;  %v729_v44 = vadd.f32 %v685_v12, %v217_v42  ;;  %v525_v45 = vpop.f32.mrb[6].mxu0  ;;  %v533_v46 = vpop.f32.mrb[6].mxu1 }
  0xf0   :  { %566 = vpow2.f32 %v451_v35  ;;  %v456_v47 = vmul.f32 -1.442695, %v720_v39  ;;  %v464_v48 = vmul.f32 -1.442695, %v723_v40  ;;  %v734_v49 = vadd.f32 %v525_v45, %v685_v12  ;;  %v188_v50 = vpop.f32.mrb[7].mxu0  ;;  %v220_v51 = vpop.f32.mrb[7].mxu1 }
  0xf1   :  { %568 = vpow2.f32 %v459_v36  ;;  %v454_v52 = vmul.f32 -1.442695, %v726_v43  ;;  %v462_v53 = vmul.f32 -1.442695, %v729_v44  ;;  %v740_v8 = vadd.f32 %v533_v46, %v685_v12 }
  0xf2   :  { %570 = vpow2.f32 %v456_v47  ;;  %v457_v54 = vmul.f32 -1.442695, %v734_v49  ;;  %v743_v11 = vadd.f32 %v685_v12, %v188_v50  ;;  %v746_v17 = vadd.f32 %v685_v12, %v220_v51 }
  0xf3   :  { %572 = vpow2.f32 %v464_v48  ;;  %v465_v24 = vmul.f32 -1.442695, %v740_v8 }
  0xf4   :  { %v555_v55 = vpop.eup %554  ;;  %574 = vpow2.f32 %v454_v52  ;;  %v455_v29 = vmul.f32 -1.442695, %v743_v11  ;;  %v463_v12 = vmul.f32 -1.442695, %v746_v17 }
  0xf5   :  { %v557_v56 = vpop.eup %556  ;;  %v282_v57 = vadd.f32 1.0, %v555_v55  ;;  %576 = vpow2.f32 %v462_v53 }
  0xf6   :  { %v559_v58 = vpop.eup %558  ;;  %v290_v59 = vadd.f32 1.0, %v557_v56  ;;  %578 = vpow2.f32 %v457_v54 }
  0xf7   :  { %v561_v60 = vpop.eup %560  ;;  %580 = vrcp.f32 %v282_v57  ;;  %v280_v61 = vadd.f32 1.0, %v559_v58 }
  0xf8   :  { %v563_v62 = vpop.eup %562  ;;  %582 = vrcp.f32 %v290_v59  ;;  %v288_v63 = vadd.f32 1.0, %v561_v60 }
  0xf9   :  { %v565_v0 = vpop.eup %564  ;;  %584 = vrcp.f32 %v280_v61  ;;  %v283_v1 = vadd.f32 1.0, %v563_v62 }
  0xfa   :  { %v567_v2 = vpop.eup %566  ;;  %586 = vrcp.f32 %v288_v63  ;;  %v291_v3 = vadd.f32 1.0, %v565_v0 }
  0xfb   :  { %v569_v4 = vpop.eup %568  ;;  %588 = vrcp.f32 %v283_v1  ;;  %v281_v5 = vadd.f32 1.0, %v567_v2 }
  0xfc   :  { %v571_v6 = vpop.eup %570  ;;  %590 = vrcp.f32 %v291_v3  ;;  %v289_v7 = vadd.f32 1.0, %v569_v4 }
  0xfd   :  { %v573_v9 = vpop.eup %572  ;;  %592 = vrcp.f32 %v281_v5  ;;  %v286_v10 = vadd.f32 1.0, %v571_v6 }
  0xfe   :  { %v575_v13 = vpop.eup %574  ;;  %594 = vrcp.f32 %v289_v7  ;;  %v294_v14 = vadd.f32 1.0, %v573_v9 }
  0xff   :  { %v577_v18 = vpop.eup %576  ;;  %596 = vrcp.f32 %v286_v10  ;;  %v284_v21 = vadd.f32 1.0, %v575_v13 }
 0x100   :  { %v579_v22 = vpop.eup %578  ;;  %598 = vrcp.f32 %v294_v14  ;;  %v292_v23 = vadd.f32 1.0, %v577_v18 }
 0x101   :  { %v581_v27 = vpop.eup %580  ;;  %600 = vrcp.f32 %v284_v21  ;;  %v287_v28 = vadd.f32 1.0, %v579_v22 }
 0x102   :  { %v583_v30 = vpop.eup %582  ;;  %v330_v33 = vmul.f32 %v581_v27, %v688_v15  ;;  %602 = vrcp.f32 %v292_v23 }
 0x103   :  { %v585_v34 = vpop.eup %584  ;;  %v338_v35 = vmul.f32 %v583_v30, %v691_v16  ;;  %604 = vrcp.f32 %v287_v28 }
 0x104   :  { %v587_v36 = vpop.eup %586  ;;  %v484_v37 = vpack.c.bf16 %v330_v33, %v330_v33  ;;  %v328_v38 = vmul.f32 %v585_v34, %v694_v19  ;;  %606 = vpow2.f32 %v465_v24 }
 0x105   :  { %v589_v41 = vpop.eup %588  ;;  %v492_v42 = vpack.c.bf16 %v338_v35, %v338_v35  ;;  %v336_v45 = vmul.f32 %v587_v36, %v697_v20  ;;  %608 = vpow2.f32 %v455_v29 }
 0x106   :  { %v591_v46 = vpop.eup %590  ;;  %411 = vst.msk [vmem:[%s834_s3 + $0x8] sm:$0xf] %vm408_vm1, %v484_v37  ;;  %v482_v15 = vpack.c.bf16 %v328_v38, %v328_v38  ;;  %v331_v16 = vmul.f32 %v589_v41, %v702_v25  ;;  %610 = vpow2.f32 %v463_v12 }
 0x107   :  { %v593_v47 = vpop.eup %592  ;;  %419 = vst.msk [vmem:[%s834_s3 + $0x28] sm:$0xf] %vm408_vm1, %v492_v42  ;;  %v490_v19 = vpack.c.bf16 %v336_v45, %v336_v45  ;;  %v339_v20 = vmul.f32 %v591_v46, %v705_v26 }
 0x108   :  { %v595_v48 = vpop.eup %594  ;;  %409 = vst.msk [vmem:[%s834_s3] sm:$0xf] %vm408_vm1, %v482_v15  ;;  %v485_v50 = vpack.c.bf16 %v331_v16, %v331_v16  ;;  %v329_v51 = vmul.f32 %v593_v47, %v710_v31 }
 0x109   :  { %v597_v25 = vpop.eup %596  ;;  %417 = vst.msk [vmem:[%s834_s3 + $0x20] sm:$0xf] %vm408_vm1, %v490_v19  ;;  %v493_v52 = vpack.c.bf16 %v339_v20, %v339_v20  ;;  %v337_v53 = vmul.f32 %v595_v48, %v713_v32 }
 0x10a   :  { %v599_v54 = vpop.eup %598  ;;  %412 = vst.msk [vmem:[%s834_s3 + $0xc] sm:$0xf] %vm408_vm1, %v485_v50  ;;  %v483_v26 = vpack.c.bf16 %v329_v51, %v329_v51  ;;  %v334_v55 = vmul.f32 %v597_v25, %v720_v39 }
 0x10b   :  { %v601_v56 = vpop.eup %600  ;;  %420 = vst.msk [vmem:[%s834_s3 + $0x2c] sm:$0xf] %vm408_vm1, %v493_v52  ;;  %v491_v31 = vpack.c.bf16 %v337_v53, %v337_v53  ;;  %v342_v57 = vmul.f32 %v599_v54, %v723_v40 }
 0x10c   :  { %v603_v58 = vpop.eup %602  ;;  %410 = vst.msk [vmem:[%s834_s3 + $0x4] sm:$0xf] %vm408_vm1, %v483_v26  ;;  %v488_v32 = vpack.c.bf16 %v334_v55, %v334_v55  ;;  %v332_v59 = vmul.f32 %v601_v56, %v726_v43 }
 0x10d   :  { %v605_v60 = vpop.eup %604  ;;  %418 = vst.msk [vmem:[%s834_s3 + $0x24] sm:$0xf] %vm408_vm1, %v491_v31  ;;  %v496_v39 = vpack.c.bf16 %v342_v57, %v342_v57  ;;  %v340_v61 = vmul.f32 %v603_v58, %v729_v44 }
 0x10e   :  { %v607_v62 = vpop.eup %606  ;;  %415 = vst.msk [vmem:[%s834_s3 + $0x18] sm:$0xf] %vm408_vm1, %v488_v32  ;;  %v486_v40 = vpack.c.bf16 %v332_v59, %v332_v59  ;;  %v335_v63 = vmul.f32 %v605_v60, %v734_v49 }
 0x10f   :  { %v609_v0 = vpop.eup %608  ;;  %423 = vst.msk [vmem:[%s834_s3 + $0x38] sm:$0xf] %vm408_vm1, %v496_v39  ;;  %v494_v43 = vpack.c.bf16 %v340_v61, %v340_v61  ;;  %v295_v1 = vadd.f32 1.0, %v607_v62 }
 0x110   :  { %v611_v2 = vpop.eup %610  ;;  %413 = vst.msk [vmem:[%s834_s3 + $0x10] sm:$0xf] %vm408_vm1, %v486_v40  ;;  %v489_v44 = vpack.c.bf16 %v335_v63, %v335_v63  ;;  %v285_v3 = vadd.f32 1.0, %v609_v0 }
 0x111   :  { %421 = vst.msk [vmem:[%s834_s3 + $0x30] sm:$0xf] %vm408_vm1, %v494_v43  ;;  %612 = vrcp.f32 %v295_v1  ;;  %v293_v49 = vadd.f32 1.0, %v611_v2 }
 0x112   :  { %416 = vst.msk [vmem:[%s834_s3 + $0x1c] sm:$0xf] %vm408_vm1, %v489_v44  ;;  %614 = vrcp.f32 %v285_v3 }
 0x113   :  { %616 = vrcp.f32 %v293_v49 }
 0x11b   :  { %v613_v4 = vpop.eup %612 }
 0x11c   :  { %v615_v5 = vpop.eup %614  ;;  %v343_v6 = vmul.f32 %v613_v4, %v740_v8 }
 0x11d   :  { %v617_v7 = vpop.eup %616  ;;  %v333_v9 = vmul.f32 %v615_v5, %v743_v11 }
 0x11e   :  { %v497_v10 = vpack.c.bf16 %v343_v6, %v343_v6  ;;  %v341_v13 = vmul.f32 %v617_v7, %v746_v17 }
 0x11f   :  { %v487_v14 = vpack.c.bf16 %v333_v9, %v333_v9 }
 0x120   :  { %424 = vst.msk [vmem:[%s834_s3 + $0x3c] sm:$0xf] %vm408_vm1, %v497_v10  ;;  %v495_v18 = vpack.c.bf16 %v341_v13, %v341_v13 }
 0x121   :  { %414 = vst.msk [vmem:[%s834_s3 + $0x14] sm:$0xf] %vm408_vm1, %v487_v14 }
 0x122   :  { %422 = vst.msk [vmem:[%s834_s3 + $0x34] sm:$0xf] %vm408_vm1, %v495_v18 }

// kernel: yolox_forward.47
= control target key start
LH: loop header
LB: loop body
LE: loop exit
PB: predicated region body
PF: predicated region fallthrough
CT: control target
= control target key end

     0   :  { %vm558_vm0 = vcmask 523264   ;;  %vm1050_vm1 = vcmask 519168   ;;  %s1967_s1 = inlined_call_operand.vmem [shape: bf16[576,64], index: 1, kind: input, shape index: {}]   ;;  %s1968_s0 = inlined_call_operand.vmem [shape: bf16[128,576], index: 0, kind: input, shape index: {}]   ;;  %s1969_s2 = inlined_call_operand.vmem [shape: f32[1,64], index: 2, kind: input, shape index: {}]   ;;  %s1970_s3 = inlined_call_operand.vmem [shape: bf16[128,64], index: 3, kind: output, shape index: {}]  }
   0x1   :  { %v1376_v0 = vld [vmem:[%s1967_s1 + $0x40] sm:$0xff]   ;;  %v1380_v4 = vld [vmem:[%s1967_s1 + $0x48] sm:$0xff]   ;;  %v1384_v8 = vld [vmem:[%s1967_s1 + $0x50] sm:$0xff]  }
   0x2   :  { %v1377_v1 = vld [vmem:[%s1967_s1 + $0xc0] sm:$0xff]   ;;  %1204 = vmatprep.subr.bf16.mxu0 %v1376_v0  ;;  %v1381_v5 = vld [vmem:[%s1967_s1 + $0xc8] sm:$0xff]   ;;  %v1385_v9 = vld [vmem:[%s1967_s1 + $0xd0] sm:$0xff]  }
   0x3   :  { %v1378_v2 = vld [vmem:[%s1967_s1] sm:$0xff]   ;;  %1268 = vmatprep.subr.bf16.mxu1 %v1377_v1  ;;  %v1382_v6 = vld [vmem:[%s1967_s1 + $0x8] sm:$0xff]   ;;  %v1386_v10 = vld [vmem:[%s1967_s1 + $0x10] sm:$0xff]  }
   0x4   :  { %v1379_v3 = vld [vmem:[%s1967_s1 + $0x80] sm:$0xff]   ;;  %1205 = vmatpush3.bf16.msra.mxu0 %v1378_v2  ;;  %v1383_v7 = vld [vmem:[%s1967_s1 + $0x88] sm:$0xff]   ;;  %v1387_v11 = vld [vmem:[%s1967_s1 + $0x90] sm:$0xff]  }
   0x5   :  { %1269 = vmatpush3.bf16.msra.mxu1 %v1379_v3  ;;  %1206 = vmatprep.subr.bf16.mxu0 %v1380_v4  ;;  %v1388_v12 = vld [vmem:[%s1967_s1 + $0x58] sm:$0xff]   ;;  %v1392_v16 = vld [vmem:[%s1967_s1 + $0x60] sm:$0xff]   ;;  %v1396_v20 = vld [vmem:[%s1967_s1 + $0x68] sm:$0xff]  }
   0x6   :  { %1270 = vmatprep.subr.bf16.mxu1 %v1381_v5  ;;  %v1389_v13 = vld [vmem:[%s1967_s1 + $0xd8] sm:$0xff]   ;;  %v1393_v17 = vld [vmem:[%s1967_s1 + $0xe0] sm:$0xff]   ;;  %v1397_v21 = vld [vmem:[%s1967_s1 + $0xe8] sm:$0xff]  }
   0x7   :  { %v1390_v14 = vld [vmem:[%s1967_s1 + $0x18] sm:$0xff]   ;;  %v1394_v18 = vld [vmem:[%s1967_s1 + $0x20] sm:$0xff]   ;;  %v1398_v22 = vld [vmem:[%s1967_s1 + $0x28] sm:$0xff]  }
   0x8   :  { %1207 = vmatpush3.bf16.msra.mxu0 %v1382_v6  ;;  %v1391_v15 = vld [vmem:[%s1967_s1 + $0x98] sm:$0xff]   ;;  %v1395_v19 = vld [vmem:[%s1967_s1 + $0xa0] sm:$0xff]   ;;  %v1399_v23 = vld [vmem:[%s1967_s1 + $0xa8] sm:$0xff]  }
   0x9   :  { %1271 = vmatpush3.bf16.msra.mxu1 %v1383_v7  ;;  %1208 = vmatprep.subr.bf16.mxu0 %v1384_v8  ;;  %v1400_v24 = vld [vmem:[%s1967_s1 + $0x70] sm:$0xff]   ;;  %v1404_v28 = vld [vmem:[%s1967_s1 + $0x78] sm:$0xff]   ;;  %v1413_v35 = vld [vmem:[%s1968_s0 + $0xc] ss:$20 sps:$4 sm:$0xff]  }
   0xa   :  { %1272 = vmatprep.subr.bf16.mxu1 %v1385_v9  ;;  %v1401_v25 = vld [vmem:[%s1967_s1 + $0xf0] sm:$0xff]   ;;  %v1405_v29 = vld [vmem:[%s1967_s1 + $0xf8] sm:$0xff]   ;;  %v1414_v36 = vld [vmem:[%s1967_s1 + $0x100] sm:$0xff]   ;;  %712 = vmatprep.mubr.bf16.mxu1 %v1413_v35 }
   0xb   :  { %v1402_v26 = vld [vmem:[%s1967_s1 + $0x30] sm:$0xff]   ;;  %v1406_v30 = vld [vmem:[%s1967_s1 + $0x38] sm:$0xff]   ;;  %v1415_v37 = vld [vmem:[%s1968_s0 + $0x2c] ss:$20 sps:$4 sm:$0xff]  }
   0xc   :  { %1209 = vmatpush3.bf16.msra.mxu0 %v1386_v10  ;;  %v1403_v27 = vld [vmem:[%s1967_s1 + $0xb0] sm:$0xff]   ;;  %v1407_v31 = vld [vmem:[%s1967_s1 + $0xb8] sm:$0xff]   ;;  %v1427_v42 = vld [vmem:[%s1967_s1 + $0x108] sm:$0xff]  }
   0xd   :  { %1273 = vmatpush3.bf16.msra.mxu1 %v1387_v11  ;;  %1210 = vmatprep.subr.bf16.mxu0 %v1388_v12  ;;  %v1408_v32 = vld [vmem:[%s1968_s0] ss:$20 sps:$4 sm:$0xff]   ;;  %v1410_v33 = vld [vmem:[%s1968_s0 + $0x4] ss:$20 sps:$4 sm:$0xff]   ;;  %v1411_v34 = vld [vmem:[%s1968_s0 + $0x8] ss:$20 sps:$4 sm:$0xff]  }
   0xe   :  { %1274 = vmatprep.subr.bf16.mxu1 %v1389_v13  ;;  %615 = vmatprep.mubr.bf16.mxu0 %v1410_v33  ;;  %v1417_v38 = vld [vmem:[%s1968_s0 + $0x34] ss:$20 sps:$4 sm:$0xff]   ;;  %v1420_v40 = vld [vmem:[%s1968_s0 + $0x30] ss:$20 sps:$4 sm:$0xff]   ;;  %v1426_v45 = vld [vmem:[%s1968_s0 + $0x58] ss:$20 sps:$4 sm:$0xff]  }
   0xf   :  { %v1419_v39 = vld [vmem:[%s1968_s0 + $0x28] ss:$20 sps:$4 sm:$0xff]   ;;  %v1425_v44 = vld [vmem:[%s1968_s0 + $0x50] ss:$20 sps:$4 sm:$0xff]   ;;  %v1432_v50 = vld [vmem:[%s1968_s0 + $0x78] ss:$20 sps:$4 sm:$0xff]  }
  0x10   :  { %1211 = vmatpush3.bf16.msra.mxu0 %v1390_v14  ;;  %v1421_v41 = vld [vmem:[%s1968_s0 + $0x54] ss:$20 sps:$4 sm:$0xff]   ;;  %v1423_v43 = vld [vmem:[%s1968_s0 + $0x5c] ss:$20 sps:$4 sm:$0xff]   ;;  %v1430_v48 = vld [vmem:[%s1968_s0 + $0x84] ss:$20 sps:$4 sm:$0xff]  }
  0x11   :  { %1275 = vmatpush3.bf16.msra.mxu1 %v1391_v15  ;;  %1212 = vmatprep.subr.bf16.mxu0 %v1392_v16  ;;  %v1440_v46 = vld [vmem:[%s1967_s1 + $0x110] sm:$0xff]   ;;  %v1453_v49 = vld [vmem:[%s1967_s1 + $0x118] sm:$0xff]   ;;  %v1436_v53 = vld [vmem:[%s1968_s0 + $0xac] ss:$20 sps:$4 sm:$0xff]  }
  0x12   :  { %1276 = vmatprep.subr.bf16.mxu1 %v1393_v17  ;;  %v1428_v47 = vld [vmem:[%s1968_s0 + $0x7c] ss:$20 sps:$4 sm:$0xff]   ;;  %v1433_v51 = vld [vmem:[%s1968_s0 + $0x80] ss:$20 sps:$4 sm:$0xff]   ;;  %v1434_v52 = vld [vmem:[%s1968_s0 + $0xa4] ss:$20 sps:$4 sm:$0xff]  }
  0x13   :  { %v1438_v54 = vld [vmem:[%s1968_s0 + $0xa0] ss:$20 sps:$4 sm:$0xff]   ;;  %v1439_v55 = vld [vmem:[%s1968_s0 + $0xa8] ss:$20 sps:$4 sm:$0xff]   ;;  %v1446_v59 = vld [vmem:[%s1968_s0 + $0xd0] ss:$20 sps:$4 sm:$0xff]  }
  0x14   :  { %1213 = vmatpush3.bf16.msra.mxu0 %v1394_v18  ;;  %v1441_v56 = vld [vmem:[%s1968_s0 + $0xcc] ss:$20 sps:$4 sm:$0xff]   ;;  %v1443_v57 = vld [vmem:[%s1968_s0 + $0xd4] ss:$20 sps:$4 sm:$0xff]   ;;  %v1449_v61 = vld [vmem:[%s1968_s0 + $0xfc] ss:$20 sps:$4 sm:$0xff]  }
  0x15   :  { %1277 = vmatpush3.bf16.msra.mxu1 %v1395_v19  ;;  %1214 = vmatprep.subr.bf16.mxu0 %v1396_v20  ;;  %v1445_v58 = vld [vmem:[%s1968_s0 + $0xc8] ss:$20 sps:$4 sm:$0xff]   ;;  %v1451_v62 = vld [vmem:[%s1968_s0 + $0xf0] ss:$20 sps:$4 sm:$0xff]   ;;  %v1452_v63 = vld [vmem:[%s1968_s0 + $0xf8] ss:$20 sps:$4 sm:$0xff]  }
  0x16   :  { %1278 = vmatprep.subr.bf16.mxu1 %v1397_v21  ;;  %v1447_v60 = vld [vmem:[%s1968_s0 + $0xf4] ss:$20 sps:$4 sm:$0xff]   ;;  %v1454_v0 = vld [vmem:[%s1968_s0 + $0x11c] ss:$20 sps:$4 sm:$0xff]   ;;  %v1456_v1 = vld [vmem:[%s1968_s0 + $0x124] ss:$20 sps:$4 sm:$0xff]  }
  0x17   :  { %v1458_v2 = vld [vmem:[%s1968_s0 + $0x118] ss:$20 sps:$4 sm:$0xff]   ;;  %v1459_v3 = vld [vmem:[%s1968_s0 + $0x120] ss:$20 sps:$4 sm:$0xff]   ;;  %v1460_v4 = vld [vmem:[%s1968_s0 + $0x10] ss:$20 sps:$4 sm:$0xff]  }
  0x18   :  { %1215 = vmatpush3.bf16.msra.mxu0 %v1398_v22  ;;  %v1461_v5 = vld [vmem:[%s1968_s0 + $0xb0] ss:$20 sps:$4 sm:$0xff]   ;;  %v1462_v6 = vld [vmem:[%s1968_s0 + $0x38] ss:$20 sps:$4 sm:$0xff]   ;;  %v1464_v8 = vld [vmem:[%s1968_s0 + $0x60] ss:$20 sps:$4 sm:$0xff]  }
  0x19   :  { %1279 = vmatpush3.bf16.msra.mxu1 %v1399_v23  ;;  %1216 = vmatprep.subr.bf16.mxu0 %v1400_v24  ;;  %v1463_v7 = vld [vmem:[%s1968_s0 + $0xd8] ss:$20 sps:$4 sm:$0xff]   ;;  %v1465_v9 = vld [vmem:[%s1968_s0 + $0x100] ss:$20 sps:$4 sm:$0xff]   ;;  %v1466_v10 = vld [vmem:[%s1968_s0 + $0x88] ss:$20 sps:$4 sm:$0xff]  }
  0x1a   :  { %1280 = vmatprep.subr.bf16.mxu1 %v1401_v25  ;;  %v1467_v11 = vld [vmem:[%s1968_s0 + $0x128] ss:$20 sps:$4 sm:$0xff]   ;;  %v1791_v14 = vld [vmem:[%s1969_s2] ss:$0 sm:$0xff] }
  0x1c   :  { %1217 = vmatpush3.bf16.msra.mxu0 %v1402_v26 }
  0x1d   :  { %1281 = vmatpush3.bf16.msra.mxu1 %v1403_v27  ;;  %1218 = vmatprep.subr.bf16.mxu0 %v1404_v28 }
  0x1e   :  { %1282 = vmatprep.subr.bf16.mxu1 %v1405_v29 }
  0x20   :  { %1219 = vmatpush3.bf16.msra.mxu0 %v1406_v30 }
  0x21   :  { %1283 = vmatpush3.bf16.msra.mxu1 %v1407_v31  ;;  %1344 = vmatprep.subr.bf16.mxu0 %v1414_v36 }
  0x22   :  { %1368 = vmatprep.subr.bf16.mxu1 %v1414_v36 }
  0x23   :  { %616 = vmatmul.mubr.bf16.vlgmr.msra.gmra.mrb[0].mxu0 %v1408_v32 }
  0x24   :  { %713 = vmatmul.mubr.bf16.vlgmr.msra.gmra.mrb[0].mxu1 %v1411_v34  ;;  %1345 = vmatpush3.bf16.msra.mxu0 %v1414_v36 }
  0x25   :  { %1372 = vmatpush3.bf16.msra.mxu1 %v1414_v36  ;;  %623 = vmatprep.mubr.bf16.mxu0 %v1415_v37 }
  0x26   :  { %720 = vmatprep.mubr.bf16.mxu1 %v1417_v38  ;;  %1346 = vmatprep.subr.bf16.mxu0 %v1427_v42 }
  0x27   :  { %1369 = vmatprep.subr.bf16.mxu1 %v1427_v42 }
  0x28   :  { %1347 = vmatpush3.bf16.msra.mxu0 %v1427_v42 }
  0x29   :  { %1373 = vmatpush3.bf16.msra.mxu1 %v1427_v42  ;;  %1348 = vmatprep.subr.bf16.mxu0 %v1440_v46 }
  0x2a   :  { %1370 = vmatprep.subr.bf16.mxu1 %v1440_v46 }
  0x2b   :  { %624 = vmatmul.mubr.bf16.gmra.mrb[4].mxu0 %v1419_v39 }
  0x2c   :  { %721 = vmatmul.mubr.bf16.gmra.mrb[4].mxu1 %v1420_v40  ;;  %631 = vmatprep.mubr.bf16.mxu0 %v1421_v41 }
  0x2d   :  { %728 = vmatprep.mubr.bf16.mxu1 %v1423_v43  ;;  %1349 = vmatpush3.bf16.msra.mxu0 %v1440_v46 }
  0x2e   :  { %1374 = vmatpush3.bf16.msra.mxu1 %v1440_v46  ;;  %1350 = vmatprep.subr.bf16.mxu0 %v1453_v49 }
  0x2f   :  { %1371 = vmatprep.subr.bf16.mxu1 %v1453_v49 }
  0x31   :  { %1351 = vmatpush3.bf16.msra.mxu0 %v1453_v49 }
  0x32   :  { %1375 = vmatpush3.bf16.msra.mxu1 %v1453_v49 }
  0x33   :  { %632 = vmatmul.mubr.bf16.gmra.mrb[8].mxu0 %v1425_v44 }
  0x34   :  { %729 = vmatmul.mubr.bf16.gmra.mrb[8].mxu1 %v1426_v45  ;;  %639 = vmatprep.mubr.bf16.mxu0 %v1428_v47 }
  0x35   :  { %736 = vmatprep.mubr.bf16.mxu1 %v1430_v48 }
  0x3b   :  { %640 = vmatmul.mubr.bf16.gmra.mrb[12].mxu0 %v1432_v50 }
  0x3c   :  { %737 = vmatmul.mubr.bf16.gmra.mrb[12].mxu1 %v1433_v51  ;;  %647 = vmatprep.mubr.bf16.mxu0 %v1434_v52 }
  0x3d   :  { %744 = vmatprep.mubr.bf16.mxu1 %v1436_v53 }
  0x43   :  { %648 = vmatmul.mubr.bf16.gmra.mrb[16].mxu0 %v1438_v54 }
  0x44   :  { %745 = vmatmul.mubr.bf16.gmra.mrb[16].mxu1 %v1439_v55  ;;  %655 = vmatprep.mubr.bf16.mxu0 %v1441_v56 }
  0x45   :  { %752 = vmatprep.mubr.bf16.mxu1 %v1443_v57 }
  0x4b   :  { %656 = vmatmul.mubr.bf16.gmra.mrb[20].mxu0 %v1445_v58 }
  0x4c   :  { %753 = vmatmul.mubr.bf16.gmra.mrb[20].mxu1 %v1446_v59  ;;  %663 = vmatprep.mubr.bf16.mxu0 %v1447_v60 }
  0x4d   :  { %760 = vmatprep.mubr.bf16.mxu1 %v1449_v61 }
  0x53   :  { %664 = vmatmul.mubr.bf16.gmra.mrb[24].mxu0 %v1451_v62 }
  0x54   :  { %761 = vmatmul.mubr.bf16.gmra.mrb[24].mxu1 %v1452_v63  ;;  %671 = vmatprep.mubr.bf16.mxu0 %v1454_v0 }
  0x55   :  { %768 = vmatprep.mubr.bf16.mxu1 %v1456_v1 }
  0x5b   :  { %672 = vmatmul.mubr.bf16.gmra.mrb[28].mxu0 %v1458_v2 }
  0x5c   :  { %769 = vmatmul.mubr.bf16.gmra.mrb[28].mxu1 %v1459_v3  ;;  %1352 = vmatprep.mubr.msk.bf16.mxu0 %vm558_vm0, %v1460_v4 }
  0x5d   :  { %1360 = vmatprep.mubr.msk.bf16.mxu1 %vm558_vm0, %v1461_v5 }
  0x63   :  { %1353 = vmatmul.mubr.msk.bf16.vlgmr.msra.gmra.mrb[32].mxu0 %vm558_vm0, %v1462_v6 }
  0x64   :  { %1361 = vmatmul.mubr.msk.bf16.vlgmr.msra.gmra.mrb[32].mxu1 %vm558_vm0, %v1463_v7  ;;  %1356 = vmatprep.mubr.msk.bf16.mxu0 %vm558_vm0, %v1464_v8 }
  0x65   :  { %1364 = vmatprep.mubr.msk.bf16.mxu1 %vm558_vm0, %v1465_v9 }
  0x6b   :  { %1357 = vmatmul.mubr.msk.bf16.gmra.mrb[36].mxu0 %vm558_vm0, %v1466_v10 }
  0x6c   :  { %1365 = vmatmul.mubr.msk.bf16.gmra.mrb[36].mxu1 %vm558_vm0, %v1467_v11 }
  0xf6   :  { %v1220_v12 = vpop.f32.mrb[0].mxu0 }
  0xf7   :  { %v1284_v13 = vpop.f32.mrb[0].mxu1  ;;  %v1221_v15 = vpop.f32.mrb[1].mxu0 }
  0xf8   :  { %v1222_v16 = vadd.f32 %v1221_v15, %v1220_v12  ;;  %v1285_v17 = vpop.f32.mrb[1].mxu1  ;;  %v1223_v18 = vpop.f32.mrb[2].mxu0 }
  0xf9   :  { %v1286_v19 = vadd.f32 %v1285_v17, %v1284_v13  ;;  %v1287_v20 = vpop.f32.mrb[2].mxu1  ;;  %v1224_v21 = vpop.f32.mrb[3].mxu0 }
  0xfa   :  { %v618_v22 = vadd.f32 %v1222_v16, %v1791_v14  ;;  %v1225_v23 = vadd.f32 %v1224_v21, %v1223_v18  ;;  %v1288_v24 = vpop.f32.mrb[3].mxu1 }
  0xfb   :  { %v1289_v25 = vadd.f32 %v1288_v24, %v1287_v20 }
  0xfc   :  { %v621_v26 = vadd.f32 %v1225_v23, %v1791_v14  ;;  %v1795_v27 = vadd.f32 %v1286_v19, %v618_v22 }
  0xfe   :  { %v1226_v28 = vpop.f32.mrb[4].mxu0  ;;  %v1797_v29 = vadd.f32 %v1289_v25, %v621_v26 }
  0xff   :  { %v1290_v30 = vpop.f32.mrb[4].mxu1  ;;  %v1227_v31 = vpop.f32.mrb[5].mxu0 }
 0x100   :  { %v1228_v32 = vadd.f32 %v1227_v31, %v1226_v28  ;;  %v1291_v33 = vpop.f32.mrb[5].mxu1  ;;  %v1229_v34 = vpop.f32.mrb[6].mxu0 }
 0x101   :  { %v1292_v35 = vadd.f32 %v1291_v33, %v1290_v30  ;;  %v1293_v36 = vpop.f32.mrb[6].mxu1  ;;  %v1230_v37 = vpop.f32.mrb[7].mxu0 }
 0x102   :  { %v626_v38 = vadd.f32 %v1228_v32, %v1791_v14  ;;  %v1231_v39 = vadd.f32 %v1230_v37, %v1229_v34  ;;  %v1294_v40 = vpop.f32.mrb[7].mxu1 }
 0x103   :  { %v1295_v41 = vadd.f32 %v1294_v40, %v1293_v36 }
 0x104   :  { %v629_v42 = vadd.f32 %v1231_v39, %v1791_v14  ;;  %v1801_v43 = vadd.f32 %v1292_v35, %v626_v38 }
 0x106   :  { %v1232_v44 = vpop.f32.mrb[8].mxu0  ;;  %v1803_v45 = vadd.f32 %v1295_v41, %v629_v42 }
 0x107   :  { %v1296_v46 = vpop.f32.mrb[8].mxu1  ;;  %v1233_v47 = vpop.f32.mrb[9].mxu0 }
 0x108   :  { %v1234_v48 = vadd.f32 %v1233_v47, %v1232_v44  ;;  %v1297_v49 = vpop.f32.mrb[9].mxu1  ;;  %v1235_v50 = vpop.f32.mrb[10].mxu0 }
 0x109   :  { %v1298_v51 = vadd.f32 %v1297_v49, %v1296_v46  ;;  %v1299_v52 = vpop.f32.mrb[10].mxu1  ;;  %v1236_v53 = vpop.f32.mrb[11].mxu0 }
 0x10a   :  { %v634_v54 = vadd.f32 %v1234_v48, %v1791_v14  ;;  %v1237_v55 = vadd.f32 %v1236_v53, %v1235_v50  ;;  %v1300_v56 = vpop.f32.mrb[11].mxu1 }
 0x10b   :  { %v1301_v57 = vadd.f32 %v1300_v56, %v1299_v52 }
 0x10c   :  { %v637_v58 = vadd.f32 %v1237_v55, %v1791_v14  ;;  %v1807_v59 = vadd.f32 %v1298_v51, %v634_v54 }
 0x10e   :  { %v1238_v60 = vpop.f32.mrb[12].mxu0  ;;  %v1809_v61 = vadd.f32 %v1301_v57, %v637_v58 }
 0x10f   :  { %v1302_v62 = vpop.f32.mrb[12].mxu1  ;;  %v1239_v63 = vpop.f32.mrb[13].mxu0 }
 0x110   :  { %v1240_v0 = vadd.f32 %v1239_v63, %v1238_v60  ;;  %v1303_v1 = vpop.f32.mrb[13].mxu1  ;;  %v1241_v2 = vpop.f32.mrb[14].mxu0 }
 0x111   :  { %v1304_v3 = vadd.f32 %v1303_v1, %v1302_v62  ;;  %v1305_v4 = vpop.f32.mrb[14].mxu1  ;;  %v1242_v5 = vpop.f32.mrb[15].mxu0 }
 0x112   :  { %v642_v6 = vadd.f32 %v1240_v0, %v1791_v14  ;;  %v1243_v7 = vadd.f32 %v1242_v5, %v1241_v2  ;;  %v1306_v8 = vpop.f32.mrb[15].mxu1 }
 0x113   :  { %v1307_v9 = vadd.f32 %v1306_v8, %v1305_v4 }
 0x114   :  { %v645_v10 = vadd.f32 %v1243_v7, %v1791_v14  ;;  %v1813_v11 = vadd.f32 %v1304_v3, %v642_v6 }
 0x116   :  { %v1244_v12 = vpop.f32.mrb[16].mxu0  ;;  %v1815_v13 = vadd.f32 %v1307_v9, %v645_v10 }
 0x117   :  { %v1308_v15 = vpop.f32.mrb[16].mxu1  ;;  %v1245_v16 = vpop.f32.mrb[17].mxu0 }
 0x118   :  { %v1246_v17 = vadd.f32 %v1245_v16, %v1244_v12  ;;  %v1309_v18 = vpop.f32.mrb[17].mxu1  ;;  %v1247_v19 = vpop.f32.mrb[18].mxu0 }
 0x119   :  { %v1310_v20 = vadd.f32 %v1309_v18, %v1308_v15  ;;  %v1311_v21 = vpop.f32.mrb[18].mxu1  ;;  %v1248_v22 = vpop.f32.mrb[19].mxu0 }
 0x11a   :  { %v650_v23 = vadd.f32 %v1246_v17, %v1791_v14  ;;  %v1249_v24 = vadd.f32 %v1248_v22, %v1247_v19  ;;  %v1312_v25 = vpop.f32.mrb[19].mxu1 }
 0x11b   :  { %v1313_v26 = vadd.f32 %v1312_v25, %v1311_v21 }
 0x11c   :  { %v653_v28 = vadd.f32 %v1249_v24, %v1791_v14  ;;  %v747_v30 = vadd.f32 %v1310_v20, %v650_v23 }
 0x11e   :  { %v1250_v31 = vpop.f32.mrb[20].mxu0  ;;  %v1819_v32 = vadd.f32 %v1313_v26, %v653_v28 }
 0x11f   :  { %v1314_v33 = vpop.f32.mrb[20].mxu1  ;;  %v1251_v34 = vpop.f32.mrb[21].mxu0 }
 0x120   :  { %v1252_v35 = vadd.f32 %v1251_v34, %v1250_v31  ;;  %v1315_v36 = vpop.f32.mrb[21].mxu1  ;;  %v1253_v37 = vpop.f32.mrb[22].mxu0 }
 0x121   :  { %v1316_v38 = vadd.f32 %v1315_v36, %v1314_v33  ;;  %v1317_v39 = vpop.f32.mrb[22].mxu1  ;;  %v1254_v40 = vpop.f32.mrb[23].mxu0 }
 0x122   :  { %v658_v41 = vadd.f32 %v1252_v35, %v1791_v14  ;;  %v1255_v42 = vadd.f32 %v1254_v40, %v1253_v37  ;;  %v1318_v44 = vpop.f32.mrb[23].mxu1 }
 0x123   :  { %v1319_v46 = vadd.f32 %v1318_v44, %v1317_v39 }
 0x124   :  { %v661_v47 = vadd.f32 %v1255_v42, %v1791_v14  ;;  %v755_v48 = vadd.f32 %v1316_v38, %v658_v41 }
 0x126   :  { %v1256_v49 = vpop.f32.mrb[24].mxu0  ;;  %v758_v50 = vadd.f32 %v1319_v46, %v661_v47 }
 0x127   :  { %v1320_v51 = vpop.f32.mrb[24].mxu1  ;;  %v1257_v52 = vpop.f32.mrb[25].mxu0 }
 0x128   :  { %v1258_v53 = vadd.f32 %v1257_v52, %v1256_v49  ;;  %v1321_v54 = vpop.f32.mrb[25].mxu1  ;;  %v1259_v55 = vpop.f32.mrb[26].mxu0 }
 0x129   :  { %v1322_v56 = vadd.f32 %v1321_v54, %v1320_v51  ;;  %v1323_v57 = vpop.f32.mrb[26].mxu1  ;;  %v1260_v58 = vpop.f32.mrb[27].mxu0 }
 0x12a   :  { %v666_v60 = vadd.f32 %v1258_v53, %v1791_v14  ;;  %v1261_v62 = vadd.f32 %v1260_v58, %v1259_v55  ;;  %v1324_v63 = vpop.f32.mrb[27].mxu1 }
 0x12b   :  { %v1325_v0 = vadd.f32 %v1324_v63, %v1323_v57 }
 0x12c   :  { %v669_v1 = vadd.f32 %v1261_v62, %v1791_v14  ;;  %v763_v2 = vadd.f32 %v1322_v56, %v666_v60 }
 0x12e   :  { %v1262_v3 = vpop.f32.mrb[28].mxu0  ;;  %v1825_v4 = vadd.f32 %v1325_v0, %v669_v1 }
 0x12f   :  { %v1326_v5 = vpop.f32.mrb[28].mxu1  ;;  %v1263_v6 = vpop.f32.mrb[29].mxu0 }
 0x130   :  { %v1264_v7 = vadd.f32 %v1263_v6, %v1262_v3  ;;  %v1327_v8 = vpop.f32.mrb[29].mxu1  ;;  %v1265_v9 = vpop.f32.mrb[30].mxu0 }
 0x131   :  { %v1328_v10 = vadd.f32 %v1327_v8, %v1326_v5  ;;  %v1329_v12 = vpop.f32.mrb[30].mxu1  ;;  %v1266_v15 = vpop.f32.mrb[31].mxu0 }
 0x132   :  { %v674_v16 = vadd.f32 %v1264_v7, %v1791_v14  ;;  %v1267_v17 = vadd.f32 %v1266_v15, %v1265_v9  ;;  %v1330_v18 = vpop.f32.mrb[31].mxu1 }
 0x133   :  { %v1331_v19 = vadd.f32 %v1330_v18, %v1329_v12 }
 0x134   :  { %v677_v20 = vadd.f32 %v1267_v17, %v1791_v14  ;;  %v771_v21 = vadd.f32 %v1328_v10, %v674_v16 }
 0x136   :  { %v1354_v22 = vpop.f32.mrb[32].mxu0  ;;  %v774_v23 = vadd.f32 %v1331_v19, %v677_v20 }
 0x137   :  { %v1830_v24 = vadd.f32 %v1354_v22, %v1801_v43  ;;  %v1362_v25 = vpop.f32.mrb[32].mxu1  ;;  %v811_v26 = vpop.f32.mrb[33].mxu0 }
 0x138   :  { %v1832_v28 = vadd.f32 %v1362_v25, %v755_v48  ;;  %v1835_v31 = vadd.f32 %v811_v26, %v1795_v27  ;;  %v843_v33 = vpop.f32.mrb[33].mxu1  ;;  %v1355_v34 = vpop.f32.mrb[34].mxu0 }
 0x139   :  { %v1158_v35 = vmul.f32 -1.442695, %v1830_v24  ;;  %v1838_v36 = vadd.f32 %v843_v33, %v747_v30  ;;  %v1841_v14 = vadd.f32 %v1355_v34, %v1803_v45  ;;  %v1363_v37 = vpop.f32.mrb[34].mxu1  ;;  %v814_v38 = vpop.f32.mrb[35].mxu0 }
 0x13a   :  { %v1166_v43 = vmul.f32 -1.442695, %v1832_v28  ;;  %v1156_v39 = vmul.f32 -1.442695, %v1835_v31  ;;  %v1845_v40 = vadd.f32 %v1363_v37, %v758_v50  ;;  %v1848_v27 = vadd.f32 %v814_v38, %v1797_v29  ;;  %v846_v41 = vpop.f32.mrb[35].mxu1 }
 0x13b   :  { %1468 = vpow2.f32 %v1158_v35  ;;  %v1164_v42 = vmul.f32 -1.442695, %v1838_v36  ;;  %v1159_v30 = vmul.f32 -1.442695, %v1841_v14  ;;  %v1853_v45 = vadd.f32 %v846_v41, %v1819_v32 }
 0x13c   :  { %1470 = vpow2.f32 %v1166_v43  ;;  %v1167_v44 = vmul.f32 -1.442695, %v1845_v40  ;;  %v1157_v46 = vmul.f32 -1.442695, %v1848_v27 }
 0x13d   :  { %1472 = vpow2.f32 %v1156_v39  ;;  %v1165_v47 = vmul.f32 -1.442695, %v1853_v45 }
 0x13e   :  { %1474 = vpow2.f32 %v1164_v42  ;;  %v1358_v29 = vpop.f32.mrb[36].mxu0 }
 0x13f   :  { %1476 = vpow2.f32 %v1159_v30  ;;  %v1859_v48 = vadd.f32 %v1358_v29, %v1813_v11  ;;  %v1366_v49 = vpop.f32.mrb[36].mxu1  ;;  %v827_v50 = vpop.f32.mrb[37].mxu0 }
 0x140   :  { %1478 = vpow2.f32 %v1167_v44  ;;  %v1861_v51 = vadd.f32 %v1366_v49, %v771_v21  ;;  %v1864_v32 = vadd.f32 %v827_v50, %v1807_v59  ;;  %v859_v52 = vpop.f32.mrb[37].mxu1  ;;  %v1359_v53 = vpop.f32.mrb[38].mxu0 }
 0x141   :  { %1480 = vpow2.f32 %v1157_v46  ;;  %v1162_v54 = vmul.f32 -1.442695, %v1859_v48  ;;  %v1867_v55 = vadd.f32 %v859_v52, %v763_v2  ;;  %v1870_v56 = vadd.f32 %v1359_v53, %v1815_v13  ;;  %v1367_v11 = vpop.f32.mrb[38].mxu1  ;;  %v830_v57 = vpop.f32.mrb[39].mxu0 }
 0x142   :  { %1482 = vpow2.f32 %v1165_v47  ;;  %v1170_v58 = vmul.f32 -1.442695, %v1861_v51  ;;  %v1160_v60 = vmul.f32 -1.442695, %v1864_v32  ;;  %v1874_v62 = vadd.f32 %v1367_v11, %v774_v23  ;;  %v862_v59 = vpop.f32.mrb[39].mxu1 }
 0x143   :  { %1484 = vpow2.f32 %v1162_v54  ;;  %v1168_v63 = vmul.f32 -1.442695, %v1867_v55  ;;  %v1163_v0 = vmul.f32 -1.442695, %v1870_v56  ;;  %v1879_v1 = vadd.f32 %v830_v57, %v1809_v61 }
 0x144   :  { %1486 = vpow2.f32 %v1170_v58  ;;  %v1882_v13 = vadd.f32 %v862_v59, %v1825_v4  ;;  %v1171_v37 = vmul.f32 -1.442695, %v1874_v62 }
 0x145   :  { %v1469_v2 = vpop.eup %1468  ;;  %1488 = vpow2.f32 %v1160_v60  ;;  %v1161_v39 = vmul.f32 -1.442695, %v1879_v1 }
 0x146   :  { %v1471_v3 = vpop.eup %1470  ;;  %v924_v5 = vadd.f32 1.0, %v1469_v2  ;;  %1490 = vpow2.f32 %v1168_v63  ;;  %v1169_v30 = vmul.f32 -1.442695, %v1882_v13 }
 0x147   :  { %v1473_v6 = vpop.eup %1472  ;;  %v932_v7 = vadd.f32 1.0, %v1471_v3  ;;  %1492 = vpow2.f32 %v1163_v0 }
 0x148   :  { %v1475_v8 = vpop.eup %1474  ;;  %1494 = vrcp.f32 %v924_v5  ;;  %v922_v9 = vadd.f32 1.0, %v1473_v6 }
 0x149   :  { %v1477_v10 = vpop.eup %1476  ;;  %1496 = vrcp.f32 %v932_v7  ;;  %v930_v12 = vadd.f32 1.0, %v1475_v8 }
 0x14a   :  { %v1479_v61 = vpop.eup %1478  ;;  %1498 = vrcp.f32 %v922_v9  ;;  %v925_v15 = vadd.f32 1.0, %v1477_v10 }
 0x14b   :  { %v1481_v16 = vpop.eup %1480  ;;  %1500 = vrcp.f32 %v930_v12  ;;  %v933_v4 = vadd.f32 1.0, %v1479_v61 }
 0x14c   :  { %v1483_v17 = vpop.eup %1482  ;;  %1502 = vrcp.f32 %v925_v15  ;;  %v923_v18 = vadd.f32 1.0, %v1481_v16 }
 0x14d   :  { %v1485_v19 = vpop.eup %1484  ;;  %1504 = vrcp.f32 %v933_v4  ;;  %v931_v20 = vadd.f32 1.0, %v1483_v17 }
 0x14e   :  { %v1487_v21 = vpop.eup %1486  ;;  %1506 = vrcp.f32 %v923_v18  ;;  %v928_v22 = vadd.f32 1.0, %v1485_v19 }
 0x14f   :  { %v1489_v23 = vpop.eup %1488  ;;  %1508 = vrcp.f32 %v931_v20  ;;  %v936_v25 = vadd.f32 1.0, %v1487_v21 }
 0x150   :  { %v1491_v26 = vpop.eup %1490  ;;  %1510 = vrcp.f32 %v928_v22  ;;  %v926_v33 = vadd.f32 1.0, %v1489_v23 }
 0x151   :  { %v1493_v34 = vpop.eup %1492  ;;  %1512 = vrcp.f32 %v936_v25  ;;  %v934_v35 = vadd.f32 1.0, %v1491_v26 }
 0x152   :  { %v1495_v38 = vpop.eup %1494  ;;  %1514 = vrcp.f32 %v926_v33  ;;  %v929_v43 = vadd.f32 1.0, %v1493_v34 }
 0x153   :  { %v1497_v41 = vpop.eup %1496  ;;  %v972_v42 = vmul.f32 %v1495_v38, %v1830_v24  ;;  %1516 = vrcp.f32 %v934_v35 }
 0x154   :  { %v1499_v44 = vpop.eup %1498  ;;  %v980_v46 = vmul.f32 %v1497_v41, %v1832_v28  ;;  %1518 = vrcp.f32 %v929_v43 }
 0x155   :  { %v1501_v47 = vpop.eup %1500  ;;  %v1190_v29 = vpack.c.bf16 %v972_v42, %v972_v42  ;;  %v970_v49 = vmul.f32 %v1499_v44, %v1835_v31  ;;  %1520 = vpow2.f32 %v1171_v37 }
 0x156   :  { %v1503_v50 = vpop.eup %1502  ;;  %v1198_v52 = vpack.c.bf16 %v980_v46, %v980_v46  ;;  %v978_v53 = vmul.f32 %v1501_v47, %v1838_v36  ;;  %1522 = vpow2.f32 %v1161_v39 }
 0x157   :  { %v1505_v54 = vpop.eup %1504  ;;  %1053 = vst.msk [vmem:[%s1970_s3 + $0x8] sm:$0xf] %vm1050_vm1, %v1190_v29  ;;  %v1188_v24 = vpack.c.bf16 %v970_v49, %v970_v49  ;;  %v973_v28 = vmul.f32 %v1503_v50, %v1841_v14  ;;  %1524 = vpow2.f32 %v1169_v30 }
 0x158   :  { %v1507_v11 = vpop.eup %1506  ;;  %1061 = vst.msk [vmem:[%s1970_s3 + $0x28] sm:$0xf] %vm1050_vm1, %v1198_v52  ;;  %v1196_v31 = vpack.c.bf16 %v978_v53, %v978_v53  ;;  %v981_v36 = vmul.f32 %v1505_v54, %v1845_v40 }
 0x159   :  { %v1509_v57 = vpop.eup %1508  ;;  %1051 = vst.msk [vmem:[%s1970_s3] sm:$0xf] %vm1050_vm1, %v1188_v24  ;;  %v1191_v58 = vpack.c.bf16 %v973_v28, %v973_v28  ;;  %v971_v60 = vmul.f32 %v1507_v11, %v1848_v27 }
 0x15a   :  { %v1511_v14 = vpop.eup %1510  ;;  %1059 = vst.msk [vmem:[%s1970_s3 + $0x20] sm:$0xf] %vm1050_vm1, %v1196_v31  ;;  %v1199_v59 = vpack.c.bf16 %v981_v36, %v981_v36  ;;  %v979_v63 = vmul.f32 %v1509_v57, %v1853_v45 }
 0x15b   :  { %v1513_v0 = vpop.eup %1512  ;;  %1054 = vst.msk [vmem:[%s1970_s3 + $0xc] sm:$0xf] %vm1050_vm1, %v1191_v58  ;;  %v1189_v40 = vpack.c.bf16 %v971_v60, %v971_v60  ;;  %v976_v2 = vmul.f32 %v1511_v14, %v1859_v48 }
 0x15c   :  { %v1515_v3 = vpop.eup %1514  ;;  %1062 = vst.msk [vmem:[%s1970_s3 + $0x2c] sm:$0xf] %vm1050_vm1, %v1199_v59  ;;  %v1197_v27 = vpack.c.bf16 %v979_v63, %v979_v63  ;;  %v984_v5 = vmul.f32 %v1513_v0, %v1861_v51 }
 0x15d   :  { %v1517_v6 = vpop.eup %1516  ;;  %1052 = vst.msk [vmem:[%s1970_s3 + $0x4] sm:$0xf] %vm1050_vm1, %v1189_v40  ;;  %v1194_v45 = vpack.c.bf16 %v976_v2, %v976_v2  ;;  %v974_v7 = vmul.f32 %v1515_v3, %v1864_v32 }
 0x15e   :  { %v1519_v8 = vpop.eup %1518  ;;  %1060 = vst.msk [vmem:[%s1970_s3 + $0x24] sm:$0xf] %vm1050_vm1, %v1197_v27  ;;  %v1202_v48 = vpack.c.bf16 %v984_v5, %v984_v5  ;;  %v982_v9 = vmul.f32 %v1517_v6, %v1867_v55 }
 0x15f   :  { %v1521_v10 = vpop.eup %1520  ;;  %1057 = vst.msk [vmem:[%s1970_s3 + $0x18] sm:$0xf] %vm1050_vm1, %v1194_v45  ;;  %v1192_v51 = vpack.c.bf16 %v974_v7, %v974_v7  ;;  %v977_v12 = vmul.f32 %v1519_v8, %v1870_v56 }
 0x160   :  { %v1523_v61 = vpop.eup %1522  ;;  %1065 = vst.msk [vmem:[%s1970_s3 + $0x38] sm:$0xf] %vm1050_vm1, %v1202_v48  ;;  %v1200_v32 = vpack.c.bf16 %v982_v9, %v982_v9  ;;  %v937_v15 = vadd.f32 1.0, %v1521_v10 }
 0x161   :  { %v1525_v16 = vpop.eup %1524  ;;  %1055 = vst.msk [vmem:[%s1970_s3 + $0x10] sm:$0xf] %vm1050_vm1, %v1192_v51  ;;  %v1195_v55 = vpack.c.bf16 %v977_v12, %v977_v12  ;;  %v927_v4 = vadd.f32 1.0, %v1523_v61 }
 0x162   :  { %1063 = vst.msk [vmem:[%s1970_s3 + $0x30] sm:$0xf] %vm1050_vm1, %v1200_v32  ;;  %1526 = vrcp.f32 %v937_v15  ;;  %v935_v56 = vadd.f32 1.0, %v1525_v16 }
 0x163   :  { %1058 = vst.msk [vmem:[%s1970_s3 + $0x1c] sm:$0xf] %vm1050_vm1, %v1195_v55  ;;  %1528 = vrcp.f32 %v927_v4 }
 0x164   :  { %1530 = vrcp.f32 %v935_v56 }
 0x16c   :  { %v1527_v17 = vpop.eup %1526 }
 0x16d   :  { %v1529_v18 = vpop.eup %1528  ;;  %v985_v19 = vmul.f32 %v1527_v17, %v1874_v62 }
 0x16e   :  { %v1531_v20 = vpop.eup %1530  ;;  %v975_v21 = vmul.f32 %v1529_v18, %v1879_v1 }
 0x16f   :  { %v1203_v22 = vpack.c.bf16 %v985_v19, %v985_v19  ;;  %v983_v23 = vmul.f32 %v1531_v20, %v1882_v13 }
 0x170   :  { %v1193_v25 = vpack.c.bf16 %v975_v21, %v975_v21 }
 0x171   :  { %1066 = vst.msk [vmem:[%s1970_s3 + $0x3c] sm:$0xf] %vm1050_vm1, %v1203_v22  ;;  %v1201_v26 = vpack.c.bf16 %v983_v23, %v983_v23 }
 0x172   :  { %1056 = vst.msk [vmem:[%s1970_s3 + $0x14] sm:$0xf] %vm1050_vm1, %v1193_v25 }
 0x173   :  { %1064 = vst.msk [vmem:[%s1970_s3 + $0x34] sm:$0xf] %vm1050_vm1, %v1201_v26 }

// kernel: yolox_forward.49
= control target key start
LH: loop header
LB: loop body
LE: loop exit
PB: predicated region body
PF: predicated region fallthrough
CT: control target
= control target key end

     0   :  { %s507_s0 = inlined_call_operand.vmem [shape: bf16[128,128], index: 0, kind: input, shape index: {}]   ;;  %s508_s1 = inlined_call_operand.vmem [shape: bf16[128,9], index: 1, kind: input, shape index: {}]   ;;  %s509_s2 = inlined_call_operand.vmem [shape: f32[1,9], index: 2, kind: input, shape index: {}]   ;;  %s510_s3 = inlined_call_operand.hbm [shape: f32[128,9], index: 3, kind: output, shape index: {}]  }
   0x1   :  { %v365_v0 = vld [vmem:[%s508_s1] sm:$0xff]   ;;  %v366_v1 = vld [vmem:[%s508_s1 + $0x8] sm:$0xff]   ;;  %v367_v2 = vld [vmem:[%s508_s1 + $0x10] sm:$0xff]  }
   0x2   :  { %314 = vmatprep.subr.bf16.mxu0 %v365_v0  ;;  %346 = vmatprep.subr.bf16.mxu1 %v365_v0  ;;  %v368_v3 = vld [vmem:[%s508_s1 + $0x18] sm:$0xff]   ;;  %v373_v4 = vld [vmem:[%s507_s0] sm:$0xff]   ;;  %v370_v7 = vld [vmem:[%s508_s1 + $0x28] sm:$0xff]  }
   0x3   :  { %315 = vmatpush3.bf16.msra.mxu0 %v365_v0  ;;  %354 = vmatpush3.bf16.msra.mxu1 %v365_v0  ;;  %v374_v5 = vld [vmem:[%s507_s0 + $0x20] sm:$0xff]  }
   0x4   :  { %316 = vmatprep.subr.bf16.mxu0 %v366_v1  ;;  %347 = vmatprep.subr.bf16.mxu1 %v366_v1  ;;  %v369_v6 = vld [vmem:[%s508_s1 + $0x20] sm:$0xff]  }
   0x5   :  { %330 = vmatprep.mubr.bf16.mxu0 %v373_v4  ;;  %338 = vmatprep.mubr.bf16.mxu1 %v374_v5 }
   0x7   :  { %317 = vmatpush3.bf16.msra.mxu0 %v366_v1  ;;  %355 = vmatpush3.bf16.msra.mxu1 %v366_v1 }
   0x8   :  { %318 = vmatprep.subr.bf16.mxu0 %v367_v2  ;;  %348 = vmatprep.subr.bf16.mxu1 %v367_v2 }
   0xb   :  { %319 = vmatpush3.bf16.msra.mxu0 %v367_v2  ;;  %356 = vmatpush3.bf16.msra.mxu1 %v367_v2 }
   0xc   :  { %320 = vmatprep.subr.bf16.mxu0 %v368_v3  ;;  %349 = vmatprep.subr.bf16.mxu1 %v368_v3 }
   0xf   :  { %321 = vmatpush3.bf16.msra.mxu0 %v368_v3  ;;  %357 = vmatpush3.bf16.msra.mxu1 %v368_v3 }
  0x10   :  { %322 = vmatprep.subr.bf16.mxu0 %v369_v6  ;;  %350 = vmatprep.subr.bf16.mxu1 %v369_v6 }
  0x11   :  { %8 = vsyncpa [#allocation3], 0  ;;  %v371_v8 = vld [vmem:[%s508_s1 + $0x30] sm:$0xff]   ;;  %v372_v9 = vld [vmem:[%s508_s1 + $0x38] sm:$0xff]   ;;  %vm248_vm0 = vcmask 72704  }
  0x12   :  { %v375_v10 = vld [vmem:[%s507_s0 + $0x8] sm:$0xff]   ;;  %v377_v12 = vld [vmem:[%s507_s0 + $0x10] sm:$0xff]   ;;  %v379_v14 = vld [vmem:[%s507_s0 + $0x18] sm:$0xff]  }
  0x13   :  { %323 = vmatpush3.bf16.msra.mxu0 %v369_v6  ;;  %358 = vmatpush3.bf16.msra.mxu1 %v369_v6  ;;  %v376_v11 = vld [vmem:[%s507_s0 + $0x28] sm:$0xff]   ;;  %v378_v13 = vld [vmem:[%s507_s0 + $0x30] sm:$0xff]   ;;  %v380_v15 = vld [vmem:[%s507_s0 + $0x38] sm:$0xff]   ;;  %s405_s0 = smov [#allocation2]  }
  0x14   :  { %324 = vmatprep.subr.bf16.mxu0 %v370_v7  ;;  %351 = vmatprep.subr.bf16.mxu1 %v370_v7  ;;  %v281_v16 = vld [vmem:[%s509_s2] ss:$0 sm:$0xff]  ;;  %s270_s2 = sshll.u32 %s405_s0, 4  ;;  %s271_s2 = int_to_ptr.vmem [resolvable:$true] %s270_s2 }
  0x15   :  { %s381_s18 = scalar_lea.vmem %s271_s2, 2048  ;;  %p386_p1 = scmp.lt.s32.totalorder %s271_s2, %s271_s2 }
  0x16   :  { %p382_p0 = scmp.ne.s32.totalorder %s271_s2, %s381_s18  ;;  %p387_p2 = scmp.lt.s32.totalorder %s381_s18, %s381_s18 }
  0x17   :  { %325 = vmatpush3.bf16.msra.mxu0 %v370_v7  ;;  %359 = vmatpush3.bf16.msra.mxu1 %v370_v7 }
  0x18   :  { %326 = vmatprep.subr.bf16.mxu0 %v371_v8  ;;  %352 = vmatprep.subr.bf16.mxu1 %v371_v8  ;;  %p388_p3 = por %p387_p2, %p386_p1 }
  0x1a   :  { %p389_p4 = pnand %p388_p3, %p382_p0 }
  0x1b   :  { %327 = vmatpush3.bf16.msra.mxu0 %v371_v8  ;;  %360 = vmatpush3.bf16.msra.mxu1 %v371_v8 }
  0x1c   :  { %328 = vmatprep.subr.bf16.mxu0 %v372_v9  ;;  %353 = vmatprep.subr.bf16.mxu1 %v372_v9 }
  0x1f   :  { %329 = vmatpush3.bf16.msra.mxu0 %v372_v9  ;;  %361 = vmatpush3.bf16.msra.mxu1 %v372_v9 }
  0x22   :  { %331 = vmatmul.mubr.bf16.vlgmr.msra.gmra.mrb[0].mxu0 %v375_v10  ;;  %339 = vmatmul.mubr.bf16.vlgmr.msra.gmra.mrb[0].mxu1 %v376_v11 }
  0x23   :  { %334 = vmatprep.mubr.bf16.mxu0 %v377_v12  ;;  %342 = vmatprep.mubr.bf16.mxu1 %v378_v13 }
  0x2a   :  { %335 = vmatmul.mubr.bf16.gmra.mrb[4].mxu0 %v379_v14  ;;  %343 = vmatmul.mubr.bf16.gmra.mrb[4].mxu1 %v380_v15 }
  0xf5   :  { %v332_v17 = vpop.f32.mrb[0].mxu0  ;;  %v340_v18 = vpop.f32.mrb[0].mxu1 }
  0xf6   :  { %v194_v19 = vadd.f32 %v332_v17, %v281_v16  ;;  %v226_v20 = vadd.f32 %v340_v18, %v281_v16  ;;  %v185_v21 = vpop.f32.mrb[1].mxu0  ;;  %v217_v22 = vpop.f32.mrb[1].mxu1 }
  0xf7   :  { %v186_v23 = vadd.f32 %v281_v16, %v185_v21  ;;  %v218_v24 = vadd.f32 %v281_v16, %v217_v22  ;;  %v333_v25 = vpop.f32.mrb[2].mxu0  ;;  %v341_v26 = vpop.f32.mrb[2].mxu1 }
  0xf8   :  { %251 = vst.msk [vmem:[#allocation2 + $0x10] sm:$0xff] %vm248_vm0, %v194_v19  ;;  %259 = vst.msk [vmem:[#allocation2 + $0x50] sm:$0xff] %vm248_vm0, %v226_v20  ;;  %v197_v27 = vadd.f32 %v333_v25, %v281_v16  ;;  %v229_v28 = vadd.f32 %v341_v26, %v281_v16  ;;  %v188_v29 = vpop.f32.mrb[3].mxu0  ;;  %v220_v30 = vpop.f32.mrb[3].mxu1 }
  0xf9   :  { %249 = vst.msk [vmem:[#allocation2] sm:$0xff] %vm248_vm0, %v186_v23  ;;  %257 = vst.msk [vmem:[#allocation2 + $0x40] sm:$0xff] %vm248_vm0, %v218_v24  ;;  %v189_v31 = vadd.f32 %v281_v16, %v188_v29  ;;  %v221_v32 = vadd.f32 %v281_v16, %v220_v30 }
  0xfa   :  { %252 = vst.msk [vmem:[#allocation2 + $0x18] sm:$0xff] %vm248_vm0, %v197_v27  ;;  %260 = vst.msk [vmem:[#allocation2 + $0x58] sm:$0xff] %vm248_vm0, %v229_v28 }
  0xfb   :  { %250 = vst.msk [vmem:[#allocation2 + $0x8] sm:$0xff] %vm248_vm0, %v189_v31  ;;  %258 = vst.msk [vmem:[#allocation2 + $0x48] sm:$0xff] %vm248_vm0, %v221_v32 }
  0xfd   :  { %v336_v33 = vpop.f32.mrb[4].mxu0  ;;  %v344_v34 = vpop.f32.mrb[4].mxu1 }
  0xfe   :  { %v210_v35 = vadd.f32 %v336_v33, %v281_v16  ;;  %v242_v36 = vadd.f32 %v344_v34, %v281_v16  ;;  %v201_v37 = vpop.f32.mrb[5].mxu0  ;;  %v233_v38 = vpop.f32.mrb[5].mxu1 }
  0xff   :  { %v202_v39 = vadd.f32 %v281_v16, %v201_v37  ;;  %v234_v40 = vadd.f32 %v281_v16, %v233_v38  ;;  %v337_v41 = vpop.f32.mrb[6].mxu0  ;;  %v345_v42 = vpop.f32.mrb[6].mxu1 }
 0x100   :  { %255 = vst.msk [vmem:[#allocation2 + $0x30] sm:$0xff] %vm248_vm0, %v210_v35  ;;  %263 = vst.msk [vmem:[#allocation2 + $0x70] sm:$0xff] %vm248_vm0, %v242_v36  ;;  %v213_v43 = vadd.f32 %v337_v41, %v281_v16  ;;  %v245_v44 = vadd.f32 %v345_v42, %v281_v16  ;;  %v204_v45 = vpop.f32.mrb[7].mxu0  ;;  %v236_v46 = vpop.f32.mrb[7].mxu1 }
 0x101   :  { %253 = vst.msk [vmem:[#allocation2 + $0x20] sm:$0xff] %vm248_vm0, %v202_v39  ;;  %261 = vst.msk [vmem:[#allocation2 + $0x60] sm:$0xff] %vm248_vm0, %v234_v40  ;;  %v205_v47 = vadd.f32 %v281_v16, %v204_v45  ;;  %v237_v48 = vadd.f32 %v281_v16, %v236_v46 }
 0x102   :  { %256 = vst.msk [vmem:[#allocation2 + $0x38] sm:$0xff] %vm248_vm0, %v213_v43  ;;  %264 = vst.msk [vmem:[#allocation2 + $0x78] sm:$0xff] %vm248_vm0, %v245_v44 }
 0x103   :  { %254 = vst.msk [vmem:[#allocation2 + $0x28] sm:$0xff] %vm248_vm0, %v205_v47  ;;  %262 = vst.msk [vmem:[#allocation2 + $0x68] sm:$0xff] %vm248_vm0, %v237_v48 }
 0x104   :  { %392 = shalt.err (!%p389_p4)
}
 0x105   :  { %s393_s21 = scalar_lea.hbm %s510_s3, 2048 }
 0x106   :  { %p394_p5 = scmp.ne.s32.totalorder %s510_s3, %s393_s21  ;;  %p397_p6 = scmp.lt.u32.totalorder %s393_s21, %s510_s3 }
 0x108   :  { %p399_p7 = pnand %p397_p6, %p394_p5 }
 0x10a   :  { %402 = shalt.err (!%p399_p7)
}
 0x10b   :  { %s406_s26 = smov 128   ;;  %s407_s27 = smov 8  }
 0x10c   :  { %276 = dma.vmem_to_hbm [thread:$0]  %s271_s2, 2048, %s510_s3, [#allocation3], %s406_s26, %s406_s26, %s407_s27  }
 0x10d   :  { %403 = dma.done.wait [#allocation3], 2048  }
 0x10e   :  { %404 = vsyncadd [#allocation3], 4294965248 }
 0x10f   :  { %280 = vsyncpa [#allocation3], 1 }

</bundles_post_ra>
